<compile_context>
chip_gen: v5e
topology: v5e:2x2
jax: 0.10.0
libtpu: 0.0.40
codegen_flags: <defaults>
</compile_context>

<pallas_src>
import functools

import jax
import jax.numpy as jnp
from jax.experimental import pallas as pl
from jax.experimental.pallas import tpu as pltpu


# -----------------------------------------------------------------------------
# One Attblock (MHA + residual + LayerNorm + FFN + residual)
#   x: (Mq, D) f32 flattened queries (Mq = Bt*Lq)
#   y: (Mk, D) f32 flattened keys/values source (Mk = Bt*Lk)
#   keep_hb: (H*Bt, 1, Lk) bool, batch order (head, batch)
# -----------------------------------------------------------------------------
def _attblock(x, y, keep_hb, bt, w_qkv, w_fc, w1, w2, biases, *, n_head, d_k, d_v):
    b_qkv, b_fc, gamma, beta, b1, b2 = biases
    Mq, D = x.shape
    Mk = y.shape[0]
    Lq = Mq // bt
    Lk = Mk // bt
    H = n_head
    nq = H * d_k

    # ---- fused QKV projection: single big matmul per source tensor ----------
    qkv_x = jnp.dot(x.astype(jnp.bfloat16), w_qkv,
                    preferred_element_type=jnp.float32) + b_qkv       # (Mq, H*(2dk+dv))
    if y is x:                       # encoder: X is Y -> exactly ONE projection
        qkv_y = qkv_x
    else:                            # decoder: keys/values come from C
        qkv_y = jnp.dot(y.astype(jnp.bfloat16), w_qkv,
                        preferred_element_type=jnp.float32) + b_qkv   # (Mk, ...)

    # Split heads via cheap static lane slices; batch order (head, batch) so the
    # rearrangement is pure leading-dim reshapes (no 4-D transposes).
    def split_heads(t, off, dh, lx):
        parts = [t[:, off + h * dh: off + (h + 1) * dh] for h in range(H)]
        return jnp.stack(parts, axis=0).reshape(H * bt, lx, dh)

    q = split_heads(qkv_x, 0, d_k, Lq)          # (H*Bt, Lq, dk)
    k = split_heads(qkv_y, nq, d_k, Lk)         # (H*Bt, Lk, dk)
    v = split_heads(qkv_y, 2 * nq, d_v, Lk)     # (H*Bt, Lk, dv)

    # ---- per-(head, batch) scaled dot-product attention ----------------------
    scale = 1.0 / (float(d_k) ** 0.5)
    s = jnp.einsum('bqc,bkc->bqk',
                   q.astype(jnp.bfloat16), k.astype(jnp.bfloat16),
                   preferred_element_type=jnp.float32) * scale        # (H*Bt, Lq, Lk)
    s = jnp.where(keep_hb, s, -1e30)            # masked_fill(mask == 0, -inf)
    s = s - jnp.max(s, axis=-1, keepdims=True)
    e = jnp.exp(s)
    attn = e * pl.reciprocal(jnp.sum(e, axis=-1, keepdims=True), approx=True)

    o = jnp.einsum('bqk,bkc->bqc',
                   attn.astype(jnp.bfloat16), v.astype(jnp.bfloat16),
                   preferred_element_type=jnp.float32)                # (H*Bt, Lq, dv)

    # concat heads (lane concat) -> single out-proj matmul with original w_fc.
    o = o.reshape(H, Mq, d_v)
    o_cat = jnp.concatenate([o[h] for h in range(H)], axis=-1)        # (Mq, H*dv)
    mha = jnp.dot(o_cat.astype(jnp.bfloat16), w_fc,
                  preferred_element_type=jnp.float32) + b_fc + x      # + query residual

    # ---- LayerNorm(eps=1e-6), f32 --------------------------------------------
    mean = jnp.mean(mha, axis=-1, keepdims=True)
    var = jnp.mean((mha - mean) ** 2, axis=-1, keepdims=True)
    hnorm = (mha - mean) * jax.lax.rsqrt(var + 1e-6) * gamma + beta

    # ---- position-wise FFN + residual (dropout == identity in eval) ----------
    h1 = jnp.maximum(
        jnp.dot(hnorm.astype(jnp.bfloat16), w1,
                preferred_element_type=jnp.float32) + b1, 0.0)
    h2 = jnp.dot(h1.astype(jnp.bfloat16), w2,
                 preferred_element_type=jnp.float32) + b2
    return h2 + hnorm


# -----------------------------------------------------------------------------
# Fused Perception kernel: Bt batch elements per grid step, encoder -> decoder.
# The intermediate C never leaves VMEM.
# -----------------------------------------------------------------------------
def perception_kernel(mem_ref, cur_ref, mask_ref, small_ref,
                      e_wqkv, e_wfc, e_w1, e_w2,
                      d_wqkv, d_wfc, d_w1, d_w2,
                      o_ref, *, n_head, d_k, d_v):
    Bt, L, D = mem_ref.shape
    H = n_head
    qkv_cols = H * (2 * d_k + d_v)

    mem = mem_ref[...].reshape(Bt * L, D)            # (Bt*L, D) f32
    cur = cur_ref[...].reshape(Bt, D)                # (Bt, D)   f32
    small = small_ref[...]                           # (12, W)   f32 packed slab

    # mask predicate: computed once per grid step, shared by encoder & decoder
    m = jnp.broadcast_to(mask_ref[...][None, :, None, :], (H, Bt, 1, L))
    keep_hb = m.reshape(H * Bt, 1, L) > 0.0

    def biases(row0):
        return (small[row0 + 0:row0 + 1, :qkv_cols],   # b_qkv
                small[row0 + 1:row0 + 2, :D],          # b_fc
                small[row0 + 2:row0 + 3, :D],          # gamma
                small[row0 + 3:row0 + 4, :D],          # beta
                small[row0 + 4:row0 + 5, :D],          # b1
                small[row0 + 5:row0 + 6, :D])          # b2

    # Encoder: self-attention over memory; C stays flattened in VMEM/vregs.
    C = _attblock(mem, mem, keep_hb, Bt,
                  e_wqkv[...], e_wfc[...], e_w1[...], e_w2[...], biases(0),
                  n_head=H, d_k=d_k, d_v=d_v)
    # Decoder: Bt stacked query rows attend over C.
    x = _attblock(cur, C, keep_hb, Bt,
                  d_wqkv[...], d_wfc[...], d_w1[...], d_w2[...], biases(6),
                  n_head=H, d_k=d_k, d_v=d_v)

    o_ref[...] = x                                   # one (Bt, D) store per step


# -----------------------------------------------------------------------------
# Host-side parameter prep: fused QKV weight, bf16 MXU weights, packed biases
# -----------------------------------------------------------------------------
def prep_attblock_params(params):
    (w_qs, b_qs, w_ks, b_ks, w_vs, b_vs, w_fc, b_fc,
     gamma, beta, w_fc1, b_fc1, w_fc2, b_fc2) = params
    w_qkv = jnp.concatenate([w_qs, w_ks, w_vs], axis=1).astype(jnp.bfloat16)
    b_qkv = jnp.concatenate([b_qs, b_ks, b_vs], axis=1).astype(jnp.float32)
    weights = (w_qkv,
               w_fc.astype(jnp.bfloat16),
               w_fc1.astype(jnp.bfloat16),
               w_fc2.astype(jnp.bfloat16))
    small = (b_qkv, b_fc.astype(jnp.float32), gamma.astype(jnp.float32),
             beta.astype(jnp.float32), b_fc1.astype(jnp.float32),
             b_fc2.astype(jnp.float32))
    return weights, small


def pack_small_params(small_enc, small_dec):
    rows = list(small_enc) + list(small_dec)          # 12 rows of (1, w_i)
    width = max(int(r.shape[1]) for r in rows)
    padded = [jnp.pad(r, ((0, 0), (0, width - r.shape[1]))) for r in rows]
    return jnp.concatenate(padded, axis=0)            # (12, width) f32


def _choose_block_b(B, L, target_rows=256):
    """Largest batch block with legal 2-D tiles; prefer >=2 grid steps (v7x)."""
    cands = [d for d in range(1, B + 1) if B % d == 0 and (d == B or d % 8 == 0)]
    fitting = [d for d in cands if d * L <= target_rows]
    bt = max(fitting) if fitting else min(cands)
    if B // bt == 1 and B > 1:
        two_step = [d for d in cands if B // d == 2]   # give both v7x TCs work
        if two_step:
            bt = max(two_step)
    return bt


def _cost_estimate(B, L, D, n_head, d_k, d_v, weights, small):
    H = n_head
    qkv_cols = H * (2 * d_k + d_v)
    f = 0
    # encoder
    f += 2 * B * L * D * qkv_cols                 # fused QKV
    f += 2 * H * B * L * L * (d_k + d_v)          # scores + attn @ V
    f += 2 * B * L * (H * d_v) * D                # out projection
    f += 4 * B * L * D * D                        # FFN
    # decoder
    f += 2 * B * D * qkv_cols + 2 * B * L * D * qkv_cols
    f += 2 * H * B * L * (d_k + d_v)
    f += 2 * B * (H * d_v) * D
    f += 4 * B * D * D
    trans = H * B * L * L + H * B * L + 4 * B * (L + 1)
    bytes_io = 4 * (B * L * D + B * D + B * L + B * D)
    bytes_w = sum(int(w.size) * int(w.dtype.itemsize) for w in weights)
    bytes_w += int(small.size) * 4
    return pl.CostEstimate(flops=int(f), transcendentals=int(trans),
                           bytes_accessed=int(bytes_io + bytes_w))


# -----------------------------------------------------------------------------
# Perception forward (single fused pallas_call)
# -----------------------------------------------------------------------------
def perception_forward(embedded_memory, curr_embedding, memory_masks,
                       enc_params, dec_params, *, n_head, d_k, d_v,
                       block_b=None):
    B, L, D = embedded_memory.shape
    if block_b is None:
        block_b = _choose_block_b(B, L)
    assert B % block_b == 0 and (block_b % 8 == 0 or block_b == B)
    nb = B // block_b

    enc_w, enc_s = prep_attblock_params(enc_params)
    dec_w, dec_s = prep_attblock_params(dec_params)
    small = pack_small_params(enc_s, dec_s)
    weights = list(enc_w) + list(dec_w)

    kernel = functools.partial(perception_kernel, n_head=n_head, d_k=d_k, d_v=d_v)
    cost = _cost_estimate(B, L, D, n_head, d_k, d_v, weights, small)

    def run(buffered_weights):
        def wspec(p):
            nd = p.ndim
            kwargs = {}
            if buffered_weights:
                # grid-invariant blocks: single buffer (VMEM saving, esp. v7x)
                kwargs = dict(pipeline_mode=pl.Buffered(1))
            return pl.BlockSpec(tuple(int(s) for s in p.shape),
                                lambda b, _nd=nd: (0,) * _nd, **kwargs)

        in_specs = [
            pl.BlockSpec((block_b, L, D), lambda b: (b, 0, 0)),   # embedded_memory
            pl.BlockSpec((block_b, 1, D), lambda b: (b, 0, 0)),   # curr_embedding
            pl.BlockSpec((block_b, L), lambda b: (b, 0)),         # memory_masks
            wspec(small),
        ] + [wspec(w) for w in weights]
        out_specs = pl.BlockSpec((block_b, D), lambda b: (b, 0))

        return pl.pallas_call(
            kernel,
            grid=(nb,),
            in_specs=in_specs,
            out_specs=out_specs,
            out_shape=jax.ShapeDtypeStruct((B, D), jnp.float32),
            compiler_params=pltpu.CompilerParams(
                dimension_semantics=("parallel",),      # v7x: 2 TCs split batch
                # 64 MiB <= physical VMEM on v5e/v6e/v7x; raise toward 128 MiB
                # on v5e/v6e when scaling block_b / D / L.
                vmem_limit_bytes=64 * 1024 * 1024),
            cost_estimate=cost,
        )(embedded_memory, curr_embedding, memory_masks, small, *weights)

    try:
        return run(True)
    except Exception:
        # pipeline_mode=pl.Buffered(1) unsupported by this JAX build -> default
        # double-buffered weights (correctness identical, slightly more VMEM).
        return run(False)


# -----------------------------------------------------------------------------
# Deterministic parameter init (synthetic; Linear stored as (in, out))
# -----------------------------------------------------------------------------
def init_attblock_params(key, n_head, d_model, d_k, d_v):
    ks = jax.random.split(key, 12)

    def lin(kw, kb, din, dout):
        w = jax.random.normal(kw, (din, dout), jnp.float32) * 0.05
        b = jax.random.normal(kb, (1, dout), jnp.float32) * 0.01
        return w, b

    w_qs, b_qs = lin(ks[0], ks[1], d_model, n_head * d_k)
    w_ks, b_ks = lin(ks[2], ks[3], d_model, n_head * d_k)
    w_vs, b_vs = lin(ks[4], ks[5], d_model, n_head * d_v)
    w_fc, b_fc = lin(ks[6], ks[7], n_head * d_v, d_model)
    gamma = jnp.ones((1, d_model), jnp.float32)
    beta = jnp.zeros((1, d_model), jnp.float32)
    w_fc1, b_fc1 = lin(ks[8], ks[9], d_model, d_model)
    w_fc2, b_fc2 = lin(ks[10], ks[11], d_model, d_model)
    return (w_qs, b_qs, w_ks, b_ks, w_vs, b_vs, w_fc, b_fc,
            gamma, beta, w_fc1, b_fc1, w_fc2, b_fc2)


# -----------------------------------------------------------------------------
# Pure-JAX f32 reference (mirrors the PyTorch semantics) for a numerical check
# -----------------------------------------------------------------------------
def attblock_ref(X, Y, mask, params, *, n_head, d_k, d_v):
    (w_qs, b_qs, w_ks, b_ks, w_vs, b_vs, w_fc, b_fc,
     gamma, beta, w_fc1, b_fc1, w_fc2, b_fc2) = params
    B, Lq, D = X.shape
    Lk = Y.shape[1]
    q = (X @ w_qs + b_qs).reshape(B, Lq, n_head, d_k).transpose(0, 2, 1, 3)
    k = (Y @ w_ks + b_ks).reshape(B, Lk, n_head, d_k).transpose(0, 2, 1, 3)
    v = (Y @ w_vs + b_vs).reshape(B, Lk, n_head, d_v).transpose(0, 2, 1, 3)
    s = jnp.einsum('bhqd,bhkd->bhqk', q, k) / (d_k ** 0.5)
    s = jnp.where(mask[:, None, :, :] > 0.0, s, -1e30)
    attn = jax.nn.softmax(s, axis=-1)
    o = jnp.einsum('bhqk,bhkd->bhqd', attn, v).transpose(0, 2, 1, 3).reshape(B, Lq, -1)
    mha = o @ w_fc + b_fc + X
    mean = mha.mean(-1, keepdims=True)
    var = ((mha - mean) ** 2).mean(-1, keepdims=True)
    Hn = (mha - mean) / jnp.sqrt(var + 1e-6) * gamma + beta
    return jnp.maximum(Hn @ w_fc1 + b_fc1, 0.0) @ w_fc2 + b_fc2 + Hn


def perception_ref(embedded_memory, curr_embedding, memory_masks,
                   enc_params, dec_params, *, n_head, d_k, d_v):
    mask3 = memory_masks[:, None, :]
    C = attblock_ref(embedded_memory, embedded_memory, mask3, enc_params,
                     n_head=n_head, d_k=d_k, d_v=d_v)
    x = attblock_ref(curr_embedding, C, mask3, dec_params,
                     n_head=n_head, d_k=d_k, d_v=d_v)
    return x[:, 0, :]


# -----------------------------------------------------------------------------
if __name__ == "__main__":
    # cfg.attention: n_head=4, d_model=32, d_k=8, d_v=8; B=16 memory slots L=8
    B, L, D = 16, 8, 32
    n_head, d_k, d_v = 4, 8, 8

    key = jax.random.PRNGKey(0)
    k_mem, k_cur, k_enc, k_dec = jax.random.split(key, 4)

    embedded_memory = jax.random.normal(k_mem, (B, L, D), jnp.float32)
    curr_embedding = jax.random.normal(k_cur, (B, 1, D), jnp.float32)
    memory_masks = jnp.ones((B, L), jnp.float32)
    memory_masks = memory_masks.at[1, 5:].set(0.0)
    memory_masks = memory_masks.at[3, 2:].set(0.0)
    memory_masks = memory_masks.at[10, 6:].set(0.0)

    enc_params = init_attblock_params(k_enc, n_head, D, d_k, d_v)
    dec_params = init_attblock_params(k_dec, n_head, D, d_k, d_v)

    out = perception_forward(embedded_memory, curr_embedding, memory_masks,
                             enc_params, dec_params,
                             n_head=n_head, d_k=d_k, d_v=d_v)
    out = jax.block_until_ready(out)

    ref = perception_ref(embedded_memory, curr_embedding, memory_masks,
                         enc_params, dec_params,
                         n_head=n_head, d_k=d_k, d_v=d_v)
    assert out.shape == (B, D)
    # bf16 MXU inputs + approx softmax reciprocal vs f32 reference.
    assert jnp.allclose(out, ref, atol=3e-2, rtol=3e-2), "mismatch vs JAX reference"

    print("KERNEL_OK")
</pallas_src>

<mosaic_0001>
module attributes {stable_mosaic.version = 11 : i64} {
  func.func @perception_kernel(%arg0: i32, %arg1: memref<8x8x32xf32, #tpu.memory_space<vmem>>, %arg2: memref<8x1x32xf32, #tpu.memory_space<vmem>>, %arg3: memref<8x8xf32, #tpu.memory_space<vmem>>, %arg4: memref<12x96xf32, #tpu.memory_space<vmem>>, %arg5: memref<32x96xbf16, #tpu.memory_space<vmem>>, %arg6: memref<32x32xbf16, #tpu.memory_space<vmem>>, %arg7: memref<32x32xbf16, #tpu.memory_space<vmem>>, %arg8: memref<32x32xbf16, #tpu.memory_space<vmem>>, %arg9: memref<32x96xbf16, #tpu.memory_space<vmem>>, %arg10: memref<32x32xbf16, #tpu.memory_space<vmem>>, %arg11: memref<32x32xbf16, #tpu.memory_space<vmem>>, %arg12: memref<32x32xbf16, #tpu.memory_space<vmem>>, %arg13: memref<8x32xf32, #tpu.memory_space<vmem>>) attributes {dimension_semantics = [#tpu.dimension_semantics<parallel>], iteration_bounds = array<i64: 2>, scalar_prefetch = 0 : i64, scratch_operands = 0 : i64, tpu.core_type = #tpu.core_type<tc>, window_params = [{transform_indices = @transform_0, window_bounds = array<i64: 8, 8, 32>}, {transform_indices = @transform_1, window_bounds = array<i64: 8, 1, 32>}, {transform_indices = @transform_2, window_bounds = array<i64: 8, 8>}, {pipeline_mode = #tpu.pipeline_mode<synchronous>, transform_indices = @transform_3, window_bounds = array<i64: 12, 96>}, {pipeline_mode = #tpu.pipeline_mode<synchronous>, transform_indices = @transform_4, window_bounds = array<i64: 32, 96>}, {pipeline_mode = #tpu.pipeline_mode<synchronous>, transform_indices = @transform_5, window_bounds = array<i64: 32, 32>}, {pipeline_mode = #tpu.pipeline_mode<synchronous>, transform_indices = @transform_6, window_bounds = array<i64: 32, 32>}, {pipeline_mode = #tpu.pipeline_mode<synchronous>, transform_indices = @transform_7, window_bounds = array<i64: 32, 32>}, {pipeline_mode = #tpu.pipeline_mode<synchronous>, transform_indices = @transform_8, window_bounds = array<i64: 32, 96>}, {pipeline_mode = #tpu.pipeline_mode<synchronous>, transform_indices = @transform_9, window_bounds = array<i64: 32, 32>}, {pipeline_mode = #tpu.pipeline_mode<synchronous>, transform_indices = @transform_10, window_bounds = array<i64: 32, 32>}, {pipeline_mode = #tpu.pipeline_mode<synchronous>, transform_indices = @transform_11, window_bounds = array<i64: 32, 32>}, {transform_indices = @transform_12, window_bounds = array<i64: 8, 32>}]} {
    %c0 = arith.constant 0 : index
    %c0_0 = arith.constant 0 : index
    %c0_1 = arith.constant 0 : index
    %0 = vector.load %arg1[%c0, %c0_0, %c0_1] : memref<8x8x32xf32, #tpu.memory_space<vmem>>, vector<8x8x32xf32>
    %1 = vector.shape_cast %0 : vector<8x8x32xf32> to vector<64x32xf32>
    %c0_2 = arith.constant 0 : index
    %c0_3 = arith.constant 0 : index
    %c0_4 = arith.constant 0 : index
    %2 = vector.load %arg2[%c0_2, %c0_3, %c0_4] : memref<8x1x32xf32, #tpu.memory_space<vmem>>, vector<8x1x32xf32>
    %3 = vector.shape_cast %2 : vector<8x1x32xf32> to vector<8x32xf32>
    %c0_5 = arith.constant 0 : index
    %c0_6 = arith.constant 0 : index
    %4 = vector.load %arg4[%c0_5, %c0_6] : memref<12x96xf32, #tpu.memory_space<vmem>>, vector<12x96xf32>
    %c0_7 = arith.constant 0 : index
    %c0_8 = arith.constant 0 : index
    %5 = vector.load %arg3[%c0_7, %c0_8] : memref<8x8xf32, #tpu.memory_space<vmem>>, vector<8x8xf32>
    %6 = vector.shape_cast %5 : vector<8x8xf32> to vector<1x8x1x8xf32>
    %7 = vector.shape_cast %6 : vector<1x8x1x8xf32> to vector<1x8x1x8xf32>
    %8 = vector.broadcast %7 : vector<1x8x1x8xf32> to vector<4x8x1x8xf32>
    %9 = vector.shape_cast %8 : vector<4x8x1x8xf32> to vector<32x1x8xf32>
    %cst = arith.constant 0.000000e+00 : f32
    %10 = vector.broadcast %cst : f32 to vector<32x1x8xf32>
    %11 = arith.cmpf ogt, %9, %10 : vector<32x1x8xf32>
    %c0_9 = arith.constant 0 : index
    %c0_10 = arith.constant 0 : index
    %12 = vector.load %arg5[%c0_9, %c0_10] : memref<32x96xbf16, #tpu.memory_space<vmem>>, vector<32x96xbf16>
    %c0_11 = arith.constant 0 : index
    %c0_12 = arith.constant 0 : index
    %13 = vector.load %arg6[%c0_11, %c0_12] : memref<32x32xbf16, #tpu.memory_space<vmem>>, vector<32x32xbf16>
    %c0_13 = arith.constant 0 : index
    %c0_14 = arith.constant 0 : index
    %14 = vector.load %arg7[%c0_13, %c0_14] : memref<32x32xbf16, #tpu.memory_space<vmem>>, vector<32x32xbf16>
    %c0_15 = arith.constant 0 : index
    %c0_16 = arith.constant 0 : index
    %15 = vector.load %arg8[%c0_15, %c0_16] : memref<32x32xbf16, #tpu.memory_space<vmem>>, vector<32x32xbf16>
    %16 = vector.extract_strided_slice %4 {offsets = [0, 0], sizes = [1, 96], strides = [1, 1]} : vector<12x96xf32> to vector<1x96xf32>
    %17 = vector.extract_strided_slice %4 {offsets = [1, 0], sizes = [1, 32], strides = [1, 1]} : vector<12x96xf32> to vector<1x32xf32>
    %18 = vector.extract_strided_slice %4 {offsets = [2, 0], sizes = [1, 32], strides = [1, 1]} : vector<12x96xf32> to vector<1x32xf32>
    %19 = vector.extract_strided_slice %4 {offsets = [3, 0], sizes = [1, 32], strides = [1, 1]} : vector<12x96xf32> to vector<1x32xf32>
    %20 = vector.extract_strided_slice %4 {offsets = [4, 0], sizes = [1, 32], strides = [1, 1]} : vector<12x96xf32> to vector<1x32xf32>
    %21 = vector.extract_strided_slice %4 {offsets = [5, 0], sizes = [1, 32], strides = [1, 1]} : vector<12x96xf32> to vector<1x32xf32>
    %22 = arith.truncf %1 : vector<64x32xf32> to vector<64x32xbf16>
    %cst_17 = arith.constant dense<0.000000e+00> : vector<64x96xf32>
    %23 = tpu.matmul %22, %12, %cst_17 {dimension_numbers = #tpu.dot_dimension_numbers<[1], [0], [0], [1], [0, 0, 1, 1], [], []>} : vector<64x32xbf16>, vector<32x96xbf16>, vector<64x96xf32> -> vector<64x96xf32>
    %24 = vector.broadcast %16 : vector<1x96xf32> to vector<64x96xf32>
    %25 = arith.addf %23, %24 : vector<64x96xf32>
    %26 = vector.extract_strided_slice %25 {offsets = [0, 0], sizes = [64, 8], strides = [1, 1]} : vector<64x96xf32> to vector<64x8xf32>
    %27 = vector.extract_strided_slice %25 {offsets = [0, 8], sizes = [64, 8], strides = [1, 1]} : vector<64x96xf32> to vector<64x8xf32>
    %28 = vector.extract_strided_slice %25 {offsets = [0, 16], sizes = [64, 8], strides = [1, 1]} : vector<64x96xf32> to vector<64x8xf32>
    %29 = vector.extract_strided_slice %25 {offsets = [0, 24], sizes = [64, 8], strides = [1, 1]} : vector<64x96xf32> to vector<64x8xf32>
    %30 = vector.shape_cast %26 : vector<64x8xf32> to vector<1x64x8xf32>
    %31 = vector.shape_cast %27 : vector<64x8xf32> to vector<1x64x8xf32>
    %32 = vector.shape_cast %28 : vector<64x8xf32> to vector<1x64x8xf32>
    %33 = vector.shape_cast %29 : vector<64x8xf32> to vector<1x64x8xf32>
    %34 = tpu.concatenate %30, %31, %32, %33 in 0 : vector<1x64x8xf32>, vector<1x64x8xf32>, vector<1x64x8xf32>, vector<1x64x8xf32> -> vector<4x64x8xf32>
    %35 = vector.shape_cast %34 : vector<4x64x8xf32> to vector<32x8x8xf32>
    %36 = vector.extract_strided_slice %25 {offsets = [0, 32], sizes = [64, 8], strides = [1, 1]} : vector<64x96xf32> to vector<64x8xf32>
    %37 = vector.extract_strided_slice %25 {offsets = [0, 40], sizes = [64, 8], strides = [1, 1]} : vector<64x96xf32> to vector<64x8xf32>
    %38 = vector.extract_strided_slice %25 {offsets = [0, 48], sizes = [64, 8], strides = [1, 1]} : vector<64x96xf32> to vector<64x8xf32>
    %39 = vector.extract_strided_slice %25 {offsets = [0, 56], sizes = [64, 8], strides = [1, 1]} : vector<64x96xf32> to vector<64x8xf32>
    %40 = vector.shape_cast %36 : vector<64x8xf32> to vector<1x64x8xf32>
    %41 = vector.shape_cast %37 : vector<64x8xf32> to vector<1x64x8xf32>
    %42 = vector.shape_cast %38 : vector<64x8xf32> to vector<1x64x8xf32>
    %43 = vector.shape_cast %39 : vector<64x8xf32> to vector<1x64x8xf32>
    %44 = tpu.concatenate %40, %41, %42, %43 in 0 : vector<1x64x8xf32>, vector<1x64x8xf32>, vector<1x64x8xf32>, vector<1x64x8xf32> -> vector<4x64x8xf32>
    %45 = vector.shape_cast %44 : vector<4x64x8xf32> to vector<32x8x8xf32>
    %46 = vector.extract_strided_slice %25 {offsets = [0, 64], sizes = [64, 8], strides = [1, 1]} : vector<64x96xf32> to vector<64x8xf32>
    %47 = vector.extract_strided_slice %25 {offsets = [0, 72], sizes = [64, 8], strides = [1, 1]} : vector<64x96xf32> to vector<64x8xf32>
    %48 = vector.extract_strided_slice %25 {offsets = [0, 80], sizes = [64, 8], strides = [1, 1]} : vector<64x96xf32> to vector<64x8xf32>
    %49 = vector.extract_strided_slice %25 {offsets = [0, 88], sizes = [64, 8], strides = [1, 1]} : vector<64x96xf32> to vector<64x8xf32>
    %50 = vector.shape_cast %46 : vector<64x8xf32> to vector<1x64x8xf32>
    %51 = vector.shape_cast %47 : vector<64x8xf32> to vector<1x64x8xf32>
    %52 = vector.shape_cast %48 : vector<64x8xf32> to vector<1x64x8xf32>
    %53 = vector.shape_cast %49 : vector<64x8xf32> to vector<1x64x8xf32>
    %54 = tpu.concatenate %50, %51, %52, %53 in 0 : vector<1x64x8xf32>, vector<1x64x8xf32>, vector<1x64x8xf32>, vector<1x64x8xf32> -> vector<4x64x8xf32>
    %55 = vector.shape_cast %54 : vector<4x64x8xf32> to vector<32x8x8xf32>
    %56 = arith.truncf %35 : vector<32x8x8xf32> to vector<32x8x8xbf16>
    %57 = arith.truncf %45 : vector<32x8x8xf32> to vector<32x8x8xbf16>
    "tpu.trace_start"() <{level = 10 : i32, message = "bqc,bkc->bqk"}> : () -> ()
    %cst_18 = arith.constant dense<0.000000e+00> : vector<32x8x8xf32>
    %58 = tpu.matmul %56, %57, %cst_18 {dimension_numbers = #tpu.dot_dimension_numbers<[2], [2], [1], [1], [0, 0, 0, 1, 1, 1], [0], [0]>} : vector<32x8x8xbf16>, vector<32x8x8xbf16>, vector<32x8x8xf32> -> vector<32x8x8xf32>
    "tpu.trace_stop"() : () -> ()
    %cst_19 = arith.constant 0.353553385 : f32
    %59 = vector.broadcast %cst_19 : f32 to vector<32x8x8xf32>
    %60 = arith.mulf %58, %59 : vector<32x8x8xf32>
    %cst_20 = arith.constant -1.000000e+30 : f32
    %61 = vector.shape_cast %11 : vector<32x1x8xi1> to vector<32x1x8xi1>
    %62 = vector.broadcast %61 : vector<32x1x8xi1> to vector<32x8x8xi1>
    %63 = vector.broadcast %cst_20 : f32 to vector<32x8x8xf32>
    %64 = arith.select %62, %60, %63 : vector<32x8x8xi1>, vector<32x8x8xf32>
    %cst_21 = arith.constant dense<0xFF800000> : vector<32x8xf32>
    %65 = vector.multi_reduction <maximumf>, %64, %cst_21 [2] : vector<32x8x8xf32> to vector<32x8xf32>
    %66 = vector.shape_cast %65 : vector<32x8xf32> to vector<32x8x1xf32>
    %67 = vector.broadcast %66 : vector<32x8x1xf32> to vector<32x8x8xf32>
    %68 = arith.subf %64, %67 : vector<32x8x8xf32>
    %69 = math.exp %68 : vector<32x8x8xf32>
    %cst_22 = arith.constant dense<0.000000e+00> : vector<32x8xf32>
    %70 = vector.multi_reduction <add>, %69, %cst_22 [2] : vector<32x8x8xf32> to vector<32x8xf32>
    %71 = vector.shape_cast %70 : vector<32x8xf32> to vector<32x8x1xf32>
    %72 = tpu.reciprocal %71 {approx = true} : vector<32x8x1xf32> -> vector<32x8x1xf32>
    %73 = vector.broadcast %72 : vector<32x8x1xf32> to vector<32x8x8xf32>
    %74 = arith.mulf %69, %73 : vector<32x8x8xf32>
    %75 = arith.truncf %74 : vector<32x8x8xf32> to vector<32x8x8xbf16>
    %76 = arith.truncf %55 : vector<32x8x8xf32> to vector<32x8x8xbf16>
    "tpu.trace_start"() <{level = 10 : i32, message = "bqk,bkc->bqc"}> : () -> ()
    %cst_23 = arith.constant dense<0.000000e+00> : vector<32x8x8xf32>
    %77 = tpu.matmul %75, %76, %cst_23 {dimension_numbers = #tpu.dot_dimension_numbers<[2], [1], [1], [2], [0, 0, 0, 1, 1, 2], [0], [0]>} : vector<32x8x8xbf16>, vector<32x8x8xbf16>, vector<32x8x8xf32> -> vector<32x8x8xf32>
    "tpu.trace_stop"() : () -> ()
    %78 = vector.shape_cast %77 : vector<32x8x8xf32> to vector<4x64x8xf32>
    %79 = vector.extract_strided_slice %78 {offsets = [0, 0, 0], sizes = [1, 64, 8], strides = [1, 1, 1]} : vector<4x64x8xf32> to vector<1x64x8xf32>
    %80 = vector.shape_cast %79 : vector<1x64x8xf32> to vector<64x8xf32>
    %81 = vector.extract_strided_slice %78 {offsets = [1, 0, 0], sizes = [1, 64, 8], strides = [1, 1, 1]} : vector<4x64x8xf32> to vector<1x64x8xf32>
    %82 = vector.shape_cast %81 : vector<1x64x8xf32> to vector<64x8xf32>
    %83 = vector.extract_strided_slice %78 {offsets = [2, 0, 0], sizes = [1, 64, 8], strides = [1, 1, 1]} : vector<4x64x8xf32> to vector<1x64x8xf32>
    %84 = vector.shape_cast %83 : vector<1x64x8xf32> to vector<64x8xf32>
    %85 = vector.extract_strided_slice %78 {offsets = [3, 0, 0], sizes = [1, 64, 8], strides = [1, 1, 1]} : vector<4x64x8xf32> to vector<1x64x8xf32>
    %86 = vector.shape_cast %85 : vector<1x64x8xf32> to vector<64x8xf32>
    %87 = tpu.concatenate %80, %82, %84, %86 in 1 : vector<64x8xf32>, vector<64x8xf32>, vector<64x8xf32>, vector<64x8xf32> -> vector<64x32xf32>
    %88 = arith.truncf %87 : vector<64x32xf32> to vector<64x32xbf16>
    %cst_24 = arith.constant dense<0.000000e+00> : vector<64x32xf32>
    %89 = tpu.matmul %88, %13, %cst_24 {dimension_numbers = #tpu.dot_dimension_numbers<[1], [0], [0], [1], [0, 0, 1, 1], [], []>} : vector<64x32xbf16>, vector<32x32xbf16>, vector<64x32xf32> -> vector<64x32xf32>
    %90 = vector.broadcast %17 : vector<1x32xf32> to vector<64x32xf32>
    %91 = arith.addf %89, %90 : vector<64x32xf32>
    %92 = arith.addf %91, %1 : vector<64x32xf32>
    %cst_25 = arith.constant dense<0.000000e+00> : vector<64xf32>
    %93 = vector.multi_reduction <add>, %92, %cst_25 [1] : vector<64x32xf32> to vector<64xf32>
    %94 = vector.shape_cast %93 : vector<64xf32> to vector<64x1xf32>
    %cst_26 = arith.constant 3.200000e+01 : f32
    %95 = vector.broadcast %cst_26 : f32 to vector<64x1xf32>
    %96 = arith.divf %94, %95 : vector<64x1xf32>
    %97 = vector.broadcast %96 : vector<64x1xf32> to vector<64x32xf32>
    %98 = arith.subf %92, %97 : vector<64x32xf32>
    %99 = arith.mulf %98, %98 : vector<64x32xf32>
    %cst_27 = arith.constant dense<0.000000e+00> : vector<64xf32>
    %100 = vector.multi_reduction <add>, %99, %cst_27 [1] : vector<64x32xf32> to vector<64xf32>
    %101 = vector.shape_cast %100 : vector<64xf32> to vector<64x1xf32>
    %cst_28 = arith.constant 3.200000e+01 : f32
    %102 = vector.broadcast %cst_28 : f32 to vector<64x1xf32>
    %103 = arith.divf %101, %102 : vector<64x1xf32>
    %104 = vector.broadcast %96 : vector<64x1xf32> to vector<64x32xf32>
    %105 = arith.subf %92, %104 : vector<64x32xf32>
    %cst_29 = arith.constant 9.99999997E-7 : f32
    %106 = vector.broadcast %cst_29 : f32 to vector<64x1xf32>
    %107 = arith.addf %103, %106 : vector<64x1xf32>
    %108 = math.rsqrt %107 : vector<64x1xf32>
    %109 = vector.broadcast %108 : vector<64x1xf32> to vector<64x32xf32>
    %110 = arith.mulf %105, %109 : vector<64x32xf32>
    %111 = vector.broadcast %18 : vector<1x32xf32> to vector<64x32xf32>
    %112 = arith.mulf %110, %111 : vector<64x32xf32>
    %113 = vector.broadcast %19 : vector<1x32xf32> to vector<64x32xf32>
    %114 = arith.addf %112, %113 : vector<64x32xf32>
    %115 = arith.truncf %114 : vector<64x32xf32> to vector<64x32xbf16>
    %cst_30 = arith.constant dense<0.000000e+00> : vector<64x32xf32>
    %116 = tpu.matmul %115, %14, %cst_30 {dimension_numbers = #tpu.dot_dimension_numbers<[1], [0], [0], [1], [0, 0, 1, 1], [], []>} : vector<64x32xbf16>, vector<32x32xbf16>, vector<64x32xf32> -> vector<64x32xf32>
    %117 = vector.broadcast %20 : vector<1x32xf32> to vector<64x32xf32>
    %118 = arith.addf %116, %117 : vector<64x32xf32>
    %cst_31 = arith.constant 0.000000e+00 : f32
    %119 = vector.broadcast %cst_31 : f32 to vector<64x32xf32>
    %120 = arith.maximumf %118, %119 : vector<64x32xf32>
    %121 = arith.truncf %120 : vector<64x32xf32> to vector<64x32xbf16>
    %cst_32 = arith.constant dense<0.000000e+00> : vector<64x32xf32>
    %122 = tpu.matmul %121, %15, %cst_32 {dimension_numbers = #tpu.dot_dimension_numbers<[1], [0], [0], [1], [0, 0, 1, 1], [], []>} : vector<64x32xbf16>, vector<32x32xbf16>, vector<64x32xf32> -> vector<64x32xf32>
    %123 = vector.broadcast %21 : vector<1x32xf32> to vector<64x32xf32>
    %124 = arith.addf %122, %123 : vector<64x32xf32>
    %125 = arith.addf %124, %114 : vector<64x32xf32>
    %c0_33 = arith.constant 0 : index
    %c0_34 = arith.constant 0 : index
    %126 = vector.load %arg9[%c0_33, %c0_34] : memref<32x96xbf16, #tpu.memory_space<vmem>>, vector<32x96xbf16>
    %c0_35 = arith.constant 0 : index
    %c0_36 = arith.constant 0 : index
    %127 = vector.load %arg10[%c0_35, %c0_36] : memref<32x32xbf16, #tpu.memory_space<vmem>>, vector<32x32xbf16>
    %c0_37 = arith.constant 0 : index
    %c0_38 = arith.constant 0 : index
    %128 = vector.load %arg11[%c0_37, %c0_38] : memref<32x32xbf16, #tpu.memory_space<vmem>>, vector<32x32xbf16>
    %c0_39 = arith.constant 0 : index
    %c0_40 = arith.constant 0 : index
    %129 = vector.load %arg12[%c0_39, %c0_40] : memref<32x32xbf16, #tpu.memory_space<vmem>>, vector<32x32xbf16>
    %130 = vector.extract_strided_slice %4 {offsets = [6, 0], sizes = [1, 96], strides = [1, 1]} : vector<12x96xf32> to vector<1x96xf32>
    %131 = vector.extract_strided_slice %4 {offsets = [7, 0], sizes = [1, 32], strides = [1, 1]} : vector<12x96xf32> to vector<1x32xf32>
    %132 = vector.extract_strided_slice %4 {offsets = [8, 0], sizes = [1, 32], strides = [1, 1]} : vector<12x96xf32> to vector<1x32xf32>
    %133 = vector.extract_strided_slice %4 {offsets = [9, 0], sizes = [1, 32], strides = [1, 1]} : vector<12x96xf32> to vector<1x32xf32>
    %134 = vector.extract_strided_slice %4 {offsets = [10, 0], sizes = [1, 32], strides = [1, 1]} : vector<12x96xf32> to vector<1x32xf32>
    %135 = vector.extract_strided_slice %4 {offsets = [11, 0], sizes = [1, 32], strides = [1, 1]} : vector<12x96xf32> to vector<1x32xf32>
    %136 = arith.truncf %3 : vector<8x32xf32> to vector<8x32xbf16>
    %cst_41 = arith.constant dense<0.000000e+00> : vector<8x96xf32>
    %137 = tpu.matmul %136, %126, %cst_41 {dimension_numbers = #tpu.dot_dimension_numbers<[1], [0], [0], [1], [0, 0, 1, 1], [], []>} : vector<8x32xbf16>, vector<32x96xbf16>, vector<8x96xf32> -> vector<8x96xf32>
    %138 = vector.broadcast %130 : vector<1x96xf32> to vector<8x96xf32>
    %139 = arith.addf %137, %138 : vector<8x96xf32>
    %140 = arith.truncf %125 : vector<64x32xf32> to vector<64x32xbf16>
    %cst_42 = arith.constant dense<0.000000e+00> : vector<64x96xf32>
    %141 = tpu.matmul %140, %126, %cst_42 {dimension_numbers = #tpu.dot_dimension_numbers<[1], [0], [0], [1], [0, 0, 1, 1], [], []>} : vector<64x32xbf16>, vector<32x96xbf16>, vector<64x96xf32> -> vector<64x96xf32>
    %142 = vector.broadcast %130 : vector<1x96xf32> to vector<64x96xf32>
    %143 = arith.addf %141, %142 : vector<64x96xf32>
    %144 = vector.extract_strided_slice %139 {offsets = [0, 0], sizes = [8, 8], strides = [1, 1]} : vector<8x96xf32> to vector<8x8xf32>
    %145 = vector.extract_strided_slice %139 {offsets = [0, 8], sizes = [8, 8], strides = [1, 1]} : vector<8x96xf32> to vector<8x8xf32>
    %146 = vector.extract_strided_slice %139 {offsets = [0, 16], sizes = [8, 8], strides = [1, 1]} : vector<8x96xf32> to vector<8x8xf32>
    %147 = vector.extract_strided_slice %139 {offsets = [0, 24], sizes = [8, 8], strides = [1, 1]} : vector<8x96xf32> to vector<8x8xf32>
    %148 = vector.shape_cast %144 : vector<8x8xf32> to vector<1x8x8xf32>
    %149 = vector.shape_cast %145 : vector<8x8xf32> to vector<1x8x8xf32>
    %150 = vector.shape_cast %146 : vector<8x8xf32> to vector<1x8x8xf32>
    %151 = vector.shape_cast %147 : vector<8x8xf32> to vector<1x8x8xf32>
    %152 = tpu.concatenate %148, %149, %150, %151 in 0 : vector<1x8x8xf32>, vector<1x8x8xf32>, vector<1x8x8xf32>, vector<1x8x8xf32> -> vector<4x8x8xf32>
    %153 = vector.shape_cast %152 : vector<4x8x8xf32> to vector<32x1x8xf32>
    %154 = vector.extract_strided_slice %143 {offsets = [0, 32], sizes = [64, 8], strides = [1, 1]} : vector<64x96xf32> to vector<64x8xf32>
    %155 = vector.extract_strided_slice %143 {offsets = [0, 40], sizes = [64, 8], strides = [1, 1]} : vector<64x96xf32> to vector<64x8xf32>
    %156 = vector.extract_strided_slice %143 {offsets = [0, 48], sizes = [64, 8], strides = [1, 1]} : vector<64x96xf32> to vector<64x8xf32>
    %157 = vector.extract_strided_slice %143 {offsets = [0, 56], sizes = [64, 8], strides = [1, 1]} : vector<64x96xf32> to vector<64x8xf32>
    %158 = vector.shape_cast %154 : vector<64x8xf32> to vector<1x64x8xf32>
    %159 = vector.shape_cast %155 : vector<64x8xf32> to vector<1x64x8xf32>
    %160 = vector.shape_cast %156 : vector<64x8xf32> to vector<1x64x8xf32>
    %161 = vector.shape_cast %157 : vector<64x8xf32> to vector<1x64x8xf32>
    %162 = tpu.concatenate %158, %159, %160, %161 in 0 : vector<1x64x8xf32>, vector<1x64x8xf32>, vector<1x64x8xf32>, vector<1x64x8xf32> -> vector<4x64x8xf32>
    %163 = vector.shape_cast %162 : vector<4x64x8xf32> to vector<32x8x8xf32>
    %164 = vector.extract_strided_slice %143 {offsets = [0, 64], sizes = [64, 8], strides = [1, 1]} : vector<64x96xf32> to vector<64x8xf32>
    %165 = vector.extract_strided_slice %143 {offsets = [0, 72], sizes = [64, 8], strides = [1, 1]} : vector<64x96xf32> to vector<64x8xf32>
    %166 = vector.extract_strided_slice %143 {offsets = [0, 80], sizes = [64, 8], strides = [1, 1]} : vector<64x96xf32> to vector<64x8xf32>
    %167 = vector.extract_strided_slice %143 {offsets = [0, 88], sizes = [64, 8], strides = [1, 1]} : vector<64x96xf32> to vector<64x8xf32>
    %168 = vector.shape_cast %164 : vector<64x8xf32> to vector<1x64x8xf32>
    %169 = vector.shape_cast %165 : vector<64x8xf32> to vector<1x64x8xf32>
    %170 = vector.shape_cast %166 : vector<64x8xf32> to vector<1x64x8xf32>
    %171 = vector.shape_cast %167 : vector<64x8xf32> to vector<1x64x8xf32>
    %172 = tpu.concatenate %168, %169, %170, %171 in 0 : vector<1x64x8xf32>, vector<1x64x8xf32>, vector<1x64x8xf32>, vector<1x64x8xf32> -> vector<4x64x8xf32>
    %173 = vector.shape_cast %172 : vector<4x64x8xf32> to vector<32x8x8xf32>
    %174 = arith.truncf %153 : vector<32x1x8xf32> to vector<32x1x8xbf16>
    %175 = arith.truncf %163 : vector<32x8x8xf32> to vector<32x8x8xbf16>
    "tpu.trace_start"() <{level = 10 : i32, message = "bqc,bkc->bqk"}> : () -> ()
    %cst_43 = arith.constant dense<0.000000e+00> : vector<32x1x8xf32>
    %176 = tpu.matmul %174, %175, %cst_43 {dimension_numbers = #tpu.dot_dimension_numbers<[2], [2], [1], [1], [0, 0, 0, 1, 1, 1], [0], [0]>} : vector<32x1x8xbf16>, vector<32x8x8xbf16>, vector<32x1x8xf32> -> vector<32x1x8xf32>
    "tpu.trace_stop"() : () -> ()
    %cst_44 = arith.constant 0.353553385 : f32
    %177 = vector.broadcast %cst_44 : f32 to vector<32x1x8xf32>
    %178 = arith.mulf %176, %177 : vector<32x1x8xf32>
    %cst_45 = arith.constant -1.000000e+30 : f32
    %179 = vector.broadcast %cst_45 : f32 to vector<32x1x8xf32>
    %180 = arith.select %11, %178, %179 : vector<32x1x8xi1>, vector<32x1x8xf32>
    %cst_46 = arith.constant dense<0xFF800000> : vector<32x1xf32>
    %181 = vector.multi_reduction <maximumf>, %180, %cst_46 [2] : vector<32x1x8xf32> to vector<32x1xf32>
    %182 = vector.shape_cast %181 : vector<32x1xf32> to vector<32x1x1xf32>
    %183 = vector.broadcast %182 : vector<32x1x1xf32> to vector<32x1x8xf32>
    %184 = arith.subf %180, %183 : vector<32x1x8xf32>
    %185 = math.exp %184 : vector<32x1x8xf32>
    %cst_47 = arith.constant dense<0.000000e+00> : vector<32x1xf32>
    %186 = vector.multi_reduction <add>, %185, %cst_47 [2] : vector<32x1x8xf32> to vector<32x1xf32>
    %187 = vector.shape_cast %186 : vector<32x1xf32> to vector<32x1x1xf32>
    %188 = tpu.reciprocal %187 {approx = true} : vector<32x1x1xf32> -> vector<32x1x1xf32>
    %189 = vector.broadcast %188 : vector<32x1x1xf32> to vector<32x1x8xf32>
    %190 = arith.mulf %185, %189 : vector<32x1x8xf32>
    %191 = arith.truncf %190 : vector<32x1x8xf32> to vector<32x1x8xbf16>
    %192 = arith.truncf %173 : vector<32x8x8xf32> to vector<32x8x8xbf16>
    "tpu.trace_start"() <{level = 10 : i32, message = "bqk,bkc->bqc"}> : () -> ()
    %cst_48 = arith.constant dense<0.000000e+00> : vector<32x1x8xf32>
    %193 = tpu.matmul %191, %192, %cst_48 {dimension_numbers = #tpu.dot_dimension_numbers<[2], [1], [1], [2], [0, 0, 0, 1, 1, 2], [0], [0]>} : vector<32x1x8xbf16>, vector<32x8x8xbf16>, vector<32x1x8xf32> -> vector<32x1x8xf32>
    "tpu.trace_stop"() : () -> ()
    %194 = vector.shape_cast %193 : vector<32x1x8xf32> to vector<4x8x8xf32>
    %195 = vector.extract_strided_slice %194 {offsets = [0, 0, 0], sizes = [1, 8, 8], strides = [1, 1, 1]} : vector<4x8x8xf32> to vector<1x8x8xf32>
    %196 = vector.shape_cast %195 : vector<1x8x8xf32> to vector<8x8xf32>
    %197 = vector.extract_strided_slice %194 {offsets = [1, 0, 0], sizes = [1, 8, 8], strides = [1, 1, 1]} : vector<4x8x8xf32> to vector<1x8x8xf32>
    %198 = vector.shape_cast %197 : vector<1x8x8xf32> to vector<8x8xf32>
    %199 = vector.extract_strided_slice %194 {offsets = [2, 0, 0], sizes = [1, 8, 8], strides = [1, 1, 1]} : vector<4x8x8xf32> to vector<1x8x8xf32>
    %200 = vector.shape_cast %199 : vector<1x8x8xf32> to vector<8x8xf32>
    %201 = vector.extract_strided_slice %194 {offsets = [3, 0, 0], sizes = [1, 8, 8], strides = [1, 1, 1]} : vector<4x8x8xf32> to vector<1x8x8xf32>
    %202 = vector.shape_cast %201 : vector<1x8x8xf32> to vector<8x8xf32>
    %203 = tpu.concatenate %196, %198, %200, %202 in 1 : vector<8x8xf32>, vector<8x8xf32>, vector<8x8xf32>, vector<8x8xf32> -> vector<8x32xf32>
    %204 = arith.truncf %203 : vector<8x32xf32> to vector<8x32xbf16>
    %cst_49 = arith.constant dense<0.000000e+00> : vector<8x32xf32>
    %205 = tpu.matmul %204, %127, %cst_49 {dimension_numbers = #tpu.dot_dimension_numbers<[1], [0], [0], [1], [0, 0, 1, 1], [], []>} : vector<8x32xbf16>, vector<32x32xbf16>, vector<8x32xf32> -> vector<8x32xf32>
    %206 = vector.broadcast %131 : vector<1x32xf32> to vector<8x32xf32>
    %207 = arith.addf %205, %206 : vector<8x32xf32>
    %208 = arith.addf %207, %3 : vector<8x32xf32>
    %cst_50 = arith.constant dense<0.000000e+00> : vector<8xf32>
    %209 = vector.multi_reduction <add>, %208, %cst_50 [1] : vector<8x32xf32> to vector<8xf32>
    %210 = vector.shape_cast %209 : vector<8xf32> to vector<8x1xf32>
    %cst_51 = arith.constant 3.200000e+01 : f32
    %211 = vector.broadcast %cst_51 : f32 to vector<8x1xf32>
    %212 = arith.divf %210, %211 : vector<8x1xf32>
    %213 = vector.broadcast %212 : vector<8x1xf32> to vector<8x32xf32>
    %214 = arith.subf %208, %213 : vector<8x32xf32>
    %215 = arith.mulf %214, %214 : vector<8x32xf32>
    %cst_52 = arith.constant dense<0.000000e+00> : vector<8xf32>
    %216 = vector.multi_reduction <add>, %215, %cst_52 [1] : vector<8x32xf32> to vector<8xf32>
    %217 = vector.shape_cast %216 : vector<8xf32> to vector<8x1xf32>
    %cst_53 = arith.constant 3.200000e+01 : f32
    %218 = vector.broadcast %cst_53 : f32 to vector<8x1xf32>
    %219 = arith.divf %217, %218 : vector<8x1xf32>
    %220 = vector.broadcast %212 : vector<8x1xf32> to vector<8x32xf32>
    %221 = arith.subf %208, %220 : vector<8x32xf32>
    %cst_54 = arith.constant 9.99999997E-7 : f32
    %222 = vector.broadcast %cst_54 : f32 to vector<8x1xf32>
    %223 = arith.addf %219, %222 : vector<8x1xf32>
    %224 = math.rsqrt %223 : vector<8x1xf32>
    %225 = vector.broadcast %224 : vector<8x1xf32> to vector<8x32xf32>
    %226 = arith.mulf %221, %225 : vector<8x32xf32>
    %227 = vector.broadcast %132 : vector<1x32xf32> to vector<8x32xf32>
    %228 = arith.mulf %226, %227 : vector<8x32xf32>
    %229 = vector.broadcast %133 : vector<1x32xf32> to vector<8x32xf32>
    %230 = arith.addf %228, %229 : vector<8x32xf32>
    %231 = arith.truncf %230 : vector<8x32xf32> to vector<8x32xbf16>
    %cst_55 = arith.constant dense<0.000000e+00> : vector<8x32xf32>
    %232 = tpu.matmul %231, %128, %cst_55 {dimension_numbers = #tpu.dot_dimension_numbers<[1], [0], [0], [1], [0, 0, 1, 1], [], []>} : vector<8x32xbf16>, vector<32x32xbf16>, vector<8x32xf32> -> vector<8x32xf32>
    %233 = vector.broadcast %134 : vector<1x32xf32> to vector<8x32xf32>
    %234 = arith.addf %232, %233 : vector<8x32xf32>
    %cst_56 = arith.constant 0.000000e+00 : f32
    %235 = vector.broadcast %cst_56 : f32 to vector<8x32xf32>
    %236 = arith.maximumf %234, %235 : vector<8x32xf32>
    %237 = arith.truncf %236 : vector<8x32xf32> to vector<8x32xbf16>
    %cst_57 = arith.constant dense<0.000000e+00> : vector<8x32xf32>
    %238 = tpu.matmul %237, %129, %cst_57 {dimension_numbers = #tpu.dot_dimension_numbers<[1], [0], [0], [1], [0, 0, 1, 1], [], []>} : vector<8x32xbf16>, vector<32x32xbf16>, vector<8x32xf32> -> vector<8x32xf32>
    %239 = vector.broadcast %135 : vector<1x32xf32> to vector<8x32xf32>
    %240 = arith.addf %238, %239 : vector<8x32xf32>
    %241 = arith.addf %240, %230 : vector<8x32xf32>
    %c0_58 = arith.constant 0 : index
    %c0_59 = arith.constant 0 : index
    %242 = vector.load %arg13[%c0_58, %c0_59] : memref<8x32xf32, #tpu.memory_space<vmem>>, vector<8x32xf32>
    tpu.vector_store %arg13[%c0_58, %c0_59], %241 {strides = array<i32>} : memref<8x32xf32, #tpu.memory_space<vmem>>, vector<8x32xf32>,
    return
  }
  func.func @transform_0(%arg0: i32) -> (i32, i32, i32) {
    %c0_i32 = arith.constant 0 : i32
    %c0_i32_0 = arith.constant 0 : i32
    %c0_i32_1 = arith.constant 0 : i32
    return %arg0, %c0_i32, %c0_i32_0 : i32, i32, i32
  }
  func.func @transform_1(%arg0: i32) -> (i32, i32, i32) {
    %c0_i32 = arith.constant 0 : i32
    %c0_i32_0 = arith.constant 0 : i32
    %c0_i32_1 = arith.constant 0 : i32
    return %arg0, %c0_i32, %c0_i32_0 : i32, i32, i32
  }
  func.func @transform_2(%arg0: i32) -> (i32, i32) {
    %c0_i32 = arith.constant 0 : i32
    %c0_i32_0 = arith.constant 0 : i32
    return %arg0, %c0_i32 : i32, i32
  }
  func.func @transform_3(%arg0: i32) -> (i32, i32) {
    %c0_i32 = arith.constant 0 : i32
    %c0_i32_0 = arith.constant 0 : i32
    %c0_i32_1 = arith.constant 0 : i32
    return %c0_i32, %c0_i32_0 : i32, i32
  }
  func.func @transform_4(%arg0: i32) -> (i32, i32) {
    %c0_i32 = arith.constant 0 : i32
    %c0_i32_0 = arith.constant 0 : i32
    %c0_i32_1 = arith.constant 0 : i32
    return %c0_i32, %c0_i32_0 : i32, i32
  }
  func.func @transform_5(%arg0: i32) -> (i32, i32) {
    %c0_i32 = arith.constant 0 : i32
    %c0_i32_0 = arith.constant 0 : i32
    %c0_i32_1 = arith.constant 0 : i32
    return %c0_i32, %c0_i32_0 : i32, i32
  }
  func.func @transform_6(%arg0: i32) -> (i32, i32) {
    %c0_i32 = arith.constant 0 : i32
    %c0_i32_0 = arith.constant 0 : i32
    %c0_i32_1 = arith.constant 0 : i32
    return %c0_i32, %c0_i32_0 : i32, i32
  }
  func.func @transform_7(%arg0: i32) -> (i32, i32) {
    %c0_i32 = arith.constant 0 : i32
    %c0_i32_0 = arith.constant 0 : i32
    %c0_i32_1 = arith.constant 0 : i32
    return %c0_i32, %c0_i32_0 : i32, i32
  }
  func.func @transform_8(%arg0: i32) -> (i32, i32) {
    %c0_i32 = arith.constant 0 : i32
    %c0_i32_0 = arith.constant 0 : i32
    %c0_i32_1 = arith.constant 0 : i32
    return %c0_i32, %c0_i32_0 : i32, i32
  }
  func.func @transform_9(%arg0: i32) -> (i32, i32) {
    %c0_i32 = arith.constant 0 : i32
    %c0_i32_0 = arith.constant 0 : i32
    %c0_i32_1 = arith.constant 0 : i32
    return %c0_i32, %c0_i32_0 : i32, i32
  }
  func.func @transform_10(%arg0: i32) -> (i32, i32) {
    %c0_i32 = arith.constant 0 : i32
    %c0_i32_0 = arith.constant 0 : i32
    %c0_i32_1 = arith.constant 0 : i32
    return %c0_i32, %c0_i32_0 : i32, i32
  }
  func.func @transform_11(%arg0: i32) -> (i32, i32) {
    %c0_i32 = arith.constant 0 : i32
    %c0_i32_0 = arith.constant 0 : i32
    %c0_i32_1 = arith.constant 0 : i32
    return %c0_i32, %c0_i32_0 : i32, i32
  }
  func.func @transform_12(%arg0: i32) -> (i32, i32) {
    %c0_i32 = arith.constant 0 : i32
    %c0_i32_0 = arith.constant 0 : i32
    return %arg0, %c0_i32 : i32, i32
  }
}

module attributes {stable_mosaic.version = 11 : i64} {
  func.func @perception_kernel(%arg0: i32, %arg1: memref<8x8x32xf32, #tpu.memory_space<vmem>>, %arg2: memref<8x1x32xf32, #tpu.memory_space<vmem>>, %arg3: memref<8x8xf32, #tpu.memory_space<vmem>>, %arg4: memref<12x96xf32, #tpu.memory_space<vmem>>, %arg5: memref<32x96xbf16, #tpu.memory_space<vmem>>, %arg6: memref<32x32xbf16, #tpu.memory_space<vmem>>, %arg7: memref<32x32xbf16, #tpu.memory_space<vmem>>, %arg8: memref<32x32xbf16, #tpu.memory_space<vmem>>, %arg9: memref<32x96xbf16, #tpu.memory_space<vmem>>, %arg10: memref<32x32xbf16, #tpu.memory_space<vmem>>, %arg11: memref<32x32xbf16, #tpu.memory_space<vmem>>, %arg12: memref<32x32xbf16, #tpu.memory_space<vmem>>, %arg13: memref<8x32xf32, #tpu.memory_space<vmem>>) attributes {dimension_semantics = [#tpu.dimension_semantics<parallel>], iteration_bounds = array<i64: 2>, scalar_prefetch = 0 : i64, scratch_operands = 0 : i64, tpu.core_type = #tpu.core_type<tc>, window_params = [{transform_indices = @transform_0, window_bounds = array<i64: 8, 8, 32>}, {transform_indices = @transform_1, window_bounds = array<i64: 8, 1, 32>}, {transform_indices = @transform_2, window_bounds = array<i64: 8, 8>}, {pipeline_mode = #tpu.pipeline_mode<synchronous>, transform_indices = @transform_3, window_bounds = array<i64: 12, 96>}, {pipeline_mode = #tpu.pipeline_mode<synchronous>, transform_indices = @transform_4, window_bounds = array<i64: 32, 96>}, {pipeline_mode = #tpu.pipeline_mode<synchronous>, transform_indices = @transform_5, window_bounds = array<i64: 32, 32>}, {pipeline_mode = #tpu.pipeline_mode<synchronous>, transform_indices = @transform_6, window_bounds = array<i64: 32, 32>}, {pipeline_mode = #tpu.pipeline_mode<synchronous>, transform_indices = @transform_7, window_bounds = array<i64: 32, 32>}, {pipeline_mode = #tpu.pipeline_mode<synchronous>, transform_indices = @transform_8, window_bounds = array<i64: 32, 96>}, {pipeline_mode = #tpu.pipeline_mode<synchronous>, transform_indices = @transform_9, window_bounds = array<i64: 32, 32>}, {pipeline_mode = #tpu.pipeline_mode<synchronous>, transform_indices = @transform_10, window_bounds = array<i64: 32, 32>}, {pipeline_mode = #tpu.pipeline_mode<synchronous>, transform_indices = @transform_11, window_bounds = array<i64: 32, 32>}, {transform_indices = @transform_12, window_bounds = array<i64: 8, 32>}]} {
    %c0 = arith.constant 0 : index
    %c0_0 = arith.constant 0 : index
    %c0_1 = arith.constant 0 : index
    %0 = vector.load %arg1[%c0, %c0_0, %c0_1] : memref<8x8x32xf32, #tpu.memory_space<vmem>>, vector<8x8x32xf32>
    %1 = vector.shape_cast %0 : vector<8x8x32xf32> to vector<64x32xf32>
    %c0_2 = arith.constant 0 : index
    %c0_3 = arith.constant 0 : index
    %c0_4 = arith.constant 0 : index
    %2 = vector.load %arg2[%c0_2, %c0_3, %c0_4] : memref<8x1x32xf32, #tpu.memory_space<vmem>>, vector<8x1x32xf32>
    %3 = vector.shape_cast %2 : vector<8x1x32xf32> to vector<8x32xf32>
    %c0_5 = arith.constant 0 : index
    %c0_6 = arith.constant 0 : index
    %4 = vector.load %arg4[%c0_5, %c0_6] : memref<12x96xf32, #tpu.memory_space<vmem>>, vector<12x96xf32>
    %c0_7 = arith.constant 0 : index
    %c0_8 = arith.constant 0 : index
    %5 = vector.load %arg3[%c0_7, %c0_8] : memref<8x8xf32, #tpu.memory_space<vmem>>, vector<8x8xf32>
    %6 = vector.shape_cast %5 : vector<8x8xf32> to vector<1x8x1x8xf32>
    %7 = vector.shape_cast %6 : vector<1x8x1x8xf32> to vector<1x8x1x8xf32>
    %8 = vector.broadcast %7 : vector<1x8x1x8xf32> to vector<4x8x1x8xf32>
    %9 = vector.shape_cast %8 : vector<4x8x1x8xf32> to vector<32x1x8xf32>
    %cst = arith.constant 0.000000e+00 : f32
    %10 = vector.broadcast %cst : f32 to vector<32x1x8xf32>
    %11 = arith.cmpf ogt, %9, %10 : vector<32x1x8xf32>
    %c0_9 = arith.constant 0 : index
    %c0_10 = arith.constant 0 : index
    %12 = vector.load %arg5[%c0_9, %c0_10] : memref<32x96xbf16, #tpu.memory_space<vmem>>, vector<32x96xbf16>
    %c0_11 = arith.constant 0 : index
    %c0_12 = arith.constant 0 : index
    %13 = vector.load %arg6[%c0_11, %c0_12] : memref<32x32xbf16, #tpu.memory_space<vmem>>, vector<32x32xbf16>
    %c0_13 = arith.constant 0 : index
    %c0_14 = arith.constant 0 : index
    %14 = vector.load %arg7[%c0_13, %c0_14] : memref<32x32xbf16, #tpu.memory_space<vmem>>, vector<32x32xbf16>
    %c0_15 = arith.constant 0 : index
    %c0_16 = arith.constant 0 : index
    %15 = vector.load %arg8[%c0_15, %c0_16] : memref<32x32xbf16, #tpu.memory_space<vmem>>, vector<32x32xbf16>
    %16 = vector.extract_strided_slice %4 {offsets = [0, 0], sizes = [1, 96], strides = [1, 1]} : vector<12x96xf32> to vector<1x96xf32>
    %17 = vector.extract_strided_slice %4 {offsets = [1, 0], sizes = [1, 32], strides = [1, 1]} : vector<12x96xf32> to vector<1x32xf32>
    %18 = vector.extract_strided_slice %4 {offsets = [2, 0], sizes = [1, 32], strides = [1, 1]} : vector<12x96xf32> to vector<1x32xf32>
    %19 = vector.extract_strided_slice %4 {offsets = [3, 0], sizes = [1, 32], strides = [1, 1]} : vector<12x96xf32> to vector<1x32xf32>
    %20 = vector.extract_strided_slice %4 {offsets = [4, 0], sizes = [1, 32], strides = [1, 1]} : vector<12x96xf32> to vector<1x32xf32>
    %21 = vector.extract_strided_slice %4 {offsets = [5, 0], sizes = [1, 32], strides = [1, 1]} : vector<12x96xf32> to vector<1x32xf32>
    %22 = arith.truncf %1 : vector<64x32xf32> to vector<64x32xbf16>
    %cst_17 = arith.constant dense<0.000000e+00> : vector<64x96xf32>
    %23 = tpu.matmul %22, %12, %cst_17 {dimension_numbers = #tpu.dot_dimension_numbers<[1], [0], [0], [1], [0, 0, 1, 1], [], []>} : vector<64x32xbf16>, vector<32x96xbf16>, vector<64x96xf32> -> vector<64x96xf32>
    %24 = vector.broadcast %16 : vector<1x96xf32> to vector<64x96xf32>
    %25 = arith.addf %23, %24 : vector<64x96xf32>
    %26 = vector.extract_strided_slice %25 {offsets = [0, 0], sizes = [64, 8], strides = [1, 1]} : vector<64x96xf32> to vector<64x8xf32>
    %27 = vector.extract_strided_slice %25 {offsets = [0, 8], sizes = [64, 8], strides = [1, 1]} : vector<64x96xf32> to vector<64x8xf32>
    %28 = vector.extract_strided_slice %25 {offsets = [0, 16], sizes = [64, 8], strides = [1, 1]} : vector<64x96xf32> to vector<64x8xf32>
    %29 = vector.extract_strided_slice %25 {offsets = [0, 24], sizes = [64, 8], strides = [1, 1]} : vector<64x96xf32> to vector<64x8xf32>
    %30 = vector.shape_cast %26 : vector<64x8xf32> to vector<1x64x8xf32>
    %31 = vector.shape_cast %27 : vector<64x8xf32> to vector<1x64x8xf32>
    %32 = vector.shape_cast %28 : vector<64x8xf32> to vector<1x64x8xf32>
    %33 = vector.shape_cast %29 : vector<64x8xf32> to vector<1x64x8xf32>
    %34 = tpu.concatenate %30, %31, %32, %33 in 0 : vector<1x64x8xf32>, vector<1x64x8xf32>, vector<1x64x8xf32>, vector<1x64x8xf32> -> vector<4x64x8xf32>
    %35 = vector.shape_cast %34 : vector<4x64x8xf32> to vector<32x8x8xf32>
    %36 = vector.extract_strided_slice %25 {offsets = [0, 32], sizes = [64, 8], strides = [1, 1]} : vector<64x96xf32> to vector<64x8xf32>
    %37 = vector.extract_strided_slice %25 {offsets = [0, 40], sizes = [64, 8], strides = [1, 1]} : vector<64x96xf32> to vector<64x8xf32>
    %38 = vector.extract_strided_slice %25 {offsets = [0, 48], sizes = [64, 8], strides = [1, 1]} : vector<64x96xf32> to vector<64x8xf32>
    %39 = vector.extract_strided_slice %25 {offsets = [0, 56], sizes = [64, 8], strides = [1, 1]} : vector<64x96xf32> to vector<64x8xf32>
    %40 = vector.shape_cast %36 : vector<64x8xf32> to vector<1x64x8xf32>
    %41 = vector.shape_cast %37 : vector<64x8xf32> to vector<1x64x8xf32>
    %42 = vector.shape_cast %38 : vector<64x8xf32> to vector<1x64x8xf32>
    %43 = vector.shape_cast %39 : vector<64x8xf32> to vector<1x64x8xf32>
    %44 = tpu.concatenate %40, %41, %42, %43 in 0 : vector<1x64x8xf32>, vector<1x64x8xf32>, vector<1x64x8xf32>, vector<1x64x8xf32> -> vector<4x64x8xf32>
    %45 = vector.shape_cast %44 : vector<4x64x8xf32> to vector<32x8x8xf32>
    %46 = vector.extract_strided_slice %25 {offsets = [0, 64], sizes = [64, 8], strides = [1, 1]} : vector<64x96xf32> to vector<64x8xf32>
    %47 = vector.extract_strided_slice %25 {offsets = [0, 72], sizes = [64, 8], strides = [1, 1]} : vector<64x96xf32> to vector<64x8xf32>
    %48 = vector.extract_strided_slice %25 {offsets = [0, 80], sizes = [64, 8], strides = [1, 1]} : vector<64x96xf32> to vector<64x8xf32>
    %49 = vector.extract_strided_slice %25 {offsets = [0, 88], sizes = [64, 8], strides = [1, 1]} : vector<64x96xf32> to vector<64x8xf32>
    %50 = vector.shape_cast %46 : vector<64x8xf32> to vector<1x64x8xf32>
    %51 = vector.shape_cast %47 : vector<64x8xf32> to vector<1x64x8xf32>
    %52 = vector.shape_cast %48 : vector<64x8xf32> to vector<1x64x8xf32>
    %53 = vector.shape_cast %49 : vector<64x8xf32> to vector<1x64x8xf32>
    %54 = tpu.concatenate %50, %51, %52, %53 in 0 : vector<1x64x8xf32>, vector<1x64x8xf32>, vector<1x64x8xf32>, vector<1x64x8xf32> -> vector<4x64x8xf32>
    %55 = vector.shape_cast %54 : vector<4x64x8xf32> to vector<32x8x8xf32>
    %56 = arith.truncf %35 : vector<32x8x8xf32> to vector<32x8x8xbf16>
    %57 = arith.truncf %45 : vector<32x8x8xf32> to vector<32x8x8xbf16>
    "tpu.trace_start"() <{level = 10 : i32, message = "bqc,bkc->bqk"}> : () -> ()
    %cst_18 = arith.constant dense<0.000000e+00> : vector<32x8x8xf32>
    %58 = tpu.matmul %56, %57, %cst_18 {dimension_numbers = #tpu.dot_dimension_numbers<[2], [2], [1], [1], [0, 0, 0, 1, 1, 1], [0], [0]>} : vector<32x8x8xbf16>, vector<32x8x8xbf16>, vector<32x8x8xf32> -> vector<32x8x8xf32>
    "tpu.trace_stop"() : () -> ()
    %cst_19 = arith.constant 0.353553385 : f32
    %59 = vector.broadcast %cst_19 : f32 to vector<32x8x8xf32>
    %60 = arith.mulf %58, %59 : vector<32x8x8xf32>
    %cst_20 = arith.constant -1.000000e+30 : f32
    %61 = vector.shape_cast %11 : vector<32x1x8xi1> to vector<32x1x8xi1>
    %62 = vector.broadcast %61 : vector<32x1x8xi1> to vector<32x8x8xi1>
    %63 = vector.broadcast %cst_20 : f32 to vector<32x8x8xf32>
    %64 = arith.select %62, %60, %63 : vector<32x8x8xi1>, vector<32x8x8xf32>
    %cst_21 = arith.constant dense<0xFF800000> : vector<32x8xf32>
    %65 = vector.multi_reduction <maximumf>, %64, %cst_21 [2] : vector<32x8x8xf32> to vector<32x8xf32>
    %66 = vector.shape_cast %65 : vector<32x8xf32> to vector<32x8x1xf32>
    %67 = vector.broadcast %66 : vector<32x8x1xf32> to vector<32x8x8xf32>
    %68 = arith.subf %64, %67 : vector<32x8x8xf32>
    %69 = math.exp %68 : vector<32x8x8xf32>
    %cst_22 = arith.constant dense<0.000000e+00> : vector<32x8xf32>
    %70 = vector.multi_reduction <add>, %69, %cst_22 [2] : vector<32x8x8xf32> to vector<32x8xf32>
    %71 = vector.shape_cast %70 : vector<32x8xf32> to vector<32x8x1xf32>
    %72 = tpu.reciprocal %71 {approx = true} : vector<32x8x1xf32> -> vector<32x8x1xf32>
    %73 = vector.broadcast %72 : vector<32x8x1xf32> to vector<32x8x8xf32>
    %74 = arith.mulf %69, %73 : vector<32x8x8xf32>
    %75 = arith.truncf %74 : vector<32x8x8xf32> to vector<32x8x8xbf16>
    %76 = arith.truncf %55 : vector<32x8x8xf32> to vector<32x8x8xbf16>
    "tpu.trace_start"() <{level = 10 : i32, message = "bqk,bkc->bqc"}> : () -> ()
    %cst_23 = arith.constant dense<0.000000e+00> : vector<32x8x8xf32>
    %77 = tpu.matmul %75, %76, %cst_23 {dimension_numbers = #tpu.dot_dimension_numbers<[2], [1], [1], [2], [0, 0, 0, 1, 1, 2], [0], [0]>} : vector<32x8x8xbf16>, vector<32x8x8xbf16>, vector<32x8x8xf32> -> vector<32x8x8xf32>
    "tpu.trace_stop"() : () -> ()
    %78 = vector.shape_cast %77 : vector<32x8x8xf32> to vector<4x64x8xf32>
    %79 = vector.extract_strided_slice %78 {offsets = [0, 0, 0], sizes = [1, 64, 8], strides = [1, 1, 1]} : vector<4x64x8xf32> to vector<1x64x8xf32>
    %80 = vector.shape_cast %79 : vector<1x64x8xf32> to vector<64x8xf32>
    %81 = vector.extract_strided_slice %78 {offsets = [1, 0, 0], sizes = [1, 64, 8], strides = [1, 1, 1]} : vector<4x64x8xf32> to vector<1x64x8xf32>
    %82 = vector.shape_cast %81 : vector<1x64x8xf32> to vector<64x8xf32>
    %83 = vector.extract_strided_slice %78 {offsets = [2, 0, 0], sizes = [1, 64, 8], strides = [1, 1, 1]} : vector<4x64x8xf32> to vector<1x64x8xf32>
    %84 = vector.shape_cast %83 : vector<1x64x8xf32> to vector<64x8xf32>
    %85 = vector.extract_strided_slice %78 {offsets = [3, 0, 0], sizes = [1, 64, 8], strides = [1, 1, 1]} : vector<4x64x8xf32> to vector<1x64x8xf32>
    %86 = vector.shape_cast %85 : vector<1x64x8xf32> to vector<64x8xf32>
    %87 = tpu.concatenate %80, %82, %84, %86 in 1 : vector<64x8xf32>, vector<64x8xf32>, vector<64x8xf32>, vector<64x8xf32> -> vector<64x32xf32>
    %88 = arith.truncf %87 : vector<64x32xf32> to vector<64x32xbf16>
    %cst_24 = arith.constant dense<0.000000e+00> : vector<64x32xf32>
    %89 = tpu.matmul %88, %13, %cst_24 {dimension_numbers = #tpu.dot_dimension_numbers<[1], [0], [0], [1], [0, 0, 1, 1], [], []>} : vector<64x32xbf16>, vector<32x32xbf16>, vector<64x32xf32> -> vector<64x32xf32>
    %90 = vector.broadcast %17 : vector<1x32xf32> to vector<64x32xf32>
    %91 = arith.addf %89, %90 : vector<64x32xf32>
    %92 = arith.addf %91, %1 : vector<64x32xf32>
    %cst_25 = arith.constant dense<0.000000e+00> : vector<64xf32>
    %93 = vector.multi_reduction <add>, %92, %cst_25 [1] : vector<64x32xf32> to vector<64xf32>
    %94 = vector.shape_cast %93 : vector<64xf32> to vector<64x1xf32>
    %cst_26 = arith.constant 3.200000e+01 : f32
    %95 = vector.broadcast %cst_26 : f32 to vector<64x1xf32>
    %96 = arith.divf %94, %95 : vector<64x1xf32>
    %97 = vector.broadcast %96 : vector<64x1xf32> to vector<64x32xf32>
    %98 = arith.subf %92, %97 : vector<64x32xf32>
    %99 = arith.mulf %98, %98 : vector<64x32xf32>
    %cst_27 = arith.constant dense<0.000000e+00> : vector<64xf32>
    %100 = vector.multi_reduction <add>, %99, %cst_27 [1] : vector<64x32xf32> to vector<64xf32>
    %101 = vector.shape_cast %100 : vector<64xf32> to vector<64x1xf32>
    %cst_28 = arith.constant 3.200000e+01 : f32
    %102 = vector.broadcast %cst_28 : f32 to vector<64x1xf32>
    %103 = arith.divf %101, %102 : vector<64x1xf32>
    %104 = vector.broadcast %96 : vector<64x1xf32> to vector<64x32xf32>
    %105 = arith.subf %92, %104 : vector<64x32xf32>
    %cst_29 = arith.constant 9.99999997E-7 : f32
    %106 = vector.broadcast %cst_29 : f32 to vector<64x1xf32>
    %107 = arith.addf %103, %106 : vector<64x1xf32>
    %108 = math.rsqrt %107 : vector<64x1xf32>
    %109 = vector.broadcast %108 : vector<64x1xf32> to vector<64x32xf32>
    %110 = arith.mulf %105, %109 : vector<64x32xf32>
    %111 = vector.broadcast %18 : vector<1x32xf32> to vector<64x32xf32>
    %112 = arith.mulf %110, %111 : vector<64x32xf32>
    %113 = vector.broadcast %19 : vector<1x32xf32> to vector<64x32xf32>
    %114 = arith.addf %112, %113 : vector<64x32xf32>
    %115 = arith.truncf %114 : vector<64x32xf32> to vector<64x32xbf16>
    %cst_30 = arith.constant dense<0.000000e+00> : vector<64x32xf32>
    %116 = tpu.matmul %115, %14, %cst_30 {dimension_numbers = #tpu.dot_dimension_numbers<[1], [0], [0], [1], [0, 0, 1, 1], [], []>} : vector<64x32xbf16>, vector<32x32xbf16>, vector<64x32xf32> -> vector<64x32xf32>
    %117 = vector.broadcast %20 : vector<1x32xf32> to vector<64x32xf32>
    %118 = arith.addf %116, %117 : vector<64x32xf32>
    %cst_31 = arith.constant 0.000000e+00 : f32
    %119 = vector.broadcast %cst_31 : f32 to vector<64x32xf32>
    %120 = arith.maximumf %118, %119 : vector<64x32xf32>
    %121 = arith.truncf %120 : vector<64x32xf32> to vector<64x32xbf16>
    %cst_32 = arith.constant dense<0.000000e+00> : vector<64x32xf32>
    %122 = tpu.matmul %121, %15, %cst_32 {dimension_numbers = #tpu.dot_dimension_numbers<[1], [0], [0], [1], [0, 0, 1, 1], [], []>} : vector<64x32xbf16>, vector<32x32xbf16>, vector<64x32xf32> -> vector<64x32xf32>
    %123 = vector.broadcast %21 : vector<1x32xf32> to vector<64x32xf32>
    %124 = arith.addf %122, %123 : vector<64x32xf32>
    %125 = arith.addf %124, %114 : vector<64x32xf32>
    %c0_33 = arith.constant 0 : index
    %c0_34 = arith.constant 0 : index
    %126 = vector.load %arg9[%c0_33, %c0_34] : memref<32x96xbf16, #tpu.memory_space<vmem>>, vector<32x96xbf16>
    %c0_35 = arith.constant 0 : index
    %c0_36 = arith.constant 0 : index
    %127 = vector.load %arg10[%c0_35, %c0_36] : memref<32x32xbf16, #tpu.memory_space<vmem>>, vector<32x32xbf16>
    %c0_37 = arith.constant 0 : index
    %c0_38 = arith.constant 0 : index
    %128 = vector.load %arg11[%c0_37, %c0_38] : memref<32x32xbf16, #tpu.memory_space<vmem>>, vector<32x32xbf16>
    %c0_39 = arith.constant 0 : index
    %c0_40 = arith.constant 0 : index
    %129 = vector.load %arg12[%c0_39, %c0_40] : memref<32x32xbf16, #tpu.memory_space<vmem>>, vector<32x32xbf16>
    %130 = vector.extract_strided_slice %4 {offsets = [6, 0], sizes = [1, 96], strides = [1, 1]} : vector<12x96xf32> to vector<1x96xf32>
    %131 = vector.extract_strided_slice %4 {offsets = [7, 0], sizes = [1, 32], strides = [1, 1]} : vector<12x96xf32> to vector<1x32xf32>
    %132 = vector.extract_strided_slice %4 {offsets = [8, 0], sizes = [1, 32], strides = [1, 1]} : vector<12x96xf32> to vector<1x32xf32>
    %133 = vector.extract_strided_slice %4 {offsets = [9, 0], sizes = [1, 32], strides = [1, 1]} : vector<12x96xf32> to vector<1x32xf32>
    %134 = vector.extract_strided_slice %4 {offsets = [10, 0], sizes = [1, 32], strides = [1, 1]} : vector<12x96xf32> to vector<1x32xf32>
    %135 = vector.extract_strided_slice %4 {offsets = [11, 0], sizes = [1, 32], strides = [1, 1]} : vector<12x96xf32> to vector<1x32xf32>
    %136 = arith.truncf %3 : vector<8x32xf32> to vector<8x32xbf16>
    %cst_41 = arith.constant dense<0.000000e+00> : vector<8x96xf32>
    %137 = tpu.matmul %136, %126, %cst_41 {dimension_numbers = #tpu.dot_dimension_numbers<[1], [0], [0], [1], [0, 0, 1, 1], [], []>} : vector<8x32xbf16>, vector<32x96xbf16>, vector<8x96xf32> -> vector<8x96xf32>
    %138 = vector.broadcast %130 : vector<1x96xf32> to vector<8x96xf32>
    %139 = arith.addf %137, %138 : vector<8x96xf32>
    %140 = arith.truncf %125 : vector<64x32xf32> to vector<64x32xbf16>
    %cst_42 = arith.constant dense<0.000000e+00> : vector<64x96xf32>
    %141 = tpu.matmul %140, %126, %cst_42 {dimension_numbers = #tpu.dot_dimension_numbers<[1], [0], [0], [1], [0, 0, 1, 1], [], []>} : vector<64x32xbf16>, vector<32x96xbf16>, vector<64x96xf32> -> vector<64x96xf32>
    %142 = vector.broadcast %130 : vector<1x96xf32> to vector<64x96xf32>
    %143 = arith.addf %141, %142 : vector<64x96xf32>
    %144 = vector.extract_strided_slice %139 {offsets = [0, 0], sizes = [8, 8], strides = [1, 1]} : vector<8x96xf32> to vector<8x8xf32>
    %145 = vector.extract_strided_slice %139 {offsets = [0, 8], sizes = [8, 8], strides = [1, 1]} : vector<8x96xf32> to vector<8x8xf32>
    %146 = vector.extract_strided_slice %139 {offsets = [0, 16], sizes = [8, 8], strides = [1, 1]} : vector<8x96xf32> to vector<8x8xf32>
    %147 = vector.extract_strided_slice %139 {offsets = [0, 24], sizes = [8, 8], strides = [1, 1]} : vector<8x96xf32> to vector<8x8xf32>
    %148 = vector.shape_cast %144 : vector<8x8xf32> to vector<1x8x8xf32>
    %149 = vector.shape_cast %145 : vector<8x8xf32> to vector<1x8x8xf32>
    %150 = vector.shape_cast %146 : vector<8x8xf32> to vector<1x8x8xf32>
    %151 = vector.shape_cast %147 : vector<8x8xf32> to vector<1x8x8xf32>
    %152 = tpu.concatenate %148, %149, %150, %151 in 0 : vector<1x8x8xf32>, vector<1x8x8xf32>, vector<1x8x8xf32>, vector<1x8x8xf32> -> vector<4x8x8xf32>
    %153 = vector.shape_cast %152 : vector<4x8x8xf32> to vector<32x1x8xf32>
    %154 = vector.extract_strided_slice %143 {offsets = [0, 32], sizes = [64, 8], strides = [1, 1]} : vector<64x96xf32> to vector<64x8xf32>
    %155 = vector.extract_strided_slice %143 {offsets = [0, 40], sizes = [64, 8], strides = [1, 1]} : vector<64x96xf32> to vector<64x8xf32>
    %156 = vector.extract_strided_slice %143 {offsets = [0, 48], sizes = [64, 8], strides = [1, 1]} : vector<64x96xf32> to vector<64x8xf32>
    %157 = vector.extract_strided_slice %143 {offsets = [0, 56], sizes = [64, 8], strides = [1, 1]} : vector<64x96xf32> to vector<64x8xf32>
    %158 = vector.shape_cast %154 : vector<64x8xf32> to vector<1x64x8xf32>
    %159 = vector.shape_cast %155 : vector<64x8xf32> to vector<1x64x8xf32>
    %160 = vector.shape_cast %156 : vector<64x8xf32> to vector<1x64x8xf32>
    %161 = vector.shape_cast %157 : vector<64x8xf32> to vector<1x64x8xf32>
    %162 = tpu.concatenate %158, %159, %160, %161 in 0 : vector<1x64x8xf32>, vector<1x64x8xf32>, vector<1x64x8xf32>, vector<1x64x8xf32> -> vector<4x64x8xf32>
    %163 = vector.shape_cast %162 : vector<4x64x8xf32> to vector<32x8x8xf32>
    %164 = vector.extract_strided_slice %143 {offsets = [0, 64], sizes = [64, 8], strides = [1, 1]} : vector<64x96xf32> to vector<64x8xf32>
    %165 = vector.extract_strided_slice %143 {offsets = [0, 72], sizes = [64, 8], strides = [1, 1]} : vector<64x96xf32> to vector<64x8xf32>
    %166 = vector.extract_strided_slice %143 {offsets = [0, 80], sizes = [64, 8], strides = [1, 1]} : vector<64x96xf32> to vector<64x8xf32>
    %167 = vector.extract_strided_slice %143 {offsets = [0, 88], sizes = [64, 8], strides = [1, 1]} : vector<64x96xf32> to vector<64x8xf32>
    %168 = vector.shape_cast %164 : vector<64x8xf32> to vector<1x64x8xf32>
    %169 = vector.shape_cast %165 : vector<64x8xf32> to vector<1x64x8xf32>
    %170 = vector.shape_cast %166 : vector<64x8xf32> to vector<1x64x8xf32>
    %171 = vector.shape_cast %167 : vector<64x8xf32> to vector<1x64x8xf32>
    %172 = tpu.concatenate %168, %169, %170, %171 in 0 : vector<1x64x8xf32>, vector<1x64x8xf32>, vector<1x64x8xf32>, vector<1x64x8xf32> -> vector<4x64x8xf32>
    %173 = vector.shape_cast %172 : vector<4x64x8xf32> to vector<32x8x8xf32>
    %174 = arith.truncf %153 : vector<32x1x8xf32> to vector<32x1x8xbf16>
    %175 = arith.truncf %163 : vector<32x8x8xf32> to vector<32x8x8xbf16>
    "tpu.trace_start"() <{level = 10 : i32, message = "bqc,bkc->bqk"}> : () -> ()
    %cst_43 = arith.constant dense<0.000000e+00> : vector<32x1x8xf32>
    %176 = tpu.matmul %174, %175, %cst_43 {dimension_numbers = #tpu.dot_dimension_numbers<[2], [2], [1], [1], [0, 0, 0, 1, 1, 1], [0], [0]>} : vector<32x1x8xbf16>, vector<32x8x8xbf16>, vector<32x1x8xf32> -> vector<32x1x8xf32>
    "tpu.trace_stop"() : () -> ()
    %cst_44 = arith.constant 0.353553385 : f32
    %177 = vector.broadcast %cst_44 : f32 to vector<32x1x8xf32>
    %178 = arith.mulf %176, %177 : vector<32x1x8xf32>
    %cst_45 = arith.constant -1.000000e+30 : f32
    %179 = vector.broadcast %cst_45 : f32 to vector<32x1x8xf32>
    %180 = arith.select %11, %178, %179 : vector<32x1x8xi1>, vector<32x1x8xf32>
    %cst_46 = arith.constant dense<0xFF800000> : vector<32x1xf32>
    %181 = vector.multi_reduction <maximumf>, %180, %cst_46 [2] : vector<32x1x8xf32> to vector<32x1xf32>
    %182 = vector.shape_cast %181 : vector<32x1xf32> to vector<32x1x1xf32>
    %183 = vector.broadcast %182 : vector<32x1x1xf32> to vector<32x1x8xf32>
    %184 = arith.subf %180, %183 : vector<32x1x8xf32>
    %185 = math.exp %184 : vector<32x1x8xf32>
    %cst_47 = arith.constant dense<0.000000e+00> : vector<32x1xf32>
    %186 = vector.multi_reduction <add>, %185, %cst_47 [2] : vector<32x1x8xf32> to vector<32x1xf32>
    %187 = vector.shape_cast %186 : vector<32x1xf32> to vector<32x1x1xf32>
    %188 = tpu.reciprocal %187 {approx = true} : vector<32x1x1xf32> -> vector<32x1x1xf32>
    %189 = vector.broadcast %188 : vector<32x1x1xf32> to vector<32x1x8xf32>
    %190 = arith.mulf %185, %189 : vector<32x1x8xf32>
    %191 = arith.truncf %190 : vector<32x1x8xf32> to vector<32x1x8xbf16>
    %192 = arith.truncf %173 : vector<32x8x8xf32> to vector<32x8x8xbf16>
    "tpu.trace_start"() <{level = 10 : i32, message = "bqk,bkc->bqc"}> : () -> ()
    %cst_48 = arith.constant dense<0.000000e+00> : vector<32x1x8xf32>
    %193 = tpu.matmul %191, %192, %cst_48 {dimension_numbers = #tpu.dot_dimension_numbers<[2], [1], [1], [2], [0, 0, 0, 1, 1, 2], [0], [0]>} : vector<32x1x8xbf16>, vector<32x8x8xbf16>, vector<32x1x8xf32> -> vector<32x1x8xf32>
    "tpu.trace_stop"() : () -> ()
    %194 = vector.shape_cast %193 : vector<32x1x8xf32> to vector<4x8x8xf32>
    %195 = vector.extract_strided_slice %194 {offsets = [0, 0, 0], sizes = [1, 8, 8], strides = [1, 1, 1]} : vector<4x8x8xf32> to vector<1x8x8xf32>
    %196 = vector.shape_cast %195 : vector<1x8x8xf32> to vector<8x8xf32>
    %197 = vector.extract_strided_slice %194 {offsets = [1, 0, 0], sizes = [1, 8, 8], strides = [1, 1, 1]} : vector<4x8x8xf32> to vector<1x8x8xf32>
    %198 = vector.shape_cast %197 : vector<1x8x8xf32> to vector<8x8xf32>
    %199 = vector.extract_strided_slice %194 {offsets = [2, 0, 0], sizes = [1, 8, 8], strides = [1, 1, 1]} : vector<4x8x8xf32> to vector<1x8x8xf32>
    %200 = vector.shape_cast %199 : vector<1x8x8xf32> to vector<8x8xf32>
    %201 = vector.extract_strided_slice %194 {offsets = [3, 0, 0], sizes = [1, 8, 8], strides = [1, 1, 1]} : vector<4x8x8xf32> to vector<1x8x8xf32>
    %202 = vector.shape_cast %201 : vector<1x8x8xf32> to vector<8x8xf32>
    %203 = tpu.concatenate %196, %198, %200, %202 in 1 : vector<8x8xf32>, vector<8x8xf32>, vector<8x8xf32>, vector<8x8xf32> -> vector<8x32xf32>
    %204 = arith.truncf %203 : vector<8x32xf32> to vector<8x32xbf16>
    %cst_49 = arith.constant dense<0.000000e+00> : vector<8x32xf32>
    %205 = tpu.matmul %204, %127, %cst_49 {dimension_numbers = #tpu.dot_dimension_numbers<[1], [0], [0], [1], [0, 0, 1, 1], [], []>} : vector<8x32xbf16>, vector<32x32xbf16>, vector<8x32xf32> -> vector<8x32xf32>
    %206 = vector.broadcast %131 : vector<1x32xf32> to vector<8x32xf32>
    %207 = arith.addf %205, %206 : vector<8x32xf32>
    %208 = arith.addf %207, %3 : vector<8x32xf32>
    %cst_50 = arith.constant dense<0.000000e+00> : vector<8xf32>
    %209 = vector.multi_reduction <add>, %208, %cst_50 [1] : vector<8x32xf32> to vector<8xf32>
    %210 = vector.shape_cast %209 : vector<8xf32> to vector<8x1xf32>
    %cst_51 = arith.constant 3.200000e+01 : f32
    %211 = vector.broadcast %cst_51 : f32 to vector<8x1xf32>
    %212 = arith.divf %210, %211 : vector<8x1xf32>
    %213 = vector.broadcast %212 : vector<8x1xf32> to vector<8x32xf32>
    %214 = arith.subf %208, %213 : vector<8x32xf32>
    %215 = arith.mulf %214, %214 : vector<8x32xf32>
    %cst_52 = arith.constant dense<0.000000e+00> : vector<8xf32>
    %216 = vector.multi_reduction <add>, %215, %cst_52 [1] : vector<8x32xf32> to vector<8xf32>
    %217 = vector.shape_cast %216 : vector<8xf32> to vector<8x1xf32>
    %cst_53 = arith.constant 3.200000e+01 : f32
    %218 = vector.broadcast %cst_53 : f32 to vector<8x1xf32>
    %219 = arith.divf %217, %218 : vector<8x1xf32>
    %220 = vector.broadcast %212 : vector<8x1xf32> to vector<8x32xf32>
    %221 = arith.subf %208, %220 : vector<8x32xf32>
    %cst_54 = arith.constant 9.99999997E-7 : f32
    %222 = vector.broadcast %cst_54 : f32 to vector<8x1xf32>
    %223 = arith.addf %219, %222 : vector<8x1xf32>
    %224 = math.rsqrt %223 : vector<8x1xf32>
    %225 = vector.broadcast %224 : vector<8x1xf32> to vector<8x32xf32>
    %226 = arith.mulf %221, %225 : vector<8x32xf32>
    %227 = vector.broadcast %132 : vector<1x32xf32> to vector<8x32xf32>
    %228 = arith.mulf %226, %227 : vector<8x32xf32>
    %229 = vector.broadcast %133 : vector<1x32xf32> to vector<8x32xf32>
    %230 = arith.addf %228, %229 : vector<8x32xf32>
    %231 = arith.truncf %230 : vector<8x32xf32> to vector<8x32xbf16>
    %cst_55 = arith.constant dense<0.000000e+00> : vector<8x32xf32>
    %232 = tpu.matmul %231, %128, %cst_55 {dimension_numbers = #tpu.dot_dimension_numbers<[1], [0], [0], [1], [0, 0, 1, 1], [], []>} : vector<8x32xbf16>, vector<32x32xbf16>, vector<8x32xf32> -> vector<8x32xf32>
    %233 = vector.broadcast %134 : vector<1x32xf32> to vector<8x32xf32>
    %234 = arith.addf %232, %233 : vector<8x32xf32>
    %cst_56 = arith.constant 0.000000e+00 : f32
    %235 = vector.broadcast %cst_56 : f32 to vector<8x32xf32>
    %236 = arith.maximumf %234, %235 : vector<8x32xf32>
    %237 = arith.truncf %236 : vector<8x32xf32> to vector<8x32xbf16>
    %cst_57 = arith.constant dense<0.000000e+00> : vector<8x32xf32>
    %238 = tpu.matmul %237, %129, %cst_57 {dimension_numbers = #tpu.dot_dimension_numbers<[1], [0], [0], [1], [0, 0, 1, 1], [], []>} : vector<8x32xbf16>, vector<32x32xbf16>, vector<8x32xf32> -> vector<8x32xf32>
    %239 = vector.broadcast %135 : vector<1x32xf32> to vector<8x32xf32>
    %240 = arith.addf %238, %239 : vector<8x32xf32>
    %241 = arith.addf %240, %230 : vector<8x32xf32>
    %c0_58 = arith.constant 0 : index
    %c0_59 = arith.constant 0 : index
    %242 = vector.load %arg13[%c0_58, %c0_59] : memref<8x32xf32, #tpu.memory_space<vmem>>, vector<8x32xf32>
    tpu.vector_store %arg13[%c0_58, %c0_59], %241 {strides = array<i32>} : memref<8x32xf32, #tpu.memory_space<vmem>>, vector<8x32xf32>,
    return
  }
  func.func @transform_0(%arg0: i32) -> (i32, i32, i32) {
    %c0_i32 = arith.constant 0 : i32
    %c0_i32_0 = arith.constant 0 : i32
    %c0_i32_1 = arith.constant 0 : i32
    return %arg0, %c0_i32, %c0_i32_0 : i32, i32, i32
  }
  func.func @transform_1(%arg0: i32) -> (i32, i32, i32) {
    %c0_i32 = arith.constant 0 : i32
    %c0_i32_0 = arith.constant 0 : i32
    %c0_i32_1 = arith.constant 0 : i32
    return %arg0, %c0_i32, %c0_i32_0 : i32, i32, i32
  }
  func.func @transform_2(%arg0: i32) -> (i32, i32) {
    %c0_i32 = arith.constant 0 : i32
    %c0_i32_0 = arith.constant 0 : i32
    return %arg0, %c0_i32 : i32, i32
  }
  func.func @transform_3(%arg0: i32) -> (i32, i32) {
    %c0_i32 = arith.constant 0 : i32
    %c0_i32_0 = arith.constant 0 : i32
    %c0_i32_1 = arith.constant 0 : i32
    return %c0_i32, %c0_i32_0 : i32, i32
  }
  func.func @transform_4(%arg0: i32) -> (i32, i32) {
    %c0_i32 = arith.constant 0 : i32
    %c0_i32_0 = arith.constant 0 : i32
    %c0_i32_1 = arith.constant 0 : i32
    return %c0_i32, %c0_i32_0 : i32, i32
  }
  func.func @transform_5(%arg0: i32) -> (i32, i32) {
    %c0_i32 = arith.constant 0 : i32
    %c0_i32_0 = arith.constant 0 : i32
    %c0_i32_1 = arith.constant 0 : i32
    return %c0_i32, %c0_i32_0 : i32, i32
  }
  func.func @transform_6(%arg0: i32) -> (i32, i32) {
    %c0_i32 = arith.constant 0 : i32
    %c0_i32_0 = arith.constant 0 : i32
    %c0_i32_1 = arith.constant 0 : i32
    return %c0_i32, %c0_i32_0 : i32, i32
  }
  func.func @transform_7(%arg0: i32) -> (i32, i32) {
    %c0_i32 = arith.constant 0 : i32
    %c0_i32_0 = arith.constant 0 : i32
    %c0_i32_1 = arith.constant 0 : i32
    return %c0_i32, %c0_i32_0 : i32, i32
  }
  func.func @transform_8(%arg0: i32) -> (i32, i32) {
    %c0_i32 = arith.constant 0 : i32
    %c0_i32_0 = arith.constant 0 : i32
    %c0_i32_1 = arith.constant 0 : i32
    return %c0_i32, %c0_i32_0 : i32, i32
  }
  func.func @transform_9(%arg0: i32) -> (i32, i32) {
    %c0_i32 = arith.constant 0 : i32
    %c0_i32_0 = arith.constant 0 : i32
    %c0_i32_1 = arith.constant 0 : i32
    return %c0_i32, %c0_i32_0 : i32, i32
  }
  func.func @transform_10(%arg0: i32) -> (i32, i32) {
    %c0_i32 = arith.constant 0 : i32
    %c0_i32_0 = arith.constant 0 : i32
    %c0_i32_1 = arith.constant 0 : i32
    return %c0_i32, %c0_i32_0 : i32, i32
  }
  func.func @transform_11(%arg0: i32) -> (i32, i32) {
    %c0_i32 = arith.constant 0 : i32
    %c0_i32_0 = arith.constant 0 : i32
    %c0_i32_1 = arith.constant 0 : i32
    return %c0_i32, %c0_i32_0 : i32, i32
  }
  func.func @transform_12(%arg0: i32) -> (i32, i32) {
    %c0_i32 = arith.constant 0 : i32
    %c0_i32_0 = arith.constant 0 : i32
    return %arg0, %c0_i32 : i32, i32
  }
}

</mosaic_0001>

<bundles_post_ra>
// kernel: tpu_custom_call.1
= control target key start
LH: loop header
LB: loop body
LE: loop exit
PB: predicated region body
PF: predicated region fallthrough
CT: control target
= control target key end

     0   :  { %s9770_s0 = inlined_call_operand.hbm [shape: f32[16,8,32], index: 0, kind: input, shape index: {}]   ;;  %s9771_s1 = inlined_call_operand.vmem [shape: f32[16,1,32], index: 1, kind: input, shape index: {}]   ;;  %s9772_s2 = inlined_call_operand.vmem [shape: f32[16,8], index: 2, kind: input, shape index: {}]   ;;  %s9773_s3 = inlined_call_operand.hbm [shape: f32[12,96], index: 3, kind: input, shape index: {}]   ;;  %s9774_s4 = inlined_call_operand.hbm [shape: bf16[32,96], index: 4, kind: input, shape index: {}]   ;;  %s9775_s5 = inlined_call_operand.hbm [shape: bf16[32,32], index: 5, kind: input, shape index: {}]   ;;  %s9776_s6 = inlined_call_operand.hbm [shape: bf16[32,32], index: 6, kind: input, shape index: {}]   ;;  %s9777_s7 = inlined_call_operand.hbm [shape: bf16[32,32], index: 7, kind: input, shape index: {}]   ;;  %s9778_s8 = inlined_call_operand.hbm [shape: bf16[32,96], index: 8, kind: input, shape index: {}]   ;;  %s9779_s9 = inlined_call_operand.vmem [shape: bf16[32,32], index: 9, kind: input, shape index: {}]   ;;  %s9780_s10 = inlined_call_operand.hbm [shape: bf16[32,32], index: 10, kind: input, shape index: {}]   ;;  %s9781_s11 = inlined_call_operand.hbm [shape: bf16[32,32], index: 11, kind: input, shape index: {}]   ;;  %s9782_s12 = inlined_call_operand.hbm [shape: f32[16,32], index: 12, kind: output, shape index: {}]  }
   0x1   :  { %9820 = sst [smem:[#allocation41_spill]] %s9773_s3 }
   0x2   :  { %9821 = sst [smem:[#allocation42_spill]] %s9774_s4 }
   0x3   :  { %9822 = sst [smem:[#allocation43_spill]] %s9775_s5 }
   0x4   :  { %9823 = sst [smem:[#allocation44_spill]] %s9776_s6 }
   0x5   :  { %9824 = sst [smem:[#allocation45_spill]] %s9777_s7 }
   0x6   :  { %9825 = sst [smem:[#allocation46_spill]] %s9778_s8 }
   0x7   :  { %9826 = sst [smem:[#allocation47_spill]] %s9782_s12 }
   0x8   :  { %17 = vsyncpa [#allocation3], 0 }
   0x9   :  { %19 = vsyncpa [#allocation3 + $0x1], 0 }
   0xa   :  { %20 = vsyncpa [#allocation6], 0 }
   0xb   :  { %21 = vsyncpa [#allocation9], 0 }
   0xc   :  { %22 = vsyncpa [#allocation12], 0 }
   0xd   :  { %23 = vsyncpa [#allocation15], 0 }
   0xe   :  { %24 = vsyncpa [#allocation4], 0 }
   0xf   :  { %26 = vsyncpa [#allocation4 + $0x1], 0  ;;  %s7244_s21 = smov 0   ;;  %s7246_s22 = smov 0  }
  0x10   :  { %s7248_s23 = smov 0   ;;  %s7250_s24 = smov 0  }
  0x11 LB: > { %s9827_s3 = sld [smem:[#allocation41_spill]]  ;;  %s7268_s28 = sadd.s32 4294967295, %s7155_s24   ;;  %s7155_s24 = sphi %s7250_s24, %s10033_s24   ;;  %s7151_s23 = sphi %s7248_s23, %s10032_s23   ;;  %s7147_s22 = sphi %s7246_s22, %s10031_s22   ;;  %s7143_s21 = sphi %s7244_s21, %s10030_s21  }
  0x12   : > { %p5933_p0 = scmp.ge.s32.totalorder %s7155_s24, 1  ;;  %p53_p1 = scmp.eq.s32.totalorder %s7268_s28, 0 }
  0x13   : > { %p330_p2 = scmp.lt.s32.totalorder %s7155_s24, 3  ;;  %s7157_s30 = smov [#allocation5]  }
  0x14   : > { %s343_s13 = sshll.u32 %s7157_s30, 4  ;;  %s9830_s5 = sld [smem:[#allocation43_spill]]  ;;  %s344_s13 = int_to_ptr.vmem [resolvable:$true] %s343_s13 }
  0x15   : > { %p7273_p3 = pnand %p5933_p0, %p330_p2  ;;  %s9784_s18 = smov 128  }
  0x16   : > { %s9785_s19 = smov 8   ;;  %s7160_s20 = smov [#allocation8]  }
  0x17   : > { %s341_s27 = sshll.u32 %s9827_s3, 4  ;;  %p6232_p4 = pneg %p7273_p3  ;;  %s342_s27 = int_to_ptr.hbm [resolvable:$true] %s341_s27 }
  0x18   : > { %s371_s25 = sshll.u32 %s7160_s20, 4  ;;  %s9831_s7 = sld [smem:[#allocation45_spill]]  ;;  %s372_s25 = int_to_ptr.vmem [resolvable:$true] %s371_s25 }
  0x19   : > { %p7282_p6 = pnand %p6232_p4, %p53_p1  ;;  %s7161_s15 = smov 64  }
  0x1a   : > { %s369_s17 = sshll.u32 %s9830_s5, 4  ;;  %s7162_s16 = smov 4   ;;  %s370_s17 = int_to_ptr.hbm [resolvable:$true] %s369_s17 }
  0x1b   : > { %6235 = dma.hbm_to_vmem [thread:$0]  (!%p7282_p6), %s342_s27, 256, %s344_s13, [#allocation6], %s9784_s18, %s9784_s18, %s9785_s19  }
  0x1c   : > { %6241 = dma.hbm_to_vmem [thread:$0]  (!%p7282_p6), %s370_s17, 256, %s372_s25, [#allocation9], %s7161_s15, %s7161_s15, %s7162_s16  }
  0x1d   : > { %s428_s27 = sshll.u32 %s9780_s10, 4  ;;  %s7163_s13 = smov [#allocation11]   ;;  %s429_s27 = int_to_ptr.hbm [resolvable:$true] %s428_s27 }
  0x1e   : > { %s397_s3 = sshll.u32 %s9831_s7, 4  ;;  %s399_s20 = sshll.u32 %s7163_s13, 4  ;;  %s398_s3 = int_to_ptr.hbm [resolvable:$true] %s397_s3  ;;  %s400_s20 = int_to_ptr.vmem [resolvable:$true] %s399_s20 }
  0x1f   : > { %6247 = dma.hbm_to_vmem [thread:$0]  (!%p7282_p6), %s398_s3, 256, %s400_s20, [#allocation12], %s7161_s15, %s7161_s15, %s7162_s16  }
  0x20   : > { %s7164_s26 = smov [#allocation14]   ;;  %s9832_s4 = sld [smem:[#allocation42_spill]] }
  0x21   : > { %s430_s30 = sshll.u32 %s7164_s26, 4  ;;  %s9833_s6 = sld [smem:[#allocation44_spill]]  ;;  %s431_s30 = int_to_ptr.vmem [resolvable:$true] %s430_s30 }
  0x22   : > { %6253 = dma.hbm_to_vmem [thread:$0]  (!%p7282_p6), %s429_s27, 256, %s431_s30, [#allocation15], %s7161_s15, %s7161_s15, %s7162_s16  }
  0x23   : > { %s7165_s13 = smov [#allocation7]   ;;  %s7166_s18 = smov [#allocation10]  }
  0x24   : > { %s357_s3 = sshll.u32 %s7165_s13, 4  ;;  %s385_s19 = sshll.u32 %s7166_s18, 4  ;;  %s358_s3 = int_to_ptr.vmem [resolvable:$true] %s357_s3  ;;  %s386_s19 = int_to_ptr.vmem [resolvable:$true] %s385_s19 }
  0x25   : > { %s9834_s8 = sld [smem:[#allocation46_spill]]  ;;  %s442_s5 = sshll.u32 %s9781_s11, 4  ;;  %s443_s5 = int_to_ptr.hbm [resolvable:$true] %s442_s5 }
  0x26   : > { %s355_s17 = sshll.u32 %s9832_s4, 4  ;;  %s7167_s12 = smov [#allocation13]   ;;  %s356_s17 = int_to_ptr.hbm [resolvable:$true] %s355_s17 }
  0x27   : > { %s383_s25 = sshll.u32 %s9833_s6, 4  ;;  %s413_s13 = sshll.u32 %s7167_s12, 4  ;;  %s384_s25 = int_to_ptr.hbm [resolvable:$true] %s383_s25  ;;  %s414_s13 = int_to_ptr.vmem [resolvable:$true] %s413_s13 }
  0x28   : > { %6238 = dma.hbm_to_vmem [thread:$0]  (!%p7282_p6), %s356_s17, 256, %s358_s3, [#allocation6], %s7161_s15, %s7161_s15, %s7162_s16  }
  0x29   : > { %6244 = dma.hbm_to_vmem [thread:$0]  (!%p7282_p6), %s384_s25, 256, %s386_s19, [#allocation9], %s7161_s15, %s7161_s15, %s7162_s16  }
  0x2a   : > { %s7168_s25 = smov [#allocation16]   ;;  %s5932_s18 = sadd.s32 4294967294, %s7155_s24  }
  0x2b   : > { %s411_s26 = sshll.u32 %s9834_s8, 4  ;;  %s444_s3 = sshll.u32 %s7168_s25, 4  ;;  %s412_s26 = int_to_ptr.hbm [resolvable:$true] %s411_s26  ;;  %s445_s3 = int_to_ptr.vmem [resolvable:$true] %s444_s3 }
  0x2c   : > { %6250 = dma.hbm_to_vmem [thread:$0]  (!%p7282_p6), %s412_s26, 256, %s414_s13, [#allocation12], %s7161_s15, %s7161_s15, %s7162_s16  }
  0x2d   : > { %6256 = dma.hbm_to_vmem [thread:$0]  (!%p7282_p6), %s443_s5, 256, %s445_s3, [#allocation15], %s7161_s15, %s7161_s15, %s7162_s16  }
  0x2e   : > { %s7349_s19 = sadd.s32 1, %s7155_s24   ;;  %s39_s27 = sadd.s32 1, %s7151_s23 }
  0x2f   : > { %s36_s20 = ssub.s32 %s7155_s24, %s7349_s19  ;;  %p46_p8 = scmp.ne.s32.totalorder %s7151_s23, %s7147_s22 }
  0x30   : > { %p37_p7 = scmp.eq.s32.totalorder %s36_s20, 0  ;;  %p47_p9 = scmp.eq.s32.totalorder %s7155_s24, 0 }
  0x31   : > { %p52_p10 = scmp.ne.s32.totalorder %s7147_s22, %s7143_s21  ;;  %p317_p13 = scmp.eq.s32.totalorder %s7268_s28, 1 }
  0x32   : > { %s7360_s26 = scalar_select %p37_p7, %s7151_s23, %s39_s27  }
  0x33   : > { %p7362_p11 = por %p47_p9, %p46_p8  ;;  %p7368_p12 = por %p53_p1, %p52_p10 }
  0x34   : > { %p323_p0 = scmp.eq.s32.totalorder %s5932_s18, 1  ;;  %p6273_p2 = scmp.lt.s32.totalorder %s7155_s24, 2 }
  0x35   : > { %s458_s16 = sand.u32 1, %s7151_s23   ;;  %p7375_p4 = por %p317_p13, %p46_p8 }
  0x36   : > { %p7379_p6 = por %p323_p0, %p52_p10  ;;  %s5943_s5 = sshll.u32 %s458_s16, 6 }
  0x37   : > { %s6179_s12 = sshll.u32 %s7155_s24, 6  ;;  %s462_s20 = scalar_lea.vmem [#allocation2], %s5943_s5 }
  0x38   : > { %s467_s3 = scalar_lea.hbm %s9770_s0, %s6179_s12  ;;  %s470_s27 = sshll.u32 %s462_s20, 4  ;;  %s471_s27 = int_to_ptr.vmem [resolvable:$true] %s470_s27 }
  0x39   : > { %s468_s4 = sshll.u32 %s467_s3, 4  ;;  %p7389_p7 = pnand %p6273_p2, %p7362_p11  ;;  %s469_s4 = int_to_ptr.hbm [resolvable:$true] %s468_s4 }
  0x3a   : > { %s459_s6 = scalar_lea.sflag [#allocation3], %s458_s16  ;;  %s7043_s7 = sshra.s32 %s469_s4, 4  ;;  %s7044_s7 = int_to_ptr.hbm [resolvable:$true] %s7043_s7 }
  0x3b   : > { %s7045_s8 = scalar_lea.hbm %s7044_s7, 64  ;;  %p7047_p9 = pneg %p7389_p7 }
  0x3c   : > { %p7046_p8 = scmp.ne.s32.totalorder %s7044_s7, %s7045_s8  ;;  %s7050_s13 = scalar_lea.hbm %s9770_s0, 128 }
  0x3d   : > { %p7051_p11 = scmp.lt.s32.totalorder %s7044_s7, %s9770_s0  ;;  %p7052_p0 = scmp.lt.s32.totalorder %s7050_s13, %s7045_s8 }
  0x3e   : > { %p7048_p10 = pnand %p7047_p9, %p7046_p8 }
  0x3f   : > { %p7053_p2 = por %p7052_p0, %p7051_p11 }
  0x40   : > { %p7049_p13 = pneg %p7048_p10 }
  0x42   : > { %p7054_p5 = pnand %p7053_p2, %p7049_p13 }
  0x44   : > { %7057 = shalt.err (!%p7054_p5)
}
  0x45   : > { %s9840_s16 = smov 8   ;;  %s9841_s3 = smov 128  }
  0x46   : > { %6260 = dma.hbm_to_vmem [thread:$0]  (!%p7389_p7), %s469_s4, 1024, %s471_s27, %s459_s6, %s9841_s3, %s9841_s3, %s9840_s16  }
  0x47   : > { %497 = sbr.rel (%p7273_p3) target bundleno = 3963 (0xf7b), region = 68 }
  0x4c   : > { %s7409_s20 = sand.u32 1, %s7147_s22  }
  0x4d   : > { %s5947_s7 = sshll.u32 %s7409_s20, 6  ;;  %s500_s8 = scalar_lea.sflag [#allocation3], %s7409_s20 }
  0x4e   : > { %s7413_s5 = scalar_lea.vmem [#allocation2], %s5947_s7 }
  0x4f   : > { %7118 = dma.done.wait (%p7368_p12), %s500_s8, 1024  }
  0x50   : > { %7120 = vsyncadd (%p7368_p12), %s500_s8, 4294966272 }
  0x51   : > { %7122 = dma.done.wait (%p53_p1), [#allocation6], 512  }
  0x52   : > { %7124 = vsyncadd (%p53_p1), [#allocation6], 4294966784 }
  0x53   : > { %7126 = dma.done.wait (%p53_p1), [#allocation9], 512  }
  0x54   : > { %7128 = vsyncadd (%p53_p1), [#allocation9], 4294966784 }
  0x55   : > { %7130 = dma.done.wait (%p53_p1), [#allocation12], 512  }
  0x56   : > { %7132 = vsyncadd (%p53_p1), [#allocation12], 4294966784 }
  0x57   : > { %7134 = dma.done.wait (%p53_p1), [#allocation15], 512  }
  0x58   : > { %7136 = vsyncadd (%p53_p1), [#allocation15], 4294966784  ;;  %v6181_v0 = vld [vmem:[#allocation7 + $0x8] sm:$0xff]  ;;  %v6180_v1 = vld [vmem:[#allocation7] sm:$0xff]  ;;  %vm9787_vm0 = vcmask 261120   ;;  %s7169_s4 = smov 96  }
  0x59   : > { %698 = vmatpush.bf16.msra.mxu0 %v6181_v0  ;;  %v604_v2 = vld [vmem:[%s7413_s5] sm:$0xff]  ;;  %v605_v3 = vld [vmem:[%s7413_s5 + $0x8] sm:$0xff]  ;;  %v606_v5 = vld [vmem:[%s7413_s5 + $0x10] sm:$0xff]  ;;  %s7170_s6 = smov 104   ;;  %s7171_s29 = smov 112   ;;  %vm838_vm1 = vcmask 64512  }
  0x5a   : > { %v662_v4 = vpack.c.bf16 %v605_v3, %v604_v2  ;;  %v607_v6 = vld [vmem:[%s7413_s5 + $0x18] sm:$0xff]  ;;  %v608_v8 = vld [vmem:[%s7413_s5 + $0x20] sm:$0xff]  ;;  %v609_v9 = vld [vmem:[%s7413_s5 + $0x28] sm:$0xff]  ;;  %s7172_s15 = smov 120   ;;  %s7173_s27 = smov 64   ;;  %vm9788_vm7 = vcmask 1043456  }
  0x5b   : > { %v663_v7 = vpack.c.bf16 %v607_v6, %v606_v5  ;;  %v664_v10 = vpack.c.bf16 %v609_v9, %v608_v8  ;;  %v610_v11 = vld [vmem:[%s7413_s5 + $0x30] sm:$0xff]  ;;  %v611_v12 = vld [vmem:[%s7413_s5 + $0x38] sm:$0xff]  ;;  %v620_v14 = vld [vmem:[#allocation5] sm:$0xff]  ;;  %p599_p1 = scmp.lt.s32.totalorder %s7268_s28, 1  ;;  %s7175_s16 = smov 8  }
  0x5c   : > { %v665_v13 = vpack.c.bf16 %v611_v12, %v610_v11  ;;  %v666_v15 = vperm.slane %v620_v14, 0  ;;  %s7176_s3 = smov 16   ;;  %s7177_s7 = smov 24  }
  0x5d   : > { %699 = vmatpush.bf16.msra.mxu0 %v6180_v1  ;;  %s600_s18 = scalar_select %p599_p1, %s7268_s28, 1 }
  0x5e   : > { %s8745_s8 = sshll.u32 %s7268_s28, 3 }
  0x5f   : > { %s5958_s12 = sshll.u32 %s600_s18, 3  ;;  %p595_p3 = scmp.lt.s32.totalorder %s8745_s8, 15 }
  0x60   : > { %5967 = vmatmul.msk.bf16.vlgmr.msra.gmra.mxu0 %vm9787_vm0, %v662_v4  ;;  %s602_s14 = scalar_lea.vmem %s9772_s2, %s5958_s12  ;;  %s5750_s18 = scalar_lea.sflag [#allocation4], %s7409_s20 }
  0x70   : > { %5968 = vmatmul.msk.bf16.gmra.mxu0 %vm9787_vm0, %v663_v7 }
  0x80   : > { %5969 = vmatmul.msk.bf16.gmra.mxu0 %vm9787_vm0, %v664_v10 }
  0x90   : > { %5970 = vmatmul.msk.bf16.gmra.mxu0 %vm9787_vm0, %v665_v13 }
  0xdd   : > { %v701_v16 = vpop.f32.mrf.mxu0 }
  0xde   : > { %v702_v17 = vadd.f32 %v701_v16, %v666_v15 }
  0xe0   : > { %v7447_v18 = vpack.c.bf16 %v702_v17, %v702_v17 }
  0xe2   : > { %v834_v19 = vunpack.c.l.b16 %v7447_v18 }
  0xe4   : > { %v7450_v20 = vpack.c.b16 %v834_v19, %v834_v19 }
  0xe5   : > { %v703_v21 = vpop.f32.mrf.mxu0 }
  0xe6   : > { %v704_v22 = vadd.f32 %v703_v21, %v666_v15  ;;  %836 = vrot.lane.b32.xlu0 %v7450_v20, %s7169_s4 }
  0xe8   : > { %v6347_v23 = vpack.i.bf16 %v704_v22, %v702_v17  ;;  %v7454_v24 = vpack.c.bf16 %v704_v22, %v704_v22 }
  0xea   : > { %6348 = vrot.lane.b32.xlu1 %v6347_v23, %s7170_s6  ;;  %6343 = vrot.lane.b32.xlu2 %v6347_v23, %s7171_s29  ;;  %v859_v25 = vunpack.c.l.b16 %v7454_v24 }
  0xec   : > { %v7460_v28 = vpack.c.b16 %v859_v25, %v859_v25 }
  0xed   : > { %v706_v26 = vpop.f32.mrf.mxu0 }
  0xee   : > { %v707_v27 = vadd.f32 %v706_v26, %v666_v15  ;;  %6338 = vrot.lane.b32.xlu0 %v6347_v23, %s7172_s15 }
  0xf0   : > { %v7462_v29 = vpack.c.bf16 %v707_v27, %v707_v27 }
  0xf2   : > { %861 = vrot.lane.b32.xlu1 %v7460_v28, %s7169_s4  ;;  %v883_v30 = vunpack.c.l.b16 %v7462_v29 }
  0xf4   : > { %v7467_v33 = vpack.c.b16 %v883_v30, %v883_v30 }
  0xf5   : > { %v708_v31 = vpop.f32.mrf.mxu0 }
  0xf6   : > { %v709_v32 = vadd.f32 %v708_v31, %v666_v15 }
  0xf8   : > { %v6352_v34 = vpack.i.bf16 %v709_v32, %v707_v27  ;;  %v7474_v38 = vpack.c.bf16 %v709_v32, %v709_v32 }
  0xfa   : > { %885 = vrot.lane.b32.xlu1 %v7467_v33, %s7169_s4  ;;  %6353 = vrot.lane.b32.xlu2 %v6352_v34, %s7172_s15  ;;  %v907_v40 = vunpack.c.l.b16 %v7474_v38 }
  0xfc   : > { %v7482_v44 = vpack.c.b16 %v907_v40, %v907_v40 }
  0xfd   : > { %v711_v35 = vpop.f32.mrf.mxu0 }
  0xfe   : > { %v712_v36 = vadd.f32 %v711_v35, %v666_v15 }
 0x100   : > { %v7472_v37 = vpack.c.bf16 %v712_v36, %v712_v36 }
 0x102   : > { %6363 = vrot.lane.b32.xlu1 %v6352_v34, %s7170_s6  ;;  %6358 = vrot.lane.b32.xlu2 %v6352_v34, %s7171_s29  ;;  %v931_v39 = vunpack.c.l.b16 %v7472_v37 }
 0x104   : > { %v7480_v43 = vpack.c.b16 %v931_v39, %v931_v39 }
 0x105   : > { %v713_v41 = vpop.f32.mrf.mxu0 }
 0x106   : > { %v714_v42 = vadd.f32 %v713_v41, %v666_v15 }
 0x108   : > { %v6367_v45 = vpack.i.bf16 %v714_v42, %v712_v36  ;;  %v7484_v46 = vpack.c.bf16 %v714_v42, %v714_v42 }
 0x10a   : > { %933 = vrot.lane.b32.xlu1 %v7480_v43, %s7169_s4  ;;  %909 = vrot.lane.b32.xlu2 %v7482_v44, %s7169_s4  ;;  %v955_v47 = vunpack.c.l.b16 %v7484_v46 }
 0x10b   : > { %6368 = vrot.lane.b32.xlu0 %v6367_v45, %s7172_s15 }
 0x10c   : > { %v7492_v50 = vpack.c.b16 %v955_v47, %v955_v47 }
 0x10d   : > { %v716_v48 = vpop.f32.mrf.mxu0 }
 0x10e   : > { %v717_v49 = vadd.f32 %v716_v48, %v666_v15 }
 0x110   : > { %v7494_v51 = vpack.c.bf16 %v717_v49, %v717_v49 }
 0x112   : > { %6373 = vrot.lane.b32.xlu1 %v6367_v45, %s7171_s29  ;;  %957 = vrot.lane.b32.xlu2 %v7492_v50, %s7169_s4  ;;  %v979_v52 = vunpack.c.l.b16 %v7494_v51 }
 0x114   : > { %v7500_v55 = vpack.c.b16 %v979_v52, %v979_v52 }
 0x115   : > { %v718_v53 = vpop.f32.mrf.mxu0 }
 0x116   : > { %v719_v54 = vadd.f32 %v718_v53, %v666_v15 }
 0x118   : > { %v7502_v56 = vpack.i.bf16 %v719_v54, %v717_v49  ;;  %v7504_v57 = vpack.c.bf16 %v719_v54, %v719_v54 }
 0x11a   : > { %981 = vrot.lane.b32.xlu1 %v7500_v55, %s7169_s4  ;;  %6378 = vrot.lane.b32.xlu2 %v6367_v45, %s7170_s6  ;;  %v1003_v58 = vunpack.c.l.b16 %v7504_v57 }
 0x11b   : > { %6383 = vrot.lane.b32.xlu0 %v7502_v56, %s7172_s15 }
 0x11c   : > { %v7512_v59 = vpack.c.b16 %v1003_v58, %v1003_v58 }
 0x122   : > { %6388 = vrot.lane.b32.xlu1 %v7502_v56, %s7171_s29 }
 0x123   : > { %1005 = vrot.lane.b32.xlu0 %v7512_v59, %s7169_s4 }
 0x144   : > { %v6344_v60 = vpop.permute.xlu2 %6343 }
 0x145   : > { %v6345_v61 = vunpack.i.l.bf16 %v6344_v60  ;;  %v6346_v16 = vunpack.i.h.bf16 %v6344_v60 }
 0x147   : > { %v7518_v62 = vpack.c.bf16 %v6345_v61, %v6345_v61  ;;  %v7552_v31 = vpack.c.bf16 %v6346_v16, %v6346_v16 }
 0x149   : > { %v1219_v63 = vunpack.c.l.b16 %v7518_v62  ;;  %v1243_v39 = vunpack.c.l.b16 %v7552_v31 }
 0x14b   : > { %v7521_v0 = vpack.c.b16 %v1219_v63, %v1219_v63  ;;  %v7572_v49 = vpack.c.b16 %v1243_v39, %v1243_v39 }
 0x14d   : > { %1221 = vrot.lane.b32.xlu2 %v7521_v0, %s7169_s4 }
 0x154   : > { %v6354_v1 = vpop.permute.xlu2 %6353 }
 0x155   : > { %v6355_v2 = vunpack.i.l.bf16 %v6354_v1  ;;  %v6356_v36 = vunpack.i.h.bf16 %v6354_v1 }
 0x157   : > { %v7525_v3 = vpack.c.bf16 %v6355_v2, %v6355_v2  ;;  %v7570_v48 = vpack.c.bf16 %v6356_v36, %v6356_v36 }
 0x158   : > { %v837_v4 = vpop.permute.xlu0 %836 }
 0x159   : > { %v843_v5 = vsel %vm838_vm1, %v837_v4, 0  ;;  %v1075_v6 = vunpack.c.l.b16 %v7525_v3 }
 0x15a   : > { %852 = vmatpush.bf16.xpose.msra.mxu1 %v843_v5 }
 0x15b   : > { %v7529_v7 = vpack.c.b16 %v1075_v6, %v1075_v6 }
 0x15c   : > { %v7531_v8 = vpop.permute.xlu1 %6348  ;;  %v6359_v9 = vpop.permute.xlu2 %6358 }
 0x15d   : > { %v6361_v10 = vunpack.i.h.bf16 %v6359_v9  ;;  %1077 = vrot.lane.b32.xlu2 %v7529_v7, %s7169_s4  ;;  %v6360_v22 = vunpack.i.l.bf16 %v6359_v9 }
 0x15f   : > { %v7535_v11 = vpack.c.bf16 %v6361_v10, %v6361_v10  ;;  %v7558_v35 = vpack.c.bf16 %v6360_v22, %v6360_v22 }
 0x160   : > { %v6339_v12 = vpop.permute.xlu0 %6338 }
 0x161   : > { %v6341_v13 = vunpack.i.h.bf16 %v6339_v12  ;;  %v6340_v14 = vunpack.i.l.bf16 %v6339_v12  ;;  %5971 = vmatmul.msk.bf16.vlgmr.msra.gmra.mxu1 %vm838_vm1, %v7447_v18  ;;  %v1291_v15 = vunpack.c.l.b16 %v7535_v11  ;;  %v1267_v42 = vunpack.c.l.b16 %v7558_v35 }
 0x162   : > { %v6351_v12 = vunpack.i.h.bf16 %v7531_v8 }
 0x163   : > { %v7540_v17 = vpack.c.bf16 %v6341_v13, %v6341_v13  ;;  %v7542_v19 = vpack.c.bf16 %v6340_v14, %v6340_v14  ;;  %v7544_v21 = vpack.c.b16 %v1291_v15, %v1291_v15  ;;  %v7574_v52 = vpack.c.b16 %v1267_v42, %v1267_v42 }
 0x164   : > { %v862_v23 = vpop.permute.xlu1 %861  ;;  %v910_v25 = vpop.permute.xlu2 %909 }
 0x165   : > { %1293 = vrot.lane.b32.xlu2 %v7544_v21, %s7169_s4  ;;  %v867_v26 = vsel %vm838_vm1, %v862_v23, 0  ;;  %v915_v27 = vsel %vm838_vm1, %v910_v25, 0  ;;  %v1051_v18 = vunpack.c.l.b16 %v7540_v17  ;;  %v1027_v30 = vunpack.c.l.b16 %v7542_v19 }
 0x166   : > { %876 = vmatpush.bf16.xpose.msra.mxu2 %v867_v26  ;;  %924 = vmatpush.bf16.xpose.msrb.mxu1 %v915_v27 }
 0x167   : > { %v7554_v32 = vpack.c.b16 %v1051_v18, %v1051_v18  ;;  %v7556_v34 = vpack.c.b16 %v1027_v30, %v1027_v30  ;;  %v6350_v18 = vunpack.i.l.bf16 %v7531_v8 }
 0x169   : > { %1053 = vrot.lane.b32.xlu0 %v7554_v32, %s7169_s4  ;;  %1029 = vrot.lane.b32.xlu1 %v7556_v34, %s7169_s4  ;;  %v7630_v42 = vpack.c.bf16 %v6350_v18, %v6350_v18 }
 0x16c   : > { %v886_v40 = vpop.permute.xlu1 %885  ;;  %v958_v41 = vpop.permute.xlu2 %957 }
 0x16d   : > { %5972 = vmatmul.msk.bf16.vlgmr.msra.gmra.mxu2 %vm838_vm1, %v7454_v24  ;;  %v891_v45 = vsel %vm838_vm1, %v886_v40, 0  ;;  %v963_v47 = vsel %vm838_vm1, %v958_v41, 0  ;;  %v1099_v24 = vunpack.c.l.b16 %v7570_v48 }
 0x16e   : > { %900 = vmatpush.bf16.xpose.msra.mxu3 %v891_v45 }
 0x16f   : > { %v7585_v54 = vpack.c.b16 %v1099_v24, %v1099_v24 }
 0x171   : > { %5974 = vmatmul.msk.bf16.vlgmr.msrb.gmra.mxu1 %vm838_vm1, %v7474_v38  ;;  %1245 = vrot.lane.b32.xlu0 %v7572_v49, %s7169_s4 }
 0x172   : > { %1269 = vrot.lane.b32.xlu1 %v7574_v52, %s7169_s4 }
 0x174   : > { %v6364_v53 = vpop.permute.xlu1 %6363  ;;  %v6379_v26 = vpop.permute.xlu2 %6378 }
 0x175   : > { %5973 = vmatmul.msk.bf16.vlgmr.msra.gmra.mxu3 %vm838_vm1, %v7462_v29  ;;  %v6380_v40 = vunpack.i.l.bf16 %v6379_v26 }
 0x176   : > { %972 = vmatpush.bf16.xpose.msrb.mxu3 %v963_v47 }
 0x179   : > { %1101 = vrot.lane.b32.xlu0 %v7585_v54, %s7169_s4 }
 0x17c   : > { %v934_v58 = vpop.permute.xlu1 %933 }
 0x17d   : > { %v6369_v60 = vpop.permute.xlu0 %6368  ;;  %v939_v38 = vsel %vm838_vm1, %v934_v58, 0  ;;  %v7634_v58 = vpack.c.bf16 %v6380_v40, %v6380_v40 }
 0x17e   : > { %v6370_v61 = vunpack.i.l.bf16 %v6369_v60  ;;  %948 = vmatpush.bf16.xpose.msrb.mxu2 %v939_v38  ;;  %v6371_v6 = vunpack.i.h.bf16 %v6369_v60  ;;  %v6366_v38 = vunpack.i.h.bf16 %v6364_v53 }
 0x180   : > { %v7590_v63 = vpack.c.bf16 %v6370_v61, %v6370_v61  ;;  %v7608_v15 = vpack.c.bf16 %v6371_v6, %v6371_v6  ;;  %v1411_v61 = vunpack.c.l.b16 %v7630_v42 }
 0x182   : > { %v1123_v1 = vunpack.c.l.b16 %v7590_v63  ;;  %v1147_v30 = vunpack.c.l.b16 %v7608_v15 }
 0x184   : > { %v6374_v2 = vpop.permute.xlu1 %6373  ;;  %v7593_v4 = vpack.c.b16 %v1123_v1, %v1123_v1  ;;  %v1148_v45 = vpack.c.b16 %v1147_v30, %v1147_v30  ;;  %v6365_v1 = vunpack.i.l.bf16 %v6364_v53 }
 0x185   : > { %v6376_v5 = vunpack.i.h.bf16 %v6374_v2  ;;  %v6375_v29 = vunpack.i.l.bf16 %v6374_v2  ;;  %5975 = vmatmul.msk.bf16.vlgmr.msrb.gmra.mxu2 %vm838_vm1, %v7472_v37  ;;  %5976 = vmatmul.msk.bf16.vlgmr.msrb.gmra.mxu3 %vm838_vm1, %v7484_v46  ;;  %v7614_v46 = vpack.c.bf16 %v6351_v12, %v6351_v12  ;;  %v1507_v2 = vunpack.c.l.b16 %v7634_v58 }
 0x186   : > { %1125 = vrot.lane.b32.xlu2 %v7593_v4, %s7169_s4  ;;  %v6381_v12 = vunpack.i.h.bf16 %v6379_v26 }
 0x187   : > { %v7601_v9 = vpack.c.bf16 %v6376_v5, %v6376_v5  ;;  %v7603_v10 = vpack.c.bf16 %v6375_v29, %v6375_v29  ;;  %v1435_v39 = vunpack.c.l.b16 %v7614_v46  ;;  %v7645_v5 = vpack.c.bf16 %v6366_v38, %v6366_v38 }
 0x188   : > { %v7647_v29 = vpack.c.b16 %v1411_v61, %v1411_v61  ;;  %v7653_v6 = vpack.c.b16 %v1507_v2, %v1507_v2 }
 0x189   : > { %v1315_v13 = vunpack.c.l.b16 %v7603_v10  ;;  %v1339_v14 = vunpack.c.l.b16 %v7601_v9  ;;  %v1436_v24 = vpack.c.b16 %v1435_v39, %v1435_v39  ;;  %v1483_v53 = vunpack.c.l.b16 %v7645_v5 }
 0x18a   : > { %9842 = vst [vmem:[#allocation24_spill] sm:$0xff] %v7653_v6 }
 0x18b   : > { %v7610_v37 = vpack.c.b16 %v1315_v13, %v1315_v13  ;;  %v7612_v16 = vpack.c.b16 %v1339_v14, %v1339_v14  ;;  %v7663_v14 = vpack.c.b16 %v1483_v53, %v1483_v53 }
 0x18c   : > { %v982_v22 = vpop.permute.xlu1 %981 }
 0x18d   : > { %v987_v23 = vsel %vm838_vm1, %v982_v22, 0  ;;  %v7617_v25 = vpop.permute.xlu0 %6383  ;;  %1317 = vrot.lane.b32.xlu0 %v7610_v37, %s7169_s4  ;;  %1341 = vrot.lane.b32.xlu1 %v7612_v16, %s7169_s4  ;;  %v7665_v22 = vpack.c.bf16 %v6381_v12, %v6381_v12 }
 0x18e   : > { %v6385_v27 = vunpack.i.l.bf16 %v7617_v25  ;;  %996 = vmatpush.bf16.xpose.msra.mxu1 %v987_v23 }
 0x190   : > { %v7626_v36 = vpack.c.bf16 %v6385_v27, %v6385_v27 }
 0x192   : > { %v1171_v41 = vunpack.c.l.b16 %v7626_v36 }
 0x194   : > { %v7632_v47 = vpack.c.b16 %v1171_v41, %v1171_v41 }
 0x195   : > { %v1006_v60 = vpop.permute.xlu0 %1005  ;;  %5977 = vmatmul.msk.bf16.vlgmr.msra.gmra.mxu1 %vm838_vm1, %v7494_v51  ;;  %1149 = vrot.lane.b32.xlu0 %v1148_v45, %s7169_s4  ;;  %v7649_v51 = vpack.c.bf16 %v6365_v1, %v6365_v1 }
 0x196   : > { %v1011_v8 = vsel %vm838_vm1, %v1006_v60, 0  ;;  %1173 = vrot.lane.b32.xlu2 %v7632_v47, %s7169_s4  ;;  %1437 = vrot.lane.b32.xlu1 %v1436_v24, %s7169_s4 }
 0x197   : > { %1020 = vmatpush.bf16.xpose.msra.mxu2 %v1011_v8  ;;  %v1459_v13 = vunpack.c.l.b16 %v7649_v51 }
 0x199   : > { %v1460_v23 = vpack.c.b16 %v1459_v13, %v1459_v13 }
 0x19d   : > { %1413 = vrot.lane.b32.xlu0 %v7647_v29, %s7169_s4 }
 0x19e   : > { %5978 = vmatmul.msk.bf16.vlgmr.msra.gmra.mxu2 %vm838_vm1, %v7504_v57  ;;  %6393 = vrot.lane.b32.xlu2 %v7502_v56, %s7170_s6  ;;  %v1531_v56 = vunpack.c.l.b16 %v7665_v22 }
 0x19f   : > { %1509 = vrot.lane.b32.xlu1 %v7653_v6, %s7169_s4 }
 0x1a0   : > { %v7673_v57 = vpack.c.b16 %v1531_v56, %v1531_v56 }
 0x1a2   : > { %9843 = vst [vmem:[#allocation25_spill] sm:$0xff] %v7673_v57 }
 0x1a5   : > { %1485 = vrot.lane.b32.xlu0 %v7663_v14, %s7169_s4 }
 0x1a6   : > { %1461 = vrot.lane.b32.xlu2 %v1460_v23, %s7169_s4 }
 0x1a7   : > { %2074 = vrot.lane.b32.xlu1 %v7450_v20, %s7173_s27  ;;  %v1222_v26 = vpop.permute.xlu2 %1221 }
 0x1ad   : > { %2117 = vrot.lane.b32.xlu0 %v7467_v33, %s7173_s27  ;;  %v6389_v33 = vpop.permute.xlu1 %6388 }
 0x1ae   : > { %1533 = vrot.lane.b32.xlu2 %v7673_v57, %s7169_s4 }
 0x1af   : > { %2180 = vrot.lane.b32.xlu1 %v7492_v50, %s7173_s27  ;;  %v6390_v50 = vunpack.i.l.bf16 %v6389_v33 }
 0x1b5   : > { %2138 = vrot.lane.b32.xlu0 %v7482_v44, %s7173_s27 }
 0x1b6   : > { %2096 = vrot.lane.b32.xlu2 %v7460_v28, %s7173_s27  ;;  %v7695_v28 = vpack.c.bf16 %v6390_v50, %v6390_v50 }
 0x1b7   : > { %2243 = vrot.lane.b32.xlu1 %v7556_v34, %s7173_s27  ;;  %v1078_v20 = vpop.permute.xlu2 %1077 }
 0x1b8   : > { %v1083_v27 = vsel %vm838_vm1, %v1078_v20, 0  ;;  %v1363_v44 = vunpack.c.l.b16 %v7695_v28 }
 0x1b9   : > { %1092 = vmatpush.bf16.xpose.msrb.mxu2 %v1083_v27 }
 0x1bd   : > { %2222 = vrot.lane.b32.xlu0 %v7512_v59, %s7173_s27  ;;  %v6391_v59 = vunpack.i.h.bf16 %v6389_v33 }
 0x1be   : > { %2159 = vrot.lane.b32.xlu2 %v7480_v43, %s7173_s27  ;;  %v7704_v43 = vpack.c.b16 %v1363_v44, %v1363_v44 }
 0x1bf   : > { %2348 = vrot.lane.b32.xlu1 %v1148_v45, %s7173_s27  ;;  %v1227_v45 = vsel %vm838_vm1, %v1222_v26, 0 }
 0x1c0   : > { %5981 = vmatmul.msk.bf16.vlgmr.msrb.gmra.mxu2 %vm838_vm1, %v7525_v3  ;;  %v7712_v3 = vpack.c.bf16 %v6391_v59, %v6391_v59 }
 0x1c2   : > { %v1387_v34 = vunpack.c.l.b16 %v7712_v3 }
 0x1c4   : > { %v1388_v39 = vpack.c.b16 %v1387_v34, %v1387_v34  ;;  %v7777_v34 = vld [vmem:[%s602_s14] sm:$0xff]  ;;  %s10027_s14 = sld [smem:[#allocation47_spill]] }
 0x1c5   : > { %2306 = vrot.lane.b32.xlu0 %v7585_v54, %s7173_s27  ;;  %9845 = vst [vmem:[#allocation27_spill] sm:$0xff] %v7777_v34  ;;  %vm9786_vm2 = vcmp.gt.f32.partialorder %v7777_v34, 0.0 }
 0x1c6   : > { %2201 = vrot.lane.b32.xlu2 %v7500_v55, %s7173_s27  ;;  %v6386_v55 = vunpack.i.h.bf16 %v7617_v25 }
 0x1c7   : > { %2411 = vrot.lane.b32.xlu1 %v7521_v0, %s7173_s27  ;;  %v7718_v0 = vpop.permute.xlu2 %1293 }
 0x1cd   : > { %1365 = vrot.lane.b32.xlu0 %v7704_v43, %s7169_s4 }
 0x1ce   : > { %2264 = vrot.lane.b32.xlu2 %v7554_v32, %s7173_s27  ;;  %v7721_v32 = vpack.c.bf16 %v6386_v55, %v6386_v55 }
 0x1cf   : > { %2516 = vrot.lane.b32.xlu1 %v7612_v16, %s7173_s27 }
 0x1d0   : > { %v1195_v40 = vunpack.c.l.b16 %v7721_v32 }
 0x1d6   : > { %2285 = vrot.lane.b32.xlu2 %v7529_v7, %s7173_s27 }
 0x1d7   : > { %2600 = vrot.lane.b32.xlu1 %v1436_v24, %s7173_s27 }
 0x1db   : > { %v1054_v54 = vpop.permute.xlu0 %1053  ;;  %v1030_v18 = vpop.permute.xlu1 %1029 }
 0x1dc   : > { %v1059_v16 = vsel %vm838_vm1, %v1054_v54, 0  ;;  %v1035_v30 = vsel %vm838_vm1, %v1030_v18, 0 }
 0x1dd   : > { %1068 = vmatpush.bf16.xpose.msrb.mxu1 %v1059_v16  ;;  %1044 = vmatpush.bf16.xpose.msra.mxu3 %v1035_v30 }
 0x1de   : > { %2474 = vrot.lane.b32.xlu2 %v7544_v21, %s7173_s27  ;;  %v7727_v7 = vpop.f32.mrf.mxu1  ;;  %v1196_v21 = vpack.c.b16 %v1195_v40, %v1195_v40  ;;  %v7174_v40 = vmov 0  }
 0x1df   : > { %1389 = vrot.lane.b32.xlu1 %v1388_v39, %s7169_s4 }
 0x1e0   : > { %v1126_v25 = vpop.permute.xlu2 %1125 }
 0x1e1   : > { %v1131_v41 = vsel %vm838_vm1, %v1126_v25, 0 }
 0x1e2   : > { %1140 = vmatpush.bf16.xpose.msrb.mxu0 %v1131_v41  ;;  %v1634_v41 = vsel %vm9786_vm2, 1, %v7174_v40 }
 0x1e3   : > { %v1246_v24 = vpop.permute.xlu0 %1245 }
 0x1e4   : > { %5979 = vmatmul.msk.bf16.vlgmr.msra.gmra.mxu3 %vm838_vm1, %v7542_v19  ;;  %5980 = vmatmul.msk.bf16.vlgmr.msrb.gmra.mxu1 %vm838_vm1, %v7540_v17  ;;  %v1270_v61 = vpop.permute.xlu1 %1269 }
 0x1e5   : > { %v1275_v53 = vsel %vm838_vm1, %v1270_v61, 0 }
 0x1e6   : > { %2390 = vrot.lane.b32.xlu2 %v1196_v21, %s7173_s27  ;;  %v856_v60 = vpop.f32.mrf.mxu1 }
 0x1e7   : > { %2621 = vrot.lane.b32.xlu1 %v1460_v23, %s7173_s27  ;;  %v626_v60 = vrot.slane %v7777_v34, 3 }
 0x1e9   : > { %5983 = vmatmul.msk.bf16.vlgmr.msrb.gmra.mxu0 %vm838_vm1, %v7590_v63  ;;  %vm7797_vm3 = vcmp.gt.f32.partialorder %v626_v60, 0.0 }
 0x1ea   : > { %1236 = vmatpush.bf16.xpose.msra.mxu0 %v1227_v45  ;;  %v1251_v45 = vsel %vm838_vm1, %v1246_v24, 0 }
 0x1eb   : > { %v1102_v8 = vpop.permute.xlu0 %1101 }
 0x1ec   : > { %v1107_v38 = vsel %vm838_vm1, %v1102_v8, 0  ;;  %v1642_v8 = vperm.slane %v1634_v41, 0  ;;  %v9856_v41 = vmov 0 }
 0x1ed   : > { %1116 = vmatpush.bf16.xpose.msrb.mxu3 %v1107_v38 }
 0x1ee   : > { %2558 = vrot.lane.b32.xlu2 %v1388_v39, %s7173_s27  ;;  %v7743_v19 = vpop.f32.mrf.mxu1  ;;  %vm7803_vm4 = vcmp.eq.s32.totalorder %v1642_v8, 1 }
 0x1f0   : > { %v1174_v17 = vpop.permute.xlu2 %1173  ;;  %v7745_v1 = vpop.f32.mrf.mxu2 }
 0x1f1   : > { %v1179_v2 = vsel %vm838_vm1, %v1174_v17, 0 }
 0x1f2   : > { %1188 = vmatpush.bf16.xpose.msra.mxu2 %v1179_v2 }
 0x1f4   : > { %5982 = vmatmul.msk.bf16.vlgmr.msrb.gmra.mxu3 %vm838_vm1, %v7570_v48 }
 0x1f6   : > { %v928_v63 = vpop.f32.mrf.mxu1 }
 0x1f8   : > { %v6394_v12 = vpop.permute.xlu2 %6393  ;;  %v880_v13 = vpop.f32.mrf.mxu2 }
 0x1f9   : > { %v6396_v23 = vunpack.i.h.bf16 %v6394_v12  ;;  %v6395_v56 = vunpack.i.l.bf16 %v6394_v12  ;;  %v7752_v26 = vpop.f32.mrf.mxu3  ;;  %5985 = vmatmul.msk.bf16.vlgmr.msra.gmra.mxu2 %vm838_vm1, %v7626_v36  ;;  %5987 = vmatmul.msk.bf16.vlgmr.msra.gmra.mxu0 %vm838_vm1, %v7518_v62  ;;  %v627_v13 = vrot.slane %v7777_v34, 4 }
 0x1fa   : > { %1284 = vmatpush.bf16.xpose.msrb.mxu2 %v1275_v53 }
 0x1fb   : > { %v7759_v20 = vpack.c.bf16 %v6396_v23, %v6396_v23  ;;  %v7761_v27 = vpack.c.bf16 %v6395_v56, %v6395_v56  ;;  %vm7825_vm5 = vcmp.gt.f32.partialorder %v627_v13, 0.0  ;;  %v9864_v13 = vmov 0 }
 0x1fd   : > { %v1555_v48 = vunpack.c.l.b16 %v7761_v27  ;;  %v1579_v33 = vunpack.c.l.b16 %v7759_v20 }
 0x1ff   : > { %v1318_v50 = vpop.permute.xlu0 %1317  ;;  %v1342_v44 = vpop.permute.xlu1 %1341  ;;  %v7765_v59 = vpack.c.b16 %v1555_v48, %v1555_v48  ;;  %v7767_v55 = vpack.c.b16 %v1579_v33, %v1579_v33  ;;  %v9851_v48 = vmov 0  ;;  %v625_v33 = vrot.slane %v7777_v34, 2 }
 0x200   : > { %v1323_v36 = vsel %vm838_vm1, %v1318_v50, 0  ;;  %v7780_v18 = vpop.permute.xlu2 %1461  ;;  %v9852_v48 = vsel %vm7825_vm5, 4294967295, %v9851_v48  ;;  %v1605_v50 = vmul.f32 0.35355338, %v7743_v19 }
 0x201   : > { %9844 = vst [vmem:[#allocation26_spill] sm:$0xff] %v7767_v55  ;;  %v904_v62 = vpop.f32.mrf.mxu3  ;;  %1557 = vrot.lane.b32.xlu0 %v7765_v59, %s7169_s4  ;;  %1581 = vrot.lane.b32.xlu1 %v7767_v55, %s7169_s4  ;;  %vm7845_vm8 = vcmp.gt.f32.partialorder %v625_v33, 0.0 }
 0x202   : > { %1332 = vmatpush.bf16.xpose.msrb.mxu0 %v1323_v36  ;;  %9853 = vst [vmem:[#allocation29_spill] sm:$0xff] %v9852_v48  ;;  %v9857_v41 = vsel %vm7845_vm8, 4294967295, %v9856_v41 }
 0x203   : > { %9858 = vst [vmem:[#allocation30_spill] sm:$0xff] %v9857_v41 }
 0x207   : > { %v1150_v54 = vpop.permute.xlu0 %1149 }
 0x208   : > { %v1155_v16 = vsel %vm838_vm1, %v1150_v54, 0  ;;  %v7783_v30 = vpop.permute.xlu1 %1437  ;;  %v950_v39 = vpop.f32.mrf.mxu2  ;;  %v1638_v54 = vsel %vm7825_vm5, 1, %v7174_v40 }
 0x209   : > { %v7785_v25 = vpop.f32.mrf.mxu3  ;;  %1197 = vrot.lane.b32.xlu0 %v1196_v21, %s7169_s4  ;;  %5989 = vmatmul.msk.bf16.vlgmr.msrb.gmra.mxu2 %vm838_vm1, %v7558_v35  ;;  %v9846_v21 = vmov 0  ;;  %v1602_v35 = vmul.f32 0.35355338, %v7727_v7  ;;  %v1637_v7 = vsel %vm7797_vm3, 1, %v7174_v40  ;;  %v7817_v23 = vpop.permute.xlu2 %1533  ;;  %v1646_v60 = vperm.slane %v1638_v54, 0 }
 0x20a   : > { %5991 = vmatmul.msk.bf16.vlgmr.msrb.gmra.mxu0 %vm838_vm1, %v7603_v10  ;;  %1164 = vmatpush.bf16.xpose.msra.mxu1 %v1155_v16  ;;  %v9847_v21 = vsel %vm7797_vm3, 4294967295, %v9846_v21  ;;  %v1347_v10 = vsel %vm838_vm1, %v1342_v44, 0 }
 0x20b   : > { %9848 = vst [vmem:[#allocation28_spill] sm:$0xff] %v9847_v21  ;;  %vm7866_vm10 = vcmp.eq.s32.totalorder %v1646_v60, 1 }
 0x20f   : > { %v1414_v38 = vpop.permute.xlu0 %1413 }
 0x210   : > { %v1419_v61 = vsel %vm838_vm1, %v1414_v38, 0  ;;  %v952_v2 = vpop.f32.mrf.mxu2  ;;  %v9859_v38 = vmov 0 }
 0x211   : > { %v1510_v24 = vpop.permute.xlu1 %1509  ;;  %2327 = vrot.lane.b32.xlu0 %v7593_v4, %s7173_s27  ;;  %5984 = vmatmul.msk.bf16.vlgmr.msra.gmra.mxu1 %vm838_vm1, %v7608_v15  ;;  %v976_v63 = vpop.f32.mrf.mxu3  ;;  %v7821_v4 = vsel %vm7803_vm4, %v1602_v35, -1e+30  ;;  %v1645_v15 = vperm.slane %v1637_v7, 0  ;;  %v1636_v35 = vsel %vm7845_vm8, 1, %v7174_v40 }
 0x212   : > { %1260 = vmatpush.bf16.xpose.msrb.mxu1 %v1251_v45  ;;  %v1515_v53 = vsel %vm838_vm1, %v1510_v24, 0  ;;  %1428 = vmatpush.bf16.xpose.msra.mxu0 %v1419_v61  ;;  %v998_v12 = vpop.f32.mrf.mxu1  ;;  %v1690_v56 = vsel %vm838_vm1, %v7821_v4, -inf  ;;  %v630_v45 = vrot.slane %v7777_v34, 7  ;;  %v2097_v8 = vpop.permute.xlu2 %2096  ;;  %v629_v61 = vrot.slane %v7777_v34, 6 }
 0x213   : > { %vm7833_vm6 = vcmp.eq.s32.totalorder %v1645_v15, 1  ;;  %v1644_v7 = vperm.slane %v1636_v35, 0  ;;  %v1604_v15 = vmul.f32 0.35355338, %v7752_v26 }
 0x214   : > { %vm7859_vm9 = vcmp.gt.f32.partialorder %v630_v45, 0.0  ;;  %vm7879_vm11 = vcmp.gt.f32.partialorder %v629_v61, 0.0 }
 0x215   : > { %v9860_v38 = vsel %vm7859_vm9, 4294967295, %v9859_v38  ;;  %v9865_v13 = vsel %vm7879_vm11, 4294967295, %v9864_v13  ;;  %vm7888_vm12 = vcmp.eq.s32.totalorder %v1644_v7, 1 }
 0x216   : > { %9861 = vst [vmem:[#allocation31_spill] sm:$0xff] %v9860_v38  ;;  %v7901_v54 = vsel %vm7888_vm12, %v1604_v15, -1e+30 }
 0x217   : > { %1691 = vmax.xlane.f32.xlu2 %v1690_v56  ;;  %v7831_v44 = vpop.permute.xlu0 %1485  ;;  %9866 = vst [vmem:[#allocation32_spill] sm:$0xff] %v9865_v13  ;;  %v1640_v56 = vsel %vm7879_vm11, 1, %v7174_v40  ;;  %v1696_v35 = vsel %vm838_vm1, %v7901_v54, -inf }
 0x219   : > { %v2075_v62 = vpop.permute.xlu1 %2074  ;;  %2369 = vrot.lane.b32.xlu0 %v7632_v47, %s7173_s27  ;;  %v7852_v47 = vsel %vm7833_vm6, %v1605_v50, -1e+30 }
 0x21a   : > { %1356 = vmatpush.bf16.xpose.msra.mxu1 %v1347_v10  ;;  %1524 = vmatpush.bf16.xpose.msrb.mxu0 %v1515_v53  ;;  %v2081_v16 = vsel %vm9788_vm7, %v2075_v62, 0  ;;  %v1000_v19 = vpop.f32.mrf.mxu1  ;;  %v1606_v10 = vmul.f32 0.35355338, %v950_v39  ;;  %v1443_v53 = vsel %vm838_vm1, %v7783_v30, 0  ;;  %v1641_v39 = vsel %vm7859_vm9, 1, %v7174_v40  ;;  %v2160_v50 = vpop.permute.xlu2 %2159 }
 0x21b   : > { %5995 = vmatmul.msk.bf16.vlgmr.msra.gmra.mxu0 %vm838_vm1, %v7630_v42  ;;  %v1699_v42 = vsel %vm838_vm1, %v7852_v47, -inf  ;;  %v1648_v19 = vperm.slane %v1640_v56, 0  ;;  %v2165_v60 = vsel %vm9788_vm7, %v2160_v50, 0  ;;  %v624_v50 = vrot.slane %v7777_v34, 1 }
 0x21c   : > { %v7886_v30 = vsel %vm7866_vm10, %v1606_v10, -1e+30  ;;  %vm9883_vm9 = vcmask 1043456  }
 0x21d   : > { %v1702_v33 = vsel %vm838_vm1, %v7886_v30, -inf  ;;  %vm7918_vm14 = vcmp.eq.s32.totalorder %v1648_v19, 1  ;;  %vm7968_vm15 = vcmp.gt.f32.partialorder %v624_v50, 0.0  ;;  %v9873_v19 = vmov 0  ;;  %vm9885_vm11 = vmmov %vm9883_vm9 }
 0x21e   : > { %v9874_v19 = vsel %vm7968_vm15, 4294967295, %v9873_v19 }
 0x21f   : > { %1700 = vmax.xlane.f32.xlu2 %v1699_v42  ;;  %v7864_v24 = vpop.permute.xlu0 %2117  ;;  %v1608_v42 = vmul.f32 0.35355338, %v998_v12  ;;  %v1539_v12 = vsel %vm838_vm1, %v7817_v23, 0  ;;  %v2102_v23 = vsel %vm9788_vm7, %v2097_v8, 0  ;;  %9875 = vst [vmem:[#allocation33_spill] sm:$0xff] %v9874_v19 }
 0x221   : > { %v1022_v63 = vpop.f32.mrf.mxu2  ;;  %2432 = vrot.lane.b32.xlu0 %v7572_v49, %s7173_s27  ;;  %5988 = vmatmul.msk.bf16.vlgmr.msrb.gmra.mxu1 %vm838_vm1, %v7552_v31  ;;  %v1649_v31 = vperm.slane %v1641_v39, 0 }
 0x222   : > { %2090 = vmatpush.bf16.msra.mxu0 %v2081_v16  ;;  %1452 = vmatpush.bf16.xpose.msrb.mxu1 %v1443_v53  ;;  %v1609_v62 = vmul.f32 0.35355338, %v1022_v63 }
 0x223   : > { %vm7903_vm13 = vcmp.eq.s32.totalorder %v1649_v31, 1 }
 0x224   : > { %v7916_v61 = vsel %vm7903_vm13, %v1609_v62, -1e+30 }
 0x227   : > { %1703 = vmax.xlane.f32.xlu2 %v1702_v33  ;;  %v7897_v26 = vpop.permute.xlu0 %2138 }
 0x229   : > { %v1024_v45 = vpop.f32.mrf.mxu2  ;;  %2453 = vrot.lane.b32.xlu0 %v7574_v52, %s7173_s27  ;;  %v1711_v52 = vsel %vm838_vm1, %v7916_v61, -inf }
 0x22a   : > { %v1635_v45 = vsel %vm7968_vm15, 1, %v7174_v40 }
 0x22b   : > { %5999 = vmatmul.msk.bf16.vlgmr.msrb.gmra.mxu0 %vm838_vm1, %v7634_v58  ;;  %1697 = vmax.xlane.f32.xlu1 %v1696_v35  ;;  %v7928_v58 = vsel %vm7918_vm14, %v1608_v42, -1e+30 }
 0x22c   : > { %2174 = vmatpush.bf16.msrb.mxu0 %v2165_v60  ;;  %v1708_v53 = vsel %vm838_vm1, %v7928_v58, -inf  ;;  %v1643_v60 = vperm.slane %v1635_v45, 0 }
 0x22e   : > { %vm7985_vm0 = vcmp.eq.s32.totalorder %v1643_v60, 1 }
 0x22f   : > { %1712 = vmax.xlane.f32.xlu2 %v1711_v52  ;;  %v7924_v7 = vpop.permute.xlu0 %2222  ;;  %v9876_v52 = vmov 0 }
 0x231   : > { %2495 = vrot.lane.b32.xlu0 %v7610_v37, %s7173_s27  ;;  %5992 = vmatmul.msk.bf16.vlgmr.msra.gmra.mxu1 %vm838_vm1, %v7601_v9  ;;  %v1467_v9 = vsel %vm838_vm1, %v7780_v18, 0  ;;  %v2202_v18 = vpop.permute.xlu2 %2201 }
 0x232   : > { %1548 = vmatpush.bf16.xpose.msra.mxu1 %v1539_v12 }
 0x233   : > { %1709 = vmax.xlane.f32.xlu1 %v1708_v53 }
 0x237   : > { %v7938_v63 = vpop.permute.xlu0 %2306 }
 0x239   : > { %2537 = vrot.lane.b32.xlu0 %v7704_v43, %s7173_s27  ;;  %v2181_v43 = vpop.permute.xlu1 %2180 }
 0x23a   : > { %v2186_v33 = vsel %vm9788_vm7, %v2181_v43, 0 }
 0x23f   : > { %v1366_v39 = vpop.permute.xlu0 %1365 }
 0x240   : > { %v1371_v15 = vsel %vm838_vm1, %v1366_v39, 0 }
 0x241   : > { %2579 = vrot.lane.b32.xlu0 %v7647_v29, %s7173_s27  ;;  %5996 = vmatmul.msk.bf16.vlgmr.msrb.gmra.mxu1 %vm838_vm1, %v7614_v46  ;;  %v7958_v29 = vpop.permute.xlu1 %2243 }
 0x242   : > { %2111 = vmatpush.bf16.msrb.mxu1 %v2102_v23  ;;  %1380 = vmatpush.bf16.xpose.msra.mxu2 %v1371_v15 }
 0x243   : > { %v1094_v37 = vpop.f32.mrf.mxu2 }
 0x244   : > { %v1612_v31 = vmul.f32 0.35355338, %v1094_v37 }
 0x246   : > { %v7952_v56 = vsel %vm7888_vm12, %v1612_v31, -1e+30 }
 0x247   : > { %v1720_v8 = vsel %vm838_vm1, %v7952_v56, -inf }
 0x248   : > { %1721 = vmax.xlane.f32.xlu2 %v1720_v8 }
 0x249   : > { %5993 = vmatmul.msk.bf16.vlgmr.msra.gmra.mxu2 %vm838_vm1, %v7695_v28  ;;  %v7964_v62 = vpop.permute.xlu1 %2348  ;;  %v7972_v28 = vpop.permute.xlu2 %2264 }
 0x24a   : > { %1476 = vmatpush.bf16.xpose.msrb.mxu2 %v1467_v9 }
 0x24b   : > { %v1096_v46 = vpop.f32.mrf.mxu2 }
 0x251   : > { %6000 = vmatmul.msk.bf16.vlgmr.msra.gmra.mxu1 %vm838_vm1, %v7665_v22  ;;  %v628_v22 = vrot.slane %v7777_v34, 5  ;;  %v7983_v12 = vpop.permute.xlu1 %2411  ;;  %v7989_v39 = vpop.permute.xlu2 %2285 }
 0x252   : > { %2195 = vmatpush.bf16.msra.mxu1 %v2186_v33  ;;  %v1607_v33 = vmul.f32 0.35355338, %v7785_v25 }
 0x253   : > { %vm7978_vm2 = vcmp.gt.f32.partialorder %v628_v22, 0.0 }
 0x254   : > { %v9877_v52 = vsel %vm7978_vm2, 4294967295, %v9876_v52  ;;  %v1639_v9 = vsel %vm7978_vm2, 1, %v7174_v40 }
 0x255   : > { %9878 = vst [vmem:[#allocation34_spill] sm:$0xff] %v9877_v52  ;;  %v1647_v43 = vperm.slane %v1639_v9, 0  ;;  %v2123_v9 = vsel %vm9883_vm9, %v7864_v24, 0  ;;  %v2207_v24 = vsel %vm9885_vm11, %v2202_v18, 0  ;;  %vm9889_vm11 = vmmov %vm9883_vm9 }
 0x257   : > { %vm8009_vm7 = vcmp.eq.s32.totalorder %v1647_v43, 1 }
 0x259   : > { %5997 = vmatmul.msk.bf16.vlgmr.msrb.gmra.mxu2 %vm838_vm1, %v7649_v51  ;;  %v1603_v51 = vmul.f32 0.35355338, %v7745_v1  ;;  %v8013_v40 = vpop.permute.xlu1 %2516  ;;  %v8015_v45 = vpop.permute.xlu2 %2474 }
 0x25b   : > { %v8004_v31 = vsel %vm7985_vm0, %v1603_v51, -1e+30 }
 0x25c   : > { %v1693_v46 = vsel %vm838_vm1, %v8004_v31, -inf }
 0x261   : > { %v1070_v35 = vpop.f32.mrf.mxu1 }
 0x262   : > { %v1611_v42 = vmul.f32 0.35355338, %v1070_v35  ;;  %v8019_v35 = vsel %vm8009_vm7, %v1607_v33, -1e+30 }
 0x264   : > { %v7993_v15 = vsel %vm7985_vm0, %v1611_v42, -1e+30  ;;  %v1705_v42 = vsel %vm838_vm1, %v8019_v35, -inf }
 0x265   : > { %v1717_v23 = vsel %vm838_vm1, %v7993_v15, -inf }
 0x266   : > { %v8000_v1 = vpop.f32.mrf.mxu0  ;;  %1718 = vmax.xlane.f32.xlu1 %v1717_v23 }
 0x267   : > { %v1046_v37 = vpop.f32.mrf.mxu3 }
 0x268   : > { %v1610_v51 = vmul.f32 0.35355338, %v1046_v37 }
 0x269   : > { %v1072_v8 = vpop.f32.mrf.mxu1 }
 0x26a   : > { %v8028_v8 = vpop.permute.xlu1 %2600  ;;  %v8032_v33 = vsel %vm7803_vm4, %v1610_v51, -1e+30  ;;  %v1299_v51 = vsel %vm838_vm1, %v7718_v0, 0 }
 0x26b   : > { %1694 = vmax.xlane.f32.xlu0 %v1693_v46  ;;  %9884 = vst [vmem:[#allocation35_spill] sm:$0xff] %v8028_v8  ;;  %v1714_v37 = vsel %vm838_vm1, %v8032_v33, -inf }
 0x26e   : > { %v1144_v22 = vpop.f32.mrf.mxu0 }
 0x26f   : > { %v1048_v60 = vpop.f32.mrf.mxu3  ;;  %v8034_v22 = vpop.permute.xlu2 %2390 }
 0x272   : > { %v1390_v38 = vpop.permute.xlu1 %1389 }
 0x273   : > { %1706 = vmax.xlane.f32.xlu0 %v1705_v42  ;;  %v1558_v25 = vpop.permute.xlu0 %1557  ;;  %v1395_v18 = vsel %vm838_vm1, %v1390_v38, 0 }
 0x274   : > { %v1563_v23 = vsel %vm838_vm1, %v1558_v25, 0 }
 0x275   : > { %1572 = vmatpush.bf16.xpose.msra.mxu2 %v1563_v23 }
 0x276   : > { %v8026_v43 = vpop.f32.mrf.mxu0 }
 0x277   : > { %v1118_v46 = vpop.f32.mrf.mxu3  ;;  %v8046_v13 = vpop.permute.xlu2 %2558 }
 0x278   : > { %9886 = vst [vmem:[#allocation36_spill] sm:$0xff] %v8046_v13 }
 0x27b   : > { %v1198_v60 = vpop.permute.xlu0 %1197  ;;  %1715 = vmax.xlane.f32.xlu0 %v1714_v37 }
 0x27c   : > { %v1203_v42 = vsel %vm838_vm1, %v1198_v60, 0  ;;  %v8040_v25 = vpop.f32.mrf.mxu2  ;;  %6001 = vmatmul.msk.bf16.vlgmr.msra.gmra.mxu2 %vm838_vm1, %v7761_v27 }
 0x27d   : > { %2132 = vmatpush.bf16.msrb.mxu2 %v2123_v9  ;;  %1212 = vmatpush.bf16.xpose.msra.mxu3 %v1203_v42 }
 0x27e   : > { %v1240_v23 = vpop.f32.mrf.mxu0 }
 0x27f   : > { %v1120_v9 = vpop.f32.mrf.mxu3 }
 0x281   : > { %2216 = vmatpush.bf16.msra.mxu2 %v2207_v24 }
 0x284   : > { %v1192_v37 = vpop.f32.mrf.mxu2  ;;  %5986 = vmatmul.msk.bf16.vlgmr.msra.gmra.mxu3 %vm838_vm1, %v7721_v32 }
 0x285   : > { %1308 = vmatpush.bf16.xpose.msrb.mxu3 %v1299_v51  ;;  %v8056_v51 = vpop.permute.xlu1 %2621 }
 0x286   : > { %9887 = vst [vmem:[#allocation37_spill] sm:$0xff] %v8056_v51 }
 0x287   : > { %v8051_v60 = vpop.f32.mrf.mxu0 }
 0x28a   : > { %v1692_v27 = vpop.xlane.xlu2 %1691 }
 0x28b   : > { %v1786_v0 = vsub.f32 %v7821_v4, %v1692_v27  ;;  %v1491_v4 = vsel %vm838_vm1, %v7831_v44, 0 }
 0x28c   : > { %v8054_v42 = vpop.f32.mrf.mxu2 }
 0x28d   : > { %1404 = vmatpush.bf16.xpose.msra.mxu3 %v1395_v18  ;;  %v1818_v24 = vmul.f32 1.442695, %v1786_v0 }
 0x28e   : > { %v1166_v23 = vpop.f32.mrf.mxu1 }
 0x28f   : > { %6517 = vpow2.f32 %v1818_v24  ;;  %v1615_v9 = vmul.f32 0.35355338, %v1166_v23  ;;  %v1336_v52 = vpop.f32.mrf.mxu0  ;;  %v1613_v23 = vmul.f32 0.35355338, %v1118_v46 }
 0x290   : > { %v1582_v52 = vpop.permute.xlu1 %1581 }
 0x291   : > { %v8060_v38 = vsel %vm8009_vm7, %v1615_v9, -1e+30 }
 0x292   : > { %v1701_v32 = vpop.xlane.xlu2 %1700  ;;  %v1729_v18 = vsel %vm838_vm1, %v8060_v38, -inf }
 0x293   : > { %1730 = vmax.xlane.f32.xlu2 %v1729_v18  ;;  %v8074_v18 = vpop.permute.xlu0 %2327  ;;  %v1789_v48 = vsub.f32 %v7852_v47, %v1701_v32  ;;  %v1616_v47 = vmul.f32 0.35355338, %v8040_v25 }
 0x294   : > { %v1288_v37 = vpop.f32.mrf.mxu2  ;;  %5990 = vmatmul.msk.bf16.vlgmr.msrb.gmra.mxu3 %vm838_vm1, %v7535_v11  ;;  %v8079_v11 = vsel %vm7833_vm6, %v1613_v23, -1e+30 }
 0x295   : > { %v8068_v27 = vpop.eup %6517  ;;  %1500 = vmatpush.bf16.xpose.msrb.mxu3 %v1491_v4  ;;  %v1723_v41 = vsel %vm838_vm1, %v8079_v11, -inf }
 0x296   : > { %v1168_v0 = vpop.f32.mrf.mxu1  ;;  %v1882_v24 = vsel %vm838_vm1, %v8068_v27, 0.0 }
 0x297   : > { %1883 = vadd.xlane.f32.xlu0 %v1882_v24 }
 0x298   : > { %v8072_v9 = vpop.f32.mrf.mxu0 }
 0x29a   : > { %v1704_v34 = vpop.xlane.xlu2 %1703 }
 0x29b   : > { %v1790_v44 = vsub.f32 %v7886_v30, %v1704_v34  ;;  %v1587_v34 = vsel %vm838_vm1, %v1582_v52, 0  ;;  %v8088_v30 = vpop.permute.xlu0 %2369  ;;  %v8106_v52 = vsel %vm7918_vm14, %v1616_v47, -1e+30 }
 0x29d   : > { %v1826_v37 = vmul.f32 1.442695, %v1790_v44  ;;  %v1824_v44 = vmul.f32 1.442695, %v1789_v48 }
 0x29e   : > { %v8081_v4 = vpop.f32.mrf.mxu1  ;;  %v1698_v0 = vpop.xlane.xlu1 %1697 }
 0x29f   : > { %6519 = vpow2.f32 %v1826_v37  ;;  %v1788_v24 = vsub.f32 %v7901_v54, %v1698_v0  ;;  %1724 = vmax.xlane.f32.xlu0 %v1723_v41 }
 0x2a0   : > { %v1432_v46 = vpop.f32.mrf.mxu0 }
 0x2a1   : > { %v1822_v21 = vmul.f32 1.442695, %v1788_v24 }
 0x2a3   : > { %6521 = vpow2.f32 %v1822_v21  ;;  %v8108_v0 = vpop.permute.xlu0 %2432 }
 0x2a4   : > { %5994 = vmatmul.msk.bf16.vlgmr.msra.gmra.mxu3 %vm838_vm1, %v7712_v3  ;;  %6523 = vpow2.f32 %v1824_v44 }
 0x2a5   : > { %v8092_v23 = vpop.eup %6519  ;;  %1596 = vmatpush.bf16.xpose.msra.mxu3 %v1587_v34 }
 0x2a6   : > { %v1264_v37 = vpop.f32.mrf.mxu1  ;;  %v1710_v46 = vpop.xlane.xlu1 %1709  ;;  %v1894_v41 = vsel %vm838_vm1, %v8092_v23, 0.0 }
 0x2a7   : > { %v1792_v21 = vsub.f32 %v7928_v58, %v1710_v46  ;;  %1895 = vadd.xlane.f32.xlu2 %v1894_v41  ;;  %v1732_v58 = vsel %vm838_vm1, %v8106_v52, -inf  ;;  %v1618_v46 = vmul.f32 0.35355338, %v8026_v43  ;;  %v2144_v41 = vsel %vm9883_vm9, %v7897_v26, 0 }
 0x2a8   : > { %v8097_v54 = vpop.f32.mrf.mxu0 }
 0x2a9   : > { %v8100_v32 = vpop.eup %6521  ;;  %v1830_v3 = vmul.f32 1.442695, %v1792_v21 }
 0x2aa   : > { %v1888_v48 = vsel %vm838_vm1, %v8100_v32, 0.0  ;;  %v8114_v24 = vpop.eup %6523 }
 0x2ab   : > { %1889 = vadd.xlane.f32.xlu0 %v1888_v48  ;;  %6525 = vpow2.f32 %v1830_v3  ;;  %v1891_v44 = vsel %vm838_vm1, %v8114_v24, 0.0  ;;  %v8129_v3 = vsel %vm7803_vm4, %v1618_v46, -1e+30  ;;  %v8131_v48 = vpop.permute.xlu0 %2453 }
 0x2ac   : > { %v1738_v43 = vsel %vm838_vm1, %v8129_v3, -inf }
 0x2ae   : > { %v8110_v25 = vpop.f32.mrf.mxu1 }
 0x2af   : > { %1733 = vmax.xlane.f32.xlu2 %v1732_v58 }
 0x2b0   : > { %v1528_v34 = vpop.f32.mrf.mxu0 }
 0x2b1   : > { %v8118_v37 = vpop.eup %6525 }
 0x2b2   : > { %v1900_v21 = vsel %vm838_vm1, %v8118_v37, 0.0 }
 0x2b3   : > { %1892 = vadd.xlane.f32.xlu0 %v1891_v44  ;;  %v8137_v58 = vpop.permute.xlu0 %2495 }
 0x2b4   : > { %5998 = vmatmul.msk.bf16.vlgmr.msrb.gmra.mxu3 %vm838_vm1, %v7645_v5  ;;  %9888 = vst [vmem:[#allocation38_spill] sm:$0xff] %v8137_v58  ;;  %v2228_v5 = vsel %vm9889_vm11, %v7924_v7, 0 }
 0x2b5   : > { %2153 = vmatpush.bf16.msrb.mxu3 %v2144_v41 }
 0x2b6   : > { %v1360_v47 = vpop.f32.mrf.mxu1 }
 0x2b7   : > { %1901 = vadd.xlane.f32.xlu2 %v1900_v21 }
 0x2bb   : > { %1739 = vmax.xlane.f32.xlu0 %v1738_v43  ;;  %v8143_v44 = vpop.permute.xlu0 %2537 }
 0x2bc   : > { %9890 = vst [vmem:[#allocation39_spill] sm:$0xff] %v8143_v44 }
 0x2be   : > { %v8135_v26 = vpop.f32.mrf.mxu1 }
 0x2c3   : > { %v8153_v19 = vpop.permute.xlu0 %2579 }
 0x2c4   : > { %6002 = vmatmul.msk.bf16.vlgmr.msra.gmra.mxu3 %vm838_vm1, %v7759_v20  ;;  %9891 = vst [vmem:[#allocation40_spill] sm:$0xff] %v8153_v19  ;;  %v1622_v19 = vmul.f32 0.35355338, %v8051_v60 }
 0x2c5   : > { %2237 = vmatpush.bf16.msra.mxu3 %v2228_v5 }
 0x2c6   : > { %v1456_v34 = vpop.f32.mrf.mxu1  ;;  %v8213_v6 = vsel %vm7866_vm10, %v1622_v19, -1e+30  ;;  %v1623_v19 = vmul.f32 0.35355338, %v8110_v25 }
 0x2c7   : > { %v1750_v17 = vsel %vm838_vm1, %v8213_v6, -inf }
 0x2cc   : > { %v8145_v46 = vpop.f32.mrf.mxu2 }
 0x2cd   : > { %v1624_v60 = vmul.f32 0.35355338, %v8145_v46 }
 0x2ce   : > { %v1550_v41 = vpop.f32.mrf.mxu1 }
 0x2cf   : > { %v1631_v47 = vmul.f32 0.35355338, %v1550_v41 }
 0x2d1   : > { %v8149_v21 = vsel %vm8009_vm7, %v1631_v47, -1e+30 }
 0x2d2   : > { %v1777_v43 = vsel %vm838_vm1, %v8149_v21, -inf }
 0x2d3   : > { %1778 = vmax.xlane.f32.xlu2 %v1777_v43 }
 0x2d4   : > { %v1384_v7 = vpop.f32.mrf.mxu2 }
 0x2d5   : > { %v1614_v7 = vmul.f32 0.35355338, %v8000_v1 }
 0x2d6   : > { %v1552_v20 = vpop.f32.mrf.mxu1 }
 0x2d7   : > { %v8166_v20 = vsel %vm7866_vm10, %v1614_v7, -1e+30 }
 0x2dc   : > { %v8155_v5 = vpop.f32.mrf.mxu2 }
 0x2de   : > { %v1695_v34 = vpop.xlane.xlu0 %1694 }
 0x2df   : > { %v1787_v13 = vsub.f32 %v8004_v31, %v1695_v34  ;;  %v1726_v31 = vsel %vm838_vm1, %v8166_v20, -inf }
 0x2e1   : > { %v1820_v51 = vmul.f32 1.442695, %v1787_v13 }
 0x2e3   : > { %6527 = vpow2.f32 %v1820_v51  ;;  %v1713_v51 = vpop.xlane.xlu2 %1712 }
 0x2e4   : > { %v1480_v41 = vpop.f32.mrf.mxu2 }
 0x2e5   : > { %v1620_v41 = vmul.f32 0.35355338, %v8054_v42 }
 0x2e6   : > { %v1707_v8 = vpop.xlane.xlu0 %1706 }
 0x2e7   : > { %v1791_v47 = vsub.f32 %v8019_v35, %v1707_v8  ;;  %v1619_v8 = vmul.f32 0.35355338, %v8081_v4  ;;  %v8187_v4 = vsel %vm7888_vm12, %v1620_v41, -1e+30 }
 0x2e9   : > { %v8159_v44 = vpop.eup %6527  ;;  %v1828_v58 = vmul.f32 1.442695, %v1791_v47  ;;  %v8177_v1 = vsel %vm7985_vm0, %v1619_v8, -1e+30 }
 0x2ea   : > { %v1885_v43 = vsel %vm838_vm1, %v8159_v44, 0.0  ;;  %v1741_v34 = vsel %vm838_vm1, %v8177_v1, -inf }
 0x2eb   : > { %6529 = vpow2.f32 %v1828_v58  ;;  %1886 = vadd.xlane.f32.xlu1 %v1885_v43  ;;  %v1793_v58 = vsub.f32 %v7916_v61, %v1713_v51  ;;  %v8195_v51 = vpop.xlane.xlu2 %1721 }
 0x2ed   : > { %v1832_v47 = vmul.f32 1.442695, %v1793_v58 }
 0x2ee   : > { %v8189_v7 = vpop.xlane.xlu0 %1715 }
 0x2ef   : > { %6531 = vpow2.f32 %v1832_v47  ;;  %v1626_v47 = vmul.f32 0.35355338, %v8072_v9 }
 0x2f1   : > { %v8168_v13 = vpop.eup %6529 }
 0x2f2   : > { %v1897_v35 = vsel %vm838_vm1, %v8168_v13, 0.0 }
 0x2f3   : > { %1727 = vmax.xlane.f32.xlu1 %v1726_v31  ;;  %1898 = vadd.xlane.f32.xlu0 %v1897_v35  ;;  %v1744_v31 = vsel %vm838_vm1, %v8187_v4, -inf }
 0x2f5   : > { %v8193_v61 = vpop.eup %6531 }
 0x2fb   : > { %1742 = vmax.xlane.f32.xlu1 %v1741_v34  ;;  %v1903_v34 = vsel %vm838_vm1, %v8193_v61, 0.0 }
 0x2ff   : > { %v8183_v43 = vpop.f32.mrf.mxu2 }
 0x303   : > { %1745 = vmax.xlane.f32.xlu1 %v1744_v31 }
 0x306   : > { %v8215_v57 = vpop.xlane.xlu2 %1730 }
 0x307   : > { %v1214_v35 = vpop.f32.mrf.mxu3  ;;  %v1576_v8 = vpop.f32.mrf.mxu2 }
 0x308   : > { %v1617_v42 = vmul.f32 0.35355338, %v1214_v35  ;;  %v8209_v8 = vsel %vm7803_vm4, %v1626_v47, -1e+30  ;;  %vm9892_vm4 = vmmov %vm9883_vm9 }
 0x309   : > { %v2249_v55 = vsel %vm9892_vm4, %v7958_v29, 0  ;;  %vm9894_vm9 = vmmov %vm9892_vm4 }
 0x30a   : > { %v1884_v58 = vpop.xlane.xlu0 %1883  ;;  %v8201_v41 = vsel %vm7903_vm13, %v1617_v42, -1e+30 }
 0x30b   : > { %1904 = vadd.xlane.f32.xlu1 %v1903_v34  ;;  %v1735_v31 = vsel %vm838_vm1, %v8201_v41, -inf  ;;  %6533 = vrcp.f32 %v1884_v58  ;;  %v1762_v34 = vsel %vm838_vm1, %v8209_v8, -inf }
 0x30c   : > { %1736 = vmax.xlane.f32.xlu0 %v1735_v31 }
 0x30f   : > { %v1216_v35 = vpop.f32.mrf.mxu3 }
 0x311   : > { %v6534_v42 = vpop.eup %6533 }
 0x312   : > { %v1725_v9 = vpop.xlane.xlu0 %1724  ;;  %v2010_v58 = vmul.f32 %v6534_v42, %v8068_v27  ;;  %v8230_v27 = vsel %vm7918_vm14, %v1624_v60, -1e+30 }
 0x313   : > { %v1797_v31 = vsub.f32 %v8079_v11, %v1725_v9  ;;  %1763 = vmax.xlane.f32.xlu1 %v1762_v34  ;;  %v8234_v11 = vsel %vm8009_vm7, %v1623_v19, -1e+30  ;;  %v1756_v42 = vsel %vm838_vm1, %v8230_v27, -inf  ;;  %vm9893_vm7 = vmmov %vm9892_vm4 }
 0x314   : > { %1751 = vmax.xlane.f32.xlu0 %v1750_v17  ;;  %v2042_v47 = vpack.c.bf16 %v2010_v58, %v2010_v58  ;;  %v1753_v29 = vsel %vm838_vm1, %v8234_v11, -inf  ;;  %v1794_v17 = vsub.f32 %v8032_v33, %v8189_v7 }
 0x315   : > { %v1840_v35 = vmul.f32 1.442695, %v1797_v31 }
 0x316   : > { %6003 = vmatmul.msk.bf16.vlgmr.msra.gmra.mxu0 %vm838_vm1, %v2042_v47 }
 0x317   : > { %6535 = vpow2.f32 %v1840_v35  ;;  %v1310_v46 = vpop.f32.mrf.mxu3  ;;  %2258 = vmatpush.bf16.msra.mxu0 %v2249_v55 }
 0x318   : > { %v1621_v9 = vmul.f32 0.35355338, %v1310_v46  ;;  %v1627_v46 = vmul.f32 0.35355338, %v8135_v26 }
 0x31a   : > { %v1896_v25 = vpop.xlane.xlu2 %1895  ;;  %v8246_v58 = vsel %vm7833_vm6, %v1621_v9, -1e+30  ;;  %v8262_v26 = vsel %vm7985_vm0, %v1627_v46, -1e+30  ;;  %vm9895_vm0 = vmmov %vm9892_vm4 }
 0x31b   : > { %6537 = vrcp.f32 %v1896_v25  ;;  %1757 = vmax.xlane.f32.xlu1 %v1756_v42  ;;  %v1747_v35 = vsel %vm838_vm1, %v8246_v58, -inf  ;;  %vm9901_vm11 = vmmov %vm9895_vm0 }
 0x31c   : > { %1754 = vmax.xlane.f32.xlu0 %v1753_v29  ;;  %v1834_v29 = vmul.f32 1.442695, %v1794_v17  ;;  %vm9902_vm4 = vmmov %vm9895_vm0 }
 0x31d   : > { %v8240_v34 = vpop.eup %6535 }
 0x31e   : > { %v1890_v60 = vpop.xlane.xlu0 %1889  ;;  %v1915_v55 = vsel %vm838_vm1, %v8240_v34, 0.0 }
 0x31f   : > { %6539 = vrcp.f32 %v1890_v60  ;;  %v1312_v50 = vpop.f32.mrf.mxu3  ;;  %1916 = vadd.xlane.f32.xlu2 %v1915_v55  ;;  %v2333_v55 = vsel %vm9893_vm7, %v8074_v18, 0  ;;  %vm9903_vm7 = vmmov %vm9895_vm0 }
 0x321   : > { %v6538_v31 = vpop.eup %6537 }
 0x322   : > { %v2014_v19 = vmul.f32 %v6538_v31, %v8092_v23  ;;  %v8251_v47 = vpop.xlane.xlu2 %1733  ;;  %v1719_v23 = vpop.xlane.xlu1 %1718  ;;  %v2291_v31 = vsel %vm9894_vm9, %v7989_v39, 0  ;;  %v1630_v39 = vmul.f32 0.35355338, %v8097_v54  ;;  %v1796_v54 = vsub.f32 %v7952_v56, %v8195_v51  ;;  %vm9904_vm9 = vmmov %vm9895_vm0 }
 0x323   : > { %v1795_v17 = vsub.f32 %v7993_v15, %v1719_v23 }
 0x324   : > { %v2046_v25 = vpack.c.bf16 %v2014_v19, %v2014_v19  ;;  %1748 = vmax.xlane.f32.xlu0 %v1747_v35  ;;  %v1765_v19 = vsel %vm838_vm1, %v8262_v26, -inf  ;;  %v8282_v15 = vsel %vm7866_vm10, %v1630_v39, -1e+30  ;;  %vm9896_vm10 = vmmov %vm9895_vm0 }
 0x325   : > { %v6540_v42 = vpop.eup %6539  ;;  %v1836_v46 = vmul.f32 1.442695, %v1795_v17 }
 0x326   : > { %v2012_v9 = vmul.f32 %v6540_v42, %v8100_v32  ;;  %v1893_v60 = vpop.xlane.xlu0 %1892  ;;  %6007 = vmatmul.msk.bf16.vlgmr.msrb.gmra.mxu0 %vm838_vm1, %v2046_v25 }
 0x327   : > { %v1406_v33 = vpop.f32.mrf.mxu3  ;;  %2342 = vmatpush.bf16.msrb.mxu0 %v2333_v55  ;;  %6541 = vrcp.f32 %v1893_v60  ;;  %v2312_v55 = vsel %vm9895_vm0, %v7938_v63, 0  ;;  %v1838_v63 = vmul.f32 1.442695, %v1796_v54 }
 0x328   : > { %v2044_v7 = vpack.c.bf16 %v2012_v9, %v2012_v9  ;;  %v1625_v50 = vmul.f32 0.35355338, %v1406_v33  ;;  %6543 = vpow2.f32 %v1834_v29  ;;  %v1628_v33 = vmul.f32 0.35355338, %v8155_v5 }
 0x329   : > { %v2375_v5 = vsel %vm9896_vm10, %v8088_v30, 0  ;;  %vm9910_vm10 = vmmov %vm9895_vm0 }
 0x32a   : > { %6005 = vmatmul.msk.bf16.vlgmr.msrb.gmra.mxu2 %vm838_vm1, %v2044_v7  ;;  %v1902_v32 = vpop.xlane.xlu2 %1901  ;;  %v8269_v18 = vsel %vm7903_vm13, %v1625_v50, -1e+30  ;;  %v8297_v56 = vsel %vm7888_vm12, %v1628_v33, -1e+30  ;;  %vm9898_vm12 = vmmov %vm9895_vm0 }
 0x32b   : > { %2300 = vmatpush.bf16.msrb.mxu2 %v2291_v31  ;;  %6545 = vrcp.f32 %v1902_v32  ;;  %v1759_v53 = vsel %vm838_vm1, %v8269_v18, -inf  ;;  %v1768_v31 = vsel %vm838_vm1, %v8297_v56, -inf }
 0x32c   : > { %1760 = vmax.xlane.f32.xlu1 %v1759_v53  ;;  %1766 = vmax.xlane.f32.xlu0 %v1765_v19  ;;  %6547 = vpow2.f32 %v1836_v46 }
 0x32d   : > { %v6542_v35 = vpop.eup %6541  ;;  %6549 = vpow2.f32 %v1838_v63 }
 0x32e   : > { %v2013_v25 = vmul.f32 %v6542_v35, %v8114_v24  ;;  %v8278_v29 = vpop.eup %6543  ;;  %v1774_v24 = vsel %vm838_vm1, %v8282_v15, -inf  ;;  %v1740_v35 = vpop.xlane.xlu0 %1739 }
 0x32f   : > { %v1408_v42 = vpop.f32.mrf.mxu3  ;;  %v1906_v23 = vsel %vm838_vm1, %v8278_v29, 0.0 }
 0x330   : > { %v2045_v60 = vpack.c.bf16 %v2013_v25, %v2013_v25  ;;  %v1802_v42 = vsub.f32 %v8129_v3, %v1740_v35 }
 0x331   : > { %v6546_v9 = vpop.eup %6545 }
 0x332   : > { %6006 = vmatmul.msk.bf16.vlgmr.msrb.gmra.mxu3 %vm838_vm1, %v2045_v60  ;;  %v2016_v2 = vmul.f32 %v6546_v9, %v8118_v37  ;;  %v8299_v51 = vpop.eup %6547  ;;  %v1799_v37 = vsub.f32 %v8060_v38, %v8215_v57  ;;  %v1632_v38 = vmul.f32 0.35355338, %v8183_v43 }
 0x333   : > { %2321 = vmatpush.bf16.msrb.mxu3 %v2312_v55  ;;  %v1909_v49 = vsel %vm838_vm1, %v8299_v51, 0.0  ;;  %v8314_v19 = vpop.eup %6549  ;;  %v1850_v55 = vmul.f32 1.442695, %v1802_v42 }
 0x334   : > { %1775 = vmax.xlane.f32.xlu1 %v1774_v24  ;;  %1907 = vadd.xlane.f32.xlu0 %v1906_v23  ;;  %v2048_v50 = vpack.c.bf16 %v2016_v2, %v2016_v2  ;;  %v1844_v17 = vmul.f32 1.442695, %v1799_v37  ;;  %v1912_v39 = vsel %vm838_vm1, %v8314_v19, 0.0  ;;  %v8323_v36 = vsel %vm7918_vm14, %v1632_v38, -1e+30  ;;  %vm9900_vm14 = vmmov %vm9895_vm0 }
 0x335   : > { %v1780_v9 = vsel %vm838_vm1, %v8323_v36, -inf  ;;  %v1800_v37 = vsub.f32 %v8106_v52, %v8251_v47 }
 0x336   : > { %6551 = vpow2.f32 %v1844_v17 }
 0x337   : > { %v1502_v7 = vpop.f32.mrf.mxu3  ;;  %6553 = vpow2.f32 %v1850_v55 }
 0x338   : > { %v1629_v32 = vmul.f32 0.35355338, %v1502_v7 }
 0x33a   : > { %6009 = vmatmul.msk.bf16.vlgmr.msra.gmra.mxu2 %vm838_vm1, %v2048_v50  ;;  %v8312_v30 = vsel %vm7833_vm6, %v1629_v32, -1e+30  ;;  %vm9897_vm6 = vmmov %vm9895_vm0 }
 0x33b   : > { %2384 = vmatpush.bf16.msra.mxu2 %v2375_v5  ;;  %v1771_v57 = vsel %vm838_vm1, %v8312_v30, -inf  ;;  %v2270_v32 = vsel %vm9897_vm6, %v7972_v28, 0  ;;  %vm9912_vm6 = vmmov %vm9895_vm0 }
 0x33c   : > { %1769 = vmax.xlane.f32.xlu1 %v1768_v31  ;;  %1910 = vadd.xlane.f32.xlu0 %v1909_v49  ;;  %v8325_v25 = vpop.eup %6551  ;;  %v1846_v49 = vmul.f32 1.442695, %v1800_v37 }
 0x33d   : > { %v1921_v43 = vsel %vm838_vm1, %v8325_v25, 0.0  ;;  %v8338_v3 = vpop.eup %6553 }
 0x33e   : > { %v1930_v33 = vsel %vm838_vm1, %v8338_v3, 0.0 }
 0x33f   : > { %v1504_v53 = vpop.f32.mrf.mxu3 }
 0x344   : > { %1772 = vmax.xlane.f32.xlu1 %v1771_v57  ;;  %1913 = vadd.xlane.f32.xlu0 %v1912_v39 }
 0x347   : > { %v1598_v46 = vpop.f32.mrf.mxu3 }
 0x348   : > { %v1633_v60 = vmul.f32 0.35355338, %v1598_v46 }
 0x34a   : > { %v8334_v10 = vsel %vm7903_vm13, %v1633_v60, -1e+30  ;;  %vm9899_vm13 = vmmov %vm9895_vm0 }
 0x34b   : > { %v1783_v24 = vsel %vm838_vm1, %v8334_v10, -inf }
 0x34c   : > { %1781 = vmax.xlane.f32.xlu1 %v1780_v9  ;;  %1922 = vadd.xlane.f32.xlu0 %v1921_v43 }
 0x34f   : > { %v1600_v54 = vpop.f32.mrf.mxu3 }
 0x354   : > { %1784 = vmax.xlane.f32.xlu1 %v1783_v24 }
 0x35c   : > { %1931 = vadd.xlane.f32.xlu1 %v1930_v33 }
 0x35e   : > { %v1887_v2 = vpop.xlane.xlu1 %1886 }
 0x35f   : > { %6555 = vrcp.f32 %v1887_v2 }
 0x365   : > { %v6556_v23 = vpop.eup %6555 }
 0x366   : > { %v2011_v63 = vmul.f32 %v6556_v23, %v8159_v44  ;;  %v1728_v7 = vpop.xlane.xlu1 %1727  ;;  %v1899_v16 = vpop.xlane.xlu0 %1898 }
 0x367   : > { %v1798_v50 = vsub.f32 %v8166_v20, %v1728_v7  ;;  %6557 = vrcp.f32 %v1899_v16  ;;  %v8378_v7 = vpop.xlane.xlu2 %1778 }
 0x368   : > { %v2043_v5 = vpack.c.bf16 %v2011_v63, %v2011_v63 }
 0x369   : > { %v1842_v31 = vmul.f32 1.442695, %v1798_v50 }
 0x36a   : > { %6004 = vmatmul.msk.bf16.vlgmr.msrb.gmra.mxu1 %vm838_vm1, %v2043_v5 }
 0x36b   : > { %6559 = vpow2.f32 %v1842_v31  ;;  %2279 = vmatpush.bf16.msrb.mxu1 %v2270_v32 }
 0x36c   : > { %6561 = vpow2.f32 %v1846_v49 }
 0x36d   : > { %v6558_v44 = vpop.eup %6557 }
 0x36e   : > { %v1743_v17 = vpop.xlane.xlu1 %1742  ;;  %v2015_v47 = vmul.f32 %v6558_v44, %v8168_v13 }
 0x36f   : > { %v1803_v20 = vsub.f32 %v8177_v1, %v1743_v17  ;;  %v2354_v1 = vsel %vm9898_vm12, %v7964_v62, 0  ;;  %vm9914_vm12 = vmmov %vm9895_vm0 }
 0x370   : > { %v2047_v39 = vpack.c.bf16 %v2015_v47, %v2015_v47 }
 0x371   : > { %v8349_v53 = vpop.eup %6559  ;;  %v1852_v28 = vmul.f32 1.442695, %v1803_v20 }
 0x372   : > { %v1918_v52 = vsel %vm838_vm1, %v8349_v53, 0.0  ;;  %v8357_v38 = vpop.eup %6561 }
 0x373   : > { %1919 = vadd.xlane.f32.xlu2 %v1918_v52  ;;  %6563 = vpow2.f32 %v1852_v28  ;;  %v1924_v46 = vsel %vm838_vm1, %v8357_v38, 0.0 }
 0x375   : > { %2642 = vrot.lane.b32.xlu1 %v7663_v14, %s7173_s27 }
 0x376   : > { %v1746_v57 = vpop.xlane.xlu1 %1745 }
 0x377   : > { %v1804_v35 = vsub.f32 %v8187_v4, %v1746_v57 }
 0x379   : > { %v1854_v13 = vmul.f32 1.442695, %v1804_v35  ;;  %v8365_v14 = vpop.eup %6563 }
 0x37a   : > { %6008 = vmatmul.msk.bf16.vlgmr.msra.gmra.mxu1 %vm838_vm1, %v2047_v39  ;;  %v1933_v62 = vsel %vm838_vm1, %v8365_v14, 0.0 }
 0x37b   : > { %2363 = vmatpush.bf16.msra.mxu1 %v2354_v1  ;;  %1925 = vadd.xlane.f32.xlu2 %v1924_v46 }
 0x37e   : > { %v1905_v42 = vpop.xlane.xlu1 %1904 }
 0x37f   : > { %6565 = vrcp.f32 %v1905_v42  ;;  %v1737_v9 = vpop.xlane.xlu0 %1736 }
 0x380   : > { %v1801_v60 = vsub.f32 %v8201_v41, %v1737_v9  ;;  %6567 = vpow2.f32 %v1854_v13  ;;  %v2396_v41 = vsel %vm9899_vm13, %v8034_v22, 0  ;;  %vm9916_vm13 = vmmov %vm9895_vm0 }
 0x382   : > { %v1848_v4 = vmul.f32 1.442695, %v1801_v60 }
 0x383   : > { %1934 = vadd.xlane.f32.xlu2 %v1933_v62 }
 0x384   : > { %6569 = vpow2.f32 %v1848_v4 }
 0x385   : > { %v6566_v43 = vpop.eup %6565 }
 0x386   : > { %v2017_v55 = vmul.f32 %v6566_v43, %v8193_v61  ;;  %v8371_v54 = vpop.eup %6567  ;;  %v1764_v2 = vpop.xlane.xlu1 %1763 }
 0x387   : > { %v1752_v24 = vpop.xlane.xlu0 %1751  ;;  %v1936_v61 = vsel %vm838_vm1, %v8371_v54, 0.0  ;;  %v1810_v50 = vsub.f32 %v8209_v8, %v1764_v2 }
 0x388   : > { %v2049_v33 = vpack.c.bf16 %v2017_v55, %v2017_v55  ;;  %v1806_v23 = vsub.f32 %v8213_v6, %v1752_v24 }
 0x389   : > { %v1866_v5 = vmul.f32 1.442695, %v1810_v50 }
 0x38a   : > { %v8374_v63 = vpop.eup %6569  ;;  %v1858_v16 = vmul.f32 1.442695, %v1806_v23  ;;  %6010 = vmatmul.msk.bf16.vlgmr.msra.gmra.mxu3 %vm838_vm1, %v2049_v33 }
 0x38b   : > { %2405 = vmatpush.bf16.msra.mxu3 %v2396_v41  ;;  %1937 = vadd.xlane.f32.xlu2 %v1936_v61  ;;  %v1927_v6 = vsel %vm838_vm1, %v8374_v63, 0.0 }
 0x38c   : > { %6571 = vpow2.f32 %v1858_v16  ;;  %1928 = vadd.xlane.f32.xlu0 %v1927_v6 }
 0x38d   : > { %6573 = vpow2.f32 %v1866_v5 }
 0x38e   : > { %v1758_v44 = vpop.xlane.xlu1 %1757 }
 0x38f   : > { %v1755_v37 = vpop.xlane.xlu0 %1754  ;;  %v1808_v28 = vsub.f32 %v8230_v27, %v1758_v44  ;;  %v2480_v27 = vsel %vm9900_vm14, %v8015_v45, 0  ;;  %v1815_v44 = vsub.f32 %v8149_v21, %v8378_v7  ;;  %vm9918_vm14 = vmmov %vm9895_vm0 }
 0x390   : > { %v1807_v22 = vsub.f32 %v8234_v11, %v1755_v37 }
 0x391   : > { %v1862_v13 = vmul.f32 1.442695, %v1808_v28 }
 0x392   : > { %v8387_v31 = vpop.eup %6571  ;;  %v1860_v32 = vmul.f32 1.442695, %v1807_v22  ;;  %v1917_v49 = vpop.xlane.xlu2 %1916 }
 0x393   : > { %v1942_v17 = vsel %vm838_vm1, %v8387_v31, 0.0  ;;  %v8391_v8 = vpop.f32.mrf.mxu0  ;;  %v8394_v47 = vpop.eup %6573 }
 0x394   : > { %6575 = vpow2.f32 %v1860_v32  ;;  %1943 = vadd.xlane.f32.xlu0 %v1942_v17 }
 0x395   : > { %6577 = vrcp.f32 %v1917_v49 }
 0x397   : > { %v1749_v20 = vpop.xlane.xlu0 %1748 }
 0x398   : > { %v1805_v52 = vsub.f32 %v8246_v58, %v1749_v20  ;;  %v1954_v58 = vsel %vm838_vm1, %v8394_v47, 0.0 }
 0x39a   : > { %v8396_v11 = vpop.eup %6575  ;;  %v1856_v57 = vmul.f32 1.442695, %v1805_v52 }
 0x39b   : > { %v6578_v39 = vpop.eup %6577  ;;  %v1945_v35 = vsel %vm838_vm1, %v8396_v11, 0.0  ;;  %v2094_v46 = vpop.f32.mrf.mxu0 }
 0x39c   : > { %v2021_v1 = vmul.f32 %v6578_v39, %v8240_v34  ;;  %6579 = vpow2.f32 %v1856_v57  ;;  %1946 = vadd.xlane.f32.xlu2 %v1945_v35  ;;  %v1876_v39 = vmul.f32 1.442695, %v1815_v44 }
 0x39d   : > { %6581 = vpow2.f32 %v1862_v13 }
 0x39e   : > { %v2053_v42 = vpack.c.bf16 %v2021_v1, %v2021_v1 }
 0x39f   : > { %v1767_v9 = vpop.xlane.xlu0 %1766  ;;  %1955 = vadd.xlane.f32.xlu1 %v1954_v58  ;;  %v1761_v60 = vpop.xlane.xlu1 %1760 }
 0x3a0   : > { %6014 = vmatmul.msk.bf16.vlgmr.msrb.gmra.mxu3 %vm838_vm1, %v2053_v42  ;;  %v1811_v4 = vsub.f32 %v8262_v26, %v1767_v9  ;;  %v1809_v43 = vsub.f32 %v8269_v18, %v1761_v60  ;;  %v2438_v60 = vsel %vm9902_vm4, %v8108_v0, 0  ;;  %vm9920_vm4 = vmmov %vm9895_vm0 }
 0x3a1   : > { %2489 = vmatpush.bf16.msrb.mxu3 %v2480_v27 }
 0x3a2   : > { %v8408_v34 = vpop.eup %6579  ;;  %v1868_v62 = vmul.f32 1.442695, %v1811_v4  ;;  %v1864_v33 = vmul.f32 1.442695, %v1809_v43 }
 0x3a3   : > { %v1939_v55 = vsel %vm838_vm1, %v8408_v34, 0.0  ;;  %v8413_v24 = vpop.f32.mrf.mxu0  ;;  %v8415_v2 = vpop.eup %6581 }
 0x3a4   : > { %6583 = vpow2.f32 %v1868_v62  ;;  %1940 = vadd.xlane.f32.xlu0 %v1939_v55  ;;  %v1948_v61 = vsel %vm838_vm1, %v8415_v2, 0.0 }
 0x3a7   : > { %v1776_v45 = vpop.xlane.xlu1 %1775  ;;  %v1908_v23 = vpop.xlane.xlu0 %1907 }
 0x3a8   : > { %v1814_v26 = vsub.f32 %v8282_v15, %v1776_v45  ;;  %6585 = vrcp.f32 %v1908_v23  ;;  %v2459_v23 = vsel %vm9903_vm7, %v8131_v48, 0  ;;  %v9905_v48 = vld [vmem:[#allocation26_spill] sm:$0xff]  ;;  %vm9921_vm7 = vmmov %vm9895_vm0 }
 0x3a9   : > { %6587 = vpow2.f32 %v1864_v33 }
 0x3aa   : > { %v8418_v41 = vpop.eup %6583  ;;  %v1874_v16 = vmul.f32 1.442695, %v1814_v26 }
 0x3ab   : > { %v1957_v18 = vsel %vm838_vm1, %v8418_v41, 0.0  ;;  %v2178_v50 = vpop.f32.mrf.mxu0 }
 0x3ac   : > { %6589 = vpow2.f32 %v1874_v16  ;;  %1958 = vadd.xlane.f32.xlu2 %v1957_v18  ;;  %1949 = vadd.xlane.f32.xlu0 %v1948_v61  ;;  %v2522_v61 = vsel %vm9904_vm9, %v8013_v40, 0  ;;  %v9906_v50 = vld [vmem:[#allocation25_spill] sm:$0xff]  ;;  %vm9922_vm9 = vmmov %vm9895_vm0 }
 0x3ad   : > { %v8424_v6 = vpop.f32.mrf.mxu2 }
 0x3ae   : > { %v6586_v5 = vpop.eup %6585 }
 0x3af   : > { %v1770_v37 = vpop.xlane.xlu1 %1769  ;;  %v8426_v15 = vpop.eup %6587  ;;  %v2018_v22 = vmul.f32 %v6586_v5, %v8278_v29  ;;  %v2417_v29 = vsel %vm9901_vm11, %v7983_v12, 0  ;;  %vm9919_vm11 = vmmov %vm9895_vm0 }
 0x3b0   : > { %v1911_v32 = vpop.xlane.xlu0 %1910  ;;  %v1812_v49 = vsub.f32 %v8297_v56, %v1770_v37  ;;  %v1951_v28 = vsel %vm838_vm1, %v8426_v15, 0.0  ;;  %v9907_v37 = vld [vmem:[#allocation24_spill] sm:$0xff] }
 0x3b1   : > { %6591 = vrcp.f32 %v1911_v32  ;;  %v2050_v20 = vpack.c.bf16 %v2018_v22, %v2018_v22 }
 0x3b2   : > { %v8430_v17 = vpop.eup %6589  ;;  %v1870_v52 = vmul.f32 1.442695, %v1812_v49 }
 0x3b3   : > { %v1966_v57 = vsel %vm838_vm1, %v8430_v17, 0.0  ;;  %6011 = vmatmul.msk.bf16.vlgmr.msra.gmra.mxu0 %vm838_vm1, %v2050_v20 }
 0x3b4   : > { %6593 = vpow2.f32 %v1870_v52  ;;  %1952 = vadd.xlane.f32.xlu2 %v1951_v28  ;;  %2426 = vmatpush.bf16.msra.mxu0 %v2417_v29 }
 0x3b5   : > { %1967 = vadd.xlane.f32.xlu1 %v1966_v57  ;;  %v2136_v56 = vpop.f32.mrf.mxu2  ;;  %v8441_v21 = vpop.f32.mrf.mxu3  ;;  %v9908_v57 = vld [vmem:[#allocation38_spill] sm:$0xff] }
 0x3b6   : > { %v2501_v29 = vsel %vm9895_vm0, %v9908_v57, 0 }
 0x3b7   : > { %v6592_v7 = vpop.eup %6591  ;;  %v1773_v35 = vpop.xlane.xlu1 %1772 }
 0x3b8   : > { %v2019_v1 = vmul.f32 %v6592_v7, %v8299_v51  ;;  %v1914_v46 = vpop.xlane.xlu0 %1913  ;;  %v1813_v13 = vsub.f32 %v8312_v30, %v1773_v35 }
 0x3b9   : > { %6595 = vrcp.f32 %v1914_v46 }
 0x3ba   : > { %v8445_v42 = vpop.eup %6593  ;;  %6597 = vpow2.f32 %v1876_v39  ;;  %v2051_v12 = vpack.c.bf16 %v2019_v1, %v2019_v1  ;;  %v1872_v58 = vmul.f32 1.442695, %v1813_v13 }
 0x3bb   : > { %v1960_v9 = vsel %vm838_vm1, %v8445_v42, 0.0 }
 0x3bc   : > { %6599 = vpow2.f32 %v1872_v58  ;;  %6012 = vmatmul.msk.bf16.vlgmr.msrb.gmra.mxu1 %vm838_vm1, %v2051_v12  ;;  %1961 = vadd.xlane.f32.xlu0 %v1960_v9  ;;  %v9909_v12 = vld [vmem:[#allocation39_spill] sm:$0xff] }
 0x3bd   : > { %2447 = vmatpush.bf16.msrb.mxu1 %v2438_v60  ;;  %v8452_v51 = vpop.f32.mrf.mxu2  ;;  %v2157_v30 = vpop.f32.mrf.mxu3  ;;  %v2543_v58 = vsel %vm9910_vm10, %v9909_v12, 0  ;;  %vm9813_vm10 = vcmask 130048  }
 0x3bf   : > { %v6596_v27 = vpop.eup %6595  ;;  %v1782_v5 = vpop.xlane.xlu1 %1781 }
 0x3c0   : > { %v8454_v4 = vpop.eup %6597  ;;  %v2020_v62 = vmul.f32 %v6596_v27, %v8314_v19  ;;  %v1923_v43 = vpop.xlane.xlu0 %1922  ;;  %v1816_v56 = vsub.f32 %v8323_v36, %v1782_v5 }
 0x3c1   : > { %6601 = vrcp.f32 %v1923_v43  ;;  %v1969_v0 = vsel %vm838_vm1, %v8454_v4, 0.0 }
 0x3c2   : > { %v8457_v55 = vpop.eup %6599  ;;  %v2052_v33 = vpack.c.bf16 %v2020_v62, %v2020_v62 }
 0x3c3   : > { %v1963_v45 = vsel %vm838_vm1, %v8457_v55, 0.0 }
 0x3c4   : > { %6013 = vmatmul.msk.bf16.vlgmr.msrb.gmra.mxu2 %vm838_vm1, %v2052_v33  ;;  %1970 = vadd.xlane.f32.xlu0 %v1969_v0 }
 0x3c5   : > { %2468 = vmatpush.bf16.msrb.mxu2 %v2459_v23  ;;  %1964 = vadd.xlane.f32.xlu2 %v1963_v45  ;;  %v2220_v19 = vpop.f32.mrf.mxu2  ;;  %v9911_v23 = vld [vmem:[#allocation35_spill] sm:$0xff] }
 0x3c6   : > { %v2606_v19 = vsel %vm9912_vm6, %v9911_v23, 0  ;;  %vm9812_vm6 = vcmask 195584  }
 0x3c7   : > { %v6602_v26 = vpop.eup %6601  ;;  %v1785_v22 = vpop.xlane.xlu1 %1784 }
 0x3c8   : > { %v2023_v16 = vmul.f32 %v6602_v26, %v8325_v25  ;;  %v1817_v20 = vsub.f32 %v8334_v10, %v1785_v22  ;;  %v1878_v10 = vmul.f32 1.442695, %v1816_v56 }
 0x3ca   : > { %v2055_v18 = vpack.c.bf16 %v2023_v16, %v2023_v16  ;;  %v1880_v39 = vmul.f32 1.442695, %v1817_v20 }
 0x3cc   : > { %6016 = vmatmul.msk.bf16.vlgmr.msra.gmra.mxu1 %vm838_vm1, %v2055_v18 }
 0x3cd   : > { %2531 = vmatpush.bf16.msra.mxu1 %v2522_v61 }
 0x3ce   : > { %2705 = vrot.lane.b32.xlu1 %v7765_v59, %s7173_s27 }
 0x3cf   : > { %v1932_v28 = vpop.xlane.xlu1 %1931 }
 0x3d6   : > { %2726 = vrot.lane.b32.xlu1 %v9905_v48, %s7173_s27 }
 0x3d8   : > { %2684 = vrot.lane.b32.xlu0 %v9906_v50, %s7173_s27 }
 0x3dd   : > { %2663 = vrot.lane.b32.xlu2 %v9907_v37, %s7173_s27 }
 0x3e6   : > { %v1920_v25 = vpop.xlane.xlu2 %1919 }
 0x3e7   : > { %6603 = vrcp.f32 %v1920_v25  ;;  %v8478_v40 = vpop.f32.mrf.mxu1  ;;  %v9915_v25 = vld [vmem:[#allocation37_spill] sm:$0xff] }
 0x3e8   : > { %v2627_v22 = vsel %vm9916_vm13, %v9915_v25, 0 }
 0x3ed   : > { %v6604_v32 = vpop.eup %6603 }
 0x3ee   : > { %v2022_v49 = vmul.f32 %v6604_v32, %v8349_v53  ;;  %v1926_v44 = vpop.xlane.xlu2 %1925  ;;  %v2643_v32 = vpop.permute.xlu1 %2642 }
 0x3ef   : > { %6605 = vrcp.f32 %v1926_v44  ;;  %v2115_v59 = vpop.f32.mrf.mxu1 }
 0x3f0   : > { %v2054_v52 = vpack.c.bf16 %v2022_v49, %v2022_v49  ;;  %6607 = vrcp.f32 %v1932_v28  ;;  %v9917_v49 = vld [vmem:[#allocation36_spill] sm:$0xff] }
 0x3f1   : > { %v2564_v44 = vsel %vm9918_vm14, %v9917_v49, 0 }
 0x3f2   : > { %6015 = vmatmul.msk.bf16.vlgmr.msrb.gmra.mxu0 %vm838_vm1, %v2054_v52 }
 0x3f3   : > { %2510 = vmatpush.bf16.msrb.mxu0 %v2501_v29 }
 0x3f5   : > { %v6606_v7 = vpop.eup %6605 }
 0x3f6   : > { %v2024_v53 = vmul.f32 %v6606_v7, %v8357_v38  ;;  %v1935_v35 = vpop.xlane.xlu2 %1934  ;;  %v6608_v13 = vpop.eup %6607 }
 0x3f7   : > { %6609 = vrcp.f32 %v1935_v35  ;;  %v8487_v1 = vpop.f32.mrf.mxu1  ;;  %v2026_v9 = vmul.f32 %v6608_v13, %v8338_v3  ;;  %v9913_v3 = vld [vmem:[#allocation40_spill] sm:$0xff] }
 0x3f8   : > { %6611 = vpow2.f32 %v1880_v39  ;;  %v2056_v46 = vpack.c.bf16 %v2024_v53, %v2024_v53 }
 0x3f9   : > { %6613 = vpow2.f32 %v1878_v10  ;;  %v2058_v33 = vpack.c.bf16 %v2026_v9, %v2026_v9 }
 0x3fa   : > { %6017 = vmatmul.msk.bf16.vlgmr.msra.gmra.mxu2 %vm838_vm1, %v2056_v46 }
 0x3fb   : > { %2552 = vmatpush.bf16.msra.mxu2 %v2543_v58 }
 0x3fd   : > { %v6610_v36 = vpop.eup %6609 }
 0x3fe   : > { %v8493_v60 = vpop.eup %6611  ;;  %v2027_v38 = vmul.f32 %v6610_v36, %v8365_v14  ;;  %v1938_v30 = vpop.xlane.xlu2 %1937  ;;  %v2585_v14 = vsel %vm9914_vm12, %v9913_v3, 0  ;;  %v2648_v36 = vsel %vm9919_vm11, %v2643_v32, 0  ;;  %vm9923_vm12 = vcmask 261120  }
 0x3ff   : > { %6615 = vrcp.f32 %v1938_v30  ;;  %v1929_v27 = vpop.xlane.xlu0 %1928  ;;  %v2199_v62 = vpop.f32.mrf.mxu1  ;;  %v1975_v0 = vsel %vm838_vm1, %v8493_v60, 0.0  ;;  %vm9924_vm13 = vmmov %vm9923_vm12 }
 0x400   : > { %v2059_v43 = vpack.c.bf16 %v2027_v38, %v2027_v38  ;;  %6617 = vrcp.f32 %v1929_v27  ;;  %v8498_v45 = vpop.eup %6613  ;;  %vm9925_vm14 = vmmov %vm9923_vm12 }
 0x401   : > { %v1972_v16 = vsel %vm838_vm1, %v8498_v45, 0.0  ;;  %vm9926_vm11 = vmmov %vm9923_vm12 }
 0x402   : > { %6020 = vmatmul.msk.bf16.vlgmr.msrb.gmra.mxu1 %vm838_vm1, %v2059_v43  ;;  %1976 = vadd.xlane.f32.xlu0 %v1975_v0 }
 0x403   : > { %2615 = vmatpush.bf16.msrb.mxu1 %v2606_v19  ;;  %6019 = vmatmul.msk.bf16.vlgmr.msra.gmra.mxu0 %vm838_vm1, %v2058_v33 }
 0x404   : > { %2594 = vmatpush.bf16.msra.mxu0 %v2585_v14 }
 0x405   : > { %v6616_v26 = vpop.eup %6615 }
 0x406   : > { %v6618_v18 = vpop.eup %6617  ;;  %v2028_v61 = vmul.f32 %v6616_v26, %v8371_v54  ;;  %1973 = vadd.xlane.f32.xlu2 %v1972_v16 }
 0x407   : > { %v2025_v48 = vmul.f32 %v6618_v18, %v8374_v63  ;;  %v1944_v50 = vpop.xlane.xlu0 %1943 }
 0x408   : > { %v2060_v5 = vpack.c.bf16 %v2028_v61, %v2028_v61  ;;  %6619 = vrcp.f32 %v1944_v50 }
 0x409   : > { %v2057_v37 = vpack.c.bf16 %v2025_v48, %v2025_v48 }
 0x40a   : > { %6021 = vmatmul.msk.bf16.vlgmr.msrb.gmra.mxu2 %vm838_vm1, %v2060_v5 }
 0x40b   : > { %2636 = vmatpush.bf16.msrb.mxu2 %v2627_v22  ;;  %6018 = vmatmul.msk.bf16.vlgmr.msra.gmra.mxu3 %vm838_vm1, %v2057_v37 }
 0x40c   : > { %2573 = vmatpush.bf16.msra.mxu3 %v2564_v44 }
 0x40d   : > { %v8516_v54 = vpop.f32.mrf.mxu3 }
 0x40e   : > { %v6620_v63 = vpop.eup %6619 }
 0x40f   : > { %v2030_v59 = vmul.f32 %v6620_v63, %v8387_v31  ;;  %v1947_v20 = vpop.xlane.xlu2 %1946 }
 0x410   : > { %6621 = vrcp.f32 %v1947_v20 }
 0x411   : > { %v2062_v52 = vpack.c.bf16 %v2030_v59, %v2030_v59 }
 0x412   : > { %v1956_v28 = vpop.xlane.xlu1 %1955 }
 0x413   : > { %6023 = vmatmul.msk.bf16.vlgmr.msrb.gmra.mxu0 %vm838_vm1, %v2062_v52  ;;  %6623 = vrcp.f32 %v1956_v28 }
 0x415   : > { %v2241_v57 = vpop.f32.mrf.mxu3 }
 0x416   : > { %v6622_v29 = vpop.eup %6621 }
 0x417   : > { %v2031_v56 = vmul.f32 %v6622_v29, %v8396_v11  ;;  %v1941_v39 = vpop.xlane.xlu0 %1940 }
 0x418   : > { %6625 = vrcp.f32 %v1941_v39 }
 0x419   : > { %v2063_v7 = vpack.c.bf16 %v2031_v56, %v2031_v56  ;;  %v6624_v53 = vpop.eup %6623 }
 0x41a   : > { %v2034_v35 = vmul.f32 %v6624_v53, %v8394_v47 }
 0x41b   : > { %6024 = vmatmul.msk.bf16.vlgmr.msra.gmra.mxu1 %vm838_vm1, %v2063_v7 }
 0x41c   : > { %v2066_v12 = vpack.c.bf16 %v2034_v35, %v2034_v35 }
 0x41e   : > { %v6626_v31 = vpop.eup %6625 }
 0x41f   : > { %v2029_v10 = vmul.f32 %v6626_v31, %v8408_v34  ;;  %v1959_v46 = vpop.xlane.xlu2 %1958  ;;  %v1950_v13 = vpop.xlane.xlu0 %1949 }
 0x420   : > { %6627 = vrcp.f32 %v1959_v46 }
 0x421   : > { %v2061_v58 = vpack.c.bf16 %v2029_v10, %v2029_v10  ;;  %6629 = vrcp.f32 %v1950_v13 }
 0x423   : > { %v2323_v11 = vpop.f32.mrf.mxu3  ;;  %6022 = vmatmul.msk.bf16.vlgmr.msrb.gmra.mxu3 %vm838_vm1, %v2061_v58  ;;  %6027 = vmatmul.msk.bf16.vlgmr.msra.gmra.mxu0 %vm838_vm1, %v2066_v12 }
 0x424   : > { %2657 = vmatpush.bf16.msrb.mxu3 %v2648_v36 }
 0x426   : > { %v6628_v9 = vpop.eup %6627 }
 0x427   : > { %v6630_v38 = vpop.eup %6629  ;;  %v2035_v47 = vmul.f32 %v6628_v9, %v8418_v41  ;;  %v1953_v30 = vpop.xlane.xlu2 %1952 }
 0x428   : > { %v2032_v34 = vmul.f32 %v6630_v38, %v8415_v2  ;;  %6631 = vrcp.f32 %v1953_v30  ;;  %v1968_v14 = vpop.xlane.xlu1 %1967 }
 0x429   : > { %v2067_v27 = vpack.c.bf16 %v2035_v47, %v2035_v47 }
 0x42a   : > { %v2064_v62 = vpack.c.bf16 %v2032_v34, %v2032_v34 }
 0x42b   : > { %v2325_v43 = vpop.f32.mrf.mxu3  ;;  %6028 = vmatmul.msk.bf16.vlgmr.msrb.gmra.mxu1 %vm838_vm1, %v2067_v27 }
 0x42c   : > { %6025 = vmatmul.msk.bf16.vlgmr.msra.gmra.mxu2 %vm838_vm1, %v2064_v62 }
 0x42e   : > { %v6632_v33 = vpop.eup %6631 }
 0x42f   : > { %v2033_v0 = vmul.f32 %v6632_v33, %v8426_v15  ;;  %v1962_v23 = vpop.xlane.xlu0 %1961 }
 0x430   : > { %6633 = vrcp.f32 %v1962_v23  ;;  %v2260_v3 = vpop.f32.mrf.mxu0 }
 0x431   : > { %v2065_v19 = vpack.c.bf16 %v2033_v0, %v2033_v0  ;;  %6635 = vrcp.f32 %v1968_v14 }
 0x433   : > { %6026 = vmatmul.msk.bf16.vlgmr.msra.gmra.mxu3 %vm838_vm1, %v2065_v19 }
 0x436   : > { %v6634_v41 = vpop.eup %6633 }
 0x437   : > { %v2036_v2 = vmul.f32 %v6634_v41, %v8445_v42  ;;  %v6636_v50 = vpop.eup %6635  ;;  %v1971_v15 = vpop.xlane.xlu0 %1970 }
 0x438   : > { %v1965_v26 = vpop.xlane.xlu2 %1964  ;;  %v2262_v18 = vpop.f32.mrf.mxu0  ;;  %v2038_v37 = vmul.f32 %v6636_v50, %v8430_v17 }
 0x439   : > { %v2068_v16 = vpack.c.bf16 %v2036_v2, %v2036_v2  ;;  %6637 = vrcp.f32 %v1965_v26  ;;  %v2281_v61 = vpop.f32.mrf.mxu1 }
 0x43a   : > { %v6397_v48 = vpack.i.bf16 %v2281_v61, %v2260_v3  ;;  %6639 = vrcp.f32 %v1971_v15  ;;  %v2070_v59 = vpack.c.bf16 %v2038_v37, %v2038_v37 }
 0x43c   : > { %6398 = vrot.lane.b32.xlu1 %v6397_v48, %s7175_s16  ;;  %6029 = vmatmul.msk.bf16.vlgmr.msrb.gmra.mxu2 %vm838_vm1, %v2068_v16 }
 0x43f   : > { %v6638_v5 = vpop.eup %6637 }
 0x440   : > { %v2037_v25 = vmul.f32 %v6638_v5, %v8457_v55  ;;  %v2664_v42 = vpop.permute.xlu2 %2663  ;;  %v2706_v22 = vpop.permute.xlu1 %2705 }
 0x441   : > { %v2669_v32 = vsel %vm9920_vm4, %v2664_v42, 0  ;;  %v2711_v49 = vsel %vm9921_vm7, %v2706_v22, 0  ;;  %v2283_v44 = vpop.f32.mrf.mxu1  ;;  %v6640_v20 = vpop.eup %6639  ;;  %vm9927_vm4 = vmmov %vm9926_vm11 }
 0x442   : > { %v2069_v63 = vpack.c.bf16 %v2037_v25, %v2037_v25  ;;  %2678 = vmatpush.bf16.msrb.mxu0 %v2669_v32  ;;  %2720 = vmatpush.bf16.msra.mxu2 %v2711_v49  ;;  %v2039_v55 = vmul.f32 %v6640_v20, %v8454_v4  ;;  %vm9928_vm7 = vmmov %vm9927_vm4 }
 0x444   : > { %6030 = vmatmul.msk.bf16.vlgmr.msrb.gmra.mxu3 %vm838_vm1, %v2069_v63  ;;  %v2071_v7 = vpack.c.bf16 %v2039_v55, %v2039_v55 }
 0x445   : > { %6031 = vmatmul.msk.bf16.vlgmr.msrb.gmra.mxu0 %vm838_vm1, %v2070_v59 }
 0x447   : > { %v2302_v17 = vpop.f32.mrf.mxu2 }
 0x448   : > { %v6412_v52 = vpack.i.bf16 %v2323_v11, %v2302_v17  ;;  %v2727_v28 = vpop.permute.xlu1 %2726 }
 0x449   : > { %v2732_v57 = vsel %vm9922_vm9, %v2727_v28, 0  ;;  %v2365_v29 = vpop.f32.mrf.mxu1  ;;  %vm9929_vm9 = vmmov %vm9927_vm4 }
 0x44a   : > { %6413 = vrot.lane.b32.xlu1 %v6412_v52, %s7175_s16  ;;  %2741 = vmatpush.bf16.msra.mxu3 %v2732_v57  ;;  %v2685_v56 = vpop.permute.xlu0 %2684 }
 0x44b   : > { %v2690_v39 = vsel %vm9895_vm0, %v2685_v56, 0  ;;  %v6183_v56 = vld [vmem:[#allocation8 + $0x8] sm:$0xff]  ;;  %vm9930_vm0 = vmmov %vm9927_vm4 }
 0x44c   : > { %2699 = vmatpush.bf16.msra.mxu1 %v2690_v39  ;;  %2904 = vmatpush.bf16.msra.mxu0 %v6183_v56  ;;  %v6182_v39 = vld [vmem:[#allocation8] sm:$0xff] }
 0x44f   : > { %v2304_v53 = vpop.f32.mrf.mxu2  ;;  %6032 = vmatmul.msk.bf16.vlgmr.msra.gmra.mxu1 %vm838_vm1, %v2071_v7 }
 0x450   : > { %2905 = vmatpush.bf16.msra.mxu0 %v6182_v39 }
 0x451   : > { %v2367_v35 = vpop.f32.mrf.mxu1 }
 0x46f   : > { %v2344_v31 = vpop.f32.mrf.mxu0 }
 0x470   : > { %v6427_v15 = vpack.i.bf16 %v2365_v29, %v2344_v31 }
 0x475   : > { %v1977_v10 = vpop.xlane.xlu0 %1976 }
 0x476   : > { %6641 = vrcp.f32 %v1977_v10 }
 0x477   : > { %v2346_v46 = vpop.f32.mrf.mxu0 }
 0x479   : > { %v1974_v4 = vpop.xlane.xlu2 %1973 }
 0x47a   : > { %6643 = vrcp.f32 %v1974_v4 }
 0x47c   : > { %v6642_v13 = vpop.eup %6641 }
 0x47d   : > { %v2041_v12 = vmul.f32 %v6642_v13, %v8493_v60  ;;  %v2386_v58 = vpop.f32.mrf.mxu2 }
 0x47f   : > { %v2073_v36 = vpack.c.bf16 %v2041_v12, %v2041_v12  ;;  %v2449_v11 = vpop.f32.mrf.mxu1 }
 0x480   : > { %v6644_v9 = vpop.eup %6643  ;;  %v2428_v38 = vpop.f32.mrf.mxu0 }
 0x481   : > { %v2040_v47 = vmul.f32 %v6644_v9, %v8498_v45  ;;  %v6402_v30 = vpack.i.bf16 %v2449_v11, %v2428_v38  ;;  %6034 = vmatmul.msk.bf16.vlgmr.msra.gmra.mxu3 %vm838_vm1, %v2073_v36 }
 0x483   : > { %v2072_v34 = vpack.c.bf16 %v2040_v47, %v2040_v47  ;;  %6403 = vrot.lane.b32.xlu2 %v6402_v30, %s7176_s3 }
 0x485   : > { %6033 = vmatmul.msk.bf16.vlgmr.msra.gmra.mxu2 %vm838_vm1, %v2072_v34  ;;  %v2388_v27 = vpop.f32.mrf.mxu2 }
 0x487   : > { %v2451_v62 = vpop.f32.mrf.mxu1 }
 0x488   : > { %v2430_v43 = vpop.f32.mrf.mxu0 }
 0x48d   : > { %v2470_v60 = vpop.f32.mrf.mxu2 }
 0x48e   : > { %v2407_v33 = vpop.f32.mrf.mxu3 }
 0x48f   : > { %v6442_v42 = vpack.i.bf16 %v2407_v33, %v2386_v58 }
 0x490   : > { %v2512_v0 = vpop.f32.mrf.mxu0 }
 0x495   : > { %v2472_v23 = vpop.f32.mrf.mxu2 }
 0x496   : > { %v2409_v19 = vpop.f32.mrf.mxu3 }
 0x498   : > { %v2514_v3 = vpop.f32.mrf.mxu0  ;;  %v2533_v14 = vpop.f32.mrf.mxu1 }
 0x499   : > { %v6432_v45 = vpack.i.bf16 %v2533_v14, %v2512_v0 }
 0x49b   : > { %6433 = vrot.lane.b32.xlu2 %v6432_v45, %s7176_s3 }
 0x4a0   : > { %v2535_v41 = vpop.f32.mrf.mxu1  ;;  %v2596_v2 = vpop.f32.mrf.mxu0 }
 0x4a6   : > { %v2491_v26 = vpop.f32.mrf.mxu3 }
 0x4a7   : > { %v6417_v16 = vpack.i.bf16 %v2491_v26, %v2470_v60 }
 0x4a8   : > { %v2598_v18 = vpop.f32.mrf.mxu0  ;;  %v2617_v61 = vpop.f32.mrf.mxu1 }
 0x4a9   : > { %v6407_v48 = vpack.i.bf16 %v2617_v61, %v2596_v2  ;;  %6418 = vrot.lane.b32.xlu1 %v6417_v16, %s7176_s3 }
 0x4ab   : > { %6408 = vrot.lane.b32.xlu0 %v6407_v48, %s7177_s7 }
 0x4ae   : > { %v2493_v50 = vpop.f32.mrf.mxu3  ;;  %v6399_v46 = vpop.permute.xlu1 %6398 }
 0x4af   : > { %v2554_v5 = vpop.f32.mrf.mxu2  ;;  %v6401_v13 = vunpack.i.h.bf16 %v6399_v46  ;;  %v6400_v12 = vunpack.i.l.bf16 %v6399_v46 }
 0x4b0   : > { %v2619_v37 = vpop.f32.mrf.mxu1 }
 0x4b1   : > { %6428 = vrot.lane.b32.xlu1 %v6427_v15, %s7175_s16  ;;  %v2844_v9 = vsel %vm838_vm1, %v8478_v40, %v6401_v13  ;;  %v2843_v38 = vsel %vm838_vm1, %v8391_v8, %v6400_v12 }
 0x4b6   : > { %v2575_v25 = vpop.f32.mrf.mxu3 }
 0x4b7   : > { %v2556_v22 = vpop.f32.mrf.mxu2  ;;  %v6447_v32 = vpack.i.bf16 %v2575_v25, %v2554_v5 }
 0x4b9   : > { %6443 = vrot.lane.b32.xlu1 %v6442_v42, %s7175_s16  ;;  %6448 = vrot.lane.b32.xlu2 %v6447_v32, %s7176_s3 }
 0x4bc   : > { %v6414_v33 = vpop.permute.xlu1 %6413 }
 0x4bd   : > { %v6416_v23 = vunpack.i.h.bf16 %v6414_v33  ;;  %v6415_v40 = vunpack.i.l.bf16 %v6414_v33 }
 0x4be   : > { %v2577_v49 = vpop.f32.mrf.mxu3 }
 0x4bf   : > { %v2638_v44 = vpop.f32.mrf.mxu2  ;;  %v2846_v14 = vsel %vm838_vm1, %v8441_v21, %v6416_v23  ;;  %v2845_v45 = vsel %vm838_vm1, %v8424_v6, %v6415_v40  ;;  %v6797_v40 = vld [vmem:[%s7413_s5 + $0x18] sm:$0xff] }
 0x4c2   : > { %v2680_v63 = vpop.f32.mrf.mxu0 }
 0x4c7   : > { %v2640_v59 = vpop.f32.mrf.mxu2  ;;  %v2659_v20 = vpop.f32.mrf.mxu3 }
 0x4c8   : > { %v6422_v17 = vpack.i.bf16 %v2659_v20, %v2638_v44 }
 0x4ca   : > { %6423 = vrot.lane.b32.xlu0 %v6422_v17, %s7177_s7  ;;  %v2682_v52 = vpop.f32.mrf.mxu0 }
 0x4cc   : > { %v2701_v28 = vpop.f32.mrf.mxu1 }
 0x4cd   : > { %v6437_v57 = vpack.i.bf16 %v2701_v28, %v2680_v63 }
 0x4cf   : > { %v2661_v55 = vpop.f32.mrf.mxu3 }
 0x4d2   : > { %6438 = vrot.lane.b32.xlu0 %v6437_v57, %s7177_s7 }
 0x4d4   : > { %v2703_v29 = vpop.f32.mrf.mxu1 }
 0x4dd   : > { %v6404_v4 = vpop.permute.xlu2 %6403 }
 0x4de   : > { %v6406_v58 = vunpack.i.h.bf16 %v6404_v4  ;;  %v6405_v36 = vunpack.i.l.bf16 %v6404_v4 }
 0x4e0   : > { %v2852_v34 = vsel %vm9813_vm10, %v2843_v38, %v6405_v36  ;;  %v2853_v27 = vsel %vm9813_vm10, %v2844_v9, %v6406_v58  ;;  %v6794_v58 = vld [vmem:[%s7413_s5] sm:$0xff] }
 0x4f5   : > { %v6434_v37 = vpop.permute.xlu2 %6433 }
 0x4f6   : > { %v6436_v32 = vunpack.i.h.bf16 %v6434_v37  ;;  %v6435_v49 = vunpack.i.l.bf16 %v6434_v37 }
 0x504   : > { %v2743_v7 = vpop.f32.mrf.mxu3 }
 0x508   : > { %v2722_v53 = vpop.f32.mrf.mxu2 }
 0x509   : > { %v6452_v35 = vpack.i.bf16 %v2743_v7, %v2722_v53 }
 0x50b   : > { %6453 = vrot.lane.b32.xlu0 %v6452_v35, %s7177_s7 }
 0x50c   : > { %v2745_v31 = vpop.f32.mrf.mxu3 }
 0x510   : > { %v2724_v10 = vpop.f32.mrf.mxu2 }
 0x513   : > { %v6449_v55 = vpop.permute.xlu2 %6448 }
 0x514   : > { %v6451_v29 = vunpack.i.h.bf16 %v6449_v55  ;;  %v6450_v56 = vunpack.i.l.bf16 %v6449_v55 }
 0x51b   : > { %v6419_v0 = vpop.permute.xlu1 %6418 }
 0x51c   : > { %v6421_v19 = vunpack.i.h.bf16 %v6419_v0  ;;  %v6420_v3 = vunpack.i.l.bf16 %v6419_v0 }
 0x51d   : > { %v6409_v11 = vpop.permute.xlu0 %6408 }
 0x51e   : > { %v6411_v47 = vunpack.i.h.bf16 %v6409_v11  ;;  %v6410_v30 = vunpack.i.l.bf16 %v6409_v11  ;;  %v2854_v26 = vsel %vm9813_vm10, %v2845_v45, %v6420_v3  ;;  %v2855_v16 = vsel %vm9813_vm10, %v2846_v14, %v6421_v19  ;;  %v6798_v45 = vld [vmem:[%s7413_s5 + $0x20] sm:$0xff] }
 0x520   : > { %v2861_v62 = vsel %vm9812_vm6, %v2852_v34, %v6410_v30  ;;  %v2862_v43 = vsel %vm9812_vm6, %v2853_v27, %v6411_v47  ;;  %v6795_v47 = vld [vmem:[%s7413_s5 + $0x8] sm:$0xff] }
 0x521   : > { %v2869_v60 = vpack.c.bf16 %v2862_v43, %v2861_v62  ;;  %v6796_v43 = vld [vmem:[%s7413_s5 + $0x10] sm:$0xff] }
 0x523   : > { %6043 = vmatmul.msk.bf16.vlgmr.msra.gmra.mxu0 %vm9923_vm12, %v2869_v60  ;;  %v6429_v50 = vpop.permute.xlu1 %6428  ;;  %vm9931_vm12 = vmmov %vm9930_vm0 }
 0x524   : > { %v6431_v15 = vunpack.i.h.bf16 %v6429_v50  ;;  %v6430_v5 = vunpack.i.l.bf16 %v6429_v50  ;;  %v7178_v50 = vmov 32.0  }
 0x525   : > { %6645 = vrcp.f32 %v7178_v50 }
 0x526   : > { %v2848_v6 = vsel %vm838_vm1, %v8487_v1, %v6431_v15  ;;  %v2847_v25 = vsel %vm838_vm1, %v8413_v24, %v6430_v5 }
 0x527   : > { %v2856_v44 = vsel %vm9813_vm10, %v2847_v25, %v6435_v49  ;;  %v2857_v63 = vsel %vm9813_vm10, %v2848_v6, %v6436_v32 }
 0x52b   : > { %v6444_v52 = vpop.permute.xlu1 %6443  ;;  %v6646_v6 = vpop.eup %6645 }
 0x52c   : > { %v6446_v1 = vunpack.i.h.bf16 %v6444_v52  ;;  %v6445_v28 = vunpack.i.l.bf16 %v6444_v52 }
 0x52e   : > { %v2850_v24 = vsel %vm838_vm1, %v8516_v54, %v6446_v1  ;;  %v2849_v57 = vsel %vm838_vm1, %v8452_v51, %v6445_v28  ;;  %v8597_v54 = vld [vmem:[#allocation5] sm:$0xff] }
 0x52f   : > { %v2858_v35 = vsel %vm9813_vm10, %v2849_v57, %v6450_v56  ;;  %v2859_v31 = vsel %vm9813_vm10, %v2850_v24, %v6451_v29  ;;  %v2873_v51 = vperm.slane %v8597_v54, 1  ;;  %v6801_v29 = vld [vmem:[%s7413_s5 + $0x38] sm:$0xff] }
 0x53c   : > { %v6424_v8 = vpop.permute.xlu0 %6423 }
 0x53d   : > { %v6426_v41 = vunpack.i.h.bf16 %v6424_v8  ;;  %v6425_v2 = vunpack.i.l.bf16 %v6424_v8 }
 0x53f   : > { %v2863_v18 = vsel %vm9812_vm6, %v2854_v26, %v6425_v2  ;;  %v2864_v61 = vsel %vm9812_vm6, %v2855_v16, %v6426_v41 }
 0x540   : > { %v2870_v48 = vpack.c.bf16 %v2864_v61, %v2863_v18  ;;  %v6799_v18 = vld [vmem:[%s7413_s5 + $0x28] sm:$0xff] }
 0x542   : > { %6044 = vmatmul.msk.bf16.gmra.mxu0 %vm9924_vm13, %v2870_v48  ;;  %vm9932_vm13 = vmmov %vm9930_vm0 }
 0x544   : > { %v6439_v21 = vpop.permute.xlu0 %6438 }
 0x545   : > { %v6441_v42 = vunpack.i.h.bf16 %v6439_v21  ;;  %v6440_v22 = vunpack.i.l.bf16 %v6439_v21  ;;  %v6800_v21 = vld [vmem:[%s7413_s5 + $0x30] sm:$0xff]  ;;  %s596_s5 = scalar_select %p595_p3, %s8745_s8, 15 }
 0x547   : > { %v2865_v59 = vsel %vm9812_vm6, %v2856_v44, %v6440_v22  ;;  %v2866_v20 = vsel %vm9812_vm6, %v2857_v63, %v6441_v42  ;;  %v2960_v42 = vmul.f32 32.0, %v6646_v6  ;;  %s597_s13 = scalar_lea.vmem %s9771_s1, %s596_s5 }
 0x548   : > { %v2871_v17 = vpack.c.bf16 %v2866_v20, %v2865_v59 }
 0x549   : > { %v2961_v22 = vsub.f32 1.0, %v2960_v42 }
 0x54b   : > { %v2962_v32 = vmul.f32 %v6646_v6, %v2961_v22 }
 0x54d   : > { %v2963_v49 = vadd.f32 %v6646_v6, %v2962_v32 }
 0x552   : > { %6045 = vmatmul.msk.bf16.gmra.mxu0 %vm9925_vm14, %v2871_v17  ;;  %vm9933_vm14 = vmmov %vm9930_vm0 }
 0x57d   : > { %v6454_v39 = vpop.permute.xlu0 %6453 }
 0x57e   : > { %v6456_v7 = vunpack.i.h.bf16 %v6454_v39  ;;  %v6455_v53 = vunpack.i.l.bf16 %v6454_v39 }
 0x580   : > { %v2867_v10 = vsel %vm9812_vm6, %v2858_v35, %v6455_v53  ;;  %v2868_v46 = vsel %vm9812_vm6, %v2859_v31, %v6456_v7 }
 0x581   : > { %v2872_v4 = vpack.c.bf16 %v2868_v46, %v2867_v10 }
 0x583   : > { %6046 = vmatmul.msk.bf16.gmra.mxu0 %vm9926_vm11, %v2872_v4  ;;  %vm2964_vm11 = vweird.f32 %v6646_v6 }
 0x584   : > { %v8614_v44 = vsel %vm2964_vm11, %v6646_v6, %v2963_v49  ;;  %vm9941_vm11 = vmmov %vm9930_vm0 }
 0x585   : > { %9934 = vst [vmem:[#allocation26_spill] sm:$0xff] %v8614_v44 }
 0x5a0   : > { %v2907_v13 = vpop.f32.mrf.mxu0 }
 0x5a1   : > { %v2908_v12 = vadd.f32 %v2907_v13, %v2873_v51 }
 0x5a3   : > { %v2927_v36 = vadd.f32 %v6794_v58, %v2908_v12 }
 0x5a5   : > { %v2935_v11 = vsel %vm9927_vm4, %v2927_v36, 0.0  ;;  %vm9935_vm4 = vmmov %vm9930_vm0 }
 0x5a6   : > { %2936 = vadd.xlane.f32.xlu1 %v2935_v11 }
 0x5a8   : > { %v2909_v9 = vpop.f32.mrf.mxu0 }
 0x5a9   : > { %v2910_v38 = vadd.f32 %v2909_v9, %v2873_v51 }
 0x5ab   : > { %v2928_v30 = vadd.f32 %v6795_v47, %v2910_v38 }
 0x5ad   : > { %v2938_v34 = vsel %vm9928_vm7, %v2928_v30, 0.0  ;;  %vm9936_vm7 = vmmov %vm9930_vm0 }
 0x5ae   : > { %2939 = vadd.xlane.f32.xlu2 %v2938_v34 }
 0x5bf   : > { %v2912_v27 = vpop.f32.mrf.mxu0 }
 0x5c0   : > { %v2913_v62 = vadd.f32 %v2912_v27, %v2873_v51 }
 0x5c2   : > { %v2929_v60 = vadd.f32 %v6796_v43, %v2913_v62 }
 0x5c4   : > { %v2941_v33 = vsel %vm9929_vm9, %v2929_v60, 0.0  ;;  %vm9937_vm9 = vmmov %vm9930_vm0 }
 0x5c5   : > { %2942 = vadd.xlane.f32.xlu0 %v2941_v33 }
 0x5c7   : > { %v2914_v0 = vpop.f32.mrf.mxu0 }
 0x5c8   : > { %v2915_v23 = vadd.f32 %v2914_v0, %v2873_v51 }
 0x5ca   : > { %v2930_v19 = vadd.f32 %v6797_v40, %v2915_v23 }
 0x5cc   : > { %v2944_v3 = vsel %vm9930_vm0, %v2930_v19, 0.0 }
 0x5cd   : > { %2945 = vadd.xlane.f32.xlu1 %v2944_v3 }
 0x5cf   : > { %v2917_v8 = vpop.f32.mrf.mxu0 }
 0x5d0   : > { %v2918_v14 = vadd.f32 %v2917_v8, %v2873_v51 }
 0x5d2   : > { %v2931_v41 = vadd.f32 %v6798_v45, %v2918_v14  ;;  %v6185_v14 = vld [vmem:[#allocation10 + $0x8] sm:$0xff] }
 0x5d3   : > { %3171 = vmatpush.bf16.msrb.mxu1 %v6185_v14 }
 0x5d4   : > { %v2947_v2 = vsel %vm9931_vm12, %v2931_v41, 0.0  ;;  %vm9938_vm12 = vmmov %vm9930_vm0 }
 0x5d5   : > { %2948 = vadd.xlane.f32.xlu2 %v2947_v2 }
 0x5d7   : > { %v2919_v26 = vpop.f32.mrf.mxu0 }
 0x5d8   : > { %v2920_v16 = vadd.f32 %v2919_v26, %v2873_v51 }
 0x5da   : > { %v2932_v61 = vadd.f32 %v6799_v18, %v2920_v16 }
 0x5dc   : > { %v2950_v48 = vsel %vm9932_vm13, %v2932_v61, 0.0  ;;  %vm9939_vm13 = vmmov %vm9930_vm0 }
 0x5dd   : > { %2951 = vadd.xlane.f32.xlu0 %v2950_v48 }
 0x600   : > { %v2922_v15 = vpop.f32.mrf.mxu0 }
 0x601   : > { %v2923_v5 = vadd.f32 %v2922_v15, %v2873_v51 }
 0x603   : > { %v2933_v37 = vadd.f32 %v6800_v21, %v2923_v5 }
 0x605   : > { %v2953_v25 = vsel %vm9933_vm14, %v2933_v37, 0.0  ;;  %vm9940_vm14 = vmmov %vm9930_vm0 }
 0x606   : > { %2954 = vadd.xlane.f32.xlu0 %v2953_v25 }
 0x608   : > { %v2924_v17 = vpop.f32.mrf.mxu0 }
 0x609   : > { %v2925_v1 = vadd.f32 %v2924_v17, %v2873_v51 }
 0x60b   : > { %v2934_v56 = vadd.f32 %v6801_v29, %v2925_v1 }
 0x60d   : > { %v2956_v53 = vsel %vm9937_vm9, %v2934_v56, 0.0 }
 0x619   : > { %v2937_v63 = vpop.xlane.xlu1 %2936 }
 0x61a   : > { %v2966_v59 = vmul.f32 %v8614_v44, %v2937_v63 }
 0x61c   : > { %v8617_v20 = vsub.f32 %v2927_v36, %v2966_v59 }
 0x61e   : > { %v2982_v52 = vmul.f32 %v8617_v20, %v8617_v20 }
 0x620   : > { %v2990_v28 = vsel %vm9935_vm4, %v2982_v52, 0.0  ;;  %vm9942_vm4 = vmmov %vm9930_vm0  ;;  %v8669_v52 = vperm.slane %v8597_v54, 2 }
 0x621   : > { %v2940_v55 = vpop.xlane.xlu2 %2939  ;;  %2991 = vadd.xlane.f32.xlu1 %v2990_v28 }
 0x622   : > { %v2967_v24 = vmul.f32 %v8614_v44, %v2940_v55 }
 0x624   : > { %v8623_v57 = vsub.f32 %v2928_v30, %v2967_v24  ;;  %v8673_v24 = vperm.slane %v8597_v54, 3 }
 0x626   : > { %v2983_v39 = vmul.f32 %v8623_v57, %v8623_v57 }
 0x628   : > { %v2993_v7 = vsel %vm9936_vm7, %v2983_v39, 0.0 }
 0x629   : > { %2994 = vadd.xlane.f32.xlu2 %v2993_v7  ;;  %2957 = vadd.xlane.f32.xlu1 %v2956_v53 }
 0x638   : > { %v2943_v35 = vpop.xlane.xlu0 %2942 }
 0x639   : > { %v2968_v31 = vmul.f32 %v8614_v44, %v2943_v35 }
 0x63b   : > { %v8631_v10 = vsub.f32 %v2929_v60, %v2968_v31 }
 0x63d   : > { %v2984_v46 = vmul.f32 %v8631_v10, %v8631_v10 }
 0x63f   : > { %v2996_v4 = vsel %vm9930_vm0, %v2984_v46, 0.0 }
 0x640   : > { %2997 = vadd.xlane.f32.xlu2 %v2996_v4  ;;  %v2946_v51 = vpop.xlane.xlu1 %2945 }
 0x641   : > { %v2969_v13 = vmul.f32 %v8614_v44, %v2946_v51 }
 0x643   : > { %v8637_v12 = vsub.f32 %v2930_v19, %v2969_v13 }
 0x645   : > { %v2985_v58 = vmul.f32 %v8637_v12, %v8637_v12 }
 0x647   : > { %v2999_v36 = vsel %vm9938_vm12, %v2985_v58, 0.0 }
 0x648   : > { %v2949_v11 = vpop.xlane.xlu2 %2948  ;;  %3000 = vadd.xlane.f32.xlu0 %v2999_v36 }
 0x649   : > { %v2970_v9 = vmul.f32 %v8614_v44, %v2949_v11 }
 0x64b   : > { %v8643_v38 = vsub.f32 %v2931_v41, %v2970_v9  ;;  %v6184_v41 = vld [vmem:[#allocation10] sm:$0xff] }
 0x64c   : > { %3172 = vmatpush.bf16.msrb.mxu1 %v6184_v41 }
 0x64d   : > { %v2986_v47 = vmul.f32 %v8643_v38, %v8643_v38 }
 0x64f   : > { %v3002_v30 = vsel %vm9939_vm13, %v2986_v47, 0.0 }
 0x650   : > { %v2952_v34 = vpop.xlane.xlu0 %2951  ;;  %3003 = vadd.xlane.f32.xlu1 %v3002_v30 }
 0x651   : > { %v2971_v27 = vmul.f32 %v8614_v44, %v2952_v34 }
 0x653   : > { %v8649_v62 = vsub.f32 %v2932_v61, %v2971_v27 }
 0x655   : > { %v2987_v43 = vmul.f32 %v8649_v62, %v8649_v62 }
 0x657   : > { %v3005_v60 = vsel %vm9940_vm14, %v2987_v43, 0.0 }
 0x658   : > { %3006 = vadd.xlane.f32.xlu2 %v3005_v60 }
 0x679   : > { %v2955_v33 = vpop.xlane.xlu0 %2954 }
 0x67a   : > { %v2972_v0 = vmul.f32 %v8614_v44, %v2955_v33 }
 0x67c   : > { %v8655_v23 = vsub.f32 %v2933_v37, %v2972_v0 }
 0x67e   : > { %v2988_v40 = vmul.f32 %v8655_v23, %v8655_v23 }
 0x680   : > { %v3008_v19 = vsel %vm9941_vm11, %v2988_v40, 0.0  ;;  %vm9943_vm11 = vmmov %vm9942_vm4 }
 0x681   : > { %3009 = vadd.xlane.f32.xlu0 %v3008_v19 }
 0x694   : > { %v2992_v3 = vpop.xlane.xlu1 %2991 }
 0x695   : > { %v3014_v8 = vmul.f32 %v2992_v3, %v8614_v44 }
 0x697   : > { %v3022_v45 = vadd.f32 1e-06, %v3014_v8 }
 0x699   : > { %6647 = vrsqrt.f32 %v3022_v45  ;;  %vm3036_vm9 = vweird.f32 %v3022_v45 }
 0x69c   : > { %v2995_v2 = vpop.xlane.xlu2 %2994  ;;  %v2958_v26 = vpop.xlane.xlu1 %2957 }
 0x69d   : > { %v3015_v16 = vmul.f32 %v2995_v2, %v8614_v44  ;;  %v2973_v18 = vmul.f32 %v8614_v44, %v2958_v26 }
 0x69f   : > { %v6648_v61 = vpop.eup %6647  ;;  %v3023_v48 = vadd.f32 1e-06, %v3015_v16  ;;  %v8663_v50 = vsub.f32 %v2934_v56, %v2973_v18 }
 0x6a0   : > { %v3031_v15 = vmul.f32 %v6648_v61, %v3022_v45  ;;  %vm3037_vm7 = vweird.f32 %v6648_v61 }
 0x6a1   : > { %6649 = vrsqrt.f32 %v3023_v48  ;;  %v2989_v5 = vmul.f32 %v8663_v50, %v8663_v50  ;;  %vm3038_vm0 = vmor %vm3036_vm9, %vm3037_vm7  ;;  %vm3046_vm13 = vweird.f32 %v3023_v48 }
 0x6a2   : > { %v3032_v21 = vmul.f32 %v6648_v61, %v3031_v15 }
 0x6a3   : > { %v3011_v37 = vsel %vm9942_vm4, %v2989_v5, 0.0 }
 0x6a4   : > { %v3033_v6 = vmul.f32 0.5, %v3032_v21  ;;  %3012 = vadd.xlane.f32.xlu1 %v3011_v37 }
 0x6a6   : > { %v3034_v25 = vsub.f32 1.5, %v3033_v6 }
 0x6a7   : > { %v6650_v42 = vpop.eup %6649 }
 0x6a8   : > { %v3035_v22 = vmul.f32 %v6648_v61, %v3034_v25  ;;  %v3041_v32 = vmul.f32 %v6650_v42, %v3023_v48  ;;  %vm3047_vm12 = vweird.f32 %v6650_v42 }
 0x6a9   : > { %vm3048_vm14 = vmor %vm3046_vm13, %vm3047_vm12 }
 0x6aa   : > { %v3042_v49 = vmul.f32 %v6650_v42, %v3041_v32  ;;  %v3039_v63 = vsel %vm3038_vm0, %v6648_v61, %v3035_v22 }
 0x6ab   : > { %v3110_v1 = vmul.f32 %v3039_v63, %v8617_v20 }
 0x6ac   : > { %v3043_v59 = vmul.f32 0.5, %v3042_v49 }
 0x6ad   : > { %v3119_v29 = vmul.f32 %v8669_v52, %v3110_v1 }
 0x6ae   : > { %v3044_v17 = vsub.f32 1.5, %v3043_v59 }
 0x6af   : > { %v8680_v31 = vadd.f32 %v8673_v24, %v3119_v29 }
 0x6b0   : > { %v3045_v28 = vmul.f32 %v6650_v42, %v3044_v17 }
 0x6b2   : > { %v3049_v55 = vsel %vm3048_vm14, %v6650_v42, %v3045_v28 }
 0x6b3   : > { %v3111_v56 = vmul.f32 %v3049_v55, %v8623_v57  ;;  %v2998_v39 = vpop.xlane.xlu2 %2997 }
 0x6b4   : > { %v3016_v7 = vmul.f32 %v2998_v39, %v8614_v44 }
 0x6b5   : > { %v3120_v53 = vmul.f32 %v8669_v52, %v3111_v56 }
 0x6b6   : > { %v3024_v35 = vadd.f32 1e-06, %v3016_v7 }
 0x6b7   : > { %v8683_v20 = vadd.f32 %v8673_v24, %v3120_v53 }
 0x6b8   : > { %6651 = vrsqrt.f32 %v3024_v35  ;;  %vm3056_vm7 = vweird.f32 %v3024_v35 }
 0x6b9   : > { %v3136_v46 = vpack.c.bf16 %v8683_v20, %v8680_v31 }
 0x6bb   : > { %v3001_v4 = vpop.xlane.xlu0 %3000  ;;  %6055 = vmatmul.msk.bf16.vlgmr.msrb.gmra.mxu1 %vm9943_vm11, %v3136_v46 }
 0x6bc   : > { %v3017_v57 = vmul.f32 %v3001_v4, %v8614_v44 }
 0x6be   : > { %v6652_v51 = vpop.eup %6651  ;;  %v3025_v13 = vadd.f32 1e-06, %v3017_v57 }
 0x6bf   : > { %v3051_v58 = vmul.f32 %v6652_v51, %v3024_v35  ;;  %vm3057_vm4 = vweird.f32 %v6652_v51 }
 0x6c0   : > { %6653 = vrsqrt.f32 %v3025_v13  ;;  %vm3058_vm9 = vmor %vm3056_vm7, %vm3057_vm4  ;;  %vm3066_vm12 = vweird.f32 %v3025_v13  ;;  %vm9944_vm7 = vcmask 261120  }
 0x6c1   : > { %v3052_v36 = vmul.f32 %v6652_v51, %v3051_v58 }
 0x6c3   : > { %v3053_v11 = vmul.f32 0.5, %v3052_v36  ;;  %v3004_v9 = vpop.xlane.xlu1 %3003 }
 0x6c4   : > { %v3018_v47 = vmul.f32 %v3004_v9, %v8614_v44 }
 0x6c5   : > { %v3054_v30 = vsub.f32 1.5, %v3053_v11  ;;  %v6187_v11 = vld [vmem:[#allocation11 + $0x8] sm:$0xff] }
 0x6c6   : > { %v6654_v34 = vpop.eup %6653  ;;  %v3026_v27 = vadd.f32 1e-06, %v3018_v47  ;;  %3237 = vmatpush.bf16.msrb.mxu2 %v6187_v11 }
 0x6c7   : > { %v3055_v43 = vmul.f32 %v6652_v51, %v3054_v30  ;;  %v3061_v60 = vmul.f32 %v6654_v34, %v3025_v13  ;;  %vm3067_vm0 = vweird.f32 %v6654_v34 }
 0x6c8   : > { %6655 = vrsqrt.f32 %v3026_v27  ;;  %vm3068_vm13 = vmor %vm3066_vm12, %vm3067_vm0  ;;  %vm3076_vm11 = vweird.f32 %v3026_v27 }
 0x6c9   : > { %v3062_v33 = vmul.f32 %v6654_v34, %v3061_v60  ;;  %v3059_v0 = vsel %vm3058_vm9, %v6652_v51, %v3055_v43 }
 0x6ca   : > { %v3112_v45 = vmul.f32 %v3059_v0, %v8631_v10 }
 0x6cb   : > { %v3063_v40 = vmul.f32 0.5, %v3062_v33  ;;  %v3007_v19 = vpop.xlane.xlu2 %3006 }
 0x6cc   : > { %v3019_v3 = vmul.f32 %v3007_v19, %v8614_v44  ;;  %v3121_v48 = vmul.f32 %v8669_v52, %v3112_v45 }
 0x6cd   : > { %v3064_v8 = vsub.f32 1.5, %v3063_v40 }
 0x6ce   : > { %v6656_v14 = vpop.eup %6655  ;;  %v3027_v41 = vadd.f32 1e-06, %v3019_v3  ;;  %v8696_v6 = vadd.f32 %v8673_v24, %v3121_v48 }
 0x6cf   : > { %v3065_v2 = vmul.f32 %v6654_v34, %v3064_v8  ;;  %v3071_v26 = vmul.f32 %v6656_v14, %v3026_v27  ;;  %vm3077_vm14 = vweird.f32 %v6656_v14  ;;  %v6186_v27 = vld [vmem:[#allocation11] sm:$0xff] }
 0x6d0   : > { %6657 = vrsqrt.f32 %v3027_v41  ;;  %vm3078_vm4 = vmor %vm3076_vm11, %vm3077_vm14  ;;  %vm3086_vm0 = vweird.f32 %v3027_v41  ;;  %3238 = vmatpush.bf16.msrb.mxu2 %v6186_v27 }
 0x6d1   : > { %v3069_v16 = vsel %vm3068_vm13, %v6654_v34, %v3065_v2  ;;  %v3072_v18 = vmul.f32 %v6656_v14, %v3071_v26  ;;  %vm9945_vm13 = vmmov %vm9944_vm7  ;;  %v8733_v26 = vperm.slane %v8597_v54, 4 }
 0x6d2   : > { %v3113_v61 = vmul.f32 %v3069_v16, %v8637_v12 }
 0x6d3   : > { %v3073_v15 = vmul.f32 0.5, %v3072_v18 }
 0x6d4   : > { %v3122_v5 = vmul.f32 %v8669_v52, %v3113_v61 }
 0x6d5   : > { %v3074_v21 = vsub.f32 1.5, %v3073_v15 }
 0x6d6   : > { %v6658_v37 = vpop.eup %6657  ;;  %v8699_v10 = vadd.f32 %v8673_v24, %v3122_v5 }
 0x6d7   : > { %v3075_v25 = vmul.f32 %v6656_v14, %v3074_v21  ;;  %v3081_v42 = vmul.f32 %v6658_v37, %v3027_v41  ;;  %vm3087_vm9 = vweird.f32 %v6658_v37 }
 0x6d8   : > { %v3137_v22 = vpack.c.bf16 %v8699_v10, %v8696_v6  ;;  %vm3088_vm12 = vmor %vm3086_vm0, %vm3087_vm9 }
 0x6d9   : > { %v3082_v12 = vmul.f32 %v6658_v37, %v3081_v42  ;;  %v3079_v32 = vsel %vm3078_vm4, %v6656_v14, %v3075_v25 }
 0x6da   : > { %6056 = vmatmul.msk.bf16.gmra.mxu1 %vm9944_vm7, %v3137_v22  ;;  %v3114_v59 = vmul.f32 %v3079_v32, %v8643_v38 }
 0x6db   : > { %v3083_v49 = vmul.f32 0.5, %v3082_v12 }
 0x6dc   : > { %v3123_v55 = vmul.f32 %v8669_v52, %v3114_v59 }
 0x6dd   : > { %v3084_v63 = vsub.f32 1.5, %v3083_v49 }
 0x6de   : > { %v8709_v56 = vadd.f32 %v8673_v24, %v3123_v55 }
 0x6df   : > { %v3085_v17 = vmul.f32 %v6658_v37, %v3084_v63 }
 0x6e1   : > { %v3089_v1 = vsel %vm3088_vm12, %v6658_v37, %v3085_v17  ;;  %vm9946_vm12 = vmmov %vm9945_vm13 }
 0x6e2   : > { %v3115_v28 = vmul.f32 %v3089_v1, %v8649_v62  ;;  %v613_v1 = vld [vmem:[%s597_s13 + $0x1] sm:$0x1] }
 0x6e3   : > { %v3285_v55 = vpack.c.bf16 %v613_v1, %v613_v1  ;;  %5644 = vst [vmem:[#allocation1 + $0x1] ss:$9 sm:$0xff] %v613_v1 }
 0x6e4   : > { %v3124_v29 = vmul.f32 %v8669_v52, %v3115_v28  ;;  %v614_v28 = vld [vmem:[%s597_s13 + $0x2] sm:$0x1] }
 0x6e5   : > { %5646 = vst [vmem:[#allocation1 + $0x2] ss:$9 sm:$0xff] %v614_v28 }
 0x6e6   : > { %v8712_v39 = vadd.f32 %v8673_v24, %v3124_v29  ;;  %v612_v29 = vld [vmem:[%s597_s13] sm:$0x1] }
 0x6e7   : > { %5642 = vst [vmem:[#allocation1] ss:$9 sm:$0xff] %v612_v29 }
 0x6e8   : > { %v3138_v7 = vpack.c.bf16 %v8712_v39, %v8709_v56 }
 0x6ea   : > { %6057 = vmatmul.msk.bf16.gmra.mxu1 %vm9945_vm13, %v3138_v7  ;;  %vm9947_vm13 = vmmov %vm9946_vm12  ;;  %v615_v7 = vld [vmem:[%s597_s13 + $0x3] sm:$0x1] }
 0x6eb   : > { %5648 = vst [vmem:[#allocation1 + $0x3] ss:$9 sm:$0xff] %v615_v7 }
 0x6f4   : > { %v3010_v38 = vpop.xlane.xlu0 %3009 }
 0x6f5   : > { %v3020_v53 = vmul.f32 %v3010_v38, %v8614_v44  ;;  %v3286_v38 = vpack.c.bf16 %v614_v28, %v614_v28 }
 0x6f7   : > { %v3028_v35 = vadd.f32 1e-06, %v3020_v53  ;;  %v616_v53 = vld [vmem:[%s597_s13 + $0x4] sm:$0x1] }
 0x6f8   : > { %5650 = vst [vmem:[#allocation1 + $0x4] ss:$9 sm:$0xff] %v616_v53 }
 0x6f9   : > { %6659 = vrsqrt.f32 %v3028_v35  ;;  %vm3096_vm11 = vweird.f32 %v3028_v35 }
 0x6ff   : > { %v6660_v62 = vpop.eup %6659 }
 0x700   : > { %v3091_v46 = vmul.f32 %v6660_v62, %v3028_v35  ;;  %vm3097_vm14 = vweird.f32 %v6660_v62  ;;  %v3284_v35 = vpack.c.bf16 %v612_v29, %v612_v29 }
 0x701   : > { %vm3098_vm4 = vmor %vm3096_vm11, %vm3097_vm14 }
 0x702   : > { %v3092_v4 = vmul.f32 %v6660_v62, %v3091_v46  ;;  %vm9948_vm14 = vmmov %vm9946_vm12  ;;  %v3302_v46 = vunpack.c.l.b16 %v3285_v55 }
 0x703   : > { %vm9949_vm11 = vmmov %vm9946_vm12 }
 0x704   : > { %v3093_v58 = vmul.f32 0.5, %v3092_v4  ;;  %v617_v4 = vld [vmem:[%s597_s13 + $0x5] sm:$0x1]  ;;  %vm9950_vm6 = vmmov %vm9949_vm11 }
 0x705   : > { %5652 = vst [vmem:[#allocation1 + $0x5] ss:$9 sm:$0xff] %v617_v4 }
 0x706   : > { %v3094_v36 = vsub.f32 1.5, %v3093_v58  ;;  %v3289_v58 = vpack.c.bf16 %v617_v4, %v617_v4 }
 0x708   : > { %v3095_v47 = vmul.f32 %v6660_v62, %v3094_v36  ;;  %v3301_v36 = vunpack.c.l.b16 %v3284_v35 }
 0x70a   : > { %v3099_v43 = vsel %vm3098_vm4, %v6660_v62, %v3095_v47  ;;  %v3287_v62 = vpack.c.bf16 %v615_v7, %v615_v7  ;;  %v6189_v47 = vld [vmem:[#allocation13 + $0x8] sm:$0xff]  ;;  %vm3310_vm4 = vcmask 1041409  }
 0x70b   : > { %v3116_v0 = vmul.f32 %v3099_v43, %v8655_v23  ;;  %3352 = vmatpush.bf16.msrb.mxu3 %v6189_v47 }
 0x70c   : > { %v3304_v11 = vunpack.c.l.b16 %v3287_v62 }
 0x70d   : > { %v3125_v8 = vmul.f32 %v8669_v52, %v3116_v0 }
 0x70f   : > { %v8724_v45 = vadd.f32 %v8673_v24, %v3125_v8  ;;  %v3315_v8 = vrot.slane %v3304_v11, 5 }
 0x717   : > { %v3013_v57 = vpop.xlane.xlu1 %3012 }
 0x718   : > { %v3021_v51 = vmul.f32 %v3013_v57, %v8614_v44  ;;  %v3288_v57 = vpack.c.bf16 %v616_v53, %v616_v53 }
 0x71a   : > { %v3029_v13 = vadd.f32 1e-06, %v3021_v51  ;;  %v3303_v51 = vunpack.c.l.b16 %v3286_v38  ;;  %v3305_v27 = vunpack.c.l.b16 %v3288_v57 }
 0x71c   : > { %6661 = vrsqrt.f32 %v3029_v13  ;;  %vm3106_vm9 = vweird.f32 %v3029_v13  ;;  %v3312_v43 = vrot.slane %v3303_v51, 6 }
 0x722   : > { %v6662_v9 = vpop.eup %6661 }
 0x723   : > { %v3101_v30 = vmul.f32 %v6662_v9, %v3029_v13  ;;  %vm3107_vm7 = vweird.f32 %v6662_v9  ;;  %v618_v13 = vld [vmem:[%s597_s13 + $0x6] sm:$0x1] }
 0x724   : > { %vm3108_vm0 = vmor %vm3106_vm9, %vm3107_vm7  ;;  %vm3313_vm7 = vcmask 1042434   ;;  %5654 = vst [vmem:[#allocation1 + $0x6] ss:$9 sm:$0xff] %v618_v13  ;;  %vm3316_vm9 = vcmask 1043459  }
 0x725   : > { %v3102_v34 = vmul.f32 %v6662_v9, %v3101_v30  ;;  %v619_v30 = vld [vmem:[%s597_s13 + $0x7] sm:$0x1] }
 0x726   : > { %5656 = vst [vmem:[#allocation1 + $0x7] ss:$9 sm:$0xff] %v619_v30 }
 0x727   : > { %v3103_v60 = vmul.f32 0.5, %v3102_v34  ;;  %v3290_v34 = vpack.c.bf16 %v618_v13, %v618_v13 }
 0x729   : > { %v3104_v33 = vsub.f32 1.5, %v3103_v60  ;;  %v3291_v60 = vpack.c.bf16 %v619_v30, %v619_v30 }
 0x72b   : > { %v3105_v40 = vmul.f32 %v6662_v9, %v3104_v33  ;;  %v3306_v33 = vunpack.c.l.b16 %v3289_v58  ;;  %v8774_v58 = vperm.slane %v8597_v54, 6 }
 0x72d   : > { %v3109_v19 = vsel %vm3108_vm0, %v6662_v9, %v3105_v40  ;;  %v3309_v9 = vrot.slane %v3302_v46, 7  ;;  %v6188_v40 = vld [vmem:[#allocation13] sm:$0xff]  ;;  %vm3319_vm0 = vcmask 1044484  }
 0x72e   : > { %v3117_v3 = vmul.f32 %v3109_v19, %v8663_v50  ;;  %v3307_v19 = vunpack.c.l.b16 %v3290_v34  ;;  %3353 = vmatpush.bf16.msrb.mxu3 %v6188_v40 }
 0x72f   : > { %v3311_v0 = vsel %vm3310_vm4, %v3309_v9, %v3301_v36 }
 0x730   : > { %v3126_v14 = vmul.f32 %v8669_v52, %v3117_v3  ;;  %v3314_v3 = vsel %vm3313_vm7, %v3312_v43, %v3311_v0 }
 0x732   : > { %v8727_v41 = vadd.f32 %v8673_v24, %v3126_v14  ;;  %v3308_v14 = vunpack.c.l.b16 %v3291_v60  ;;  %3381 = vmatpush.bf16.msra.mxu3 %v6189_v47 }
 0x734   : > { %v3139_v2 = vpack.c.bf16 %v8727_v41, %v8724_v45 }
 0x736   : > { %6058 = vmatmul.msk.bf16.gmra.mxu1 %vm9946_vm12, %v3139_v2  ;;  %v3318_v2 = vrot.slane %v3305_v27, 4  ;;  %vm9816_vm12 = vcmask 1045509   ;;  %3382 = vmatpush.bf16.msra.mxu3 %v6188_v40 }
 0x738   : > { %v3174_v23 = vpop.f32.mrf.mxu1 }
 0x739   : > { %v3175_v50 = vadd.f32 %v3174_v23, %v8733_v26  ;;  %v3321_v23 = vrot.slane %v3306_v33, 3 }
 0x73b   : > { %v3194_v18 = vmax.f32 %v3175_v50, 0.0  ;;  %v3317_v50 = vsel %vm3316_vm9, %v3315_v8, %v3314_v3 }
 0x740   : > { %v3176_v16 = vpop.f32.mrf.mxu1 }
 0x741   : > { %v3177_v52 = vadd.f32 %v3176_v16, %v8733_v26  ;;  %v3324_v16 = vrot.slane %v3307_v19, 2 }
 0x743   : > { %v3195_v61 = vmax.f32 %v3177_v52, 0.0  ;;  %v3320_v52 = vsel %vm3319_vm0, %v3318_v2, %v3317_v50 }
 0x745   : > { %v3202_v48 = vpack.c.bf16 %v3195_v61, %v3194_v18  ;;  %v3327_v18 = vrot.slane %v3308_v14, 1  ;;  %v3323_v61 = vsel %vm9816_vm12, %v3321_v23, %v3320_v52 }
 0x747   : > { %6067 = vmatmul.msk.bf16.vlgmr.msrb.gmra.mxu2 %vm9947_vm13, %v3202_v48  ;;  %vm9815_vm13 = vcmask 1046534  }
 0x748   : > { %v3326_v48 = vsel %vm9815_vm13, %v3324_v16, %v3323_v61 }
 0x757   : > { %v3179_v24 = vpop.f32.mrf.mxu1 }
 0x758   : > { %v3180_v15 = vadd.f32 %v3179_v24, %v8733_v26 }
 0x75a   : > { %v3196_v37 = vmax.f32 %v3180_v15, 0.0 }
 0x75f   : > { %v3181_v5 = vpop.f32.mrf.mxu1 }
 0x760   : > { %v3182_v21 = vadd.f32 %v3181_v5, %v8733_v26 }
 0x762   : > { %v3197_v25 = vmax.f32 %v3182_v21, 0.0 }
 0x764   : > { %v3203_v42 = vpack.c.bf16 %v3197_v25, %v3196_v37 }
 0x766   : > { %6068 = vmatmul.msk.bf16.gmra.mxu2 %vm9948_vm14, %v3203_v42  ;;  %vm9814_vm14 = vcmask 1047559  }
 0x767   : > { %v3184_v22 = vpop.f32.mrf.mxu1  ;;  %v3329_v24 = vsel %vm9814_vm14, %v3327_v18, %v3326_v48 }
 0x768   : > { %v3185_v12 = vadd.f32 %v3184_v22, %v8733_v26  ;;  %v3330_v15 = vpack.c.b16 %v3329_v24, %v3329_v24 }
 0x76a   : > { %v3198_v63 = vmax.f32 %v3185_v12, 0.0  ;;  %6079 = vmatmul.msk.bf16.vlgmr.msrb.gmra.mxu3 %vm9949_vm11, %v3330_v15 }
 0x76f   : > { %v3186_v32 = vpop.f32.mrf.mxu1 }
 0x770   : > { %v3187_v49 = vadd.f32 %v3186_v32, %v8733_v26 }
 0x772   : > { %v3199_v59 = vmax.f32 %v3187_v49, 0.0  ;;  %v3206_v49 = vperm.slane %v8597_v54, 5 }
 0x774   : > { %v3204_v17 = vpack.c.bf16 %v3199_v59, %v3198_v63 }
 0x776   : > { %6069 = vmatmul.msk.bf16.gmra.mxu2 %vm9949_vm11, %v3204_v17  ;;  %vm9951_vm11 = vmmov %vm9950_vm6 }
 0x7b3   : > { %v3189_v5 = vpop.f32.mrf.mxu1 }
 0x7b4   : > { %v3190_v21 = vadd.f32 %v3189_v5, %v8733_v26 }
 0x7b6   : > { %v3200_v42 = vmax.f32 %v3190_v21, 0.0 }
 0x7bb   : > { %v3191_v37 = vpop.f32.mrf.mxu1 }
 0x7bc   : > { %v3192_v25 = vadd.f32 %v3191_v37, %v8733_v26 }
 0x7be   : > { %v3201_v22 = vmax.f32 %v3192_v25, 0.0 }
 0x7c0   : > { %v3205_v12 = vpack.c.bf16 %v3201_v22, %v3200_v42 }
 0x7c2   : > { %6070 = vmatmul.msk.bf16.gmra.mxu2 %vm9950_vm6, %v3205_v12 }
 0x7ca   : > { %v3240_v32 = vpop.f32.mrf.mxu2 }
 0x7cb   : > { %v3241_v63 = vadd.f32 %v3240_v32, %v3206_v49 }
 0x7cd   : > { %v3260_v1 = vadd.f32 %v3241_v63, %v8680_v31 }
 0x7d2   : > { %v3242_v59 = vpop.f32.mrf.mxu2 }
 0x7d3   : > { %v3243_v17 = vadd.f32 %v3242_v59, %v3206_v49 }
 0x7d5   : > { %v3261_v28 = vadd.f32 %v3243_v17, %v8683_v20 }
 0x7d7   : > { %v3359_v55 = vpack.c.bf16 %v3261_v28, %v3260_v1 }
 0x7d9   : > { %6080 = vmatmul.msk.bf16.vlgmr.msra.gmra.mxu3 %vm9951_vm11, %v3359_v55  ;;  %vm9952_vm11 = vmmov %vm9950_vm6 }
 0x7e9   : > { %v3245_v29 = vpop.f32.mrf.mxu2 }
 0x7ea   : > { %v3246_v26 = vadd.f32 %v3245_v29, %v3206_v49 }
 0x7ec   : > { %v3262_v53 = vadd.f32 %v3246_v26, %v8696_v6 }
 0x7ed   : > { %v3355_v6 = vpop.f32.mrf.mxu3 }
 0x7f1   : > { %v3247_v7 = vpop.f32.mrf.mxu2 }
 0x7f2   : > { %v3248_v38 = vadd.f32 %v3247_v7, %v3206_v49 }
 0x7f4   : > { %v3263_v35 = vadd.f32 %v3248_v38, %v8699_v10  ;;  %v8777_v10 = vadd.f32 %v3355_v6, %v8774_v58 }
 0x7f6   : > { %v3360_v62 = vpack.c.bf16 %v3263_v35, %v3262_v53  ;;  %3408 = vrot.lane.b32.xlu1 %v8777_v10, %s7171_s29  ;;  %3405 = vrot.lane.b32.xlu2 %v8777_v10, %s7172_s15  ;;  %v3414_v1 = vrot.slane %v8777_v10, 1 }
 0x7f7   : > { %3411 = vrot.lane.b32.xlu0 %v8777_v10, %s7170_s6 }
 0x7f8   : > { %6081 = vmatmul.msk.bf16.gmra.mxu3 %vm9950_vm6, %v3360_v62  ;;  %v3551_v55 = vpack.c.bf16 %v3414_v1, %v3414_v1 }
 0x7f9   : > { %v3250_v46 = vpop.f32.mrf.mxu2 }
 0x7fa   : > { %v3251_v4 = vadd.f32 %v3250_v46, %v3206_v49 }
 0x7fc   : > { %v3264_v20 = vadd.f32 %v3251_v4, %v8709_v56  ;;  %v3357_v56 = vpop.f32.mrf.mxu3 }
 0x801   : > { %v3252_v57 = vpop.f32.mrf.mxu2 }
 0x802   : > { %v3253_v31 = vadd.f32 %v3252_v57, %v3206_v49  ;;  %v3550_v57 = vpack.c.bf16 %v8777_v10, %v8777_v10 }
 0x804   : > { %v3265_v51 = vadd.f32 %v3253_v31, %v8712_v39 }
 0x806   : > { %v3361_v13 = vpack.c.bf16 %v3265_v51, %v3264_v20 }
 0x808   : > { %6082 = vmatmul.msk.bf16.gmra.mxu3 %vm9952_vm11, %v3361_v13  ;;  %vm4446_vm11 = vcmask 57344  }
 0x845   : > { %v3255_v39 = vpop.f32.mrf.mxu2 }
 0x846   : > { %v3256_v36 = vadd.f32 %v3255_v39, %v3206_v49 }
 0x848   : > { %v3266_v54 = vadd.f32 %v3256_v36, %v8724_v45  ;;  %v3415_v36 = vrot.slane %v8777_v10, 2 }
 0x84d   : > { %v3257_v11 = vpop.f32.mrf.mxu2 }
 0x84e   : > { %v3258_v9 = vadd.f32 %v3257_v11, %v3206_v49 }
 0x850   : > { %v3267_v47 = vadd.f32 %v3258_v9, %v8727_v41  ;;  %v8824_v63 = vpop.permute.xlu2 %3405  ;;  %v3552_v9 = vpack.c.bf16 %v3415_v36, %v3415_v36 }
 0x852   : > { %v3362_v30 = vpack.c.bf16 %v3267_v47, %v3266_v54 }
 0x854   : > { %6083 = vmatmul.msk.bf16.gmra.mxu3 %vm9950_vm6, %v3362_v30 }
 0x85c   : > { %v3384_v34 = vpop.f32.mrf.mxu3 }
 0x85d   : > { %v3385_v27 = vadd.f32 %v3384_v34, %v8774_v58 }
 0x85f   : > { %v3582_v43 = vpack.c.bf16 %v3385_v27, %v3385_v27 }
 0x861   : > { %v3615_v60 = vunpack.c.l.b16 %v3582_v43 }
 0x863   : > { %v8789_v33 = vpack.c.b16 %v3615_v60, %v3615_v60 }
 0x864   : > { %v3386_v0 = vpop.f32.mrf.mxu3 }
 0x865   : > { %v3387_v40 = vadd.f32 %v3386_v0, %v8774_v58  ;;  %3617 = vrot.lane.b32.xlu1 %v8789_v33, %s7169_s4 }
 0x867   : > { %v3583_v19 = vpack.c.bf16 %v3387_v40, %v3387_v40 }
 0x868   : > { %v8828_v28 = vpop.permute.xlu1 %3408 }
 0x869   : > { %v3639_v45 = vunpack.c.l.b16 %v3583_v19  ;;  %v8850_v6 = vpop.permute.xlu0 %3411 }
 0x86b   : > { %v8794_v3 = vpack.c.b16 %v3639_v45, %v3639_v45 }
 0x86d   : > { %3641 = vrot.lane.b32.xlu2 %v8794_v3, %s7169_s4 }
 0x87b   : > { %v3389_v41 = vpop.f32.mrf.mxu3 }
 0x87c   : > { %v3390_v8 = vadd.f32 %v3389_v41, %v8774_v58 }
 0x87e   : > { %v6462_v14 = vpack.i.bf16 %v3390_v8, %v3387_v40  ;;  %v3584_v16 = vpack.c.bf16 %v3390_v8, %v3390_v8 }
 0x880   : > { %6463 = vrot.lane.b32.xlu0 %v6462_v14, %s7171_s29  ;;  %6458 = vrot.lane.b32.xlu2 %v6462_v14, %s7172_s15  ;;  %v3663_v52 = vunpack.c.l.b16 %v3584_v16 }
 0x882   : > { %v8806_v48 = vpack.c.b16 %v3663_v52, %v3663_v52 }
 0x883   : > { %v3391_v2 = vpop.f32.mrf.mxu3 }
 0x884   : > { %v3392_v23 = vadd.f32 %v3391_v2, %v8774_v58  ;;  %v3418_v2 = vrot.slane %v8777_v10, 5 }
 0x886   : > { %v6472_v50 = vpack.i.bf16 %v3392_v23, %v3385_v27  ;;  %v3585_v24 = vpack.c.bf16 %v3392_v23, %v3392_v23  ;;  %v3417_v27 = vrot.slane %v8777_v10, 4 }
 0x888   : > { %6468 = vrot.lane.b32.xlu2 %v6462_v14, %s7170_s6  ;;  %6473 = vrot.lane.b32.xlu0 %v6472_v50, %s7172_s15  ;;  %v3687_v5 = vunpack.c.l.b16 %v3585_v24  ;;  %v3554_v43 = vpack.c.bf16 %v3417_v27, %v3417_v27  ;;  %v3555_v24 = vpack.c.bf16 %v3418_v2, %v3418_v2 }
 0x889   : > { %6478 = vrot.lane.b32.xlu1 %v6472_v50, %s7171_s29 }
 0x88a   : > { %v8812_v42 = vpack.c.b16 %v3687_v5, %v3687_v5 }
 0x88b   : > { %v3394_v18 = vpop.f32.mrf.mxu3 }
 0x88c   : > { %v3395_v61 = vadd.f32 %v3394_v18, %v8774_v58 }
 0x88e   : > { %v3586_v15 = vpack.c.bf16 %v3395_v61, %v3395_v61 }
 0x890   : > { %3665 = vrot.lane.b32.xlu2 %v8806_v48, %s7169_s4  ;;  %6483 = vrot.lane.b32.xlu0 %v6472_v50, %s7170_s6  ;;  %v3711_v21 = vunpack.c.l.b16 %v3586_v15 }
 0x892   : > { %v8814_v22 = vpack.c.b16 %v3711_v21, %v3711_v21 }
 0x893   : > { %v3396_v37 = vpop.f32.mrf.mxu3 }
 0x894   : > { %v3397_v25 = vadd.f32 %v3396_v37, %v8774_v58 }
 0x896   : > { %v3587_v12 = vpack.c.bf16 %v3397_v25, %v3397_v25 }
 0x898   : > { %3689 = vrot.lane.b32.xlu0 %v8812_v42, %s7169_s4  ;;  %3713 = vrot.lane.b32.xlu2 %v8814_v22, %s7169_s4  ;;  %v3735_v32 = vunpack.c.l.b16 %v3587_v12 }
 0x89a   : > { %v8820_v49 = vpack.c.b16 %v3735_v32, %v3735_v32 }
 0x8a0   : > { %3737 = vrot.lane.b32.xlu2 %v8820_v49, %s7169_s4 }
 0x8c7   : > { %v3642_v59 = vpop.permute.xlu2 %3641 }
 0x8c8   : > { %v3647_v17 = vsel %vm838_vm1, %v3642_v59, 0 }
 0x8c9   : > { %3656 = vmatpush.bf16.xpose.msra.mxu1 %v3647_v17 }
 0x8d0   : > { %6085 = vmatmul.msk.bf16.vlgmr.msra.gmra.mxu1 %vm838_vm1, %v3551_v55 }
 0x8d7   : > { %v3399_v29 = vpop.f32.mrf.mxu3  ;;  %v3618_v26 = vpop.permute.xlu1 %3617 }
 0x8d8   : > { %v3400_v7 = vadd.f32 %v3399_v29, %v8774_v58  ;;  %v3623_v38 = vsel %vm838_vm1, %v3618_v26, 0 }
 0x8d9   : > { %3632 = vmatpush.bf16.xpose.msrb.mxu0 %v3623_v38 }
 0x8da   : > { %v8833_v53 = vpop.permute.xlu2 %6458  ;;  %v6497_v35 = vpack.i.bf16 %v3400_v7, %v3397_v25  ;;  %v3588_v62 = vpack.c.bf16 %v3400_v7, %v3400_v7 }
 0x8db   : > { %v6461_v25 = vunpack.i.h.bf16 %v8833_v53  ;;  %v6460_v12 = vunpack.i.l.bf16 %v8833_v53 }
 0x8dc   : > { %6498 = vrot.lane.b32.xlu2 %v6497_v35, %s7170_s6  ;;  %6488 = vrot.lane.b32.xlu0 %v6497_v35, %s7172_s15  ;;  %v3759_v46 = vunpack.c.l.b16 %v3588_v62 }
 0x8dd   : > { %v3592_v55 = vpack.c.bf16 %v6461_v25, %v6461_v25  ;;  %v3591_v29 = vpack.c.bf16 %v6460_v12, %v6460_v12 }
 0x8de   : > { %v8837_v4 = vpack.c.b16 %v3759_v46, %v3759_v46 }
 0x8df   : > { %v3401_v31 = vpop.f32.mrf.mxu3  ;;  %v3855_v53 = vunpack.c.l.b16 %v3592_v55  ;;  %v3831_v46 = vunpack.c.l.b16 %v3591_v29 }
 0x8e0   : > { %v3402_v20 = vadd.f32 %v3401_v31, %v8774_v58  ;;  %3761 = vrot.lane.b32.xlu1 %v8837_v4, %s7169_s4  ;;  %6084 = vmatmul.msk.bf16.vlgmr.msrb.gmra.mxu0 %vm838_vm1, %v3550_v57 }
 0x8e2   : > { %v8845_v51 = vpop.permute.xlu2 %6468  ;;  %v6512_v13 = vpack.i.bf16 %v3402_v20, %v3395_v61  ;;  %v3589_v39 = vpack.c.bf16 %v3402_v20, %v3402_v20  ;;  %v3416_v20 = vrot.slane %v8777_v10, 3 }
 0x8e3   : > { %v6471_v57 = vunpack.i.h.bf16 %v8845_v51  ;;  %v6470_v31 = vunpack.i.l.bf16 %v8845_v51 }
 0x8e4   : > { %6513 = vrot.lane.b32.xlu2 %v6512_v13, %s7170_s6  ;;  %6493 = vrot.lane.b32.xlu0 %v6497_v35, %s7171_s29  ;;  %v3783_v11 = vunpack.c.l.b16 %v3589_v39  ;;  %v3553_v36 = vpack.c.bf16 %v3416_v20, %v3416_v20 }
 0x8e5   : > { %v3608_v39 = vpack.c.bf16 %v6471_v57, %v6471_v57 }
 0x8e6   : > { %v8855_v30 = vpack.c.b16 %v3783_v11, %v3783_v11 }
 0x8e7   : > { %v4239_v11 = vunpack.c.l.b16 %v3608_v39 }
 0x8e8   : > { %6503 = vrot.lane.b32.xlu1 %v6512_v13, %s7172_s15  ;;  %s5956_s15 = sshll.u32 %s7409_s20, 3 }
 0x8ea   : > { %v3666_v56 = vpop.permute.xlu2 %3665 }
 0x8eb   : > { %v3671_v58 = vsel %vm838_vm1, %v3666_v56, 0  ;;  %v3832_v56 = vpack.c.b16 %v3831_v46, %v3831_v46 }
 0x8ec   : > { %3680 = vmatpush.bf16.xpose.msra.mxu2 %v3671_v58  ;;  %6508 = vrot.lane.b32.xlu0 %v6512_v13, %s7171_s29  ;;  %v8895_v13 = vpack.c.b16 %v3855_v53, %v3855_v53  ;;  %v3607_v58 = vpack.c.bf16 %v6470_v31, %v6470_v31 }
 0x8ee   : > { %v4215_v51 = vunpack.c.l.b16 %v3607_v58 }
 0x8f2   : > { %v6464_v54 = vpop.permute.xlu0 %6463  ;;  %v3714_v47 = vpop.permute.xlu2 %3713 }
 0x8f3   : > { %v3719_v34 = vsel %vm838_vm1, %v3714_v47, 0  ;;  %6086 = vmatmul.msk.bf16.vlgmr.msra.gmra.mxu2 %vm838_vm1, %v3552_v9  ;;  %v6465_v8 = vunpack.i.l.bf16 %v6464_v54  ;;  %v6466_v23 = vunpack.i.h.bf16 %v6464_v54  ;;  %v8904_v47 = vpack.c.b16 %v4239_v11, %v4239_v11 }
 0x8f4   : > { %3728 = vmatpush.bf16.xpose.msrb.mxu1 %v3719_v34  ;;  %3785 = vrot.lane.b32.xlu0 %v8855_v30, %s7169_s4  ;;  %v8906_v34 = vpack.c.b16 %v4215_v51, %v4215_v51  ;;  %v3420_v51 = vrot.slane %v8777_v10, 7 }
 0x8f5   : > { %v3599_v18 = vpack.c.bf16 %v6465_v8, %v6465_v8  ;;  %v3600_v15 = vpack.c.bf16 %v6466_v23, %v6466_v23  ;;  %v3419_v23 = vrot.slane %v8777_v10, 6 }
 0x8f7   : > { %v4023_v32 = vunpack.c.l.b16 %v3599_v18  ;;  %v4047_v17 = vunpack.c.l.b16 %v3600_v15 }
 0x8f9   : > { %v8879_v26 = vpack.c.b16 %v4023_v32, %v4023_v32  ;;  %v8883_v38 = vpack.c.b16 %v4047_v17, %v4047_v17 }
 0x8fa   : > { %v8862_v60 = vpop.permute.xlu0 %6473  ;;  %v3738_v0 = vpop.permute.xlu2 %3737 }
 0x8fb   : > { %v6475_v40 = vunpack.i.l.bf16 %v8862_v60  ;;  %v3743_v19 = vsel %vm838_vm1, %v3738_v0, 0  ;;  %v6479_v45 = vpop.permute.xlu1 %6478  ;;  %6088 = vmatmul.msk.bf16.vlgmr.msrb.gmra.mxu1 %vm838_vm1, %v3554_v43  ;;  %v6476_v9 = vunpack.i.h.bf16 %v8862_v60 }
 0x8fc   : > { %v6480_v41 = vunpack.i.l.bf16 %v6479_v45  ;;  %3752 = vmatpush.bf16.xpose.msrb.mxu2 %v3743_v19  ;;  %v6481_v54 = vunpack.i.h.bf16 %v6479_v45 }
 0x8fd   : > { %v3590_v14 = vpack.c.bf16 %v6475_v40, %v6475_v40  ;;  %v3593_v27 = vpack.c.bf16 %v6476_v9, %v6476_v9 }
 0x8fe   : > { %v3598_v50 = vpack.c.bf16 %v6480_v41, %v6480_v41  ;;  %v3601_v43 = vpack.c.bf16 %v6481_v54, %v6481_v54 }
 0x8ff   : > { %v3807_v16 = vunpack.c.l.b16 %v3590_v14 }
 0x900   : > { %v3999_v52 = vunpack.c.l.b16 %v3598_v50  ;;  %v4071_v0 = vunpack.c.l.b16 %v3601_v43 }
 0x901   : > { %v8868_v61 = vpack.c.b16 %v3807_v16, %v3807_v16 }
 0x902   : > { %v8870_v5 = vpack.c.b16 %v3999_v52, %v3999_v52  ;;  %v6484_v21 = vpop.permute.xlu0 %6483  ;;  %v8914_v19 = vpack.c.b16 %v4071_v0, %v4071_v0  ;;  %v3556_v52 = vpack.c.bf16 %v3419_v23, %v3419_v23  ;;  %v3557_v0 = vpack.c.bf16 %v3420_v51, %v3420_v51 }
 0x903   : > { %v6485_v37 = vunpack.i.l.bf16 %v6484_v21  ;;  %6089 = vmatmul.msk.bf16.vlgmr.msrb.gmra.mxu2 %vm838_vm1, %v3555_v24  ;;  %3809 = vrot.lane.b32.xlu1 %v8868_v61, %s7169_s4  ;;  %v6486_v40 = vunpack.i.h.bf16 %v6484_v21 }
 0x904   : > { %4001 = vrot.lane.b32.xlu0 %v8870_v5, %s7169_s4 }
 0x905   : > { %v3606_v59 = vpack.c.bf16 %v6485_v37, %v6485_v37  ;;  %v3609_v45 = vpack.c.bf16 %v6486_v40, %v6486_v40 }
 0x907   : > { %v4191_v1 = vunpack.c.l.b16 %v3606_v59  ;;  %v4263_v41 = vunpack.c.l.b16 %v3609_v45 }
 0x909   : > { %v8881_v7 = vpack.c.b16 %v4191_v1, %v4191_v1  ;;  %v8921_v8 = vpack.c.b16 %v4263_v41, %v4263_v41 }
 0x90a   : > { %v3690_v35 = vpop.permute.xlu0 %3689 }
 0x90b   : > { %v3695_v62 = vsel %vm838_vm1, %v3690_v35, 0  ;;  %4193 = vrot.lane.b32.xlu2 %v8881_v7, %s7169_s4  ;;  %4025 = vrot.lane.b32.xlu1 %v8879_v26, %s7169_s4 }
 0x90c   : > { %4049 = vrot.lane.b32.xlu0 %v8883_v38, %s7169_s4  ;;  %3704 = vmatpush.bf16.xpose.msra.mxu0 %v3695_v62 }
 0x913   : > { %3833 = vrot.lane.b32.xlu2 %v3832_v56, %s7169_s4  ;;  %3857 = vrot.lane.b32.xlu1 %v8895_v13, %s7169_s4 }
 0x914   : > { %6087 = vmatmul.msk.bf16.vlgmr.msra.gmra.mxu0 %vm838_vm1, %v3553_v36  ;;  %4852 = vrot.lane.b32.xlu0 %v8794_v3, %s7173_s27  ;;  %v3879_v3 = vunpack.c.l.b16 %v3593_v27 }
 0x916   : > { %v3880_v60 = vpack.c.b16 %v3879_v3, %v3879_v3 }
 0x91b   : > { %4217 = vrot.lane.b32.xlu2 %v8906_v34, %s7169_s4  ;;  %4241 = vrot.lane.b32.xlu1 %v8904_v47, %s7169_s4 }
 0x91c   : > { %4831 = vrot.lane.b32.xlu0 %v8789_v33, %s7173_s27 }
 0x923   : > { %3881 = vrot.lane.b32.xlu2 %v3880_v60, %s7169_s4  ;;  %4073 = vrot.lane.b32.xlu1 %v8914_v19, %s7169_s4 }
 0x924   : > { %4957 = vrot.lane.b32.xlu0 %v8837_v4, %s7173_s27 }
 0x92b   : > { %4873 = vrot.lane.b32.xlu2 %v8806_v48, %s7173_s27  ;;  %4265 = vrot.lane.b32.xlu1 %v8921_v8, %s7169_s4 }
 0x92c   : > { %5020 = vrot.lane.b32.xlu0 %v3832_v56, %s7173_s27 }
 0x933   : > { %4894 = vrot.lane.b32.xlu2 %v8812_v42, %s7173_s27 }
 0x936   : > { %v6499_v14 = vpop.permute.xlu2 %6498 }
 0x937   : > { %v6500_v16 = vunpack.i.l.bf16 %v6499_v14  ;;  %v6501_v53 = vunpack.i.h.bf16 %v6499_v14  ;;  %v3421_v14 = vrot.slane %v8824_v63, 1 }
 0x939   : > { %v3611_v15 = vpack.c.bf16 %v6500_v16, %v6500_v16  ;;  %v3612_v9 = vpack.c.bf16 %v6501_v53, %v6501_v53 }
 0x93b   : > { %4915 = vrot.lane.b32.xlu2 %v8814_v22, %s7173_s27  ;;  %v4311_v55 = vunpack.c.l.b16 %v3611_v15  ;;  %v4335_v40 = vunpack.c.l.b16 %v3612_v9 }
 0x93d   : > { %v8954_v46 = vpack.c.b16 %v4311_v55, %v4311_v55 }
 0x93e   : > { %v8944_v21 = vpop.permute.xlu2 %6513 }
 0x943   : > { %4978 = vrot.lane.b32.xlu2 %v8855_v30, %s7173_s27 }
 0x94b   : > { %4999 = vrot.lane.b32.xlu2 %v8868_v61, %s7173_s27 }
 0x94d   : > { %v8936_v33 = vpop.f32.mrf.mxu1 }
 0x94e   : > { %v6489_v48 = vpop.permute.xlu0 %6488 }
 0x94f   : > { %v6491_v62 = vunpack.i.h.bf16 %v6489_v48  ;;  %v6490_v57 = vunpack.i.l.bf16 %v6489_v48 }
 0x951   : > { %v3596_v58 = vpack.c.bf16 %v6491_v62, %v6491_v62  ;;  %v3595_v54 = vpack.c.bf16 %v6490_v57, %v6490_v57 }
 0x952   : > { %v3762_v4 = vpop.permute.xlu1 %3761 }
 0x953   : > { %5062 = vrot.lane.b32.xlu2 %v3880_v60, %s7173_s27  ;;  %v3767_v2 = vsel %vm838_vm1, %v3762_v4, 0  ;;  %v3951_v3 = vunpack.c.l.b16 %v3596_v58  ;;  %v6515_v60 = vunpack.i.l.bf16 %v8944_v21  ;;  %v3927_v45 = vunpack.c.l.b16 %v3595_v54 }
 0x954   : > { %3776 = vmatpush.bf16.xpose.msrb.mxu3 %v3767_v2  ;;  %v8972_v2 = vpack.c.b16 %v4335_v40, %v4335_v40  ;;  %v6516_v54 = vunpack.i.h.bf16 %v8944_v21 }
 0x955   : > { %v3660_v42 = vpop.f32.mrf.mxu1  ;;  %v3952_v4 = vpack.c.b16 %v3951_v3, %v3951_v3  ;;  %v3928_v23 = vpack.c.b16 %v3927_v45, %v3927_v45 }
 0x956   : > { %v6494_v22 = vpop.permute.xlu0 %6493  ;;  %v3610_v42 = vpack.c.bf16 %v6515_v60, %v6515_v60 }
 0x957   : > { %v6495_v50 = vunpack.i.l.bf16 %v6494_v22  ;;  %v6496_v37 = vunpack.i.h.bf16 %v6494_v22 }
 0x958   : > { %v4287_v16 = vunpack.c.l.b16 %v3610_v42 }
 0x959   : > { %v3603_v30 = vpack.c.bf16 %v6495_v50, %v6495_v50  ;;  %v3604_v29 = vpack.c.bf16 %v6496_v37, %v6496_v37  ;;  %v3559_v50 = vpack.c.bf16 %v3421_v14, %v3421_v14 }
 0x95a   : > { %v6504_v18 = vpop.permute.xlu1 %6503  ;;  %v8986_v37 = vpack.c.b16 %v4287_v16, %v4287_v16 }
 0x95b   : > { %v4119_v61 = vunpack.c.l.b16 %v3603_v30  ;;  %5209 = vrot.lane.b32.xlu2 %v8883_v38, %s7173_s27  ;;  %v6505_v24 = vunpack.i.l.bf16 %v6504_v18  ;;  %6090 = vmatmul.msk.bf16.vlgmr.msrb.gmra.mxu3 %vm838_vm1, %v3556_v52  ;;  %v4143_v31 = vunpack.c.l.b16 %v3604_v29  ;;  %v6506_v41 = vunpack.i.h.bf16 %v6504_v18 }
 0x95d   : > { %v4120_v25 = vpack.c.b16 %v4119_v61, %v4119_v61  ;;  %v3594_v12 = vpack.c.bf16 %v6505_v24, %v6505_v24  ;;  %v8946_v32 = vpop.f32.mrf.mxu0  ;;  %v8962_v27 = vpack.c.b16 %v4143_v31, %v4143_v31  ;;  %v3597_v22 = vpack.c.bf16 %v6506_v41, %v6506_v41 }
 0x95e   : > { %v8948_v59 = vpop.permute.xlu0 %6508 }
 0x95f   : > { %v3903_v17 = vunpack.c.l.b16 %v3594_v12  ;;  %v6510_v1 = vunpack.i.l.bf16 %v8948_v59  ;;  %4121 = vrot.lane.b32.xlu0 %v4120_v25, %s7169_s4  ;;  %v3975_v30 = vunpack.c.l.b16 %v3597_v22  ;;  %v3558_v12 = vpack.c.bf16 %v8824_v63, %v8824_v63 }
 0x961   : > { %v3904_v38 = vpack.c.b16 %v3903_v17, %v3903_v17  ;;  %v3602_v35 = vpack.c.bf16 %v6510_v1, %v6510_v1 }
 0x963   : > { %5272 = vrot.lane.b32.xlu2 %v4120_v25, %s7173_s27  ;;  %3905 = vrot.lane.b32.xlu1 %v3904_v38, %s7169_s4  ;;  %v4095_v20 = vunpack.c.l.b16 %v3602_v35  ;;  %v3976_v25 = vpack.c.b16 %v3975_v30, %v3975_v30  ;;  %v3423_v35 = vrot.slane %v8824_v63, 3 }
 0x965   : > { %v8956_v56 = vpop.permute.xlu2 %4193  ;;  %v3636_v39 = vpop.f32.mrf.mxu0  ;;  %v4096_v43 = vpack.c.b16 %v4095_v20, %v4095_v20  ;;  %v3561_v62 = vpack.c.bf16 %v3423_v35, %v3423_v35 }
 0x966   : > { %v3786_v36 = vpop.permute.xlu0 %3785 }
 0x967   : > { %v3791_v11 = vsel %vm838_vm1, %v3786_v36, 0  ;;  %4313 = vrot.lane.b32.xlu0 %v8954_v46, %s7169_s4  ;;  %v6511_v36 = vunpack.i.h.bf16 %v8948_v59 }
 0x968   : > { %3800 = vmatpush.bf16.xpose.msrb.mxu0 %v3791_v11 }
 0x969   : > { %v3605_v51 = vpack.c.bf16 %v6511_v36, %v6511_v36 }
 0x96b   : > { %4145 = vrot.lane.b32.xlu2 %v8962_v27, %s7169_s4  ;;  %4097 = vrot.lane.b32.xlu1 %v4096_v43, %s7169_s4 }
 0x96d   : > { %v3834_v48 = vpop.permute.xlu2 %3833 }
 0x96e   : > { %v3839_v10 = vsel %vm838_vm1, %v3834_v48, 0 }
 0x96f   : > { %3848 = vmatpush.bf16.xpose.msra.mxu2 %v3839_v10  ;;  %6091 = vmatmul.msk.bf16.vlgmr.msrb.gmra.mxu0 %vm838_vm1, %v3557_v0  ;;  %v3613_v0 = vpack.c.bf16 %v6516_v54, %v6516_v54 }
 0x970   : > { %3953 = vrot.lane.b32.xlu0 %v3952_v4, %s7169_s4 }
 0x971   : > { %v4359_v60 = vunpack.c.l.b16 %v3613_v0 }
 0x973   : > { %4337 = vrot.lane.b32.xlu2 %v8972_v2, %s7169_s4  ;;  %3929 = vrot.lane.b32.xlu1 %v3928_v23, %s7169_s4  ;;  %v9037_v21 = vpack.c.b16 %v4359_v60, %v4359_v60  ;;  %v9959_v60 = vld [vmem:[#allocation27_spill] sm:$0xff] }
 0x974   : > { %vm9960_vm6 = vcmp.gt.f32.partialorder %v9959_v60, 0.0  ;;  %vm9966_vm14 = vcmp.gt.f32.partialorder %v9959_v60, 0.0 }
 0x975   : > { %v8977_v52 = vpop.permute.xlu2 %4217  ;;  %v3810_v18 = vpop.permute.xlu1 %3809  ;;  %9953 = vst [vmem:[#allocation25_spill] sm:$0xff] %v9037_v21 }
 0x976   : > { %v3815_v61 = vsel %vm838_vm1, %v3810_v18, 0  ;;  %v8980_v24 = vpop.f32.mrf.mxu2  ;;  %6093 = vmatmul.msk.bf16.vlgmr.msra.gmra.mxu2 %vm838_vm1, %v3559_v50  ;;  %v4002_v9 = vpop.permute.xlu0 %4001 }
 0x977   : > { %3824 = vmatpush.bf16.xpose.msra.mxu1 %v3815_v61 }
 0x978   : > { %v8983_v15 = vpop.f32.mrf.mxu1  ;;  %5083 = vrot.lane.b32.xlu0 %v3904_v38, %s7173_s27 }
 0x97b   : > { %3977 = vrot.lane.b32.xlu2 %v3976_v25, %s7169_s4  ;;  %4289 = vrot.lane.b32.xlu1 %v8986_v37, %s7169_s4 }
 0x97d   : > { %v3882_v17 = vpop.permute.xlu2 %3881  ;;  %v8993_v1 = vpop.permute.xlu1 %4025 }
 0x97e   : > { %v3887_v55 = vsel %vm838_vm1, %v3882_v17, 0  ;;  %v3684_v29 = vpop.f32.mrf.mxu2  ;;  %6092 = vmatmul.msk.bf16.vlgmr.msra.gmra.mxu1 %vm838_vm1, %v3558_v12  ;;  %v9030_v40 = vpop.permute.xlu0 %4049 }
 0x97f   : > { %3896 = vmatpush.bf16.xpose.msra.mxu0 %v3887_v55 }
 0x980   : > { %v3732_v38 = vpop.f32.mrf.mxu1  ;;  %5167 = vrot.lane.b32.xlu0 %v8870_v5, %s7173_s27  ;;  %v3422_v5 = vrot.slane %v8824_v63, 2 }
 0x981   : > { %v4384_v38 = vmul.f32 0.35355338, %v8980_v24 }
 0x983   : > { %5377 = vrot.lane.b32.xlu2 %v8904_v47, %s7173_s27  ;;  %4936 = vrot.lane.b32.xlu1 %v8820_v49, %s7173_s27  ;;  %v3560_v47 = vpack.c.bf16 %v3422_v5, %v3422_v5  ;;  %v4007_v5 = vsel %vm838_vm1, %v4002_v9, 0  ;;  %v9095_v24 = vsel %vm7845_vm8, %v4384_v38, -1e+30  ;;  %v4055_v38 = vsel %vm838_vm1, %v9030_v40, 0 }
 0x984   : > { %v4453_v9 = vsel %vm4446_vm11, %v9095_v24, -inf  ;;  %v3430_v40 = vrot.slane %v8828_v28, 3 }
 0x985   : > { %v9004_v53 = vpop.permute.xlu2 %4873  ;;  %v3858_v57 = vpop.permute.xlu1 %3857 }
 0x986   : > { %v3863_v31 = vsel %vm838_vm1, %v3858_v57, 0  ;;  %v9007_v20 = vpop.f32.mrf.mxu2  ;;  %6095 = vmatmul.msk.bf16.vlgmr.msra.gmra.mxu0 %vm838_vm1, %v3561_v62  ;;  %v9045_v48 = vpop.permute.xlu0 %4852 }
 0x987   : > { %3872 = vmatpush.bf16.xpose.msra.mxu3 %v3863_v31  ;;  %v4387_v0 = vmul.f32 0.35355338, %v9007_v20 }
 0x988   : > { %5251 = vrot.lane.b32.xlu0 %v4096_v43, %s7173_s27  ;;  %v4167_v43 = vunpack.c.l.b16 %v3605_v51 }
 0x98a   : > { %v4168_v59 = vpack.c.b16 %v4167_v43, %v4167_v43 }
 0x98b   : > { %5041 = vrot.lane.b32.xlu1 %v8895_v13, %s7173_s27 }
 0x98d   : > { %v9014_v49 = vpop.permute.xlu2 %4894  ;;  %v9072_v30 = vpop.permute.xlu1 %4241 }
 0x98e   : > { %v3756_v39 = vpop.f32.mrf.mxu2  ;;  %6094 = vmatmul.msk.bf16.vlgmr.msra.gmra.mxu3 %vm838_vm1, %v3560_v47 }
 0x98f   : > { %v3427_v39 = vrot.slane %v8824_v63, 7 }
 0x990   : > { %5125 = vrot.lane.b32.xlu0 %v3952_v4, %s7173_s27 }
 0x991   : > { %v3706_v58 = vpop.f32.mrf.mxu0  ;;  %v3565_v54 = vpack.c.bf16 %v3427_v39, %v3427_v39 }
 0x993   : > { %5104 = vrot.lane.b32.xlu1 %v3928_v23, %s7173_s27  ;;  %v4386_v23 = vmul.f32 0.35355338, %v8983_v15 }
 0x995   : > { %v9020_v11 = vpop.permute.xlu2 %4915  ;;  %v9069_v16 = vsel %vm7825_vm5, %v4386_v23, -1e+30  ;;  %v4074_v15 = vpop.permute.xlu1 %4073 }
 0x996   : > { %v4459_v18 = vsel %vm4446_vm11, %v9069_v16, -inf  ;;  %v4079_v47 = vsel %vm838_vm1, %v4074_v15, 0 }
 0x998   : > { %5335 = vrot.lane.b32.xlu0 %v8881_v7, %s7173_s27  ;;  %v4383_v7 = vmul.f32 0.35355338, %v8936_v33 }
 0x999   : > { %v3708_v13 = vpop.f32.mrf.mxu0 }
 0x99a   : > { %v4382_v13 = vmul.f32 0.35355338, %v8946_v32 }
 0x99b   : > { %5188 = vrot.lane.b32.xlu1 %v8879_v26, %s7173_s27  ;;  %v9041_v26 = vsel %vm7968_vm15, %v4383_v7, -1e+30 }
 0x99c   : > { %v4450_v4 = vsel %vm4446_vm11, %v9041_v26, -inf  ;;  %v9105_v7 = vsel %vm9960_vm6, %v4382_v13, -1e+30  ;;  %v3425_v13 = vrot.slane %v8824_v63, 5 }
 0x99d   : > { %v9027_v3 = vpop.permute.xlu2 %4978  ;;  %v9082_v17 = vpop.permute.xlu1 %4265  ;;  %v4447_v20 = vsel %vm4446_vm11, %v9105_v7, -inf }
 0x9a0   : > { %4169 = vrot.lane.b32.xlu0 %v4168_v59, %s7169_s4 }
 0x9a3   : > { %5230 = vrot.lane.b32.xlu1 %v8914_v19, %s7173_s27  ;;  %v4385_v19 = vmul.f32 0.35355338, %v3706_v58  ;;  %v3424_v58 = vrot.slane %v8824_v63, 4 }
 0x9a5   : > { %v9035_v45 = vpop.permute.xlu2 %4999  ;;  %v9055_v14 = vsel %vm7797_vm3, %v4385_v19, -1e+30  ;;  %v3562_v43 = vpack.c.bf16 %v3424_v58, %v3424_v58  ;;  %v4031_v58 = vsel %vm838_vm1, %v8993_v1, 0  ;;  %v3569_v1 = vpack.c.bf16 %v3430_v40, %v3430_v40 }
 0x9a6   : > { %v4456_v42 = vsel %vm4446_vm11, %v9055_v14, -inf  ;;  %v4247_v40 = vsel %vm838_vm1, %v9072_v30, 0 }
 0x9a8   : > { %4361 = vrot.lane.b32.xlu0 %v9037_v21, %s7169_s4  ;;  %s7093_s4 = scalar_lea.hbm %s10027_s14, 16 }
 0x9ab   : > { %5356 = vrot.lane.b32.xlu1 %v8906_v34, %s7173_s27  ;;  %v9063_v34 = vpop.permute.xlu0 %4831 }
 0x9ac   : > { %4451 = vmax.xlane.f32.xlu2 %v4450_v4 }
 0x9ad   : > { %v9051_v33 = vpop.permute.xlu2 %5062 }
 0x9b0   : > { %5146 = vrot.lane.b32.xlu0 %v3976_v25, %s7173_s27 }
 0x9b3   : > { %5293 = vrot.lane.b32.xlu1 %v8962_v27, %s7173_s27  ;;  %v9078_v61 = vpop.permute.xlu0 %4957 }
 0x9b4   : > { %4457 = vmax.xlane.f32.xlu2 %v4456_v42  ;;  %v9112_v42 = vsel %vm7978_vm2, %v4387_v0, -1e+30 }
 0x9b5   : > { %v9065_v22 = vpop.permute.xlu2 %5209 }
 0x9b8   : > { %5314 = vrot.lane.b32.xlu0 %v4168_v59, %s7173_s27 }
 0x9bb   : > { %v9080_v12 = vpop.permute.xlu0 %5020 }
 0x9bc   : > { %4460 = vmax.xlane.f32.xlu2 %v4459_v18 }
 0x9bd   : > { %v9076_v27 = vpop.permute.xlu2 %5272 }
 0x9be   : > { %9957 = vst [vmem:[#allocation24_spill] sm:$0xff] %v9076_v27 }
 0x9c5   : > { %v4146_v25 = vpop.permute.xlu2 %4145 }
 0x9c6   : > { %v4151_v0 = vsel %vm838_vm1, %v4146_v25, 0  ;;  %v9964_v25 = vld [vmem:[#allocation31_spill] sm:$0xff] }
 0x9c7   : > { %vm9965_vm10 = vnez %v9964_v25 }
 0x9cd   : > { %v9084_v55 = vpop.permute.xlu2 %4337 }
 0x9d1   : > { %v4122_v29 = vpop.permute.xlu0 %4121 }
 0x9d5   : > { %v3978_v35 = vpop.permute.xlu2 %3977  ;;  %v3906_v62 = vpop.permute.xlu1 %3905 }
 0x9d6   : > { %v3983_v57 = vsel %vm838_vm1, %v3978_v35, 0  ;;  %v3911_v31 = vsel %vm838_vm1, %v3906_v62, 0  ;;  %v4462_v35 = vsel %vm4446_vm11, %v9112_v42, -inf }
 0x9d7   : > { %3992 = vmatpush.bf16.xpose.msrb.mxu0 %v3983_v57  ;;  %3920 = vmatpush.bf16.xpose.msrb.mxu1 %v3911_v31  ;;  %v3426_v57 = vrot.slane %v8824_v63, 6  ;;  %v9962_v31 = vld [vmem:[#allocation32_spill] sm:$0xff]  ;;  %v4127_v63 = vsel %vm838_vm1, %v4122_v29, 0 }
 0x9d8   : > { %vm9963_vm6 = vnez %v9962_v31 }
 0x9d9   : > { %v9097_v51 = vpop.permute.xlu0 %4313 }
 0x9dd   : > { %4454 = vmax.xlane.f32.xlu1 %v4453_v9  ;;  %v4098_v59 = vpop.permute.xlu1 %4097  ;;  %v3564_v9 = vpack.c.bf16 %v3426_v57, %v3426_v57 }
 0x9de   : > { %6099 = vmatmul.msk.bf16.vlgmr.msrb.gmra.mxu0 %vm838_vm1, %v3565_v54  ;;  %v4103_v4 = vsel %vm838_vm1, %v4098_v59, 0  ;;  %v3778_v19 = vpop.f32.mrf.mxu3  ;;  %6096 = vmatmul.msk.bf16.vlgmr.msrb.gmra.mxu1 %vm838_vm1, %v3562_v43 }
 0x9df   : > { %4088 = vmatpush.bf16.xpose.msra.mxu0 %v4079_v47  ;;  %4016 = vmatpush.bf16.xpose.msra.mxu1 %v4007_v5  ;;  %v4388_v23 = vmul.f32 0.35355338, %v3778_v19 }
 0x9e1   : > { %v9124_v5 = vsel %vm9963_vm6, %v4388_v23, -1e+30  ;;  %v4199_v23 = vsel %vm838_vm1, %v8956_v56, 0 }
 0x9e2   : > { %4448 = vmax.xlane.f32.xlu0 %v4447_v20  ;;  %v3954_v18 = vpop.permute.xlu0 %3953  ;;  %v4465_v54 = vsel %vm4446_vm11, %v9124_v5, -inf  ;;  %v3566_v20 = vpack.c.bf16 %v8828_v28, %v8828_v28 }
 0x9e3   : > { %v3959_v15 = vsel %vm838_vm1, %v3954_v18, 0 }
 0x9e4   : > { %3968 = vmatpush.bf16.xpose.msrb.mxu3 %v3959_v15 }
 0x9e5   : > { %4463 = vmax.xlane.f32.xlu1 %v4462_v35  ;;  %v3930_v62 = vpop.permute.xlu1 %3929  ;;  %v3429_v35 = vrot.slane %v8828_v28, 2 }
 0x9e6   : > { %v3935_v47 = vsel %vm838_vm1, %v3930_v62, 0  ;;  %v3780_v39 = vpop.f32.mrf.mxu3  ;;  %v3428_v62 = vrot.slane %v8828_v28, 1 }
 0x9e7   : > { %4112 = vmatpush.bf16.xpose.msrb.mxu1 %v4103_v4  ;;  %3944 = vmatpush.bf16.xpose.msrb.mxu2 %v3935_v47  ;;  %v3563_v4 = vpack.c.bf16 %v3425_v13, %v3425_v13  ;;  %v3568_v57 = vpack.c.bf16 %v3429_v35, %v3429_v35  ;;  %v3431_v47 = vrot.slane %v8828_v28, 4  ;;  %v3433_v35 = vrot.slane %v8828_v28, 6 }
 0x9ea   : > { %4466 = vmax.xlane.f32.xlu0 %v4465_v54  ;;  %v9133_v43 = vpop.permute.xlu0 %5083 }
 0x9eb   : > { %6098 = vmatmul.msk.bf16.vlgmr.msrb.gmra.mxu3 %vm838_vm1, %v3564_v9 }
 0x9ec   : > { %4064 = vmatpush.bf16.xpose.msra.mxu3 %v4055_v38  ;;  %v3802_v59 = vpop.f32.mrf.mxu0 }
 0x9ed   : > { %v4389_v19 = vmul.f32 0.35355338, %v3802_v59  ;;  %v4290_v54 = vpop.permute.xlu1 %4289  ;;  %v3567_v59 = vpack.c.bf16 %v3428_v62, %v3428_v62  ;;  %v3432_v62 = vrot.slane %v8828_v28, 5 }
 0x9ee   : > { %6103 = vmatmul.msk.bf16.vlgmr.msra.gmra.mxu0 %vm838_vm1, %v3569_v1  ;;  %6097 = vmatmul.msk.bf16.vlgmr.msrb.gmra.mxu2 %vm838_vm1, %v3563_v4  ;;  %v3570_v4 = vpack.c.bf16 %v3431_v47, %v3431_v47  ;;  %v4343_v47 = vsel %vm838_vm1, %v9084_v55, 0 }
 0x9ef   : > { %4040 = vmatpush.bf16.xpose.msra.mxu2 %v4031_v58  ;;  %v9146_v18 = vsel %vm9965_vm10, %v4389_v19, -1e+30  ;;  %6100 = vmatmul.msk.bf16.vlgmr.msra.gmra.mxu1 %vm838_vm1, %v3566_v20  ;;  %v4223_v19 = vsel %vm838_vm1, %v8977_v52, 0  ;;  %v4295_v20 = vsel %vm838_vm1, %v4290_v54, 0  ;;  %v3574_v54 = vpack.c.bf16 %v8850_v6, %v8850_v6 }
 0x9f0   : > { %4208 = vmatpush.bf16.xpose.msra.mxu1 %v4199_v23  ;;  %v4468_v15 = vsel %vm4446_vm11, %v9146_v18, -inf }
 0x9f1   : > { %4469 = vmax.xlane.f32.xlu1 %v4468_v15 }
 0x9f2   : > { %v9151_v29 = vpop.permute.xlu0 %5167 }
 0x9f4   : > { %4160 = vmatpush.bf16.xpose.msrb.mxu3 %v4151_v0  ;;  %v3804_v38 = vpop.f32.mrf.mxu0 }
 0x9f7   : > { %4136 = vmatpush.bf16.xpose.msrb.mxu2 %v4127_v63 }
 0x9f9   : > { %v3850_v56 = vpop.f32.mrf.mxu2 }
 0x9fa   : > { %v4391_v39 = vmul.f32 0.35355338, %v3850_v56  ;;  %v9156_v58 = vpop.permute.xlu0 %5251  ;;  %v3572_v56 = vpack.c.bf16 %v3433_v35, %v3433_v35 }
 0x9fb   : > { %v3826_v13 = vpop.f32.mrf.mxu1  ;;  %6102 = vmatmul.msk.bf16.vlgmr.msra.gmra.mxu3 %vm838_vm1, %v3568_v57 }
 0x9fc   : > { %v9163_v9 = vsel %vm7968_vm15, %v4391_v39, -1e+30  ;;  %v4390_v0 = vmul.f32 0.35355338, %v3826_v13  ;;  %4256 = vmatpush.bf16.xpose.msra.mxu3 %v4247_v40  ;;  %v4937_v40 = vpop.permute.xlu1 %4936  ;;  %v3571_v13 = vpack.c.bf16 %v3432_v62, %v3432_v62 }
 0x9fd   : > { %v4474_v1 = vsel %vm4446_vm11, %v9163_v9, -inf }
 0x9fe   : > { %v9171_v30 = vsel %vm9966_vm14, %v4390_v0, -1e+30  ;;  %4475 = vmax.xlane.f32.xlu0 %v4474_v1  ;;  %6101 = vmatmul.msk.bf16.vlgmr.msra.gmra.mxu2 %vm838_vm1, %v3567_v59  ;;  %v4319_v0 = vsel %vm838_vm1, %v9097_v51, 0  ;;  %vm9968_vm14 = vcmask 1043456   ;;  %v3434_v51 = vrot.slane %v8828_v28, 7 }
 0x9ff   : > { %6104 = vmatmul.msk.bf16.vlgmr.msrb.gmra.mxu1 %vm838_vm1, %v3570_v4  ;;  %4232 = vmatpush.bf16.xpose.msra.mxu2 %v4223_v19  ;;  %v4471_v63 = vsel %vm4446_vm11, %v9171_v30, -inf  ;;  %v4837_v59 = vsel %vm9968_vm14, %v9063_v34, 0  ;;  %v4271_v19 = vsel %vm838_vm1, %v9082_v17, 0  ;;  %v9206_v34 = vpop.permute.xlu2 %5377  ;;  %v4879_v17 = vsel %vm9968_vm14, %v9004_v53, 0  ;;  %vm9970_vm13 = vmmov %vm9968_vm14 }
 0xa00   : > { %4304 = vmatpush.bf16.xpose.msrb.mxu1 %v4295_v20  ;;  %4472 = vmax.xlane.f32.xlu1 %v4471_v63  ;;  %v3436_v20 = vrot.slane %v8850_v6, 2  ;;  %9969 = vst [vmem:[#allocation39_spill] sm:$0xff] %v9206_v34  ;;  %v3573_v35 = vpack.c.bf16 %v3434_v51, %v3434_v51  ;;  %vm9971_vm12 = vmmov %vm9970_vm13  ;;  %v3439_v51 = vrot.slane %v8850_v6, 5 }
 0xa01   : > { %v3852_v23 = vpop.f32.mrf.mxu2  ;;  %vm9973_vm14 = vmmov %vm9971_vm12 }
 0xa02   : > { %v9178_v15 = vpop.permute.xlu0 %5125  ;;  %v3435_v23 = vrot.slane %v8850_v6, 1  ;;  %v3576_v62 = vpack.c.bf16 %v3436_v20, %v3436_v20 }
 0xa03   : > { %v3828_v52 = vpop.f32.mrf.mxu1  ;;  %v9180_v38 = vpop.f32.mrf.mxu0 }
 0xa04   : > { %v9204_v63 = vpop.permute.xlu1 %5041  ;;  %v3575_v28 = vpack.c.bf16 %v3435_v23, %v3435_v23 }
 0xa0a   : > { %v9184_v57 = vpop.permute.xlu0 %5335 }
 0xa0b   : > { %9967 = vst [vmem:[#allocation38_spill] sm:$0xff] %v9184_v57  ;;  %v3900_v39 = vpop.f32.mrf.mxu0  ;;  %6106 = vmatmul.msk.bf16.vlgmr.msrb.gmra.mxu3 %vm838_vm1, %v3572_v56  ;;  %v3438_v56 = vrot.slane %v8850_v6, 4 }
 0xa0c   : > { %4352 = vmatpush.bf16.xpose.msrb.mxu3 %v4343_v47  ;;  %v9221_v53 = vpop.permute.xlu1 %5104 }
 0xa0e   : > { %6105 = vmatmul.msk.bf16.vlgmr.msrb.gmra.mxu2 %vm838_vm1, %v3571_v13  ;;  %v3578_v13 = vpack.c.bf16 %v3438_v56, %v3438_v56  ;;  %v3579_v56 = vpack.c.bf16 %v3439_v51, %v3439_v51 }
 0xa0f   : > { %6108 = vmatmul.msk.bf16.vlgmr.msra.gmra.mxu1 %vm838_vm1, %v3574_v54  ;;  %4328 = vmatpush.bf16.xpose.msrb.mxu2 %v4319_v0  ;;  %v4858_v54 = vsel %vm9970_vm13, %v9045_v48, 0  ;;  %v4921_v0 = vsel %vm9971_vm12, %v9020_v11, 0  ;;  %v3440_v48 = vrot.slane %v8850_v6, 6  ;;  %vm9972_vm13 = vmmov %vm9971_vm12 }
 0xa10   : > { %4846 = vmatpush.bf16.msra.mxu1 %v4837_v59 }
 0xa11   : > { %v9197_v55 = vpop.f32.mrf.mxu3  ;;  %v3580_v23 = vpack.c.bf16 %v3440_v48, %v3440_v48 }
 0xa12   : > { %v4170_v1 = vpop.permute.xlu0 %4169 }
 0xa13   : > { %v4175_v4 = vsel %vm838_vm1, %v4170_v1, 0 }
 0xa14   : > { %4184 = vmatpush.bf16.xpose.msrb.mxu0 %v4175_v4 }
 0xa19   : > { %v3876_v52 = vpop.f32.mrf.mxu3 }
 0xa1a   : > { %v4362_v47 = vpop.permute.xlu0 %4361  ;;  %v9229_v52 = vpop.permute.xlu1 %5188 }
 0xa1b   : > { %v4367_v39 = vsel %vm838_vm1, %v4362_v47, 0  ;;  %6107 = vmatmul.msk.bf16.vlgmr.msrb.gmra.mxu0 %vm838_vm1, %v3573_v35  ;;  %6110 = vmatmul.msk.bf16.vlgmr.msra.gmra.mxu3 %vm838_vm1, %v3576_v62  ;;  %v4900_v35 = vsel %vm9971_vm12, %v9014_v49, 0  ;;  %v4393_v47 = vmul.f32 0.35355338, %v9180_v38  ;;  %v4984_v38 = vsel %vm9971_vm12, %v9027_v3, 0 }
 0xa1c   : > { %4280 = vmatpush.bf16.xpose.msra.mxu0 %v4271_v19  ;;  %4888 = vmatpush.bf16.msra.mxu3 %v4879_v17  ;;  %v3437_v19 = vrot.slane %v8850_v6, 3  ;;  %v4942_v17 = vsel %vm9973_vm14, %v4937_v40, 0 }
 0xa1d   : > { %v9244_v49 = vsel %vm7797_vm3, %v4393_v47, -1e+30 }
 0xa1e   : > { %6109 = vmatmul.msk.bf16.vlgmr.msra.gmra.mxu2 %vm838_vm1, %v3575_v28  ;;  %v3577_v20 = vpack.c.bf16 %v3437_v19, %v3437_v19  ;;  %v3441_v28 = vrot.slane %v8850_v6, 7 }
 0xa1f   : > { %v4452_v59 = vpop.xlane.xlu2 %4451  ;;  %6112 = vmatmul.msk.bf16.vlgmr.msrb.gmra.mxu1 %vm838_vm1, %v3578_v13  ;;  %4867 = vmatpush.bf16.msra.mxu2 %v4858_v54 }
 0xa20   : > { %v4544_v1 = vsub.f32 %v9041_v26, %v4452_v59  ;;  %4930 = vmatpush.bf16.msrb.mxu1 %v4921_v0  ;;  %v4963_v26 = vsel %vm9972_vm13, %v9078_v61, 0  ;;  %v3581_v13 = vpack.c.bf16 %v3441_v28, %v3441_v28  ;;  %v4392_v28 = vmul.f32 0.35355338, %v9197_v55 }
 0xa21   : > { %vm9977_vm13 = vcmp.gt.f32.partialorder %v9959_v60, 0.0 }
 0xa22   : > { %v4577_v4 = vmul.f32 1.442695, %v4544_v1  ;;  %v9246_v61 = vpop.permute.xlu1 %5230  ;;  %v9256_v54 = vpop.permute.xlu0 %5146  ;;  %vm9978_vm14 = vmmov %vm9977_vm13 }
 0xa24   : > { %4376 = vmatpush.bf16.xpose.msrb.mxu0 %v4367_v39  ;;  %6663 = vpow2.f32 %v4577_v4  ;;  %v4480_v39 = vsel %vm4446_vm11, %v9244_v49, -inf }
 0xa27   : > { %v4458_v1 = vpop.xlane.xlu2 %4457 }
 0xa28   : > { %v4546_v6 = vsub.f32 %v9055_v14, %v4458_v1  ;;  %v9281_v1 = vsel %vm7845_vm8, %v4392_v28, -1e+30 }
 0xa2a   : > { %v9227_v11 = vpop.eup %6663  ;;  %v9254_v40 = vpop.permute.xlu1 %5356 }
 0xa2b   : > { %6111 = vmatmul.msk.bf16.vlgmr.msra.gmra.mxu0 %vm838_vm1, %v3577_v20  ;;  %6114 = vmatmul.msk.bf16.vlgmr.msrb.gmra.mxu3 %vm838_vm1, %v3580_v23  ;;  %v4642_v62 = vsel %vm4446_vm11, %v9227_v11, 0.0  ;;  %9974 = vst [vmem:[#allocation35_spill] sm:$0xff] %v9254_v40  ;;  %v9260_v59 = vpop.permute.xlu0 %5314  ;;  %v4581_v20 = vmul.f32 1.442695, %v4546_v6  ;;  %v4477_v6 = vsel %vm4446_vm11, %v9281_v1, -inf }
 0xa2c   : > { %4909 = vmatpush.bf16.msra.mxu0 %v4900_v35  ;;  %4972 = vmatpush.bf16.msrb.mxu3 %v4963_v26  ;;  %9976 = vst [vmem:[#allocation37_spill] sm:$0xff] %v9260_v59 }
 0xa2d   : > { %4643 = vadd.xlane.f32.xlu0 %v4642_v62 }
 0xa2e   : > { %6113 = vmatmul.msk.bf16.vlgmr.msrb.gmra.mxu2 %vm838_vm1, %v3579_v56 }
 0xa2f   : > { %4951 = vmatpush.bf16.msrb.mxu2 %v4942_v17  ;;  %v4461_v23 = vpop.xlane.xlu2 %4460 }
 0xa30   : > { %v4547_v62 = vsub.f32 %v9069_v16, %v4461_v23 }
 0xa32   : > { %v9258_v0 = vpop.permute.xlu1 %5293  ;;  %v4583_v14 = vmul.f32 1.442695, %v4547_v62 }
 0xa33   : > { %9975 = vst [vmem:[#allocation40_spill] sm:$0xff] %v9258_v0 }
 0xa35   : > { %4481 = vmax.xlane.f32.xlu0 %v4480_v39 }
 0xa3b   : > { %6115 = vmatmul.msk.bf16.vlgmr.msrb.gmra.mxu0 %vm838_vm1, %v3581_v13 }
 0xa3c   : > { %4993 = vmatpush.bf16.msrb.mxu0 %v4984_v38 }
 0xa50   : > { %v4455_v4 = vpop.xlane.xlu1 %4454 }
 0xa51   : > { %v4545_v19 = vsub.f32 %v9095_v24, %v4455_v4 }
 0xa53   : > { %v4579_v48 = vmul.f32 1.442695, %v4545_v19 }
 0xa55   : > { %6665 = vpow2.f32 %v4579_v48  ;;  %v4449_v3 = vpop.xlane.xlu0 %4448 }
 0xa56   : > { %v4543_v51 = vsub.f32 %v9105_v7, %v4449_v3 }
 0xa58   : > { %v4575_v35 = vmul.f32 1.442695, %v4543_v51  ;;  %v4464_v4 = vpop.xlane.xlu1 %4463 }
 0xa59   : > { %v4548_v55 = vsub.f32 %v9112_v42, %v4464_v4 }
 0xa5a   : > { %6667 = vpow2.f32 %v4575_v35 }
 0xa5b   : > { %v9265_v26 = vpop.eup %6665  ;;  %6669 = vpow2.f32 %v4581_v20  ;;  %v3994_v56 = vpop.f32.mrf.mxu0 }
 0xa5c   : > { %v3922_v47 = vpop.f32.mrf.mxu1  ;;  %v4645_v24 = vsel %vm4446_vm11, %v9265_v26, 0.0  ;;  %6671 = vpow2.f32 %v4583_v14 }
 0xa5d   : > { %4646 = vadd.xlane.f32.xlu1 %v4645_v24  ;;  %v4394_v48 = vmul.f32 0.35355338, %v3922_v47  ;;  %v4585_v24 = vmul.f32 1.442695, %v4548_v55 }
 0xa5f   : > { %v9292_v35 = vsel %vm7825_vm5, %v4394_v48, -1e+30  ;;  %6673 = vpow2.f32 %v4585_v24 }
 0xa60   : > { %v9270_v17 = vpop.eup %6667 }
 0xa61   : > { %v9272_v39 = vpop.eup %6669  ;;  %v4639_v7 = vsel %vm4446_vm11, %v9270_v17, 0.0 }
 0xa62   : > { %4640 = vadd.xlane.f32.xlu2 %v4639_v7  ;;  %v4648_v38 = vsel %vm4446_vm11, %v9272_v39, 0.0  ;;  %v9283_v19 = vpop.eup %6671  ;;  %v4397_v7 = vmul.f32 0.35355338, %v3994_v56 }
 0xa63   : > { %v3996_v13 = vpop.f32.mrf.mxu0  ;;  %v4651_v20 = vsel %vm4446_vm11, %v9283_v19, 0.0 }
 0xa64   : > { %v3924_v16 = vpop.f32.mrf.mxu1  ;;  %v9310_v56 = vsel %vm9965_vm10, %v4397_v7, -1e+30 }
 0xa65   : > { %4649 = vadd.xlane.f32.xlu1 %v4648_v38  ;;  %v4483_v16 = vsel %vm4446_vm11, %v9292_v35, -inf }
 0xa6a   : > { %4478 = vmax.xlane.f32.xlu2 %v4477_v6 }
 0xa6b   : > { %v4090_v3 = vpop.f32.mrf.mxu0 }
 0xa6c   : > { %v4018_v51 = vpop.f32.mrf.mxu1 }
 0xa6d   : > { %v4398_v23 = vmul.f32 0.35355338, %v4018_v51  ;;  %4652 = vadd.xlane.f32.xlu1 %v4651_v20  ;;  %v4492_v20 = vsel %vm4446_vm11, %v9310_v56, -inf }
 0xa6e   : > { %v3970_v62 = vpop.f32.mrf.mxu3 }
 0xa6f   : > { %v9296_v14 = vsel %vm9977_vm13, %v4398_v23, -1e+30  ;;  %v4396_v47 = vmul.f32 0.35355338, %v3970_v62  ;;  %v9318_v23 = vpop.eup %6673  ;;  %v4467_v62 = vpop.xlane.xlu0 %4466 }
 0xa70   : > { %v4495_v42 = vsel %vm4446_vm11, %v9296_v14, -inf }
 0xa71   : > { %v9302_v28 = vsel %vm9963_vm6, %v4396_v47, -1e+30  ;;  %4496 = vmax.xlane.f32.xlu0 %v4495_v42  ;;  %v3946_v13 = vpop.f32.mrf.mxu2  ;;  %v4549_v42 = vsub.f32 %v9124_v5, %v4467_v62 }
 0xa72   : > { %v4395_v38 = vmul.f32 0.35355338, %v3946_v13  ;;  %4484 = vmax.xlane.f32.xlu2 %v4483_v16  ;;  %v4489_v48 = vsel %vm4446_vm11, %v9302_v28, -inf  ;;  %v4654_v13 = vsel %vm4446_vm11, %v9318_v23, 0.0 }
 0xa73   : > { %v4092_v4 = vpop.f32.mrf.mxu0 }
 0xa74   : > { %v4020_v6 = vpop.f32.mrf.mxu1  ;;  %v9314_v55 = vsel %vm7978_vm2, %v4395_v38, -1e+30 }
 0xa75   : > { %4490 = vmax.xlane.f32.xlu1 %v4489_v48  ;;  %v4486_v47 = vsel %vm4446_vm11, %v9314_v55, -inf  ;;  %v4587_v6 = vmul.f32 1.442695, %v4549_v42 }
 0xa76   : > { %v3972_v51 = vpop.f32.mrf.mxu3 }
 0xa77   : > { %v4470_v51 = vpop.xlane.xlu1 %4469  ;;  %6675 = vpow2.f32 %v4587_v6 }
 0xa78   : > { %v4550_v5 = vsub.f32 %v9146_v18, %v4470_v51 }
 0xa79   : > { %4493 = vmax.xlane.f32.xlu0 %v4492_v20  ;;  %v3948_v24 = vpop.f32.mrf.mxu2 }
 0xa7a   : > { %4487 = vmax.xlane.f32.xlu2 %v4486_v47  ;;  %v4401_v24 = vmul.f32 0.35355338, %v4090_v3  ;;  %v4589_v3 = vmul.f32 1.442695, %v4550_v5 }
 0xa7c   : > { %v4114_v7 = vpop.f32.mrf.mxu1  ;;  %v9340_v42 = vsel %vm7797_vm3, %v4401_v24, -1e+30  ;;  %6677 = vpow2.f32 %v4589_v3 }
 0xa7d   : > { %v4402_v16 = vmul.f32 0.35355338, %v4114_v7  ;;  %4655 = vadd.xlane.f32.xlu1 %v4654_v13  ;;  %v4504_v6 = vsel %vm4446_vm11, %v9340_v42, -inf  ;;  %v9344_v18 = vpop.eup %6675 }
 0xa7e   : > { %v4066_v38 = vpop.f32.mrf.mxu3  ;;  %v4657_v51 = vsel %vm4446_vm11, %v9344_v18, 0.0 }
 0xa7f   : > { %v9327_v4 = vsel %vm7825_vm5, %v4402_v16, -1e+30 }
 0xa80   : > { %v4507_v48 = vsel %vm4446_vm11, %v9327_v4, -inf }
 0xa81   : > { %v4042_v20 = vpop.f32.mrf.mxu2 }
 0xa82   : > { %v4399_v47 = vmul.f32 0.35355338, %v4042_v20  ;;  %4508 = vmax.xlane.f32.xlu2 %v4507_v48  ;;  %v9348_v24 = vpop.eup %6677 }
 0xa83   : > { %v4660_v3 = vsel %vm4446_vm11, %v9348_v24, 0.0 }
 0xa84   : > { %v9334_v62 = vsel %vm7968_vm15, %v4399_v47, -1e+30  ;;  %v4116_v7 = vpop.f32.mrf.mxu1 }
 0xa85   : > { %v4498_v13 = vsel %vm4446_vm11, %v9334_v62, -inf }
 0xa86   : > { %v4068_v16 = vpop.f32.mrf.mxu3  ;;  %4499 = vmax.xlane.f32.xlu1 %v4498_v13 }
 0xa89   : > { %v4044_v20 = vpop.f32.mrf.mxu2 }
 0xa8a   : > { %4505 = vmax.xlane.f32.xlu2 %v4504_v6  ;;  %v4400_v6 = vmul.f32 0.35355338, %v4066_v38 }
 0xa8c   : > { %v4210_v48 = vpop.f32.mrf.mxu1 }
 0xa8d   : > { %v4406_v44 = vmul.f32 0.35355338, %v4210_v48 }
 0xa8e   : > { %v4162_v47 = vpop.f32.mrf.mxu3  ;;  %4658 = vadd.xlane.f32.xlu1 %v4657_v51  ;;  %v4476_v51 = vpop.xlane.xlu0 %4475 }
 0xa8f   : > { %v4404_v38 = vmul.f32 0.35355338, %v4162_v47 }
 0xa91   : > { %v4138_v7 = vpop.f32.mrf.mxu2  ;;  %v9376_v59 = vsel %vm9963_vm6, %v4404_v38, -1e+30 }
 0xa92   : > { %v4403_v16 = vmul.f32 0.35355338, %v4138_v7  ;;  %v9360_v7 = vsel %vm7845_vm8, %v4400_v6, -1e+30 }
 0xa94   : > { %v9352_v5 = vsel %vm7978_vm2, %v4403_v16, -1e+30  ;;  %v4212_v13 = vpop.f32.mrf.mxu1  ;;  %v9364_v16 = vsel %vm9978_vm14, %v4406_v44, -1e+30 }
 0xa95   : > { %v4510_v20 = vsel %vm4446_vm11, %v9352_v5, -inf  ;;  %v4519_v21 = vsel %vm4446_vm11, %v9364_v16, -inf }
 0xa96   : > { %v4164_v34 = vpop.f32.mrf.mxu3  ;;  %4511 = vmax.xlane.f32.xlu2 %v4510_v20  ;;  %4661 = vadd.xlane.f32.xlu1 %v4660_v3 }
 0xa97   : > { %v4501_v34 = vsel %vm4446_vm11, %v9360_v7, -inf }
 0xa98   : > { %v4186_v40 = vpop.f32.mrf.mxu0 }
 0xa99   : > { %v4140_v57 = vpop.f32.mrf.mxu2  ;;  %v4405_v38 = vmul.f32 0.35355338, %v4186_v40 }
 0xa9a   : > { %v4473_v57 = vpop.xlane.xlu1 %4472 }
 0xa9c   : > { %v4306_v13 = vpop.f32.mrf.mxu1 }
 0xa9e   : > { %v4258_v48 = vpop.f32.mrf.mxu3  ;;  %4520 = vmax.xlane.f32.xlu2 %v4519_v21  ;;  %4502 = vmax.xlane.f32.xlu1 %v4501_v34  ;;  %v4551_v21 = vsub.f32 %v9171_v30, %v4473_v57 }
 0xa9f   : > { %v4408_v20 = vmul.f32 0.35355338, %v4258_v48 }
 0xaa0   : > { %v4644_v3 = vpop.xlane.xlu0 %4643  ;;  %v4188_v6 = vpop.f32.mrf.mxu0  ;;  %v4591_v0 = vmul.f32 1.442695, %v4551_v21 }
 0xaa1   : > { %v9372_v60 = vsel %vm7845_vm8, %v4408_v20, -1e+30  ;;  %6679 = vrcp.f32 %v4644_v3  ;;  %v4234_v44 = vpop.f32.mrf.mxu2  ;;  %v4513_v20 = vsel %vm4446_vm11, %v9376_v59, -inf  ;;  %v4410_v3 = vmul.f32 0.35355338, %v4306_v13  ;;  %vm9979_vm8 = vmmov %vm9971_vm12 }
 0xaa2   : > { %v4407_v27 = vmul.f32 0.35355338, %v4234_v44  ;;  %v4525_v47 = vsel %vm4446_vm11, %v9372_v60, -inf  ;;  %v4552_v13 = vsub.f32 %v9163_v9, %v4476_v51  ;;  %6681 = vpow2.f32 %v4591_v0 }
 0xaa3   : > { %4526 = vmax.xlane.f32.xlu0 %v4525_v47  ;;  %v9392_v47 = vsel %vm9965_vm10, %v4405_v38, -1e+30 }
 0xaa4   : > { %v9383_v34 = vsel %vm7968_vm15, %v4407_v27, -1e+30  ;;  %v4308_v36 = vpop.f32.mrf.mxu1  ;;  %v4516_v9 = vsel %vm4446_vm11, %v9392_v47, -inf  ;;  %v4593_v10 = vmul.f32 1.442695, %v4552_v13 }
 0xaa5   : > { %v4522_v48 = vsel %vm4446_vm11, %v9383_v34, -inf  ;;  %v9396_v36 = vsel %vm7825_vm5, %v4410_v3, -1e+30 }
 0xaa6   : > { %v4260_v6 = vpop.f32.mrf.mxu3  ;;  %4523 = vmax.xlane.f32.xlu2 %v4522_v48  ;;  %4514 = vmax.xlane.f32.xlu1 %v4513_v20  ;;  %v4531_v50 = vsel %vm4446_vm11, %v9396_v36, -inf  ;;  %6683 = vpow2.f32 %v4593_v10 }
 0xaa7   : > { %v6680_v44 = vpop.eup %6679 }
 0xaa8   : > { %v4768_v30 = vmul.f32 %v6680_v44, %v9227_v11  ;;  %v4282_v57 = vpop.f32.mrf.mxu0  ;;  %v5026_v11 = vsel %vm9979_vm8, %v9080_v12, 0  ;;  %v9412_v12 = vpop.eup %6681 }
 0xaa9   : > { %v4409_v41 = vmul.f32 0.35355338, %v4282_v57  ;;  %v4236_v27 = vpop.f32.mrf.mxu2 }
 0xaaa   : > { %v4800_v40 = vpack.c.bf16 %v4768_v30, %v4768_v30  ;;  %v4663_v30 = vsel %vm4446_vm11, %v9412_v12, 0.0 }
 0xaab   : > { %v9401_v21 = vsel %vm7797_vm3, %v4409_v41, -1e+30 }
 0xaac   : > { %6117 = vmatmul.msk.bf16.vlgmr.msra.gmra.mxu2 %vm838_vm1, %v4800_v40  ;;  %v4528_v48 = vsel %vm4446_vm11, %v9401_v21, -inf  ;;  %v9428_v40 = vpop.eup %6683 }
 0xaad   : > { %5035 = vmatpush.bf16.msra.mxu2 %v5026_v11  ;;  %4529 = vmax.xlane.f32.xlu0 %v4528_v48  ;;  %v4666_v48 = vsel %vm4446_vm11, %v9428_v40, 0.0 }
 0xaae   : > { %v4354_v0 = vpop.f32.mrf.mxu3  ;;  %4532 = vmax.xlane.f32.xlu2 %v4531_v50  ;;  %4517 = vmax.xlane.f32.xlu1 %v4516_v9 }
 0xaaf   : > { %v4412_v51 = vmul.f32 0.35355338, %v4354_v0 }
 0xab0   : > { %v4284_v20 = vpop.f32.mrf.mxu0 }
 0xab1   : > { %v4330_v38 = vpop.f32.mrf.mxu2  ;;  %v9416_v3 = vsel %vm9963_vm6, %v4412_v51, -1e+30 }
 0xab2   : > { %v4411_v6 = vmul.f32 0.35355338, %v4330_v38  ;;  %v4537_v41 = vsel %vm4446_vm11, %v9416_v3, -inf }
 0xab4   : > { %v9420_v44 = vsel %vm7978_vm2, %v4411_v6, -1e+30  ;;  %vm9980_vm2 = vmmov %vm9979_vm8 }
 0xab5   : > { %4664 = vadd.xlane.f32.xlu0 %v4663_v30  ;;  %v4534_v57 = vsel %vm4446_vm11, %v9420_v44, -inf  ;;  %v5047_v30 = vsel %vm9980_vm2, %v9204_v63, 0  ;;  %vm9981_vm3 = vmmov %vm9980_vm2 }
 0xab6   : > { %v4356_v27 = vpop.f32.mrf.mxu3  ;;  %4535 = vmax.xlane.f32.xlu2 %v4534_v57  ;;  %4538 = vmax.xlane.f32.xlu1 %v4537_v41  ;;  %v4482_v57 = vpop.xlane.xlu0 %4481  ;;  %v5005_v63 = vsel %vm9981_vm3, %v9035_v45, 0  ;;  %vm9982_vm5 = vmmov %vm9980_vm2 }
 0xab7   : > { %vm9983_vm15 = vmmov %vm9980_vm2 }
 0xab8   : > { %v4378_v31 = vpop.f32.mrf.mxu0  ;;  %vm9985_vm6 = vmmov %vm9980_vm2 }
 0xab9   : > { %v4413_v13 = vmul.f32 0.35355338, %v4378_v31  ;;  %v4332_v32 = vpop.f32.mrf.mxu2  ;;  %vm9986_vm12 = vmmov %vm9980_vm2 }
 0xaba   : > { %vm9987_vm13 = vmmov %vm9980_vm2 }
 0xabb   : > { %v9432_v11 = vsel %vm9965_vm10, %v4413_v13, -1e+30  ;;  %vm9984_vm10 = vmmov %vm9980_vm2 }
 0xabc   : > { %v4540_v50 = vsel %vm4446_vm11, %v9432_v11, -inf  ;;  %vm9988_vm14 = vmmov %vm9980_vm2 }
 0xabd   : > { %4667 = vadd.xlane.f32.xlu0 %v4666_v48  ;;  %vm9989_vm8 = vmmov %vm9980_vm2 }
 0xabe   : > { %4541 = vmax.xlane.f32.xlu2 %v4540_v50  ;;  %vm9992_vm3 = vmmov %vm9980_vm2 }
 0xac0   : > { %v4380_v9 = vpop.f32.mrf.mxu0 }
 0xad0   : > { %v4647_v0 = vpop.xlane.xlu1 %4646 }
 0xad1   : > { %6685 = vrcp.f32 %v4647_v0 }
 0xad5   : > { %v4641_v10 = vpop.xlane.xlu2 %4640 }
 0xad6   : > { %6687 = vrcp.f32 %v4641_v10 }
 0xad7   : > { %v6686_v51 = vpop.eup %6685 }
 0xad8   : > { %v4769_v20 = vmul.f32 %v6686_v51, %v9265_v26  ;;  %v4650_v38 = vpop.xlane.xlu1 %4649  ;;  %v4554_v26 = vsub.f32 %v9244_v49, %v4482_v57 }
 0xad9   : > { %6689 = vrcp.f32 %v4650_v38 }
 0xada   : > { %v4801_v25 = vpack.c.bf16 %v4769_v20, %v4769_v20 }
 0xadc   : > { %v6688_v6 = vpop.eup %6687  ;;  %6118 = vmatmul.msk.bf16.vlgmr.msra.gmra.mxu3 %vm838_vm1, %v4801_v25 }
 0xadd   : > { %v4767_v41 = vmul.f32 %v6688_v6, %v9270_v17  ;;  %5056 = vmatpush.bf16.msra.mxu3 %v5047_v30  ;;  %v4479_v27 = vpop.xlane.xlu2 %4478  ;;  %v5068_v17 = vsel %vm9982_vm5, %v9051_v33, 0  ;;  %vm9994_vm5 = vmmov %vm9980_vm2 }
 0xade   : > { %v4553_v31 = vsub.f32 %v9281_v1, %v4479_v27  ;;  %v4597_v1 = vmul.f32 1.442695, %v4554_v26 }
 0xadf   : > { %v6690_v13 = vpop.eup %6689  ;;  %v4799_v32 = vpack.c.bf16 %v4767_v41, %v4767_v41 }
 0xae0   : > { %v4770_v48 = vmul.f32 %v6690_v13, %v9272_v39  ;;  %v4595_v50 = vmul.f32 1.442695, %v4553_v31  ;;  %v4653_v9 = vpop.xlane.xlu1 %4652 }
 0xae1   : > { %6691 = vrcp.f32 %v4653_v9  ;;  %6116 = vmatmul.msk.bf16.vlgmr.msra.gmra.mxu1 %vm838_vm1, %v4799_v32 }
 0xae2   : > { %v4802_v0 = vpack.c.bf16 %v4770_v48, %v4770_v48  ;;  %6693 = vpow2.f32 %v4595_v50  ;;  %5014 = vmatpush.bf16.msra.mxu1 %v5005_v63  ;;  %v5089_v50 = vsel %vm9983_vm15, %v9133_v43, 0  ;;  %vm9996_vm15 = vmmov %vm9980_vm2 }
 0xae3   : > { %6695 = vpow2.f32 %v4597_v1 }
 0xae4   : > { %v4497_v10 = vpop.xlane.xlu0 %4496  ;;  %6119 = vmatmul.msk.bf16.vlgmr.msra.gmra.mxu0 %vm838_vm1, %v4802_v0 }
 0xae5   : > { %v4559_v49 = vsub.f32 %v9296_v14, %v4497_v10  ;;  %5077 = vmatpush.bf16.msra.mxu0 %v5068_v17  ;;  %v4485_v39 = vpop.xlane.xlu2 %4484 }
 0xae6   : > { %v4555_v38 = vsub.f32 %v9292_v35, %v4485_v39 }
 0xae7   : > { %v6692_v51 = vpop.eup %6691  ;;  %v4607_v20 = vmul.f32 1.442695, %v4559_v49 }
 0xae8   : > { %v9453_v45 = vpop.eup %6693  ;;  %v4491_v25 = vpop.xlane.xlu1 %4490  ;;  %v4771_v30 = vmul.f32 %v6692_v51, %v9283_v19  ;;  %v4599_v57 = vmul.f32 1.442695, %v4555_v38 }
 0xae9   : > { %6697 = vpow2.f32 %v4607_v20  ;;  %v4557_v6 = vsub.f32 %v9302_v28, %v4491_v25  ;;  %v4669_v33 = vsel %vm4446_vm11, %v9453_v45, 0.0  ;;  %v9461_v13 = vpop.eup %6695 }
 0xaea   : > { %4670 = vadd.xlane.f32.xlu1 %v4669_v33  ;;  %v4803_v32 = vpack.c.bf16 %v4771_v30, %v4771_v30  ;;  %v5110_v30 = vsel %vm9984_vm10, %v9221_v53, 0  ;;  %vm9997_vm10 = vcmask 1045509  }
 0xaeb   : > { %v4603_v14 = vmul.f32 1.442695, %v4557_v6 }
 0xaec   : > { %v4494_v41 = vpop.xlane.xlu0 %4493 }
 0xaed   : > { %6699 = vpow2.f32 %v4603_v14  ;;  %v4558_v27 = vsub.f32 %v9310_v56, %v4494_v41  ;;  %v4488_v31 = vpop.xlane.xlu2 %4487  ;;  %v4672_v56 = vsel %vm4446_vm11, %v9461_v13, 0.0 }
 0xaee   : > { %6701 = vpow2.f32 %v4599_v57  ;;  %v4556_v28 = vsub.f32 %v9314_v55, %v4488_v31 }
 0xaef   : > { %v9463_v35 = vpop.eup %6697  ;;  %v4605_v26 = vmul.f32 1.442695, %v4558_v27 }
 0xaf0   : > { %v4656_v48 = vpop.xlane.xlu1 %4655  ;;  %v4687_v19 = vsel %vm4446_vm11, %v9463_v35, 0.0  ;;  %v4601_v55 = vmul.f32 1.442695, %v4556_v28 }
 0xaf1   : > { %6120 = vmatmul.msk.bf16.vlgmr.msrb.gmra.mxu1 %vm838_vm1, %v4803_v32  ;;  %4688 = vadd.xlane.f32.xlu2 %v4687_v19  ;;  %6703 = vpow2.f32 %v4605_v26  ;;  %v5131_v19 = vsel %vm9985_vm6, %v9178_v15, 0  ;;  %vm10000_vm6 = vmmov %vm9980_vm2 }
 0xaf2   : > { %5098 = vmatpush.bf16.msrb.mxu1 %v5089_v50  ;;  %4673 = vadd.xlane.f32.xlu1 %v4672_v56  ;;  %6705 = vrcp.f32 %v4656_v48 }
 0xaf3   : > { %v9473_v9 = vpop.eup %6699  ;;  %6707 = vpow2.f32 %v4601_v55 }
 0xaf4   : > { %v4681_v63 = vsel %vm4446_vm11, %v9473_v9, 0.0  ;;  %v9477_v17 = vpop.eup %6701 }
 0xaf5   : > { %v4509_v0 = vpop.xlane.xlu2 %4508  ;;  %4682 = vadd.xlane.f32.xlu0 %v4681_v63  ;;  %v4675_v51 = vsel %vm4446_vm11, %v9477_v17, 0.0 }
 0xaf6   : > { %v4563_v43 = vsub.f32 %v9327_v4, %v4509_v0 }
 0xaf7   : > { %v9480_v1 = vpop.eup %6703 }
 0xaf8   : > { %v4615_v10 = vmul.f32 1.442695, %v4563_v43  ;;  %v6706_v49 = vpop.eup %6705  ;;  %v4684_v4 = vsel %vm4446_vm11, %v9480_v1, 0.0 }
 0xaf9   : > { %v4500_v39 = vpop.xlane.xlu1 %4499  ;;  %v4772_v20 = vmul.f32 %v6706_v49, %v9318_v23  ;;  %v9488_v33 = vpop.eup %6707 }
 0xafa   : > { %v4560_v38 = vsub.f32 %v9334_v62, %v4500_v39  ;;  %4676 = vadd.xlane.f32.xlu1 %v4675_v51  ;;  %6709 = vpow2.f32 %v4615_v10  ;;  %v4678_v57 = vsel %vm4446_vm11, %v9488_v33, 0.0 }
 0xafb   : > { %v4804_v25 = vpack.c.bf16 %v4772_v20, %v4772_v20 }
 0xafc   : > { %v4609_v6 = vmul.f32 1.442695, %v4560_v38 }
 0xafd   : > { %4685 = vadd.xlane.f32.xlu0 %v4684_v4  ;;  %6121 = vmatmul.msk.bf16.vlgmr.msrb.gmra.mxu2 %vm838_vm1, %v4804_v25  ;;  %v9495_v62 = vpop.xlane.xlu2 %4505 }
 0xafe   : > { %6711 = vpow2.f32 %v4609_v6  ;;  %5119 = vmatpush.bf16.msrb.mxu2 %v5110_v30 }
 0xb00   : > { %v9493_v23 = vpop.eup %6709 }
 0xb01   : > { %v4659_v14 = vpop.xlane.xlu1 %4658  ;;  %v4699_v27 = vsel %vm4446_vm11, %v9493_v23, 0.0 }
 0xb02   : > { %4679 = vadd.xlane.f32.xlu1 %v4678_v57  ;;  %6713 = vrcp.f32 %v4659_v14 }
 0xb04   : > { %v9499_v41 = vpop.eup %6711 }
 0xb05   : > { %4700 = vadd.xlane.f32.xlu0 %v4699_v27  ;;  %v4690_v53 = vsel %vm4446_vm11, %v9499_v41, 0.0 }
 0xb06   : > { %4691 = vadd.xlane.f32.xlu2 %v4690_v53 }
 0xb08   : > { %v6714_v31 = vpop.eup %6713 }
 0xb09   : > { %v9505_v32 = vpop.xlane.xlu2 %4511  ;;  %v4662_v26 = vpop.xlane.xlu1 %4661  ;;  %v4773_v28 = vmul.f32 %v6714_v31, %v9344_v18  ;;  %v5152_v18 = vsel %vm9986_vm12, %v9256_v54, 0  ;;  %vm10002_vm12 = vmmov %vm9980_vm2 }
 0xb0a   : > { %6715 = vrcp.f32 %v4662_v26 }
 0xb0b   : > { %v4805_v48 = vpack.c.bf16 %v4773_v28, %v4773_v28 }
 0xb0d   : > { %6122 = vmatmul.msk.bf16.vlgmr.msrb.gmra.mxu3 %vm838_vm1, %v4805_v48 }
 0xb0e   : > { %5140 = vmatpush.bf16.msrb.mxu3 %v5131_v19 }
 0xb10   : > { %v6716_v50 = vpop.eup %6715 }
 0xb11   : > { %v4774_v56 = vmul.f32 %v6716_v50, %v9348_v24  ;;  %v9512_v55 = vpop.xlane.xlu2 %4520  ;;  %v4503_v63 = vpop.xlane.xlu1 %4502 }
 0xb12   : > { %v4561_v0 = vsub.f32 %v9360_v7, %v4503_v63 }
 0xb13   : > { %v4806_v43 = vpack.c.bf16 %v4774_v56, %v4774_v56  ;;  %v5173_v56 = vsel %vm9987_vm13, %v9151_v29, 0  ;;  %v5194_v29 = vsel %vm9988_vm14, %v9229_v52, 0  ;;  %vm10003_vm13 = vcmask 1046534  }
 0xb14   : > { %v4611_v10 = vmul.f32 1.442695, %v4561_v0  ;;  %vm10004_vm14 = vcmask 1047559  }
 0xb15   : > { %6123 = vmatmul.msk.bf16.vlgmr.msrb.gmra.mxu0 %vm838_vm1, %v4806_v43 }
 0xb16   : > { %5161 = vmatpush.bf16.msrb.mxu0 %v5152_v18  ;;  %6717 = vpow2.f32 %v4611_v10  ;;  %v4527_v15 = vpop.xlane.xlu0 %4526 }
 0xb17   : > { %v4569_v7 = vsub.f32 %v9372_v60, %v4527_v15 }
 0xb19   : > { %v9518_v49 = vpop.xlane.xlu2 %4523  ;;  %v4515_v39 = vpop.xlane.xlu1 %4514  ;;  %v4627_v25 = vmul.f32 1.442695, %v4569_v7 }
 0xb1a   : > { %v4565_v24 = vsub.f32 %v9376_v59, %v4515_v39 }
 0xb1c   : > { %v4619_v51 = vmul.f32 1.442695, %v4565_v24  ;;  %v9521_v20 = vpop.eup %6717 }
 0xb1d   : > { %v4693_v54 = vsel %vm4446_vm11, %v9521_v20, 0.0 }
 0xb1e   : > { %5440 = vrot.lane.b32.xlu2 %v8954_v46, %s7173_s27  ;;  %6719 = vpow2.f32 %v4619_v51  ;;  %4694 = vadd.xlane.f32.xlu0 %v4693_v54 }
 0xb1f   : > { %6721 = vpow2.f32 %v4627_v25 }
 0xb20   : > { %v9528_v38 = vpop.xlane.xlu0 %4529 }
 0xb21   : > { %v9530_v6 = vpop.xlane.xlu2 %4532 }
 0xb24   : > { %v9532_v4 = vpop.eup %6719 }
 0xb25   : > { %v4705_v59 = vsel %vm4446_vm11, %v9532_v4, 0.0  ;;  %v9537_v14 = vpop.eup %6721 }
 0xb26   : > { %4706 = vadd.xlane.f32.xlu1 %v4705_v59  ;;  %v4717_v27 = vsel %vm4446_vm11, %v9537_v14, 0.0 }
 0xb28   : > { %v4665_v60 = vpop.xlane.xlu0 %4664 }
 0xb29   : > { %6723 = vrcp.f32 %v4665_v60  ;;  %v4536_v46 = vpop.xlane.xlu2 %4535 }
 0xb2a   : > { %v4572_v30 = vsub.f32 %v9420_v44, %v4536_v46  ;;  %v4571_v46 = vsub.f32 %v9396_v36, %v9530_v6 }
 0xb2c   : > { %v4633_v57 = vmul.f32 1.442695, %v4572_v30 }
 0xb2e   : > { %6725 = vpow2.f32 %v4633_v57  ;;  %4718 = vadd.xlane.f32.xlu1 %v4717_v27 }
 0xb2f   : > { %v6724_v53 = vpop.eup %6723  ;;  %v9541_v31 = vpop.f32.mrf.mxu2 }
 0xb30   : > { %v4775_v26 = vmul.f32 %v6724_v53, %v9412_v12  ;;  %v4668_v28 = vpop.xlane.xlu0 %4667  ;;  %v4562_v12 = vsub.f32 %v9340_v42, %v9495_v62  ;;  %v4564_v42 = vsub.f32 %v9352_v5, %v9505_v32  ;;  %v4567_v5 = vsub.f32 %v9364_v16, %v9512_v55 }
 0xb31   : > { %6727 = vrcp.f32 %v4668_v28  ;;  %v4542_v48 = vpop.xlane.xlu2 %4541  ;;  %v4568_v32 = vsub.f32 %v9383_v34, %v9518_v49  ;;  %v4570_v16 = vsub.f32 %v9401_v21, %v9528_v38  ;;  %v4631_v49 = vmul.f32 1.442695, %v4571_v46 }
 0xb32   : > { %v4807_v19 = vpack.c.bf16 %v4775_v26, %v4775_v26  ;;  %v4574_v50 = vsub.f32 %v9432_v11, %v4542_v48  ;;  %5398 = vrot.lane.b32.xlu0 %v8921_v8, %s7173_s27  ;;  %v4613_v10 = vmul.f32 1.442695, %v4562_v12  ;;  %v4617_v39 = vmul.f32 1.442695, %v4564_v42 }
 0xb33   : > { %v4623_v59 = vmul.f32 1.442695, %v4567_v5  ;;  %v4629_v57 = vmul.f32 1.442695, %v4570_v16  ;;  %v5511_v38 = vrot.slane %v9541_v31, 7  ;;  %v5236_v46 = vsel %vm9980_vm2, %v9246_v61, 0 }
 0xb34   : > { %v9547_v44 = vpop.eup %6725  ;;  %v4637_v63 = vmul.f32 1.442695, %v4574_v50  ;;  %6124 = vmatmul.msk.bf16.vlgmr.msra.gmra.mxu1 %vm838_vm1, %v4807_v19 }
 0xb35   : > { %5182 = vmatpush.bf16.msra.mxu1 %v5173_v56  ;;  %v4726_v0 = vsel %vm4446_vm11, %v9547_v44, 0.0 }
 0xb36   : > { %6729 = vpow2.f32 %v4637_v63  ;;  %4727 = vadd.xlane.f32.xlu1 %v4726_v0 }
 0xb37   : > { %v6728_v11 = vpop.eup %6727  ;;  %v4871_v43 = vpop.f32.mrf.mxu2  ;;  %6731 = vpow2.f32 %v4613_v10 }
 0xb38   : > { %v4776_v8 = vmul.f32 %v6728_v11, %v9428_v40  ;;  %v4518_v40 = vpop.xlane.xlu1 %4517  ;;  %6733 = vpow2.f32 %v4617_v39  ;;  %v5215_v39 = vsel %vm9989_vm8, %v9065_v22, 0  ;;  %vm10006_vm8 = vmmov %vm9980_vm2 }
 0xb39   : > { %v4566_v51 = vsub.f32 %v9392_v47, %v4518_v40  ;;  %v4625_v47 = vmul.f32 1.442695, %v4568_v32 }
 0xb3a   : > { %v4808_v18 = vpack.c.bf16 %v4776_v8, %v4776_v8 }
 0xb3b   : > { %v4621_v7 = vmul.f32 1.442695, %v4566_v51 }
 0xb3c   : > { %v9557_v15 = vpop.eup %6729  ;;  %6125 = vmatmul.msk.bf16.vlgmr.msra.gmra.mxu2 %vm838_vm1, %v4808_v18 }
 0xb3d   : > { %5203 = vmatpush.bf16.msra.mxu2 %v5194_v29  ;;  %v4732_v62 = vsel %vm4446_vm11, %v9557_v15, 0.0  ;;  %v9566_v24 = vpop.eup %6731  ;;  %6735 = vpow2.f32 %v4621_v7 }
 0xb3e   : > { %4733 = vadd.xlane.f32.xlu1 %v4732_v62  ;;  %v4696_v52 = vsel %vm4446_vm11, %v9566_v24, 0.0  ;;  %v9571_v54 = vpop.eup %6733  ;;  %6737 = vpow2.f32 %v4623_v59 }
 0xb3f   : > { %v4702_v25 = vsel %vm4446_vm11, %v9571_v54, 0.0  ;;  %6739 = vpow2.f32 %v4625_v47 }
 0xb40   : > { %v4539_v55 = vpop.xlane.xlu1 %4538  ;;  %6741 = vpow2.f32 %v4631_v49 }
 0xb41   : > { %6743 = vpow2.f32 %v4629_v57  ;;  %v4573_v21 = vsub.f32 %v9416_v3, %v4539_v55 }
 0xb43   : > { %v9579_v60 = vpop.eup %6735  ;;  %v4635_v50 = vmul.f32 1.442695, %v4573_v21 }
 0xb44   : > { %v4708_v34 = vsel %vm4446_vm11, %v9579_v60, 0.0  ;;  %v9589_v30 = vpop.eup %6737 }
 0xb45   : > { %v9591_v27 = vpop.eup %6739  ;;  %v4711_v36 = vsel %vm4446_vm11, %v9589_v30, 0.0 }
 0xb46   : > { %v9600_v19 = vpop.eup %6741 }
 0xb47   : > { %4697 = vadd.xlane.f32.xlu2 %v4696_v52  ;;  %v9603_v31 = vpop.eup %6743  ;;  %v4723_v11 = vsel %vm4446_vm11, %v9600_v19, 0.0 }
 0xb48   : > { %v4720_v18 = vsel %vm4446_vm11, %v9603_v31, 0.0 }
 0xb4f   : > { %4703 = vadd.xlane.f32.xlu2 %v4702_v25 }
 0xb57   : > { %4709 = vadd.xlane.f32.xlu2 %v4708_v34  ;;  %5461 = vrot.lane.b32.xlu1 %v8972_v2, %s7173_s27  ;;  %v4714_v2 = vsel %vm4446_vm11, %v9591_v27, 0.0 }
 0xb5c   : > { %4712 = vadd.xlane.f32.xlu0 %v4711_v36 }
 0xb5d   : > { %v4671_v6 = vpop.xlane.xlu1 %4670 }
 0xb5e   : > { %6745 = vrcp.f32 %v4671_v6  ;;  %v4848_v53 = vpop.f32.mrf.mxu1 }
 0xb5f   : > { %v5512_v26 = vsel %vm3310_vm4, %v5511_v38, %v4848_v53  ;;  %v4890_v28 = vpop.f32.mrf.mxu3  ;;  %4715 = vadd.xlane.f32.xlu2 %v4714_v2  ;;  %6747 = vpow2.f32 %v4635_v50  ;;  %v9991_v53 = vld [vmem:[#allocation40_spill] sm:$0xff] }
 0xb60   : > { %v5513_v48 = vrot.slane %v4890_v28, 6 }
 0xb61   : > { %v4911_v56 = vpop.f32.mrf.mxu0 }
 0xb62   : > { %v5514_v3 = vsel %vm3313_vm7, %v5513_v48, %v5512_v26  ;;  %v5515_v63 = vrot.slane %v4911_v56, 5 }
 0xb64   : > { %v6746_v12 = vpop.eup %6745  ;;  %v5516_v0 = vsel %vm3316_vm9, %v5515_v63, %v5514_v3  ;;  %4724 = vadd.xlane.f32.xlu0 %v4723_v11  ;;  %v4689_v36 = vpop.xlane.xlu2 %4688  ;;  %v9995_v3 = vld [vmem:[#allocation37_spill] sm:$0xff] }
 0xb65   : > { %v4777_v43 = vmul.f32 %v6746_v12, %v9453_v45  ;;  %v4674_v8 = vpop.xlane.xlu1 %4673  ;;  %v9614_v51 = vpop.eup %6747  ;;  %v5320_v63 = vsel %vm9996_vm15, %v9995_v3, 0  ;;  %vm10010_vm15 = vmmov %vm9980_vm2 }
 0xb66   : > { %6749 = vrcp.f32 %v4674_v8  ;;  %v4850_v10 = vpop.f32.mrf.mxu1  ;;  %v4729_v32 = vsel %vm4446_vm11, %v9614_v51, 0.0  ;;  %vm9990_vm11 = vmmov %vm9980_vm2  ;;  %v9998_v8 = vld [vmem:[#allocation25_spill] sm:$0xff] }
 0xb67   : > { %v4809_v29 = vpack.c.bf16 %v4777_v43, %v4777_v43  ;;  %v4892_v42 = vpop.f32.mrf.mxu3  ;;  %4721 = vadd.xlane.f32.xlu2 %v4720_v18  ;;  %v5257_v61 = vsel %vm9990_vm11, %v9156_v58, 0  ;;  %v9999_v18 = vld [vmem:[#allocation38_spill] sm:$0xff]  ;;  %vm10007_vm11 = vmmov %vm9980_vm2 }
 0xb68   : > { %v4683_v62 = vpop.xlane.xlu0 %4682 }
 0xb69   : > { %6126 = vmatmul.msk.bf16.vlgmr.msra.gmra.mxu3 %vm838_vm1, %v4809_v29  ;;  %v4913_v40 = vpop.f32.mrf.mxu0  ;;  %6751 = vrcp.f32 %v4683_v62  ;;  %v5341_v29 = vsel %vm10000_vm6, %v9999_v18, 0  ;;  %vm10011_vm6 = vmmov %vm10003_vm13 }
 0xb6a   : > { %5224 = vmatpush.bf16.msra.mxu3 %v5215_v39  ;;  %v10001_v40 = vld [vmem:[#allocation35_spill] sm:$0xff] }
 0xb6c   : > { %v6750_v45 = vpop.eup %6749 }
 0xb6d   : > { %v4778_v52 = vmul.f32 %v6750_v45, %v9461_v13  ;;  %v4677_v7 = vpop.xlane.xlu1 %4676  ;;  %v5362_v45 = vsel %vm10002_vm12, %v10001_v40, 0  ;;  %vm10012_vm12 = vmmov %vm10004_vm14 }
 0xb6e   : > { %6753 = vrcp.f32 %v4677_v7  ;;  %v4932_v5 = vpop.f32.mrf.mxu1 }
 0xb6f   : > { %v4810_v25 = vpack.c.bf16 %v4778_v52, %v4778_v52  ;;  %v5517_v59 = vrot.slane %v4932_v5, 4  ;;  %4730 = vadd.xlane.f32.xlu2 %v4729_v32  ;;  %v6752_v47 = vpop.eup %6751 }
 0xb70   : > { %v4686_v22 = vpop.xlane.xlu0 %4685  ;;  %v4781_v55 = vmul.f32 %v6752_v47, %v9473_v9  ;;  %v5299_v9 = vsel %vm9992_vm3, %v9991_v53, 0  ;;  %vm10008_vm3 = vmmov %vm9980_vm2 }
 0xb71   : > { %v5518_v16 = vsel %vm3319_vm0, %v5517_v59, %v5516_v0  ;;  %6127 = vmatmul.msk.bf16.vlgmr.msra.gmra.mxu0 %vm838_vm1, %v4810_v25  ;;  %6755 = vrcp.f32 %v4686_v22 }
 0xb72   : > { %5245 = vmatpush.bf16.msra.mxu0 %v5236_v46  ;;  %v4813_v6 = vpack.c.bf16 %v4781_v55, %v4781_v55 }
 0xb74   : > { %v6754_v13 = vpop.eup %6753 }
 0xb75   : > { %v4779_v34 = vmul.f32 %v6754_v13, %v9477_v17  ;;  %v4680_v49 = vpop.xlane.xlu1 %4679 }
 0xb76   : > { %6757 = vrcp.f32 %v4680_v49  ;;  %v4934_v57 = vpop.f32.mrf.mxu1 }
 0xb77   : > { %v4811_v21 = vpack.c.bf16 %v4779_v34, %v4779_v34  ;;  %v6756_v38 = vpop.eup %6755  ;;  %6759 = vrcp.f32 %v4689_v36  ;;  %v10005_v57 = vld [vmem:[#allocation39_spill] sm:$0xff] }
 0xb78   : > { %5419 = vrot.lane.b32.xlu0 %v8986_v37, %s7173_s27  ;;  %v4782_v17 = vmul.f32 %v6756_v38, %v9480_v1  ;;  %v9993_v37 = vld [vmem:[#allocation24_spill] sm:$0xff]  ;;  %v4701_v43 = vpop.xlane.xlu0 %4700 }
 0xb79   : > { %6128 = vmatmul.msk.bf16.vlgmr.msrb.gmra.mxu1 %vm838_vm1, %v4811_v21  ;;  %6130 = vmatmul.msk.bf16.vlgmr.msrb.gmra.mxu3 %vm838_vm1, %v4813_v6  ;;  %v4692_v48 = vpop.xlane.xlu2 %4691  ;;  %v5278_v56 = vsel %vm9994_vm5, %v9993_v37, 0  ;;  %vm10009_vm5 = vmmov %vm9980_vm2 }
 0xb7a   : > { %5266 = vmatpush.bf16.msrb.mxu1 %v5257_v61  ;;  %5308 = vmatpush.bf16.msrb.mxu3 %v5299_v9  ;;  %v4814_v28 = vpack.c.bf16 %v4782_v17, %v4782_v17  ;;  %6761 = vrcp.f32 %v4692_v48 }
 0xb7b   : > { %6763 = vrcp.f32 %v4701_v43 }
 0xb7c   : > { %v6758_v2 = vpop.eup %6757 }
 0xb7d   : > { %v4780_v26 = vmul.f32 %v6758_v2, %v9488_v33  ;;  %v6760_v50 = vpop.eup %6759 }
 0xb7e   : > { %v4783_v33 = vmul.f32 %v6760_v50, %v9463_v35 }
 0xb7f   : > { %v4812_v58 = vpack.c.bf16 %v4780_v26, %v4780_v26 }
 0xb80   : > { %v4953_v12 = vpop.f32.mrf.mxu2  ;;  %v4815_v11 = vpack.c.bf16 %v4783_v33, %v4783_v33  ;;  %v6762_v10 = vpop.eup %6761 }
 0xb81   : > { %6129 = vmatmul.msk.bf16.vlgmr.msrb.gmra.mxu2 %vm838_vm1, %v4812_v58  ;;  %6131 = vmatmul.msk.bf16.vlgmr.msrb.gmra.mxu0 %vm838_vm1, %v4814_v28  ;;  %v5519_v1 = vrot.slane %v4953_v12, 3  ;;  %v4784_v62 = vmul.f32 %v6762_v10, %v9499_v41  ;;  %v6764_v35 = vpop.eup %6763 }
 0xb82   : > { %5287 = vmatpush.bf16.msrb.mxu2 %v5278_v56  ;;  %5329 = vmatpush.bf16.msrb.mxu0 %v5320_v63  ;;  %v4787_v25 = vmul.f32 %v6764_v35, %v9493_v23  ;;  %v5383_v23 = vsel %vm10006_vm8, %v10005_v57, 0  ;;  %vm10015_vm8 = vmmov %vm10012_vm12 }
 0xb83   : > { %v5520_v0 = vsel %vm9997_vm10, %v5519_v1, %v5518_v16  ;;  %v4816_v39 = vpack.c.bf16 %v4784_v62, %v4784_v62 }
 0xb84   : > { %v4819_v47 = vpack.c.bf16 %v4787_v25, %v4787_v25 }
 0xb87   : > { %5482 = vrot.lane.b32.xlu2 %v9998_v8, %s7173_s27 }
 0xb88   : > { %v4955_v42 = vpop.f32.mrf.mxu2 }
 0xb89   : > { %6132 = vmatmul.msk.bf16.vlgmr.msra.gmra.mxu1 %vm838_vm1, %v4815_v11 }
 0xb8a   : > { %5350 = vmatpush.bf16.msra.mxu1 %v5341_v29 }
 0xb90   : > { %v4974_v52 = vpop.f32.mrf.mxu3 }
 0xb91   : > { %6133 = vmatmul.msk.bf16.vlgmr.msra.gmra.mxu2 %vm838_vm1, %v4816_v39  ;;  %v5521_v7 = vrot.slane %v4974_v52, 2  ;;  %v4695_v5 = vpop.xlane.xlu0 %4694 }
 0xb92   : > { %5371 = vmatpush.bf16.msra.mxu2 %v5362_v45  ;;  %v4995_v32 = vpop.f32.mrf.mxu0  ;;  %6765 = vrcp.f32 %v4695_v5 }
 0xb93   : > { %v5523_v59 = vrot.slane %v4995_v32, 1  ;;  %v5522_v22 = vsel %vm10003_vm13, %v5521_v7, %v5520_v0  ;;  %vm10013_vm13 = vmmov %vm9997_vm10 }
 0xb95   : > { %v9655_v41 = vsel %vm10004_vm14, %v5523_v59, %v5522_v22  ;;  %vm10014_vm14 = vmmov %vm10011_vm6 }
 0xb98   : > { %v6766_v46 = vpop.eup %6765  ;;  %v4976_v16 = vpop.f32.mrf.mxu3 }
 0xb99   : > { %6136 = vmatmul.msk.bf16.vlgmr.msrb.gmra.mxu1 %vm838_vm1, %v4819_v47  ;;  %v4785_v13 = vmul.f32 %v6766_v46, %v9521_v20  ;;  %v4707_v49 = vpop.xlane.xlu1 %4706  ;;  %v5441_v20 = vpop.permute.xlu2 %5440 }
 0xb9a   : > { %v4997_v55 = vpop.f32.mrf.mxu0  ;;  %6767 = vrcp.f32 %v4707_v49  ;;  %v5446_v10 = vsel %vm10008_vm3, %v5441_v20, 0 }
 0xb9b   : > { %v4817_v34 = vpack.c.bf16 %v4785_v13, %v4785_v13 }
 0xb9d   : > { %6134 = vmatmul.msk.bf16.vlgmr.msra.gmra.mxu3 %vm838_vm1, %v4817_v34 }
 0xb9e   : > { %5392 = vmatpush.bf16.msra.mxu3 %v5383_v23 }
 0xba0   : > { %v6768_v36 = vpop.eup %6767 }
 0xba1   : > { %v4789_v21 = vmul.f32 %v6768_v36, %v9532_v4  ;;  %v4719_v6 = vpop.xlane.xlu1 %4718 }
 0xba2   : > { %6769 = vrcp.f32 %v4719_v6 }
 0xba3   : > { %v4821_v38 = vpack.c.bf16 %v4789_v21, %v4789_v21 }
 0xba4   : > { %v5399_v63 = vpop.permute.xlu0 %5398 }
 0xba5   : > { %v5404_v12 = vsel %vm9980_vm2, %v5399_v63, 0  ;;  %vm10016_vm2 = vmmov %vm9997_vm10 }
 0xba8   : > { %v6770_v53 = vpop.eup %6769 }
 0xba9   : > { %v4793_v9 = vmul.f32 %v6770_v53, %v9537_v14  ;;  %v4728_v17 = vpop.xlane.xlu1 %4727 }
 0xbab   : > { %v4825_v28 = vpack.c.bf16 %v4793_v9, %v4793_v9 }
 0xbad   : > { %6138 = vmatmul.msk.bf16.vlgmr.msrb.gmra.mxu3 %vm838_vm1, %v4821_v38 }
 0xbb1   : > { %v5016_v61 = vpop.f32.mrf.mxu1  ;;  %v4734_v50 = vpop.xlane.xlu1 %4733 }
 0xbb9   : > { %v5018_v2 = vpop.f32.mrf.mxu1 }
 0xbba   : > { %v4698_v26 = vpop.xlane.xlu2 %4697 }
 0xbbb   : > { %6771 = vrcp.f32 %v4698_v26 }
 0xbbd   : > { %6142 = vmatmul.msk.bf16.vlgmr.msra.gmra.mxu3 %vm838_vm1, %v4825_v28 }
 0xbbf   : > { %v5037_v58 = vpop.f32.mrf.mxu2 }
 0xbc0   : > { %v5534_v48 = vrot.slane %v5037_v58, 7 }
 0xbc1   : > { %v6772_v4 = vpop.eup %6771 }
 0xbc2   : > { %v4786_v37 = vmul.f32 %v6772_v4, %v9566_v24  ;;  %v9668_v56 = vsel %vm3310_vm4, %v5534_v48, %v5016_v61  ;;  %v4704_v3 = vpop.xlane.xlu2 %4703 }
 0xbc3   : > { %6773 = vrcp.f32 %v4704_v3 }
 0xbc4   : > { %v4818_v14 = vpack.c.bf16 %v4786_v37, %v4786_v37 }
 0xbc6   : > { %6135 = vmatmul.msk.bf16.vlgmr.msra.gmra.mxu0 %vm838_vm1, %v4818_v14 }
 0xbc7   : > { %v5039_v1 = vpop.f32.mrf.mxu2  ;;  %5413 = vmatpush.bf16.msra.mxu0 %v5404_v12 }
 0xbc9   : > { %v6774_v33 = vpop.eup %6773  ;;  %v5462_v11 = vpop.permute.xlu1 %5461 }
 0xbca   : > { %v4788_v0 = vmul.f32 %v6774_v33, %v9571_v54  ;;  %v4710_v43 = vpop.xlane.xlu2 %4709  ;;  %v5467_v24 = vsel %vm10007_vm11, %v5462_v11, 0  ;;  %vm10017_vm11 = vmmov %vm10011_vm6 }
 0xbcb   : > { %6775 = vrcp.f32 %v4710_v43  ;;  %5476 = vmatpush.bf16.msrb.mxu3 %v5467_v24 }
 0xbcc   : > { %v4820_v8 = vpack.c.bf16 %v4788_v0, %v4788_v0 }
 0xbce   : > { %6137 = vmatmul.msk.bf16.vlgmr.msrb.gmra.mxu2 %vm838_vm1, %v4820_v8 }
 0xbcf   : > { %5455 = vmatpush.bf16.msrb.mxu2 %v5446_v10  ;;  %v4713_v18 = vpop.xlane.xlu0 %4712 }
 0xbd0   : > { %6777 = vrcp.f32 %v4713_v18 }
 0xbd1   : > { %v6776_v29 = vpop.eup %6775 }
 0xbd2   : > { %v4790_v42 = vmul.f32 %v6776_v29, %v9579_v60  ;;  %v4716_v62 = vpop.xlane.xlu2 %4715 }
 0xbd3   : > { %6779 = vrcp.f32 %v4716_v62 }
 0xbd4   : > { %v4822_v54 = vpack.c.bf16 %v4790_v42, %v4790_v42 }
 0xbd6   : > { %6139 = vmatmul.msk.bf16.vlgmr.msrb.gmra.mxu0 %vm838_vm1, %v4822_v54  ;;  %v6778_v39 = vpop.eup %6777 }
 0xbd7   : > { %v4791_v35 = vmul.f32 %v6778_v39, %v9589_v30  ;;  %v4725_v32 = vpop.xlane.xlu0 %4724 }
 0xbd9   : > { %v6780_v40 = vpop.eup %6779  ;;  %v4823_v45 = vpack.c.bf16 %v4791_v35, %v4791_v35 }
 0xbda   : > { %v4792_v52 = vmul.f32 %v6780_v40, %v9591_v27  ;;  %v4722_v7 = vpop.xlane.xlu2 %4721 }
 0xbdb   : > { %6781 = vrcp.f32 %v4722_v7  ;;  %6140 = vmatmul.msk.bf16.vlgmr.msra.gmra.mxu1 %vm838_vm1, %v4823_v45 }
 0xbdc   : > { %v4824_v5 = vpack.c.bf16 %v4792_v52, %v4792_v52  ;;  %6783 = vrcp.f32 %v4728_v17 }
 0xbdd   : > { %6785 = vrcp.f32 %v4725_v32 }
 0xbde   : > { %6141 = vmatmul.msk.bf16.vlgmr.msra.gmra.mxu2 %vm838_vm1, %v4824_v5 }
 0xbe1   : > { %v6782_v60 = vpop.eup %6781 }
 0xbe2   : > { %v4794_v25 = vmul.f32 %v6782_v60, %v9603_v31  ;;  %v4731_v59 = vpop.xlane.xlu2 %4730  ;;  %v6784_v22 = vpop.eup %6783 }
 0xbe3   : > { %6787 = vrcp.f32 %v4731_v59  ;;  %v6786_v27 = vpop.eup %6785  ;;  %v4796_v47 = vmul.f32 %v6784_v22, %v9547_v44 }
 0xbe4   : > { %v4826_v30 = vpack.c.bf16 %v4794_v25, %v4794_v25  ;;  %6789 = vrcp.f32 %v4734_v50  ;;  %v4795_v16 = vmul.f32 %v6786_v27, %v9600_v19 }
 0xbe5   : > { %v4828_v31 = vpack.c.bf16 %v4796_v47, %v4796_v47 }
 0xbe6   : > { %6143 = vmatmul.msk.bf16.vlgmr.msra.gmra.mxu0 %vm838_vm1, %v4826_v30  ;;  %v4827_v38 = vpack.c.bf16 %v4795_v16, %v4795_v16 }
 0xbe9   : > { %v6788_v46 = vpop.eup %6787 }
 0xbea   : > { %v4797_v13 = vmul.f32 %v6788_v46, %v9614_v51  ;;  %v5483_v55 = vpop.permute.xlu2 %5482  ;;  %v5420_v49 = vpop.permute.xlu0 %5419 }
 0xbeb   : > { %v5488_v34 = vsel %vm10009_vm5, %v5483_v55, 0  ;;  %v5425_v23 = vsel %vm10010_vm15, %v5420_v49, 0  ;;  %v6790_v21 = vpop.eup %6789 }
 0xbec   : > { %v4829_v57 = vpack.c.bf16 %v4797_v13, %v4797_v13  ;;  %v5058_v36 = vpop.f32.mrf.mxu3  ;;  %5497 = vmatpush.bf16.msrb.mxu0 %v5488_v34  ;;  %5434 = vmatpush.bf16.msrb.mxu1 %v5425_v23  ;;  %v4798_v44 = vmul.f32 %v6790_v21, %v9557_v15 }
 0xbed   : > { %v5536_v9 = vrot.slane %v5058_v36, 6 }
 0xbee   : > { %v5079_v6 = vpop.f32.mrf.mxu0  ;;  %6145 = vmatmul.msk.bf16.vlgmr.msrb.gmra.mxu2 %vm838_vm1, %v4828_v31  ;;  %6146 = vmatmul.msk.bf16.vlgmr.msrb.gmra.mxu3 %vm838_vm1, %v4829_v57  ;;  %v4830_v19 = vpack.c.bf16 %v4798_v44, %v4798_v44 }
 0xbef   : > { %6144 = vmatmul.msk.bf16.vlgmr.msrb.gmra.mxu1 %vm838_vm1, %v4827_v38  ;;  %v5538_v26 = vrot.slane %v5079_v6, 5  ;;  %v5537_v28 = vsel %vm3313_vm7, %v5536_v9, %v9668_v56 }
 0xbf1   : > { %v5539_v15 = vsel %vm3316_vm9, %v5538_v26, %v5537_v28 }
 0xbf4   : > { %v5060_v51 = vpop.f32.mrf.mxu3 }
 0xbf6   : > { %v5081_v61 = vpop.f32.mrf.mxu0  ;;  %v5100_v20 = vpop.f32.mrf.mxu1  ;;  %6147 = vmatmul.msk.bf16.vlgmr.msrb.gmra.mxu0 %vm838_vm1, %v4830_v19 }
 0xbf7   : > { %v5540_v58 = vrot.slane %v5100_v20, 4 }
 0xbf9   : > { %v5541_v37 = vsel %vm3319_vm0, %v5540_v58, %v5539_v15 }
 0xbfc   : > { %v5142_v53 = vpop.f32.mrf.mxu3 }
 0xbfd   : > { %v5544_v3 = vrot.slane %v5142_v53, 2 }
 0xbfe   : > { %v5102_v17 = vpop.f32.mrf.mxu1  ;;  %v5163_v2 = vpop.f32.mrf.mxu0 }
 0xbff   : > { %v5546_v12 = vrot.slane %v5163_v2, 1 }
 0xc04   : > { %v5121_v48 = vpop.f32.mrf.mxu2  ;;  %v5144_v50 = vpop.f32.mrf.mxu3 }
 0xc05   : > { %v5542_v4 = vrot.slane %v5121_v48, 3 }
 0xc06   : > { %v5165_v63 = vpop.f32.mrf.mxu0  ;;  %v5184_v14 = vpop.f32.mrf.mxu1 }
 0xc07   : > { %v5543_v1 = vsel %vm9997_vm10, %v5542_v4, %v5541_v37 }
 0xc08   : > { %v5545_v33 = vsel %vm10011_vm6, %v5544_v3, %v5543_v1  ;;  %v6191_v1 = vld [vmem:[%s9779_s9 + $0x8] sm:$0xff] }
 0xc09   : > { %v5547_v0 = vsel %vm10012_vm12, %v5546_v12, %v5545_v33  ;;  %5627 = vmatpush.bf16.msra.mxu1 %v6191_v1  ;;  %v6190_v33 = vld [vmem:[%s9779_s9] sm:$0xff] }
 0xc0a   : > { %5548 = vrot.lane.b32.xlu0 %v5547_v0, %s7175_s16  ;;  %s5760_s16 = scalar_lea.hbm %s10027_s14, %s8745_s8 }
 0xc0b   : > { %s5764_s5 = sshll.u32 %s5760_s16, 4  ;;  %s5765_s5 = int_to_ptr.hbm [resolvable:$true] %s5764_s5 }
 0xc0c   : > { %v5123_v56 = vpop.f32.mrf.mxu2  ;;  %s7087_s12 = sshra.s32 %s5765_s5, 4  ;;  %s7088_s12 = int_to_ptr.hbm [resolvable:$true] %s7087_s12 }
 0xc0d   : > { %5628 = vmatpush.bf16.msra.mxu1 %v6190_v33  ;;  %s7089_s13 = scalar_lea.hbm %s7088_s12, 8  ;;  %p7094_p8 = scmp.lt.s32.totalorder %s7088_s12, %s10027_s14 }
 0xc0e   : > { %v5186_v11 = vpop.f32.mrf.mxu1  ;;  %p7090_p5 = scmp.ne.s32.totalorder %s7088_s12, %s7089_s13  ;;  %p7095_p9 = scmp.lt.s32.totalorder %s7093_s4, %s7089_s13 }
 0xc10   : > { %p7091_p12 = pnand %p7090_p5, %p7375_p4  ;;  %p7096_p10 = por %p7095_p9, %p7094_p8 }
 0xc12   : > { %p7092_p7 = pneg %p7091_p12 }
 0xc14   : > { %v5205_v43 = vpop.f32.mrf.mxu2  ;;  %p7097_p13 = pnand %p7096_p10, %p7092_p7 }
 0xc15   : > { %v5559_v40 = vrot.slane %v5205_v43, 7 }
 0xc16   : > { %v5268_v24 = vpop.f32.mrf.mxu1 }
 0xc17   : > { %v5560_v5 = vsel %vm3310_vm4, %v5559_v40, %v5184_v14  ;;  %v5565_v25 = vrot.slane %v5268_v24, 4 }
 0xc1c   : > { %v5207_v8 = vpop.f32.mrf.mxu2 }
 0xc1e   : > { %v5270_v10 = vpop.f32.mrf.mxu1 }
 0xc20   : > { %v5226_v18 = vpop.f32.mrf.mxu3 }
 0xc21   : > { %v5561_v45 = vrot.slane %v5226_v18, 6  ;;  %v6802_v18 = vld [vmem:[#allocation5] sm:$0xff] }
 0xc23   : > { %v5562_v32 = vsel %vm3313_vm7, %v5561_v45, %v5560_v5 }
 0xc28   : > { %v5228_v29 = vpop.f32.mrf.mxu3 }
 0xc29   : > { %v5605_v29 = vperm.slane %v6802_v18, 7 }
 0xc30   : > { %v5310_v42 = vpop.f32.mrf.mxu3 }
 0xc31   : > { %v5569_v22 = vrot.slane %v5310_v42, 2 }
 0xc38   : > { %v5312_v62 = vpop.f32.mrf.mxu3 }
 0xc39   : > { %v5657_v62 = vld [vmem:[#allocation1] sm:$0xff] }
 0xc40   : > { %v5394_v54 = vpop.f32.mrf.mxu3 }
 0xc41   : > { %v5586_v19 = vrot.slane %v5394_v54, 6 }
 0xc43   : > { %v5247_v39 = vpop.f32.mrf.mxu0 }
 0xc44   : > { %v5563_v7 = vrot.slane %v5247_v39, 5 }
 0xc46   : > { %v5564_v60 = vsel %vm3316_vm9, %v5563_v7, %v5562_v32 }
 0xc47   : > { %v5566_v27 = vsel %vm3319_vm0, %v5565_v25, %v5564_v60  ;;  %v6193_v60 = vld [vmem:[#allocation14 + $0x8] sm:$0xff]  ;;  %v6192_v25 = vld [vmem:[#allocation14] sm:$0xff] }
 0xc48   : > { %v5396_v35 = vpop.f32.mrf.mxu3  ;;  %5709 = vmatpush.bf16.msra.mxu2 %v6193_v60 }
 0xc4b   : > { %v5249_v52 = vpop.f32.mrf.mxu0 }
 0xc4c   : > { %5710 = vmatpush.bf16.msra.mxu2 %v6192_v25 }
 0xc51   : > { %v5289_v59 = vpop.f32.mrf.mxu2 }
 0xc52   : > { %v5567_v30 = vrot.slane %v5289_v59, 3 }
 0xc53   : > { %v5331_v47 = vpop.f32.mrf.mxu0 }
 0xc54   : > { %v5568_v46 = vsel %vm10013_vm13, %v5567_v30, %v5566_v27  ;;  %v5571_v16 = vrot.slane %v5331_v47, 1 }
 0xc55   : > { %v5570_v13 = vsel %vm10014_vm14, %v5569_v22, %v5568_v46 }
 0xc56   : > { %v5572_v55 = vsel %vm10015_vm8, %v5571_v16, %v5570_v13  ;;  %v621_v13 = vld [vmem:[#allocation5 + $0x8] sm:$0xf] }
 0xc57   : > { %5573 = vrot.lane.b32.xlu1 %v5572_v55, %s7176_s3  ;;  %s592_s3 = scalar_lea.vmem [#allocation17], %s5956_s15 }
 0xc58   : > { %v5352_v34 = vpop.f32.mrf.mxu1 }
 0xc59   : > { %v5291_v49 = vpop.f32.mrf.mxu2 }
 0xc5a   : > { %v5682_v49 = vperm.slane %v621_v13, 0 }
 0xc5b   : > { %v5333_v31 = vpop.f32.mrf.mxu0 }
 0xc60   : > { %v5354_v57 = vpop.f32.mrf.mxu1 }
 0xc61   : > { %v5373_v23 = vpop.f32.mrf.mxu2  ;;  %v5684_v57 = vperm.slane %v621_v13, 1 }
 0xc62   : > { %v5584_v21 = vrot.slane %v5373_v23, 7 }
 0xc63   : > { %v5415_v36 = vpop.f32.mrf.mxu0 }
 0xc64   : > { %v5585_v44 = vsel %vm3310_vm4, %v5584_v21, %v5352_v34  ;;  %v5588_v61 = vrot.slane %v5415_v36, 5  ;;  %vm10018_vm4 = vmmov %vm10015_vm8 }
 0xc65   : > { %v5587_v20 = vsel %vm3313_vm7, %v5586_v19, %v5585_v44  ;;  %vm10019_vm7 = vcmask 130048   ;;  %v6194_v44 = vld [vmem:[#allocation16] sm:$0xff]  ;;  %v5687_v19 = vperm.slane %v621_v13, 2 }
 0xc66   : > { %v5589_v2 = vsel %vm3316_vm9, %v5588_v61, %v5587_v20  ;;  %vm10020_vm9 = vcmask 195584  }
 0xc69   : > { %v5375_v38 = vpop.f32.mrf.mxu2 }
 0xc6b   : > { %v5417_v6 = vpop.f32.mrf.mxu0 }
 0xc6c   : > { %v5436_v51 = vpop.f32.mrf.mxu1  ;;  %v6195_v6 = vld [vmem:[#allocation16 + $0x8] sm:$0xff] }
 0xc6d   : > { %v5590_v53 = vrot.slane %v5436_v51, 4  ;;  %5740 = vmatpush.bf16.msra.mxu3 %v6195_v6 }
 0xc6f   : > { %v5591_v58 = vsel %vm3319_vm0, %v5590_v53, %v5589_v2  ;;  %vm10021_vm0 = vcmask 261120  }
 0xc70   : > { %vm10022_vm3 = vmmov %vm10021_vm0 }
 0xc71   : > { %v5457_v9 = vpop.f32.mrf.mxu2  ;;  %v5478_v17 = vpop.f32.mrf.mxu3  ;;  %vm10025_vm6 = vmmov %vm10021_vm0  ;;  %5741 = vmatpush.bf16.msra.mxu3 %v6194_v44 }
 0xc72   : > { %v5592_v26 = vrot.slane %v5457_v9, 3  ;;  %v5594_v28 = vrot.slane %v5478_v17, 2  ;;  %vm10026_vm12 = vmmov %vm10021_vm0  ;;  %v5718_v17 = vperm.slane %v621_v13, 3 }
 0xc73   : > { %v5499_v48 = vpop.f32.mrf.mxu0  ;;  %vm10028_vm13 = vmmov %vm10021_vm0 }
 0xc74   : > { %v5593_v15 = vsel %vm10016_vm2, %v5592_v26, %v5591_v58  ;;  %v5596_v4 = vrot.slane %v5499_v48, 1  ;;  %v5438_v37 = vpop.f32.mrf.mxu1 }
 0xc75   : > { %v5595_v50 = vsel %vm10017_vm11, %v5594_v28, %v5593_v15 }
 0xc76   : > { %v5597_v3 = vsel %vm10018_vm4, %v5596_v4, %v5595_v50 }
 0xc77   : > { %5598 = vrot.lane.b32.xlu2 %v5597_v3, %s7177_s7  ;;  %s5762_s7 = sshll.u32 %s592_s3, 4  ;;  %s5763_s7 = int_to_ptr.vmem [resolvable:$true] %s5762_s7 }
 0xc79   : > { %v5459_v63 = vpop.f32.mrf.mxu2  ;;  %v5480_v14 = vpop.f32.mrf.mxu3 }
 0xc7b   : > { %v5501_v12 = vpop.f32.mrf.mxu0 }
 0xc7c   : > { %v5549_v0 = vpop.permute.xlu0 %5548 }
 0xc7d   : > { %v5601_v11 = vsel %vm838_vm1, %v9655_v41, %v5549_v0  ;;  %v10023_v41 = vld [vmem:[#allocation26_spill] sm:$0xff]  ;;  %vm10024_vm1 = vmmov %vm10021_vm0 }
 0xcc9   : > { %v5574_v56 = vpop.permute.xlu1 %5573 }
 0xcca   : > { %v5602_v43 = vsel %vm10019_vm7, %v5601_v11, %v5574_v56 }
 0xcd1   : > { %v5599_v24 = vpop.permute.xlu2 %5598 }
 0xcd2   : > { %v5603_v8 = vsel %vm10020_vm9, %v5602_v43, %v5599_v24 }
 0xcd3   : > { %v5604_v10 = vpack.c.bf16 %v5603_v8, %v5603_v8 }
 0xcd5   : > { %6156 = vmatmul.msk.bf16.vlgmr.msra.gmra.mxu1 %vm10021_vm0, %v5604_v10 }
 0xd52   : > { %v5630_v42 = vpop.f32.mrf.mxu1 }
 0xd53   : > { %v5631_v54 = vadd.f32 %v5630_v42, %v5605_v29 }
 0xd55   : > { %v5659_v39 = vadd.f32 %v5657_v62, %v5631_v54 }
 0xd57   : > { %v5660_v35 = vsel %vm10022_vm3, %v5659_v39, 0.0 }
 0xd58   : > { %5661 = vadd.xlane.f32.xlu0 %v5660_v35 }
 0xd5a   : > { %v5632_v40 = vpop.f32.mrf.mxu1 }
 0xdcb   : > { %v5662_v45 = vpop.xlane.xlu0 %5661 }
 0xdcc   : > { %v5663_v52 = vmul.f32 %v5662_v45, %v10023_v41 }
 0xdce   : > { %v5664_v7 = vsub.f32 %v5659_v39, %v5663_v52 }
 0xdd0   : > { %v5665_v5 = vmul.f32 %v5664_v7, %v5664_v7 }
 0xdd2   : > { %v5666_v32 = vsel %vm10024_vm1, %v5665_v5, 0.0 }
 0xdd3   : > { %5667 = vadd.xlane.f32.xlu1 %v5666_v32 }
 0xe46   : > { %v5668_v59 = vpop.xlane.xlu1 %5667 }
 0xe47   : > { %v5669_v30 = vmul.f32 %v5668_v59, %v10023_v41 }
 0xe49   : > { %v5670_v22 = vadd.f32 1e-06, %v5669_v30 }
 0xe4b   : > { %6791 = vrsqrt.f32 %v5670_v22  ;;  %vm5677_vm15 = vweird.f32 %v5670_v22 }
 0xe51   : > { %v6792_v27 = vpop.eup %6791 }
 0xe52   : > { %v5672_v47 = vmul.f32 %v6792_v27, %v5670_v22  ;;  %vm5678_vm5 = vweird.f32 %v6792_v27 }
 0xe53   : > { %vm5679_vm10 = vmor %vm5677_vm15, %vm5678_vm5 }
 0xe54   : > { %v5673_v46 = vmul.f32 %v6792_v27, %v5672_v47 }
 0xe56   : > { %v5674_v16 = vmul.f32 0.5, %v5673_v46 }
 0xe58   : > { %v5675_v55 = vsub.f32 1.5, %v5674_v16 }
 0xe5a   : > { %v5676_v34 = vmul.f32 %v6792_v27, %v5675_v55 }
 0xe5c   : > { %v5680_v31 = vsel %vm5679_vm10, %v6792_v27, %v5676_v34 }
 0xe5d   : > { %v5681_v23 = vmul.f32 %v5680_v31, %v5664_v7 }
 0xe5f   : > { %v5683_v36 = vmul.f32 %v5682_v49, %v5681_v23 }
 0xe61   : > { %v5685_v21 = vadd.f32 %v5684_v57, %v5683_v36 }
 0xe63   : > { %v5686_v38 = vpack.c.bf16 %v5685_v21, %v5685_v21 }
 0xe65   : > { %6165 = vmatmul.msk.bf16.vlgmr.msra.gmra.mxu2 %vm10025_vm6, %v5686_v38 }
 0xee8   : > { %v5712_v51 = vpop.f32.mrf.mxu2 }
 0xee9   : > { %v5713_v61 = vadd.f32 %v5712_v51, %v5687_v19 }
 0xeeb   : > { %v5716_v20 = vmax.f32 %v5713_v61, 0.0 }
 0xeed   : > { %v5717_v53 = vpack.c.bf16 %v5716_v20, %v5716_v20 }
 0xeef   : > { %6174 = vmatmul.msk.bf16.vlgmr.msra.gmra.mxu3 %vm10026_vm12, %v5717_v53 }
 0xef0   : > { %v5714_v9 = vpop.f32.mrf.mxu2 }
 0xf72   : > { %v5743_v2 = vpop.f32.mrf.mxu3 }
 0xf73   : > { %v5744_v26 = vadd.f32 %v5743_v2, %v5718_v17 }
 0xf75   : > { %v5747_v28 = vadd.f32 %v5744_v26, %v5685_v21 }
 0xf77   : > { %5748 = vst.msk [vmem:[%s592_s3] sm:$0xff] %vm10028_vm13, %v5747_v28 }
 0xf78   : > { %7100 = shalt.err (!%p7097_p13)
}
 0xf79   : > { %6230 = dma.vmem_to_hbm [thread:$0]  (%p7375_p4), %s5763_s7, 128, %s5765_s5, %s5750_s18  }
 0xf7a   : > { %v5745_v58 = vpop.f32.mrf.mxu3 }
 0xf7b PF: > { %s5776_s20 = sand.u32 1, %s7143_s21   ;;  %p10029_p11 = scmp.ge.s32.totalorder %s7155_s24, 2 }
 0xf7c   : > { %s5777_s15 = scalar_lea.sflag [#allocation4], %s5776_s20 }
 0xf7d   : > { %p6262_p0 = pnand %p10029_p11, %p7379_p6 }
 0xf7f   : > { %p6263_p2 = pneg %p6262_p0 }
 0xf81   : > { %7138 = dma.done.wait (%p6263_p2), %s5777_s15, 128  }
 0xf82   : > { %7140 = vsyncadd (%p6263_p2), %s5777_s15, 4294967168  ;;  %p29_p1 = scmp.ge.s32.totalorder %s7349_s19, 4   ;;  %s10030_s21 = smov %s7147_s22 }
 0xf83   : > { %s10031_s22 = smov %s7151_s23  ;;  %s10032_s23 = smov %s7360_s26 }
 0xf84   : > { %s10033_s24 = smov %s7349_s19  ;;  %31 = sbr.rel (!%p29_p1) target bundleno = 17 (0x11), region = 158 }
 0xf89   :  { %5783 = vsyncpa [#allocation3], 1 }
 0xf8a   :  { %5785 = vsyncpa [#allocation3 + $0x1], 1 }
 0xf8b   :  { %5786 = vsyncpa [#allocation6], 1 }
 0xf8c   :  { %5787 = vsyncpa [#allocation9], 1 }
 0xf8d   :  { %5788 = vsyncpa [#allocation12], 1 }
 0xf8e   :  { %5789 = vsyncpa [#allocation15], 1 }
 0xf8f   :  { %5790 = vsyncpa [#allocation4], 1 }
 0xf90   :  { %5792 = vsyncpa [#allocation4 + $0x1], 1 }

// kernel: tpu_custom_call.1
= control target key start
LH: loop header
LB: loop body
LE: loop exit
PB: predicated region body
PF: predicated region fallthrough
CT: control target
= control target key end

     0   :  { %s9770_s0 = inlined_call_operand.hbm [shape: f32[16,8,32], index: 0, kind: input, shape index: {}]   ;;  %s9771_s1 = inlined_call_operand.vmem [shape: f32[16,1,32], index: 1, kind: input, shape index: {}]   ;;  %s9772_s2 = inlined_call_operand.vmem [shape: f32[16,8], index: 2, kind: input, shape index: {}]   ;;  %s9773_s3 = inlined_call_operand.hbm [shape: f32[12,96], index: 3, kind: input, shape index: {}]   ;;  %s9774_s4 = inlined_call_operand.hbm [shape: bf16[32,96], index: 4, kind: input, shape index: {}]   ;;  %s9775_s5 = inlined_call_operand.hbm [shape: bf16[32,32], index: 5, kind: input, shape index: {}]   ;;  %s9776_s6 = inlined_call_operand.hbm [shape: bf16[32,32], index: 6, kind: input, shape index: {}]   ;;  %s9777_s7 = inlined_call_operand.hbm [shape: bf16[32,32], index: 7, kind: input, shape index: {}]   ;;  %s9778_s8 = inlined_call_operand.hbm [shape: bf16[32,96], index: 8, kind: input, shape index: {}]   ;;  %s9779_s9 = inlined_call_operand.vmem [shape: bf16[32,32], index: 9, kind: input, shape index: {}]   ;;  %s9780_s10 = inlined_call_operand.hbm [shape: bf16[32,32], index: 10, kind: input, shape index: {}]   ;;  %s9781_s11 = inlined_call_operand.hbm [shape: bf16[32,32], index: 11, kind: input, shape index: {}]   ;;  %s9782_s12 = inlined_call_operand.hbm [shape: f32[16,32], index: 12, kind: output, shape index: {}]  }
   0x1   :  { %9820 = sst [smem:[#allocation41_spill]] %s9773_s3 }
   0x2   :  { %9821 = sst [smem:[#allocation42_spill]] %s9774_s4 }
   0x3   :  { %9822 = sst [smem:[#allocation43_spill]] %s9775_s5 }
   0x4   :  { %9823 = sst [smem:[#allocation44_spill]] %s9776_s6 }
   0x5   :  { %9824 = sst [smem:[#allocation45_spill]] %s9777_s7 }
   0x6   :  { %9825 = sst [smem:[#allocation46_spill]] %s9778_s8 }
   0x7   :  { %9826 = sst [smem:[#allocation47_spill]] %s9782_s12 }
   0x8   :  { %17 = vsyncpa [#allocation3], 0 }
   0x9   :  { %19 = vsyncpa [#allocation3 + $0x1], 0 }
   0xa   :  { %20 = vsyncpa [#allocation6], 0 }
   0xb   :  { %21 = vsyncpa [#allocation9], 0 }
   0xc   :  { %22 = vsyncpa [#allocation12], 0 }
   0xd   :  { %23 = vsyncpa [#allocation15], 0 }
   0xe   :  { %24 = vsyncpa [#allocation4], 0 }
   0xf   :  { %26 = vsyncpa [#allocation4 + $0x1], 0  ;;  %s7244_s21 = smov 0   ;;  %s7246_s22 = smov 0  }
  0x10   :  { %s7248_s23 = smov 0   ;;  %s7250_s24 = smov 0  }
  0x11 LB: > { %s9827_s3 = sld [smem:[#allocation41_spill]]  ;;  %s7268_s28 = sadd.s32 4294967295, %s7155_s24   ;;  %s7155_s24 = sphi %s7250_s24, %s10033_s24   ;;  %s7151_s23 = sphi %s7248_s23, %s10032_s23   ;;  %s7147_s22 = sphi %s7246_s22, %s10031_s22   ;;  %s7143_s21 = sphi %s7244_s21, %s10030_s21  }
  0x12   : > { %p5933_p0 = scmp.ge.s32.totalorder %s7155_s24, 1  ;;  %p53_p1 = scmp.eq.s32.totalorder %s7268_s28, 0 }
  0x13   : > { %p330_p2 = scmp.lt.s32.totalorder %s7155_s24, 3  ;;  %s7157_s30 = smov [#allocation5]  }
  0x14   : > { %s343_s13 = sshll.u32 %s7157_s30, 4  ;;  %s9830_s5 = sld [smem:[#allocation43_spill]]  ;;  %s344_s13 = int_to_ptr.vmem [resolvable:$true] %s343_s13 }
  0x15   : > { %p7273_p3 = pnand %p5933_p0, %p330_p2  ;;  %s9784_s18 = smov 128  }
  0x16   : > { %s9785_s19 = smov 8   ;;  %s7160_s20 = smov [#allocation8]  }
  0x17   : > { %s341_s27 = sshll.u32 %s9827_s3, 4  ;;  %p6232_p4 = pneg %p7273_p3  ;;  %s342_s27 = int_to_ptr.hbm [resolvable:$true] %s341_s27 }
  0x18   : > { %s371_s25 = sshll.u32 %s7160_s20, 4  ;;  %s9831_s7 = sld [smem:[#allocation45_spill]]  ;;  %s372_s25 = int_to_ptr.vmem [resolvable:$true] %s371_s25 }
  0x19   : > { %p7282_p6 = pnand %p6232_p4, %p53_p1  ;;  %s7161_s15 = smov 64  }
  0x1a   : > { %s369_s17 = sshll.u32 %s9830_s5, 4  ;;  %s7162_s16 = smov 4   ;;  %s370_s17 = int_to_ptr.hbm [resolvable:$true] %s369_s17 }
  0x1b   : > { %6235 = dma.hbm_to_vmem [thread:$0]  (!%p7282_p6), %s342_s27, 256, %s344_s13, [#allocation6], %s9784_s18, %s9784_s18, %s9785_s19  }
  0x1c   : > { %6241 = dma.hbm_to_vmem [thread:$0]  (!%p7282_p6), %s370_s17, 256, %s372_s25, [#allocation9], %s7161_s15, %s7161_s15, %s7162_s16  }
  0x1d   : > { %s428_s27 = sshll.u32 %s9780_s10, 4  ;;  %s7163_s13 = smov [#allocation11]   ;;  %s429_s27 = int_to_ptr.hbm [resolvable:$true] %s428_s27 }
  0x1e   : > { %s397_s3 = sshll.u32 %s9831_s7, 4  ;;  %s399_s20 = sshll.u32 %s7163_s13, 4  ;;  %s398_s3 = int_to_ptr.hbm [resolvable:$true] %s397_s3  ;;  %s400_s20 = int_to_ptr.vmem [resolvable:$true] %s399_s20 }
  0x1f   : > { %6247 = dma.hbm_to_vmem [thread:$0]  (!%p7282_p6), %s398_s3, 256, %s400_s20, [#allocation12], %s7161_s15, %s7161_s15, %s7162_s16  }
  0x20   : > { %s7164_s26 = smov [#allocation14]   ;;  %s9832_s4 = sld [smem:[#allocation42_spill]] }
  0x21   : > { %s430_s30 = sshll.u32 %s7164_s26, 4  ;;  %s9833_s6 = sld [smem:[#allocation44_spill]]  ;;  %s431_s30 = int_to_ptr.vmem [resolvable:$true] %s430_s30 }
  0x22   : > { %6253 = dma.hbm_to_vmem [thread:$0]  (!%p7282_p6), %s429_s27, 256, %s431_s30, [#allocation15], %s7161_s15, %s7161_s15, %s7162_s16  }
  0x23   : > { %s7165_s13 = smov [#allocation7]   ;;  %s7166_s18 = smov [#allocation10]  }
  0x24   : > { %s357_s3 = sshll.u32 %s7165_s13, 4  ;;  %s385_s19 = sshll.u32 %s7166_s18, 4  ;;  %s358_s3 = int_to_ptr.vmem [resolvable:$true] %s357_s3  ;;  %s386_s19 = int_to_ptr.vmem [resolvable:$true] %s385_s19 }
  0x25   : > { %s9834_s8 = sld [smem:[#allocation46_spill]]  ;;  %s442_s5 = sshll.u32 %s9781_s11, 4  ;;  %s443_s5 = int_to_ptr.hbm [resolvable:$true] %s442_s5 }
  0x26   : > { %s355_s17 = sshll.u32 %s9832_s4, 4  ;;  %s7167_s12 = smov [#allocation13]   ;;  %s356_s17 = int_to_ptr.hbm [resolvable:$true] %s355_s17 }
  0x27   : > { %s383_s25 = sshll.u32 %s9833_s6, 4  ;;  %s413_s13 = sshll.u32 %s7167_s12, 4  ;;  %s384_s25 = int_to_ptr.hbm [resolvable:$true] %s383_s25  ;;  %s414_s13 = int_to_ptr.vmem [resolvable:$true] %s413_s13 }
  0x28   : > { %6238 = dma.hbm_to_vmem [thread:$0]  (!%p7282_p6), %s356_s17, 256, %s358_s3, [#allocation6], %s7161_s15, %s7161_s15, %s7162_s16  }
  0x29   : > { %6244 = dma.hbm_to_vmem [thread:$0]  (!%p7282_p6), %s384_s25, 256, %s386_s19, [#allocation9], %s7161_s15, %s7161_s15, %s7162_s16  }
  0x2a   : > { %s7168_s25 = smov [#allocation16]   ;;  %s5932_s18 = sadd.s32 4294967294, %s7155_s24  }
  0x2b   : > { %s411_s26 = sshll.u32 %s9834_s8, 4  ;;  %s444_s3 = sshll.u32 %s7168_s25, 4  ;;  %s412_s26 = int_to_ptr.hbm [resolvable:$true] %s411_s26  ;;  %s445_s3 = int_to_ptr.vmem [resolvable:$true] %s444_s3 }
  0x2c   : > { %6250 = dma.hbm_to_vmem [thread:$0]  (!%p7282_p6), %s412_s26, 256, %s414_s13, [#allocation12], %s7161_s15, %s7161_s15, %s7162_s16  }
  0x2d   : > { %6256 = dma.hbm_to_vmem [thread:$0]  (!%p7282_p6), %s443_s5, 256, %s445_s3, [#allocation15], %s7161_s15, %s7161_s15, %s7162_s16  }
  0x2e   : > { %s7349_s19 = sadd.s32 1, %s7155_s24   ;;  %s39_s27 = sadd.s32 1, %s7151_s23 }
  0x2f   : > { %s36_s20 = ssub.s32 %s7155_s24, %s7349_s19  ;;  %p46_p8 = scmp.ne.s32.totalorder %s7151_s23, %s7147_s22 }
  0x30   : > { %p37_p7 = scmp.eq.s32.totalorder %s36_s20, 0  ;;  %p47_p9 = scmp.eq.s32.totalorder %s7155_s24, 0 }
  0x31   : > { %p52_p10 = scmp.ne.s32.totalorder %s7147_s22, %s7143_s21  ;;  %p317_p13 = scmp.eq.s32.totalorder %s7268_s28, 1 }
  0x32   : > { %s7360_s26 = scalar_select %p37_p7, %s7151_s23, %s39_s27  }
  0x33   : > { %p7362_p11 = por %p47_p9, %p46_p8  ;;  %p7368_p12 = por %p53_p1, %p52_p10 }
  0x34   : > { %p323_p0 = scmp.eq.s32.totalorder %s5932_s18, 1  ;;  %p6273_p2 = scmp.lt.s32.totalorder %s7155_s24, 2 }
  0x35   : > { %s458_s16 = sand.u32 1, %s7151_s23   ;;  %p7375_p4 = por %p317_p13, %p46_p8 }
  0x36   : > { %p7379_p6 = por %p323_p0, %p52_p10  ;;  %s5943_s5 = sshll.u32 %s458_s16, 6 }
  0x37   : > { %s6179_s12 = sshll.u32 %s7155_s24, 6  ;;  %s462_s20 = scalar_lea.vmem [#allocation2], %s5943_s5 }
  0x38   : > { %s467_s3 = scalar_lea.hbm %s9770_s0, %s6179_s12  ;;  %s470_s27 = sshll.u32 %s462_s20, 4  ;;  %s471_s27 = int_to_ptr.vmem [resolvable:$true] %s470_s27 }
  0x39   : > { %s468_s4 = sshll.u32 %s467_s3, 4  ;;  %p7389_p7 = pnand %p6273_p2, %p7362_p11  ;;  %s469_s4 = int_to_ptr.hbm [resolvable:$true] %s468_s4 }
  0x3a   : > { %s459_s6 = scalar_lea.sflag [#allocation3], %s458_s16  ;;  %s7043_s7 = sshra.s32 %s469_s4, 4  ;;  %s7044_s7 = int_to_ptr.hbm [resolvable:$true] %s7043_s7 }
  0x3b   : > { %s7045_s8 = scalar_lea.hbm %s7044_s7, 64  ;;  %p7047_p9 = pneg %p7389_p7 }
  0x3c   : > { %p7046_p8 = scmp.ne.s32.totalorder %s7044_s7, %s7045_s8  ;;  %s7050_s13 = scalar_lea.hbm %s9770_s0, 128 }
  0x3d   : > { %p7051_p11 = scmp.lt.s32.totalorder %s7044_s7, %s9770_s0  ;;  %p7052_p0 = scmp.lt.s32.totalorder %s7050_s13, %s7045_s8 }
  0x3e   : > { %p7048_p10 = pnand %p7047_p9, %p7046_p8 }
  0x3f   : > { %p7053_p2 = por %p7052_p0, %p7051_p11 }
  0x40   : > { %p7049_p13 = pneg %p7048_p10 }
  0x42   : > { %p7054_p5 = pnand %p7053_p2, %p7049_p13 }
  0x44   : > { %7057 = shalt.err (!%p7054_p5)
}
  0x45   : > { %s9840_s16 = smov 8   ;;  %s9841_s3 = smov 128  }
  0x46   : > { %6260 = dma.hbm_to_vmem [thread:$0]  (!%p7389_p7), %s469_s4, 1024, %s471_s27, %s459_s6, %s9841_s3, %s9841_s3, %s9840_s16  }
  0x47   : > { %497 = sbr.rel (%p7273_p3) target bundleno = 3963 (0xf7b), region = 68 }
  0x4c   : > { %s7409_s20 = sand.u32 1, %s7147_s22  }
  0x4d   : > { %s5947_s7 = sshll.u32 %s7409_s20, 6  ;;  %s500_s8 = scalar_lea.sflag [#allocation3], %s7409_s20 }
  0x4e   : > { %s7413_s5 = scalar_lea.vmem [#allocation2], %s5947_s7 }
  0x4f   : > { %7118 = dma.done.wait (%p7368_p12), %s500_s8, 1024  }
  0x50   : > { %7120 = vsyncadd (%p7368_p12), %s500_s8, 4294966272 }
  0x51   : > { %7122 = dma.done.wait (%p53_p1), [#allocation6], 512  }
  0x52   : > { %7124 = vsyncadd (%p53_p1), [#allocation6], 4294966784 }
  0x53   : > { %7126 = dma.done.wait (%p53_p1), [#allocation9], 512  }
  0x54   : > { %7128 = vsyncadd (%p53_p1), [#allocation9], 4294966784 }
  0x55   : > { %7130 = dma.done.wait (%p53_p1), [#allocation12], 512  }
  0x56   : > { %7132 = vsyncadd (%p53_p1), [#allocation12], 4294966784 }
  0x57   : > { %7134 = dma.done.wait (%p53_p1), [#allocation15], 512  }
  0x58   : > { %7136 = vsyncadd (%p53_p1), [#allocation15], 4294966784  ;;  %v6181_v0 = vld [vmem:[#allocation7 + $0x8] sm:$0xff]  ;;  %v6180_v1 = vld [vmem:[#allocation7] sm:$0xff]  ;;  %vm9787_vm0 = vcmask 261120   ;;  %s7169_s4 = smov 96  }
  0x59   : > { %698 = vmatpush.bf16.msra.mxu0 %v6181_v0  ;;  %v604_v2 = vld [vmem:[%s7413_s5] sm:$0xff]  ;;  %v605_v3 = vld [vmem:[%s7413_s5 + $0x8] sm:$0xff]  ;;  %v606_v5 = vld [vmem:[%s7413_s5 + $0x10] sm:$0xff]  ;;  %s7170_s6 = smov 104   ;;  %s7171_s29 = smov 112   ;;  %vm838_vm1 = vcmask 64512  }
  0x5a   : > { %v662_v4 = vpack.c.bf16 %v605_v3, %v604_v2  ;;  %v607_v6 = vld [vmem:[%s7413_s5 + $0x18] sm:$0xff]  ;;  %v608_v8 = vld [vmem:[%s7413_s5 + $0x20] sm:$0xff]  ;;  %v609_v9 = vld [vmem:[%s7413_s5 + $0x28] sm:$0xff]  ;;  %s7172_s15 = smov 120   ;;  %s7173_s27 = smov 64   ;;  %vm9788_vm7 = vcmask 1043456  }
  0x5b   : > { %v663_v7 = vpack.c.bf16 %v607_v6, %v606_v5  ;;  %v664_v10 = vpack.c.bf16 %v609_v9, %v608_v8  ;;  %v610_v11 = vld [vmem:[%s7413_s5 + $0x30] sm:$0xff]  ;;  %v611_v12 = vld [vmem:[%s7413_s5 + $0x38] sm:$0xff]  ;;  %v620_v14 = vld [vmem:[#allocation5] sm:$0xff]  ;;  %p599_p1 = scmp.lt.s32.totalorder %s7268_s28, 1  ;;  %s7175_s16 = smov 8  }
  0x5c   : > { %v665_v13 = vpack.c.bf16 %v611_v12, %v610_v11  ;;  %v666_v15 = vperm.slane %v620_v14, 0  ;;  %s7176_s3 = smov 16   ;;  %s7177_s7 = smov 24  }
  0x5d   : > { %699 = vmatpush.bf16.msra.mxu0 %v6180_v1  ;;  %s600_s18 = scalar_select %p599_p1, %s7268_s28, 1 }
  0x5e   : > { %s8745_s8 = sshll.u32 %s7268_s28, 3 }
  0x5f   : > { %s5958_s12 = sshll.u32 %s600_s18, 3  ;;  %p595_p3 = scmp.lt.s32.totalorder %s8745_s8, 15 }
  0x60   : > { %5967 = vmatmul.msk.bf16.vlgmr.msra.gmra.mxu0 %vm9787_vm0, %v662_v4  ;;  %s602_s14 = scalar_lea.vmem %s9772_s2, %s5958_s12  ;;  %s5750_s18 = scalar_lea.sflag [#allocation4], %s7409_s20 }
  0x70   : > { %5968 = vmatmul.msk.bf16.gmra.mxu0 %vm9787_vm0, %v663_v7 }
  0x80   : > { %5969 = vmatmul.msk.bf16.gmra.mxu0 %vm9787_vm0, %v664_v10 }
  0x90   : > { %5970 = vmatmul.msk.bf16.gmra.mxu0 %vm9787_vm0, %v665_v13 }
  0xdd   : > { %v701_v16 = vpop.f32.mrf.mxu0 }
  0xde   : > { %v702_v17 = vadd.f32 %v701_v16, %v666_v15 }
  0xe0   : > { %v7447_v18 = vpack.c.bf16 %v702_v17, %v702_v17 }
  0xe2   : > { %v834_v19 = vunpack.c.l.b16 %v7447_v18 }
  0xe4   : > { %v7450_v20 = vpack.c.b16 %v834_v19, %v834_v19 }
  0xe5   : > { %v703_v21 = vpop.f32.mrf.mxu0 }
  0xe6   : > { %v704_v22 = vadd.f32 %v703_v21, %v666_v15  ;;  %836 = vrot.lane.b32.xlu0 %v7450_v20, %s7169_s4 }
  0xe8   : > { %v6347_v23 = vpack.i.bf16 %v704_v22, %v702_v17  ;;  %v7454_v24 = vpack.c.bf16 %v704_v22, %v704_v22 }
  0xea   : > { %6348 = vrot.lane.b32.xlu1 %v6347_v23, %s7170_s6  ;;  %6343 = vrot.lane.b32.xlu2 %v6347_v23, %s7171_s29  ;;  %v859_v25 = vunpack.c.l.b16 %v7454_v24 }
  0xec   : > { %v7460_v28 = vpack.c.b16 %v859_v25, %v859_v25 }
  0xed   : > { %v706_v26 = vpop.f32.mrf.mxu0 }
  0xee   : > { %v707_v27 = vadd.f32 %v706_v26, %v666_v15  ;;  %6338 = vrot.lane.b32.xlu0 %v6347_v23, %s7172_s15 }
  0xf0   : > { %v7462_v29 = vpack.c.bf16 %v707_v27, %v707_v27 }
  0xf2   : > { %861 = vrot.lane.b32.xlu1 %v7460_v28, %s7169_s4  ;;  %v883_v30 = vunpack.c.l.b16 %v7462_v29 }
  0xf4   : > { %v7467_v33 = vpack.c.b16 %v883_v30, %v883_v30 }
  0xf5   : > { %v708_v31 = vpop.f32.mrf.mxu0 }
  0xf6   : > { %v709_v32 = vadd.f32 %v708_v31, %v666_v15 }
  0xf8   : > { %v6352_v34 = vpack.i.bf16 %v709_v32, %v707_v27  ;;  %v7474_v38 = vpack.c.bf16 %v709_v32, %v709_v32 }
  0xfa   : > { %885 = vrot.lane.b32.xlu1 %v7467_v33, %s7169_s4  ;;  %6353 = vrot.lane.b32.xlu2 %v6352_v34, %s7172_s15  ;;  %v907_v40 = vunpack.c.l.b16 %v7474_v38 }
  0xfc   : > { %v7482_v44 = vpack.c.b16 %v907_v40, %v907_v40 }
  0xfd   : > { %v711_v35 = vpop.f32.mrf.mxu0 }
  0xfe   : > { %v712_v36 = vadd.f32 %v711_v35, %v666_v15 }
 0x100   : > { %v7472_v37 = vpack.c.bf16 %v712_v36, %v712_v36 }
 0x102   : > { %6363 = vrot.lane.b32.xlu1 %v6352_v34, %s7170_s6  ;;  %6358 = vrot.lane.b32.xlu2 %v6352_v34, %s7171_s29  ;;  %v931_v39 = vunpack.c.l.b16 %v7472_v37 }
 0x104   : > { %v7480_v43 = vpack.c.b16 %v931_v39, %v931_v39 }
 0x105   : > { %v713_v41 = vpop.f32.mrf.mxu0 }
 0x106   : > { %v714_v42 = vadd.f32 %v713_v41, %v666_v15 }
 0x108   : > { %v6367_v45 = vpack.i.bf16 %v714_v42, %v712_v36  ;;  %v7484_v46 = vpack.c.bf16 %v714_v42, %v714_v42 }
 0x10a   : > { %933 = vrot.lane.b32.xlu1 %v7480_v43, %s7169_s4  ;;  %909 = vrot.lane.b32.xlu2 %v7482_v44, %s7169_s4  ;;  %v955_v47 = vunpack.c.l.b16 %v7484_v46 }
 0x10b   : > { %6368 = vrot.lane.b32.xlu0 %v6367_v45, %s7172_s15 }
 0x10c   : > { %v7492_v50 = vpack.c.b16 %v955_v47, %v955_v47 }
 0x10d   : > { %v716_v48 = vpop.f32.mrf.mxu0 }
 0x10e   : > { %v717_v49 = vadd.f32 %v716_v48, %v666_v15 }
 0x110   : > { %v7494_v51 = vpack.c.bf16 %v717_v49, %v717_v49 }
 0x112   : > { %6373 = vrot.lane.b32.xlu1 %v6367_v45, %s7171_s29  ;;  %957 = vrot.lane.b32.xlu2 %v7492_v50, %s7169_s4  ;;  %v979_v52 = vunpack.c.l.b16 %v7494_v51 }
 0x114   : > { %v7500_v55 = vpack.c.b16 %v979_v52, %v979_v52 }
 0x115   : > { %v718_v53 = vpop.f32.mrf.mxu0 }
 0x116   : > { %v719_v54 = vadd.f32 %v718_v53, %v666_v15 }
 0x118   : > { %v7502_v56 = vpack.i.bf16 %v719_v54, %v717_v49  ;;  %v7504_v57 = vpack.c.bf16 %v719_v54, %v719_v54 }
 0x11a   : > { %981 = vrot.lane.b32.xlu1 %v7500_v55, %s7169_s4  ;;  %6378 = vrot.lane.b32.xlu2 %v6367_v45, %s7170_s6  ;;  %v1003_v58 = vunpack.c.l.b16 %v7504_v57 }
 0x11b   : > { %6383 = vrot.lane.b32.xlu0 %v7502_v56, %s7172_s15 }
 0x11c   : > { %v7512_v59 = vpack.c.b16 %v1003_v58, %v1003_v58 }
 0x122   : > { %6388 = vrot.lane.b32.xlu1 %v7502_v56, %s7171_s29 }
 0x123   : > { %1005 = vrot.lane.b32.xlu0 %v7512_v59, %s7169_s4 }
 0x144   : > { %v6344_v60 = vpop.permute.xlu2 %6343 }
 0x145   : > { %v6345_v61 = vunpack.i.l.bf16 %v6344_v60  ;;  %v6346_v16 = vunpack.i.h.bf16 %v6344_v60 }
 0x147   : > { %v7518_v62 = vpack.c.bf16 %v6345_v61, %v6345_v61  ;;  %v7552_v31 = vpack.c.bf16 %v6346_v16, %v6346_v16 }
 0x149   : > { %v1219_v63 = vunpack.c.l.b16 %v7518_v62  ;;  %v1243_v39 = vunpack.c.l.b16 %v7552_v31 }
 0x14b   : > { %v7521_v0 = vpack.c.b16 %v1219_v63, %v1219_v63  ;;  %v7572_v49 = vpack.c.b16 %v1243_v39, %v1243_v39 }
 0x14d   : > { %1221 = vrot.lane.b32.xlu2 %v7521_v0, %s7169_s4 }
 0x154   : > { %v6354_v1 = vpop.permute.xlu2 %6353 }
 0x155   : > { %v6355_v2 = vunpack.i.l.bf16 %v6354_v1  ;;  %v6356_v36 = vunpack.i.h.bf16 %v6354_v1 }
 0x157   : > { %v7525_v3 = vpack.c.bf16 %v6355_v2, %v6355_v2  ;;  %v7570_v48 = vpack.c.bf16 %v6356_v36, %v6356_v36 }
 0x158   : > { %v837_v4 = vpop.permute.xlu0 %836 }
 0x159   : > { %v843_v5 = vsel %vm838_vm1, %v837_v4, 0  ;;  %v1075_v6 = vunpack.c.l.b16 %v7525_v3 }
 0x15a   : > { %852 = vmatpush.bf16.xpose.msra.mxu1 %v843_v5 }
 0x15b   : > { %v7529_v7 = vpack.c.b16 %v1075_v6, %v1075_v6 }
 0x15c   : > { %v7531_v8 = vpop.permute.xlu1 %6348  ;;  %v6359_v9 = vpop.permute.xlu2 %6358 }
 0x15d   : > { %v6361_v10 = vunpack.i.h.bf16 %v6359_v9  ;;  %1077 = vrot.lane.b32.xlu2 %v7529_v7, %s7169_s4  ;;  %v6360_v22 = vunpack.i.l.bf16 %v6359_v9 }
 0x15f   : > { %v7535_v11 = vpack.c.bf16 %v6361_v10, %v6361_v10  ;;  %v7558_v35 = vpack.c.bf16 %v6360_v22, %v6360_v22 }
 0x160   : > { %v6339_v12 = vpop.permute.xlu0 %6338 }
 0x161   : > { %v6341_v13 = vunpack.i.h.bf16 %v6339_v12  ;;  %v6340_v14 = vunpack.i.l.bf16 %v6339_v12  ;;  %5971 = vmatmul.msk.bf16.vlgmr.msra.gmra.mxu1 %vm838_vm1, %v7447_v18  ;;  %v1291_v15 = vunpack.c.l.b16 %v7535_v11  ;;  %v1267_v42 = vunpack.c.l.b16 %v7558_v35 }
 0x162   : > { %v6351_v12 = vunpack.i.h.bf16 %v7531_v8 }
 0x163   : > { %v7540_v17 = vpack.c.bf16 %v6341_v13, %v6341_v13  ;;  %v7542_v19 = vpack.c.bf16 %v6340_v14, %v6340_v14  ;;  %v7544_v21 = vpack.c.b16 %v1291_v15, %v1291_v15  ;;  %v7574_v52 = vpack.c.b16 %v1267_v42, %v1267_v42 }
 0x164   : > { %v862_v23 = vpop.permute.xlu1 %861  ;;  %v910_v25 = vpop.permute.xlu2 %909 }
 0x165   : > { %1293 = vrot.lane.b32.xlu2 %v7544_v21, %s7169_s4  ;;  %v867_v26 = vsel %vm838_vm1, %v862_v23, 0  ;;  %v915_v27 = vsel %vm838_vm1, %v910_v25, 0  ;;  %v1051_v18 = vunpack.c.l.b16 %v7540_v17  ;;  %v1027_v30 = vunpack.c.l.b16 %v7542_v19 }
 0x166   : > { %876 = vmatpush.bf16.xpose.msra.mxu2 %v867_v26  ;;  %924 = vmatpush.bf16.xpose.msrb.mxu1 %v915_v27 }
 0x167   : > { %v7554_v32 = vpack.c.b16 %v1051_v18, %v1051_v18  ;;  %v7556_v34 = vpack.c.b16 %v1027_v30, %v1027_v30  ;;  %v6350_v18 = vunpack.i.l.bf16 %v7531_v8 }
 0x169   : > { %1053 = vrot.lane.b32.xlu0 %v7554_v32, %s7169_s4  ;;  %1029 = vrot.lane.b32.xlu1 %v7556_v34, %s7169_s4  ;;  %v7630_v42 = vpack.c.bf16 %v6350_v18, %v6350_v18 }
 0x16c   : > { %v886_v40 = vpop.permute.xlu1 %885  ;;  %v958_v41 = vpop.permute.xlu2 %957 }
 0x16d   : > { %5972 = vmatmul.msk.bf16.vlgmr.msra.gmra.mxu2 %vm838_vm1, %v7454_v24  ;;  %v891_v45 = vsel %vm838_vm1, %v886_v40, 0  ;;  %v963_v47 = vsel %vm838_vm1, %v958_v41, 0  ;;  %v1099_v24 = vunpack.c.l.b16 %v7570_v48 }
 0x16e   : > { %900 = vmatpush.bf16.xpose.msra.mxu3 %v891_v45 }
 0x16f   : > { %v7585_v54 = vpack.c.b16 %v1099_v24, %v1099_v24 }
 0x171   : > { %5974 = vmatmul.msk.bf16.vlgmr.msrb.gmra.mxu1 %vm838_vm1, %v7474_v38  ;;  %1245 = vrot.lane.b32.xlu0 %v7572_v49, %s7169_s4 }
 0x172   : > { %1269 = vrot.lane.b32.xlu1 %v7574_v52, %s7169_s4 }
 0x174   : > { %v6364_v53 = vpop.permute.xlu1 %6363  ;;  %v6379_v26 = vpop.permute.xlu2 %6378 }
 0x175   : > { %5973 = vmatmul.msk.bf16.vlgmr.msra.gmra.mxu3 %vm838_vm1, %v7462_v29  ;;  %v6380_v40 = vunpack.i.l.bf16 %v6379_v26 }
 0x176   : > { %972 = vmatpush.bf16.xpose.msrb.mxu3 %v963_v47 }
 0x179   : > { %1101 = vrot.lane.b32.xlu0 %v7585_v54, %s7169_s4 }
 0x17c   : > { %v934_v58 = vpop.permute.xlu1 %933 }
 0x17d   : > { %v6369_v60 = vpop.permute.xlu0 %6368  ;;  %v939_v38 = vsel %vm838_vm1, %v934_v58, 0  ;;  %v7634_v58 = vpack.c.bf16 %v6380_v40, %v6380_v40 }
 0x17e   : > { %v6370_v61 = vunpack.i.l.bf16 %v6369_v60  ;;  %948 = vmatpush.bf16.xpose.msrb.mxu2 %v939_v38  ;;  %v6371_v6 = vunpack.i.h.bf16 %v6369_v60  ;;  %v6366_v38 = vunpack.i.h.bf16 %v6364_v53 }
 0x180   : > { %v7590_v63 = vpack.c.bf16 %v6370_v61, %v6370_v61  ;;  %v7608_v15 = vpack.c.bf16 %v6371_v6, %v6371_v6  ;;  %v1411_v61 = vunpack.c.l.b16 %v7630_v42 }
 0x182   : > { %v1123_v1 = vunpack.c.l.b16 %v7590_v63  ;;  %v1147_v30 = vunpack.c.l.b16 %v7608_v15 }
 0x184   : > { %v6374_v2 = vpop.permute.xlu1 %6373  ;;  %v7593_v4 = vpack.c.b16 %v1123_v1, %v1123_v1  ;;  %v1148_v45 = vpack.c.b16 %v1147_v30, %v1147_v30  ;;  %v6365_v1 = vunpack.i.l.bf16 %v6364_v53 }
 0x185   : > { %v6376_v5 = vunpack.i.h.bf16 %v6374_v2  ;;  %v6375_v29 = vunpack.i.l.bf16 %v6374_v2  ;;  %5975 = vmatmul.msk.bf16.vlgmr.msrb.gmra.mxu2 %vm838_vm1, %v7472_v37  ;;  %5976 = vmatmul.msk.bf16.vlgmr.msrb.gmra.mxu3 %vm838_vm1, %v7484_v46  ;;  %v7614_v46 = vpack.c.bf16 %v6351_v12, %v6351_v12  ;;  %v1507_v2 = vunpack.c.l.b16 %v7634_v58 }
 0x186   : > { %1125 = vrot.lane.b32.xlu2 %v7593_v4, %s7169_s4  ;;  %v6381_v12 = vunpack.i.h.bf16 %v6379_v26 }
 0x187   : > { %v7601_v9 = vpack.c.bf16 %v6376_v5, %v6376_v5  ;;  %v7603_v10 = vpack.c.bf16 %v6375_v29, %v6375_v29  ;;  %v1435_v39 = vunpack.c.l.b16 %v7614_v46  ;;  %v7645_v5 = vpack.c.bf16 %v6366_v38, %v6366_v38 }
 0x188   : > { %v7647_v29 = vpack.c.b16 %v1411_v61, %v1411_v61  ;;  %v7653_v6 = vpack.c.b16 %v1507_v2, %v1507_v2 }
 0x189   : > { %v1315_v13 = vunpack.c.l.b16 %v7603_v10  ;;  %v1339_v14 = vunpack.c.l.b16 %v7601_v9  ;;  %v1436_v24 = vpack.c.b16 %v1435_v39, %v1435_v39  ;;  %v1483_v53 = vunpack.c.l.b16 %v7645_v5 }
 0x18a   : > { %9842 = vst [vmem:[#allocation24_spill] sm:$0xff] %v7653_v6 }
 0x18b   : > { %v7610_v37 = vpack.c.b16 %v1315_v13, %v1315_v13  ;;  %v7612_v16 = vpack.c.b16 %v1339_v14, %v1339_v14  ;;  %v7663_v14 = vpack.c.b16 %v1483_v53, %v1483_v53 }
 0x18c   : > { %v982_v22 = vpop.permute.xlu1 %981 }
 0x18d   : > { %v987_v23 = vsel %vm838_vm1, %v982_v22, 0  ;;  %v7617_v25 = vpop.permute.xlu0 %6383  ;;  %1317 = vrot.lane.b32.xlu0 %v7610_v37, %s7169_s4  ;;  %1341 = vrot.lane.b32.xlu1 %v7612_v16, %s7169_s4  ;;  %v7665_v22 = vpack.c.bf16 %v6381_v12, %v6381_v12 }
 0x18e   : > { %v6385_v27 = vunpack.i.l.bf16 %v7617_v25  ;;  %996 = vmatpush.bf16.xpose.msra.mxu1 %v987_v23 }
 0x190   : > { %v7626_v36 = vpack.c.bf16 %v6385_v27, %v6385_v27 }
 0x192   : > { %v1171_v41 = vunpack.c.l.b16 %v7626_v36 }
 0x194   : > { %v7632_v47 = vpack.c.b16 %v1171_v41, %v1171_v41 }
 0x195   : > { %v1006_v60 = vpop.permute.xlu0 %1005  ;;  %5977 = vmatmul.msk.bf16.vlgmr.msra.gmra.mxu1 %vm838_vm1, %v7494_v51  ;;  %1149 = vrot.lane.b32.xlu0 %v1148_v45, %s7169_s4  ;;  %v7649_v51 = vpack.c.bf16 %v6365_v1, %v6365_v1 }
 0x196   : > { %v1011_v8 = vsel %vm838_vm1, %v1006_v60, 0  ;;  %1173 = vrot.lane.b32.xlu2 %v7632_v47, %s7169_s4  ;;  %1437 = vrot.lane.b32.xlu1 %v1436_v24, %s7169_s4 }
 0x197   : > { %1020 = vmatpush.bf16.xpose.msra.mxu2 %v1011_v8  ;;  %v1459_v13 = vunpack.c.l.b16 %v7649_v51 }
 0x199   : > { %v1460_v23 = vpack.c.b16 %v1459_v13, %v1459_v13 }
 0x19d   : > { %1413 = vrot.lane.b32.xlu0 %v7647_v29, %s7169_s4 }
 0x19e   : > { %5978 = vmatmul.msk.bf16.vlgmr.msra.gmra.mxu2 %vm838_vm1, %v7504_v57  ;;  %6393 = vrot.lane.b32.xlu2 %v7502_v56, %s7170_s6  ;;  %v1531_v56 = vunpack.c.l.b16 %v7665_v22 }
 0x19f   : > { %1509 = vrot.lane.b32.xlu1 %v7653_v6, %s7169_s4 }
 0x1a0   : > { %v7673_v57 = vpack.c.b16 %v1531_v56, %v1531_v56 }
 0x1a2   : > { %9843 = vst [vmem:[#allocation25_spill] sm:$0xff] %v7673_v57 }
 0x1a5   : > { %1485 = vrot.lane.b32.xlu0 %v7663_v14, %s7169_s4 }
 0x1a6   : > { %1461 = vrot.lane.b32.xlu2 %v1460_v23, %s7169_s4 }
 0x1a7   : > { %2074 = vrot.lane.b32.xlu1 %v7450_v20, %s7173_s27  ;;  %v1222_v26 = vpop.permute.xlu2 %1221 }
 0x1ad   : > { %2117 = vrot.lane.b32.xlu0 %v7467_v33, %s7173_s27  ;;  %v6389_v33 = vpop.permute.xlu1 %6388 }
 0x1ae   : > { %1533 = vrot.lane.b32.xlu2 %v7673_v57, %s7169_s4 }
 0x1af   : > { %2180 = vrot.lane.b32.xlu1 %v7492_v50, %s7173_s27  ;;  %v6390_v50 = vunpack.i.l.bf16 %v6389_v33 }
 0x1b5   : > { %2138 = vrot.lane.b32.xlu0 %v7482_v44, %s7173_s27 }
 0x1b6   : > { %2096 = vrot.lane.b32.xlu2 %v7460_v28, %s7173_s27  ;;  %v7695_v28 = vpack.c.bf16 %v6390_v50, %v6390_v50 }
 0x1b7   : > { %2243 = vrot.lane.b32.xlu1 %v7556_v34, %s7173_s27  ;;  %v1078_v20 = vpop.permute.xlu2 %1077 }
 0x1b8   : > { %v1083_v27 = vsel %vm838_vm1, %v1078_v20, 0  ;;  %v1363_v44 = vunpack.c.l.b16 %v7695_v28 }
 0x1b9   : > { %1092 = vmatpush.bf16.xpose.msrb.mxu2 %v1083_v27 }
 0x1bd   : > { %2222 = vrot.lane.b32.xlu0 %v7512_v59, %s7173_s27  ;;  %v6391_v59 = vunpack.i.h.bf16 %v6389_v33 }
 0x1be   : > { %2159 = vrot.lane.b32.xlu2 %v7480_v43, %s7173_s27  ;;  %v7704_v43 = vpack.c.b16 %v1363_v44, %v1363_v44 }
 0x1bf   : > { %2348 = vrot.lane.b32.xlu1 %v1148_v45, %s7173_s27  ;;  %v1227_v45 = vsel %vm838_vm1, %v1222_v26, 0 }
 0x1c0   : > { %5981 = vmatmul.msk.bf16.vlgmr.msrb.gmra.mxu2 %vm838_vm1, %v7525_v3  ;;  %v7712_v3 = vpack.c.bf16 %v6391_v59, %v6391_v59 }
 0x1c2   : > { %v1387_v34 = vunpack.c.l.b16 %v7712_v3 }
 0x1c4   : > { %v1388_v39 = vpack.c.b16 %v1387_v34, %v1387_v34  ;;  %v7777_v34 = vld [vmem:[%s602_s14] sm:$0xff]  ;;  %s10027_s14 = sld [smem:[#allocation47_spill]] }
 0x1c5   : > { %2306 = vrot.lane.b32.xlu0 %v7585_v54, %s7173_s27  ;;  %9845 = vst [vmem:[#allocation27_spill] sm:$0xff] %v7777_v34  ;;  %vm9786_vm2 = vcmp.gt.f32.partialorder %v7777_v34, 0.0 }
 0x1c6   : > { %2201 = vrot.lane.b32.xlu2 %v7500_v55, %s7173_s27  ;;  %v6386_v55 = vunpack.i.h.bf16 %v7617_v25 }
 0x1c7   : > { %2411 = vrot.lane.b32.xlu1 %v7521_v0, %s7173_s27  ;;  %v7718_v0 = vpop.permute.xlu2 %1293 }
 0x1cd   : > { %1365 = vrot.lane.b32.xlu0 %v7704_v43, %s7169_s4 }
 0x1ce   : > { %2264 = vrot.lane.b32.xlu2 %v7554_v32, %s7173_s27  ;;  %v7721_v32 = vpack.c.bf16 %v6386_v55, %v6386_v55 }
 0x1cf   : > { %2516 = vrot.lane.b32.xlu1 %v7612_v16, %s7173_s27 }
 0x1d0   : > { %v1195_v40 = vunpack.c.l.b16 %v7721_v32 }
 0x1d6   : > { %2285 = vrot.lane.b32.xlu2 %v7529_v7, %s7173_s27 }
 0x1d7   : > { %2600 = vrot.lane.b32.xlu1 %v1436_v24, %s7173_s27 }
 0x1db   : > { %v1054_v54 = vpop.permute.xlu0 %1053  ;;  %v1030_v18 = vpop.permute.xlu1 %1029 }
 0x1dc   : > { %v1059_v16 = vsel %vm838_vm1, %v1054_v54, 0  ;;  %v1035_v30 = vsel %vm838_vm1, %v1030_v18, 0 }
 0x1dd   : > { %1068 = vmatpush.bf16.xpose.msrb.mxu1 %v1059_v16  ;;  %1044 = vmatpush.bf16.xpose.msra.mxu3 %v1035_v30 }
 0x1de   : > { %2474 = vrot.lane.b32.xlu2 %v7544_v21, %s7173_s27  ;;  %v7727_v7 = vpop.f32.mrf.mxu1  ;;  %v1196_v21 = vpack.c.b16 %v1195_v40, %v1195_v40  ;;  %v7174_v40 = vmov 0  }
 0x1df   : > { %1389 = vrot.lane.b32.xlu1 %v1388_v39, %s7169_s4 }
 0x1e0   : > { %v1126_v25 = vpop.permute.xlu2 %1125 }
 0x1e1   : > { %v1131_v41 = vsel %vm838_vm1, %v1126_v25, 0 }
 0x1e2   : > { %1140 = vmatpush.bf16.xpose.msrb.mxu0 %v1131_v41  ;;  %v1634_v41 = vsel %vm9786_vm2, 1, %v7174_v40 }
 0x1e3   : > { %v1246_v24 = vpop.permute.xlu0 %1245 }
 0x1e4   : > { %5979 = vmatmul.msk.bf16.vlgmr.msra.gmra.mxu3 %vm838_vm1, %v7542_v19  ;;  %5980 = vmatmul.msk.bf16.vlgmr.msrb.gmra.mxu1 %vm838_vm1, %v7540_v17  ;;  %v1270_v61 = vpop.permute.xlu1 %1269 }
 0x1e5   : > { %v1275_v53 = vsel %vm838_vm1, %v1270_v61, 0 }
 0x1e6   : > { %2390 = vrot.lane.b32.xlu2 %v1196_v21, %s7173_s27  ;;  %v856_v60 = vpop.f32.mrf.mxu1 }
 0x1e7   : > { %2621 = vrot.lane.b32.xlu1 %v1460_v23, %s7173_s27  ;;  %v626_v60 = vrot.slane %v7777_v34, 3 }
 0x1e9   : > { %5983 = vmatmul.msk.bf16.vlgmr.msrb.gmra.mxu0 %vm838_vm1, %v7590_v63  ;;  %vm7797_vm3 = vcmp.gt.f32.partialorder %v626_v60, 0.0 }
 0x1ea   : > { %1236 = vmatpush.bf16.xpose.msra.mxu0 %v1227_v45  ;;  %v1251_v45 = vsel %vm838_vm1, %v1246_v24, 0 }
 0x1eb   : > { %v1102_v8 = vpop.permute.xlu0 %1101 }
 0x1ec   : > { %v1107_v38 = vsel %vm838_vm1, %v1102_v8, 0  ;;  %v1642_v8 = vperm.slane %v1634_v41, 0  ;;  %v9856_v41 = vmov 0 }
 0x1ed   : > { %1116 = vmatpush.bf16.xpose.msrb.mxu3 %v1107_v38 }
 0x1ee   : > { %2558 = vrot.lane.b32.xlu2 %v1388_v39, %s7173_s27  ;;  %v7743_v19 = vpop.f32.mrf.mxu1  ;;  %vm7803_vm4 = vcmp.eq.s32.totalorder %v1642_v8, 1 }
 0x1f0   : > { %v1174_v17 = vpop.permute.xlu2 %1173  ;;  %v7745_v1 = vpop.f32.mrf.mxu2 }
 0x1f1   : > { %v1179_v2 = vsel %vm838_vm1, %v1174_v17, 0 }
 0x1f2   : > { %1188 = vmatpush.bf16.xpose.msra.mxu2 %v1179_v2 }
 0x1f4   : > { %5982 = vmatmul.msk.bf16.vlgmr.msrb.gmra.mxu3 %vm838_vm1, %v7570_v48 }
 0x1f6   : > { %v928_v63 = vpop.f32.mrf.mxu1 }
 0x1f8   : > { %v6394_v12 = vpop.permute.xlu2 %6393  ;;  %v880_v13 = vpop.f32.mrf.mxu2 }
 0x1f9   : > { %v6396_v23 = vunpack.i.h.bf16 %v6394_v12  ;;  %v6395_v56 = vunpack.i.l.bf16 %v6394_v12  ;;  %v7752_v26 = vpop.f32.mrf.mxu3  ;;  %5985 = vmatmul.msk.bf16.vlgmr.msra.gmra.mxu2 %vm838_vm1, %v7626_v36  ;;  %5987 = vmatmul.msk.bf16.vlgmr.msra.gmra.mxu0 %vm838_vm1, %v7518_v62  ;;  %v627_v13 = vrot.slane %v7777_v34, 4 }
 0x1fa   : > { %1284 = vmatpush.bf16.xpose.msrb.mxu2 %v1275_v53 }
 0x1fb   : > { %v7759_v20 = vpack.c.bf16 %v6396_v23, %v6396_v23  ;;  %v7761_v27 = vpack.c.bf16 %v6395_v56, %v6395_v56  ;;  %vm7825_vm5 = vcmp.gt.f32.partialorder %v627_v13, 0.0  ;;  %v9864_v13 = vmov 0 }
 0x1fd   : > { %v1555_v48 = vunpack.c.l.b16 %v7761_v27  ;;  %v1579_v33 = vunpack.c.l.b16 %v7759_v20 }
 0x1ff   : > { %v1318_v50 = vpop.permute.xlu0 %1317  ;;  %v1342_v44 = vpop.permute.xlu1 %1341  ;;  %v7765_v59 = vpack.c.b16 %v1555_v48, %v1555_v48  ;;  %v7767_v55 = vpack.c.b16 %v1579_v33, %v1579_v33  ;;  %v9851_v48 = vmov 0  ;;  %v625_v33 = vrot.slane %v7777_v34, 2 }
 0x200   : > { %v1323_v36 = vsel %vm838_vm1, %v1318_v50, 0  ;;  %v7780_v18 = vpop.permute.xlu2 %1461  ;;  %v9852_v48 = vsel %vm7825_vm5, 4294967295, %v9851_v48  ;;  %v1605_v50 = vmul.f32 0.35355338, %v7743_v19 }
 0x201   : > { %9844 = vst [vmem:[#allocation26_spill] sm:$0xff] %v7767_v55  ;;  %v904_v62 = vpop.f32.mrf.mxu3  ;;  %1557 = vrot.lane.b32.xlu0 %v7765_v59, %s7169_s4  ;;  %1581 = vrot.lane.b32.xlu1 %v7767_v55, %s7169_s4  ;;  %vm7845_vm8 = vcmp.gt.f32.partialorder %v625_v33, 0.0 }
 0x202   : > { %1332 = vmatpush.bf16.xpose.msrb.mxu0 %v1323_v36  ;;  %9853 = vst [vmem:[#allocation29_spill] sm:$0xff] %v9852_v48  ;;  %v9857_v41 = vsel %vm7845_vm8, 4294967295, %v9856_v41 }
 0x203   : > { %9858 = vst [vmem:[#allocation30_spill] sm:$0xff] %v9857_v41 }
 0x207   : > { %v1150_v54 = vpop.permute.xlu0 %1149 }
 0x208   : > { %v1155_v16 = vsel %vm838_vm1, %v1150_v54, 0  ;;  %v7783_v30 = vpop.permute.xlu1 %1437  ;;  %v950_v39 = vpop.f32.mrf.mxu2  ;;  %v1638_v54 = vsel %vm7825_vm5, 1, %v7174_v40 }
 0x209   : > { %v7785_v25 = vpop.f32.mrf.mxu3  ;;  %1197 = vrot.lane.b32.xlu0 %v1196_v21, %s7169_s4  ;;  %5989 = vmatmul.msk.bf16.vlgmr.msrb.gmra.mxu2 %vm838_vm1, %v7558_v35  ;;  %v9846_v21 = vmov 0  ;;  %v1602_v35 = vmul.f32 0.35355338, %v7727_v7  ;;  %v1637_v7 = vsel %vm7797_vm3, 1, %v7174_v40  ;;  %v7817_v23 = vpop.permute.xlu2 %1533  ;;  %v1646_v60 = vperm.slane %v1638_v54, 0 }
 0x20a   : > { %5991 = vmatmul.msk.bf16.vlgmr.msrb.gmra.mxu0 %vm838_vm1, %v7603_v10  ;;  %1164 = vmatpush.bf16.xpose.msra.mxu1 %v1155_v16  ;;  %v9847_v21 = vsel %vm7797_vm3, 4294967295, %v9846_v21  ;;  %v1347_v10 = vsel %vm838_vm1, %v1342_v44, 0 }
 0x20b   : > { %9848 = vst [vmem:[#allocation28_spill] sm:$0xff] %v9847_v21  ;;  %vm7866_vm10 = vcmp.eq.s32.totalorder %v1646_v60, 1 }
 0x20f   : > { %v1414_v38 = vpop.permute.xlu0 %1413 }
 0x210   : > { %v1419_v61 = vsel %vm838_vm1, %v1414_v38, 0  ;;  %v952_v2 = vpop.f32.mrf.mxu2  ;;  %v9859_v38 = vmov 0 }
 0x211   : > { %v1510_v24 = vpop.permute.xlu1 %1509  ;;  %2327 = vrot.lane.b32.xlu0 %v7593_v4, %s7173_s27  ;;  %5984 = vmatmul.msk.bf16.vlgmr.msra.gmra.mxu1 %vm838_vm1, %v7608_v15  ;;  %v976_v63 = vpop.f32.mrf.mxu3  ;;  %v7821_v4 = vsel %vm7803_vm4, %v1602_v35, -1e+30  ;;  %v1645_v15 = vperm.slane %v1637_v7, 0  ;;  %v1636_v35 = vsel %vm7845_vm8, 1, %v7174_v40 }
 0x212   : > { %1260 = vmatpush.bf16.xpose.msrb.mxu1 %v1251_v45  ;;  %v1515_v53 = vsel %vm838_vm1, %v1510_v24, 0  ;;  %1428 = vmatpush.bf16.xpose.msra.mxu0 %v1419_v61  ;;  %v998_v12 = vpop.f32.mrf.mxu1  ;;  %v1690_v56 = vsel %vm838_vm1, %v7821_v4, -inf  ;;  %v630_v45 = vrot.slane %v7777_v34, 7  ;;  %v2097_v8 = vpop.permute.xlu2 %2096  ;;  %v629_v61 = vrot.slane %v7777_v34, 6 }
 0x213   : > { %vm7833_vm6 = vcmp.eq.s32.totalorder %v1645_v15, 1  ;;  %v1644_v7 = vperm.slane %v1636_v35, 0  ;;  %v1604_v15 = vmul.f32 0.35355338, %v7752_v26 }
 0x214   : > { %vm7859_vm9 = vcmp.gt.f32.partialorder %v630_v45, 0.0  ;;  %vm7879_vm11 = vcmp.gt.f32.partialorder %v629_v61, 0.0 }
 0x215   : > { %v9860_v38 = vsel %vm7859_vm9, 4294967295, %v9859_v38  ;;  %v9865_v13 = vsel %vm7879_vm11, 4294967295, %v9864_v13  ;;  %vm7888_vm12 = vcmp.eq.s32.totalorder %v1644_v7, 1 }
 0x216   : > { %9861 = vst [vmem:[#allocation31_spill] sm:$0xff] %v9860_v38  ;;  %v7901_v54 = vsel %vm7888_vm12, %v1604_v15, -1e+30 }
 0x217   : > { %1691 = vmax.xlane.f32.xlu2 %v1690_v56  ;;  %v7831_v44 = vpop.permute.xlu0 %1485  ;;  %9866 = vst [vmem:[#allocation32_spill] sm:$0xff] %v9865_v13  ;;  %v1640_v56 = vsel %vm7879_vm11, 1, %v7174_v40  ;;  %v1696_v35 = vsel %vm838_vm1, %v7901_v54, -inf }
 0x219   : > { %v2075_v62 = vpop.permute.xlu1 %2074  ;;  %2369 = vrot.lane.b32.xlu0 %v7632_v47, %s7173_s27  ;;  %v7852_v47 = vsel %vm7833_vm6, %v1605_v50, -1e+30 }
 0x21a   : > { %1356 = vmatpush.bf16.xpose.msra.mxu1 %v1347_v10  ;;  %1524 = vmatpush.bf16.xpose.msrb.mxu0 %v1515_v53  ;;  %v2081_v16 = vsel %vm9788_vm7, %v2075_v62, 0  ;;  %v1000_v19 = vpop.f32.mrf.mxu1  ;;  %v1606_v10 = vmul.f32 0.35355338, %v950_v39  ;;  %v1443_v53 = vsel %vm838_vm1, %v7783_v30, 0  ;;  %v1641_v39 = vsel %vm7859_vm9, 1, %v7174_v40  ;;  %v2160_v50 = vpop.permute.xlu2 %2159 }
 0x21b   : > { %5995 = vmatmul.msk.bf16.vlgmr.msra.gmra.mxu0 %vm838_vm1, %v7630_v42  ;;  %v1699_v42 = vsel %vm838_vm1, %v7852_v47, -inf  ;;  %v1648_v19 = vperm.slane %v1640_v56, 0  ;;  %v2165_v60 = vsel %vm9788_vm7, %v2160_v50, 0  ;;  %v624_v50 = vrot.slane %v7777_v34, 1 }
 0x21c   : > { %v7886_v30 = vsel %vm7866_vm10, %v1606_v10, -1e+30  ;;  %vm9883_vm9 = vcmask 1043456  }
 0x21d   : > { %v1702_v33 = vsel %vm838_vm1, %v7886_v30, -inf  ;;  %vm7918_vm14 = vcmp.eq.s32.totalorder %v1648_v19, 1  ;;  %vm7968_vm15 = vcmp.gt.f32.partialorder %v624_v50, 0.0  ;;  %v9873_v19 = vmov 0  ;;  %vm9885_vm11 = vmmov %vm9883_vm9 }
 0x21e   : > { %v9874_v19 = vsel %vm7968_vm15, 4294967295, %v9873_v19 }
 0x21f   : > { %1700 = vmax.xlane.f32.xlu2 %v1699_v42  ;;  %v7864_v24 = vpop.permute.xlu0 %2117  ;;  %v1608_v42 = vmul.f32 0.35355338, %v998_v12  ;;  %v1539_v12 = vsel %vm838_vm1, %v7817_v23, 0  ;;  %v2102_v23 = vsel %vm9788_vm7, %v2097_v8, 0  ;;  %9875 = vst [vmem:[#allocation33_spill] sm:$0xff] %v9874_v19 }
 0x221   : > { %v1022_v63 = vpop.f32.mrf.mxu2  ;;  %2432 = vrot.lane.b32.xlu0 %v7572_v49, %s7173_s27  ;;  %5988 = vmatmul.msk.bf16.vlgmr.msrb.gmra.mxu1 %vm838_vm1, %v7552_v31  ;;  %v1649_v31 = vperm.slane %v1641_v39, 0 }
 0x222   : > { %2090 = vmatpush.bf16.msra.mxu0 %v2081_v16  ;;  %1452 = vmatpush.bf16.xpose.msrb.mxu1 %v1443_v53  ;;  %v1609_v62 = vmul.f32 0.35355338, %v1022_v63 }
 0x223   : > { %vm7903_vm13 = vcmp.eq.s32.totalorder %v1649_v31, 1 }
 0x224   : > { %v7916_v61 = vsel %vm7903_vm13, %v1609_v62, -1e+30 }
 0x227   : > { %1703 = vmax.xlane.f32.xlu2 %v1702_v33  ;;  %v7897_v26 = vpop.permute.xlu0 %2138 }
 0x229   : > { %v1024_v45 = vpop.f32.mrf.mxu2  ;;  %2453 = vrot.lane.b32.xlu0 %v7574_v52, %s7173_s27  ;;  %v1711_v52 = vsel %vm838_vm1, %v7916_v61, -inf }
 0x22a   : > { %v1635_v45 = vsel %vm7968_vm15, 1, %v7174_v40 }
 0x22b   : > { %5999 = vmatmul.msk.bf16.vlgmr.msrb.gmra.mxu0 %vm838_vm1, %v7634_v58  ;;  %1697 = vmax.xlane.f32.xlu1 %v1696_v35  ;;  %v7928_v58 = vsel %vm7918_vm14, %v1608_v42, -1e+30 }
 0x22c   : > { %2174 = vmatpush.bf16.msrb.mxu0 %v2165_v60  ;;  %v1708_v53 = vsel %vm838_vm1, %v7928_v58, -inf  ;;  %v1643_v60 = vperm.slane %v1635_v45, 0 }
 0x22e   : > { %vm7985_vm0 = vcmp.eq.s32.totalorder %v1643_v60, 1 }
 0x22f   : > { %1712 = vmax.xlane.f32.xlu2 %v1711_v52  ;;  %v7924_v7 = vpop.permute.xlu0 %2222  ;;  %v9876_v52 = vmov 0 }
 0x231   : > { %2495 = vrot.lane.b32.xlu0 %v7610_v37, %s7173_s27  ;;  %5992 = vmatmul.msk.bf16.vlgmr.msra.gmra.mxu1 %vm838_vm1, %v7601_v9  ;;  %v1467_v9 = vsel %vm838_vm1, %v7780_v18, 0  ;;  %v2202_v18 = vpop.permute.xlu2 %2201 }
 0x232   : > { %1548 = vmatpush.bf16.xpose.msra.mxu1 %v1539_v12 }
 0x233   : > { %1709 = vmax.xlane.f32.xlu1 %v1708_v53 }
 0x237   : > { %v7938_v63 = vpop.permute.xlu0 %2306 }
 0x239   : > { %2537 = vrot.lane.b32.xlu0 %v7704_v43, %s7173_s27  ;;  %v2181_v43 = vpop.permute.xlu1 %2180 }
 0x23a   : > { %v2186_v33 = vsel %vm9788_vm7, %v2181_v43, 0 }
 0x23f   : > { %v1366_v39 = vpop.permute.xlu0 %1365 }
 0x240   : > { %v1371_v15 = vsel %vm838_vm1, %v1366_v39, 0 }
 0x241   : > { %2579 = vrot.lane.b32.xlu0 %v7647_v29, %s7173_s27  ;;  %5996 = vmatmul.msk.bf16.vlgmr.msrb.gmra.mxu1 %vm838_vm1, %v7614_v46  ;;  %v7958_v29 = vpop.permute.xlu1 %2243 }
 0x242   : > { %2111 = vmatpush.bf16.msrb.mxu1 %v2102_v23  ;;  %1380 = vmatpush.bf16.xpose.msra.mxu2 %v1371_v15 }
 0x243   : > { %v1094_v37 = vpop.f32.mrf.mxu2 }
 0x244   : > { %v1612_v31 = vmul.f32 0.35355338, %v1094_v37 }
 0x246   : > { %v7952_v56 = vsel %vm7888_vm12, %v1612_v31, -1e+30 }
 0x247   : > { %v1720_v8 = vsel %vm838_vm1, %v7952_v56, -inf }
 0x248   : > { %1721 = vmax.xlane.f32.xlu2 %v1720_v8 }
 0x249   : > { %5993 = vmatmul.msk.bf16.vlgmr.msra.gmra.mxu2 %vm838_vm1, %v7695_v28  ;;  %v7964_v62 = vpop.permute.xlu1 %2348  ;;  %v7972_v28 = vpop.permute.xlu2 %2264 }
 0x24a   : > { %1476 = vmatpush.bf16.xpose.msrb.mxu2 %v1467_v9 }
 0x24b   : > { %v1096_v46 = vpop.f32.mrf.mxu2 }
 0x251   : > { %6000 = vmatmul.msk.bf16.vlgmr.msra.gmra.mxu1 %vm838_vm1, %v7665_v22  ;;  %v628_v22 = vrot.slane %v7777_v34, 5  ;;  %v7983_v12 = vpop.permute.xlu1 %2411  ;;  %v7989_v39 = vpop.permute.xlu2 %2285 }
 0x252   : > { %2195 = vmatpush.bf16.msra.mxu1 %v2186_v33  ;;  %v1607_v33 = vmul.f32 0.35355338, %v7785_v25 }
 0x253   : > { %vm7978_vm2 = vcmp.gt.f32.partialorder %v628_v22, 0.0 }
 0x254   : > { %v9877_v52 = vsel %vm7978_vm2, 4294967295, %v9876_v52  ;;  %v1639_v9 = vsel %vm7978_vm2, 1, %v7174_v40 }
 0x255   : > { %9878 = vst [vmem:[#allocation34_spill] sm:$0xff] %v9877_v52  ;;  %v1647_v43 = vperm.slane %v1639_v9, 0  ;;  %v2123_v9 = vsel %vm9883_vm9, %v7864_v24, 0  ;;  %v2207_v24 = vsel %vm9885_vm11, %v2202_v18, 0  ;;  %vm9889_vm11 = vmmov %vm9883_vm9 }
 0x257   : > { %vm8009_vm7 = vcmp.eq.s32.totalorder %v1647_v43, 1 }
 0x259   : > { %5997 = vmatmul.msk.bf16.vlgmr.msrb.gmra.mxu2 %vm838_vm1, %v7649_v51  ;;  %v1603_v51 = vmul.f32 0.35355338, %v7745_v1  ;;  %v8013_v40 = vpop.permute.xlu1 %2516  ;;  %v8015_v45 = vpop.permute.xlu2 %2474 }
 0x25b   : > { %v8004_v31 = vsel %vm7985_vm0, %v1603_v51, -1e+30 }
 0x25c   : > { %v1693_v46 = vsel %vm838_vm1, %v8004_v31, -inf }
 0x261   : > { %v1070_v35 = vpop.f32.mrf.mxu1 }
 0x262   : > { %v1611_v42 = vmul.f32 0.35355338, %v1070_v35  ;;  %v8019_v35 = vsel %vm8009_vm7, %v1607_v33, -1e+30 }
 0x264   : > { %v7993_v15 = vsel %vm7985_vm0, %v1611_v42, -1e+30  ;;  %v1705_v42 = vsel %vm838_vm1, %v8019_v35, -inf }
 0x265   : > { %v1717_v23 = vsel %vm838_vm1, %v7993_v15, -inf }
 0x266   : > { %v8000_v1 = vpop.f32.mrf.mxu0  ;;  %1718 = vmax.xlane.f32.xlu1 %v1717_v23 }
 0x267   : > { %v1046_v37 = vpop.f32.mrf.mxu3 }
 0x268   : > { %v1610_v51 = vmul.f32 0.35355338, %v1046_v37 }
 0x269   : > { %v1072_v8 = vpop.f32.mrf.mxu1 }
 0x26a   : > { %v8028_v8 = vpop.permute.xlu1 %2600  ;;  %v8032_v33 = vsel %vm7803_vm4, %v1610_v51, -1e+30  ;;  %v1299_v51 = vsel %vm838_vm1, %v7718_v0, 0 }
 0x26b   : > { %1694 = vmax.xlane.f32.xlu0 %v1693_v46  ;;  %9884 = vst [vmem:[#allocation35_spill] sm:$0xff] %v8028_v8  ;;  %v1714_v37 = vsel %vm838_vm1, %v8032_v33, -inf }
 0x26e   : > { %v1144_v22 = vpop.f32.mrf.mxu0 }
 0x26f   : > { %v1048_v60 = vpop.f32.mrf.mxu3  ;;  %v8034_v22 = vpop.permute.xlu2 %2390 }
 0x272   : > { %v1390_v38 = vpop.permute.xlu1 %1389 }
 0x273   : > { %1706 = vmax.xlane.f32.xlu0 %v1705_v42  ;;  %v1558_v25 = vpop.permute.xlu0 %1557  ;;  %v1395_v18 = vsel %vm838_vm1, %v1390_v38, 0 }
 0x274   : > { %v1563_v23 = vsel %vm838_vm1, %v1558_v25, 0 }
 0x275   : > { %1572 = vmatpush.bf16.xpose.msra.mxu2 %v1563_v23 }
 0x276   : > { %v8026_v43 = vpop.f32.mrf.mxu0 }
 0x277   : > { %v1118_v46 = vpop.f32.mrf.mxu3  ;;  %v8046_v13 = vpop.permute.xlu2 %2558 }
 0x278   : > { %9886 = vst [vmem:[#allocation36_spill] sm:$0xff] %v8046_v13 }
 0x27b   : > { %v1198_v60 = vpop.permute.xlu0 %1197  ;;  %1715 = vmax.xlane.f32.xlu0 %v1714_v37 }
 0x27c   : > { %v1203_v42 = vsel %vm838_vm1, %v1198_v60, 0  ;;  %v8040_v25 = vpop.f32.mrf.mxu2  ;;  %6001 = vmatmul.msk.bf16.vlgmr.msra.gmra.mxu2 %vm838_vm1, %v7761_v27 }
 0x27d   : > { %2132 = vmatpush.bf16.msrb.mxu2 %v2123_v9  ;;  %1212 = vmatpush.bf16.xpose.msra.mxu3 %v1203_v42 }
 0x27e   : > { %v1240_v23 = vpop.f32.mrf.mxu0 }
 0x27f   : > { %v1120_v9 = vpop.f32.mrf.mxu3 }
 0x281   : > { %2216 = vmatpush.bf16.msra.mxu2 %v2207_v24 }
 0x284   : > { %v1192_v37 = vpop.f32.mrf.mxu2  ;;  %5986 = vmatmul.msk.bf16.vlgmr.msra.gmra.mxu3 %vm838_vm1, %v7721_v32 }
 0x285   : > { %1308 = vmatpush.bf16.xpose.msrb.mxu3 %v1299_v51  ;;  %v8056_v51 = vpop.permute.xlu1 %2621 }
 0x286   : > { %9887 = vst [vmem:[#allocation37_spill] sm:$0xff] %v8056_v51 }
 0x287   : > { %v8051_v60 = vpop.f32.mrf.mxu0 }
 0x28a   : > { %v1692_v27 = vpop.xlane.xlu2 %1691 }
 0x28b   : > { %v1786_v0 = vsub.f32 %v7821_v4, %v1692_v27  ;;  %v1491_v4 = vsel %vm838_vm1, %v7831_v44, 0 }
 0x28c   : > { %v8054_v42 = vpop.f32.mrf.mxu2 }
 0x28d   : > { %1404 = vmatpush.bf16.xpose.msra.mxu3 %v1395_v18  ;;  %v1818_v24 = vmul.f32 1.442695, %v1786_v0 }
 0x28e   : > { %v1166_v23 = vpop.f32.mrf.mxu1 }
 0x28f   : > { %6517 = vpow2.f32 %v1818_v24  ;;  %v1615_v9 = vmul.f32 0.35355338, %v1166_v23  ;;  %v1336_v52 = vpop.f32.mrf.mxu0  ;;  %v1613_v23 = vmul.f32 0.35355338, %v1118_v46 }
 0x290   : > { %v1582_v52 = vpop.permute.xlu1 %1581 }
 0x291   : > { %v8060_v38 = vsel %vm8009_vm7, %v1615_v9, -1e+30 }
 0x292   : > { %v1701_v32 = vpop.xlane.xlu2 %1700  ;;  %v1729_v18 = vsel %vm838_vm1, %v8060_v38, -inf }
 0x293   : > { %1730 = vmax.xlane.f32.xlu2 %v1729_v18  ;;  %v8074_v18 = vpop.permute.xlu0 %2327  ;;  %v1789_v48 = vsub.f32 %v7852_v47, %v1701_v32  ;;  %v1616_v47 = vmul.f32 0.35355338, %v8040_v25 }
 0x294   : > { %v1288_v37 = vpop.f32.mrf.mxu2  ;;  %5990 = vmatmul.msk.bf16.vlgmr.msrb.gmra.mxu3 %vm838_vm1, %v7535_v11  ;;  %v8079_v11 = vsel %vm7833_vm6, %v1613_v23, -1e+30 }
 0x295   : > { %v8068_v27 = vpop.eup %6517  ;;  %1500 = vmatpush.bf16.xpose.msrb.mxu3 %v1491_v4  ;;  %v1723_v41 = vsel %vm838_vm1, %v8079_v11, -inf }
 0x296   : > { %v1168_v0 = vpop.f32.mrf.mxu1  ;;  %v1882_v24 = vsel %vm838_vm1, %v8068_v27, 0.0 }
 0x297   : > { %1883 = vadd.xlane.f32.xlu0 %v1882_v24 }
 0x298   : > { %v8072_v9 = vpop.f32.mrf.mxu0 }
 0x29a   : > { %v1704_v34 = vpop.xlane.xlu2 %1703 }
 0x29b   : > { %v1790_v44 = vsub.f32 %v7886_v30, %v1704_v34  ;;  %v1587_v34 = vsel %vm838_vm1, %v1582_v52, 0  ;;  %v8088_v30 = vpop.permute.xlu0 %2369  ;;  %v8106_v52 = vsel %vm7918_vm14, %v1616_v47, -1e+30 }
 0x29d   : > { %v1826_v37 = vmul.f32 1.442695, %v1790_v44  ;;  %v1824_v44 = vmul.f32 1.442695, %v1789_v48 }
 0x29e   : > { %v8081_v4 = vpop.f32.mrf.mxu1  ;;  %v1698_v0 = vpop.xlane.xlu1 %1697 }
 0x29f   : > { %6519 = vpow2.f32 %v1826_v37  ;;  %v1788_v24 = vsub.f32 %v7901_v54, %v1698_v0  ;;  %1724 = vmax.xlane.f32.xlu0 %v1723_v41 }
 0x2a0   : > { %v1432_v46 = vpop.f32.mrf.mxu0 }
 0x2a1   : > { %v1822_v21 = vmul.f32 1.442695, %v1788_v24 }
 0x2a3   : > { %6521 = vpow2.f32 %v1822_v21  ;;  %v8108_v0 = vpop.permute.xlu0 %2432 }
 0x2a4   : > { %5994 = vmatmul.msk.bf16.vlgmr.msra.gmra.mxu3 %vm838_vm1, %v7712_v3  ;;  %6523 = vpow2.f32 %v1824_v44 }
 0x2a5   : > { %v8092_v23 = vpop.eup %6519  ;;  %1596 = vmatpush.bf16.xpose.msra.mxu3 %v1587_v34 }
 0x2a6   : > { %v1264_v37 = vpop.f32.mrf.mxu1  ;;  %v1710_v46 = vpop.xlane.xlu1 %1709  ;;  %v1894_v41 = vsel %vm838_vm1, %v8092_v23, 0.0 }
 0x2a7   : > { %v1792_v21 = vsub.f32 %v7928_v58, %v1710_v46  ;;  %1895 = vadd.xlane.f32.xlu2 %v1894_v41  ;;  %v1732_v58 = vsel %vm838_vm1, %v8106_v52, -inf  ;;  %v1618_v46 = vmul.f32 0.35355338, %v8026_v43  ;;  %v2144_v41 = vsel %vm9883_vm9, %v7897_v26, 0 }
 0x2a8   : > { %v8097_v54 = vpop.f32.mrf.mxu0 }
 0x2a9   : > { %v8100_v32 = vpop.eup %6521  ;;  %v1830_v3 = vmul.f32 1.442695, %v1792_v21 }
 0x2aa   : > { %v1888_v48 = vsel %vm838_vm1, %v8100_v32, 0.0  ;;  %v8114_v24 = vpop.eup %6523 }
 0x2ab   : > { %1889 = vadd.xlane.f32.xlu0 %v1888_v48  ;;  %6525 = vpow2.f32 %v1830_v3  ;;  %v1891_v44 = vsel %vm838_vm1, %v8114_v24, 0.0  ;;  %v8129_v3 = vsel %vm7803_vm4, %v1618_v46, -1e+30  ;;  %v8131_v48 = vpop.permute.xlu0 %2453 }
 0x2ac   : > { %v1738_v43 = vsel %vm838_vm1, %v8129_v3, -inf }
 0x2ae   : > { %v8110_v25 = vpop.f32.mrf.mxu1 }
 0x2af   : > { %1733 = vmax.xlane.f32.xlu2 %v1732_v58 }
 0x2b0   : > { %v1528_v34 = vpop.f32.mrf.mxu0 }
 0x2b1   : > { %v8118_v37 = vpop.eup %6525 }
 0x2b2   : > { %v1900_v21 = vsel %vm838_vm1, %v8118_v37, 0.0 }
 0x2b3   : > { %1892 = vadd.xlane.f32.xlu0 %v1891_v44  ;;  %v8137_v58 = vpop.permute.xlu0 %2495 }
 0x2b4   : > { %5998 = vmatmul.msk.bf16.vlgmr.msrb.gmra.mxu3 %vm838_vm1, %v7645_v5  ;;  %9888 = vst [vmem:[#allocation38_spill] sm:$0xff] %v8137_v58  ;;  %v2228_v5 = vsel %vm9889_vm11, %v7924_v7, 0 }
 0x2b5   : > { %2153 = vmatpush.bf16.msrb.mxu3 %v2144_v41 }
 0x2b6   : > { %v1360_v47 = vpop.f32.mrf.mxu1 }
 0x2b7   : > { %1901 = vadd.xlane.f32.xlu2 %v1900_v21 }
 0x2bb   : > { %1739 = vmax.xlane.f32.xlu0 %v1738_v43  ;;  %v8143_v44 = vpop.permute.xlu0 %2537 }
 0x2bc   : > { %9890 = vst [vmem:[#allocation39_spill] sm:$0xff] %v8143_v44 }
 0x2be   : > { %v8135_v26 = vpop.f32.mrf.mxu1 }
 0x2c3   : > { %v8153_v19 = vpop.permute.xlu0 %2579 }
 0x2c4   : > { %6002 = vmatmul.msk.bf16.vlgmr.msra.gmra.mxu3 %vm838_vm1, %v7759_v20  ;;  %9891 = vst [vmem:[#allocation40_spill] sm:$0xff] %v8153_v19  ;;  %v1622_v19 = vmul.f32 0.35355338, %v8051_v60 }
 0x2c5   : > { %2237 = vmatpush.bf16.msra.mxu3 %v2228_v5 }
 0x2c6   : > { %v1456_v34 = vpop.f32.mrf.mxu1  ;;  %v8213_v6 = vsel %vm7866_vm10, %v1622_v19, -1e+30  ;;  %v1623_v19 = vmul.f32 0.35355338, %v8110_v25 }
 0x2c7   : > { %v1750_v17 = vsel %vm838_vm1, %v8213_v6, -inf }
 0x2cc   : > { %v8145_v46 = vpop.f32.mrf.mxu2 }
 0x2cd   : > { %v1624_v60 = vmul.f32 0.35355338, %v8145_v46 }
 0x2ce   : > { %v1550_v41 = vpop.f32.mrf.mxu1 }
 0x2cf   : > { %v1631_v47 = vmul.f32 0.35355338, %v1550_v41 }
 0x2d1   : > { %v8149_v21 = vsel %vm8009_vm7, %v1631_v47, -1e+30 }
 0x2d2   : > { %v1777_v43 = vsel %vm838_vm1, %v8149_v21, -inf }
 0x2d3   : > { %1778 = vmax.xlane.f32.xlu2 %v1777_v43 }
 0x2d4   : > { %v1384_v7 = vpop.f32.mrf.mxu2 }
 0x2d5   : > { %v1614_v7 = vmul.f32 0.35355338, %v8000_v1 }
 0x2d6   : > { %v1552_v20 = vpop.f32.mrf.mxu1 }
 0x2d7   : > { %v8166_v20 = vsel %vm7866_vm10, %v1614_v7, -1e+30 }
 0x2dc   : > { %v8155_v5 = vpop.f32.mrf.mxu2 }
 0x2de   : > { %v1695_v34 = vpop.xlane.xlu0 %1694 }
 0x2df   : > { %v1787_v13 = vsub.f32 %v8004_v31, %v1695_v34  ;;  %v1726_v31 = vsel %vm838_vm1, %v8166_v20, -inf }
 0x2e1   : > { %v1820_v51 = vmul.f32 1.442695, %v1787_v13 }
 0x2e3   : > { %6527 = vpow2.f32 %v1820_v51  ;;  %v1713_v51 = vpop.xlane.xlu2 %1712 }
 0x2e4   : > { %v1480_v41 = vpop.f32.mrf.mxu2 }
 0x2e5   : > { %v1620_v41 = vmul.f32 0.35355338, %v8054_v42 }
 0x2e6   : > { %v1707_v8 = vpop.xlane.xlu0 %1706 }
 0x2e7   : > { %v1791_v47 = vsub.f32 %v8019_v35, %v1707_v8  ;;  %v1619_v8 = vmul.f32 0.35355338, %v8081_v4  ;;  %v8187_v4 = vsel %vm7888_vm12, %v1620_v41, -1e+30 }
 0x2e9   : > { %v8159_v44 = vpop.eup %6527  ;;  %v1828_v58 = vmul.f32 1.442695, %v1791_v47  ;;  %v8177_v1 = vsel %vm7985_vm0, %v1619_v8, -1e+30 }
 0x2ea   : > { %v1885_v43 = vsel %vm838_vm1, %v8159_v44, 0.0  ;;  %v1741_v34 = vsel %vm838_vm1, %v8177_v1, -inf }
 0x2eb   : > { %6529 = vpow2.f32 %v1828_v58  ;;  %1886 = vadd.xlane.f32.xlu1 %v1885_v43  ;;  %v1793_v58 = vsub.f32 %v7916_v61, %v1713_v51  ;;  %v8195_v51 = vpop.xlane.xlu2 %1721 }
 0x2ed   : > { %v1832_v47 = vmul.f32 1.442695, %v1793_v58 }
 0x2ee   : > { %v8189_v7 = vpop.xlane.xlu0 %1715 }
 0x2ef   : > { %6531 = vpow2.f32 %v1832_v47  ;;  %v1626_v47 = vmul.f32 0.35355338, %v8072_v9 }
 0x2f1   : > { %v8168_v13 = vpop.eup %6529 }
 0x2f2   : > { %v1897_v35 = vsel %vm838_vm1, %v8168_v13, 0.0 }
 0x2f3   : > { %1727 = vmax.xlane.f32.xlu1 %v1726_v31  ;;  %1898 = vadd.xlane.f32.xlu0 %v1897_v35  ;;  %v1744_v31 = vsel %vm838_vm1, %v8187_v4, -inf }
 0x2f5   : > { %v8193_v61 = vpop.eup %6531 }
 0x2fb   : > { %1742 = vmax.xlane.f32.xlu1 %v1741_v34  ;;  %v1903_v34 = vsel %vm838_vm1, %v8193_v61, 0.0 }
 0x2ff   : > { %v8183_v43 = vpop.f32.mrf.mxu2 }
 0x303   : > { %1745 = vmax.xlane.f32.xlu1 %v1744_v31 }
 0x306   : > { %v8215_v57 = vpop.xlane.xlu2 %1730 }
 0x307   : > { %v1214_v35 = vpop.f32.mrf.mxu3  ;;  %v1576_v8 = vpop.f32.mrf.mxu2 }
 0x308   : > { %v1617_v42 = vmul.f32 0.35355338, %v1214_v35  ;;  %v8209_v8 = vsel %vm7803_vm4, %v1626_v47, -1e+30  ;;  %vm9892_vm4 = vmmov %vm9883_vm9 }
 0x309   : > { %v2249_v55 = vsel %vm9892_vm4, %v7958_v29, 0  ;;  %vm9894_vm9 = vmmov %vm9892_vm4 }
 0x30a   : > { %v1884_v58 = vpop.xlane.xlu0 %1883  ;;  %v8201_v41 = vsel %vm7903_vm13, %v1617_v42, -1e+30 }
 0x30b   : > { %1904 = vadd.xlane.f32.xlu1 %v1903_v34  ;;  %v1735_v31 = vsel %vm838_vm1, %v8201_v41, -inf  ;;  %6533 = vrcp.f32 %v1884_v58  ;;  %v1762_v34 = vsel %vm838_vm1, %v8209_v8, -inf }
 0x30c   : > { %1736 = vmax.xlane.f32.xlu0 %v1735_v31 }
 0x30f   : > { %v1216_v35 = vpop.f32.mrf.mxu3 }
 0x311   : > { %v6534_v42 = vpop.eup %6533 }
 0x312   : > { %v1725_v9 = vpop.xlane.xlu0 %1724  ;;  %v2010_v58 = vmul.f32 %v6534_v42, %v8068_v27  ;;  %v8230_v27 = vsel %vm7918_vm14, %v1624_v60, -1e+30 }
 0x313   : > { %v1797_v31 = vsub.f32 %v8079_v11, %v1725_v9  ;;  %1763 = vmax.xlane.f32.xlu1 %v1762_v34  ;;  %v8234_v11 = vsel %vm8009_vm7, %v1623_v19, -1e+30  ;;  %v1756_v42 = vsel %vm838_vm1, %v8230_v27, -inf  ;;  %vm9893_vm7 = vmmov %vm9892_vm4 }
 0x314   : > { %1751 = vmax.xlane.f32.xlu0 %v1750_v17  ;;  %v2042_v47 = vpack.c.bf16 %v2010_v58, %v2010_v58  ;;  %v1753_v29 = vsel %vm838_vm1, %v8234_v11, -inf  ;;  %v1794_v17 = vsub.f32 %v8032_v33, %v8189_v7 }
 0x315   : > { %v1840_v35 = vmul.f32 1.442695, %v1797_v31 }
 0x316   : > { %6003 = vmatmul.msk.bf16.vlgmr.msra.gmra.mxu0 %vm838_vm1, %v2042_v47 }
 0x317   : > { %6535 = vpow2.f32 %v1840_v35  ;;  %v1310_v46 = vpop.f32.mrf.mxu3  ;;  %2258 = vmatpush.bf16.msra.mxu0 %v2249_v55 }
 0x318   : > { %v1621_v9 = vmul.f32 0.35355338, %v1310_v46  ;;  %v1627_v46 = vmul.f32 0.35355338, %v8135_v26 }
 0x31a   : > { %v1896_v25 = vpop.xlane.xlu2 %1895  ;;  %v8246_v58 = vsel %vm7833_vm6, %v1621_v9, -1e+30  ;;  %v8262_v26 = vsel %vm7985_vm0, %v1627_v46, -1e+30  ;;  %vm9895_vm0 = vmmov %vm9892_vm4 }
 0x31b   : > { %6537 = vrcp.f32 %v1896_v25  ;;  %1757 = vmax.xlane.f32.xlu1 %v1756_v42  ;;  %v1747_v35 = vsel %vm838_vm1, %v8246_v58, -inf  ;;  %vm9901_vm11 = vmmov %vm9895_vm0 }
 0x31c   : > { %1754 = vmax.xlane.f32.xlu0 %v1753_v29  ;;  %v1834_v29 = vmul.f32 1.442695, %v1794_v17  ;;  %vm9902_vm4 = vmmov %vm9895_vm0 }
 0x31d   : > { %v8240_v34 = vpop.eup %6535 }
 0x31e   : > { %v1890_v60 = vpop.xlane.xlu0 %1889  ;;  %v1915_v55 = vsel %vm838_vm1, %v8240_v34, 0.0 }
 0x31f   : > { %6539 = vrcp.f32 %v1890_v60  ;;  %v1312_v50 = vpop.f32.mrf.mxu3  ;;  %1916 = vadd.xlane.f32.xlu2 %v1915_v55  ;;  %v2333_v55 = vsel %vm9893_vm7, %v8074_v18, 0  ;;  %vm9903_vm7 = vmmov %vm9895_vm0 }
 0x321   : > { %v6538_v31 = vpop.eup %6537 }
 0x322   : > { %v2014_v19 = vmul.f32 %v6538_v31, %v8092_v23  ;;  %v8251_v47 = vpop.xlane.xlu2 %1733  ;;  %v1719_v23 = vpop.xlane.xlu1 %1718  ;;  %v2291_v31 = vsel %vm9894_vm9, %v7989_v39, 0  ;;  %v1630_v39 = vmul.f32 0.35355338, %v8097_v54  ;;  %v1796_v54 = vsub.f32 %v7952_v56, %v8195_v51  ;;  %vm9904_vm9 = vmmov %vm9895_vm0 }
 0x323   : > { %v1795_v17 = vsub.f32 %v7993_v15, %v1719_v23 }
 0x324   : > { %v2046_v25 = vpack.c.bf16 %v2014_v19, %v2014_v19  ;;  %1748 = vmax.xlane.f32.xlu0 %v1747_v35  ;;  %v1765_v19 = vsel %vm838_vm1, %v8262_v26, -inf  ;;  %v8282_v15 = vsel %vm7866_vm10, %v1630_v39, -1e+30  ;;  %vm9896_vm10 = vmmov %vm9895_vm0 }
 0x325   : > { %v6540_v42 = vpop.eup %6539  ;;  %v1836_v46 = vmul.f32 1.442695, %v1795_v17 }
 0x326   : > { %v2012_v9 = vmul.f32 %v6540_v42, %v8100_v32  ;;  %v1893_v60 = vpop.xlane.xlu0 %1892  ;;  %6007 = vmatmul.msk.bf16.vlgmr.msrb.gmra.mxu0 %vm838_vm1, %v2046_v25 }
 0x327   : > { %v1406_v33 = vpop.f32.mrf.mxu3  ;;  %2342 = vmatpush.bf16.msrb.mxu0 %v2333_v55  ;;  %6541 = vrcp.f32 %v1893_v60  ;;  %v2312_v55 = vsel %vm9895_vm0, %v7938_v63, 0  ;;  %v1838_v63 = vmul.f32 1.442695, %v1796_v54 }
 0x328   : > { %v2044_v7 = vpack.c.bf16 %v2012_v9, %v2012_v9  ;;  %v1625_v50 = vmul.f32 0.35355338, %v1406_v33  ;;  %6543 = vpow2.f32 %v1834_v29  ;;  %v1628_v33 = vmul.f32 0.35355338, %v8155_v5 }
 0x329   : > { %v2375_v5 = vsel %vm9896_vm10, %v8088_v30, 0  ;;  %vm9910_vm10 = vmmov %vm9895_vm0 }
 0x32a   : > { %6005 = vmatmul.msk.bf16.vlgmr.msrb.gmra.mxu2 %vm838_vm1, %v2044_v7  ;;  %v1902_v32 = vpop.xlane.xlu2 %1901  ;;  %v8269_v18 = vsel %vm7903_vm13, %v1625_v50, -1e+30  ;;  %v8297_v56 = vsel %vm7888_vm12, %v1628_v33, -1e+30  ;;  %vm9898_vm12 = vmmov %vm9895_vm0 }
 0x32b   : > { %2300 = vmatpush.bf16.msrb.mxu2 %v2291_v31  ;;  %6545 = vrcp.f32 %v1902_v32  ;;  %v1759_v53 = vsel %vm838_vm1, %v8269_v18, -inf  ;;  %v1768_v31 = vsel %vm838_vm1, %v8297_v56, -inf }
 0x32c   : > { %1760 = vmax.xlane.f32.xlu1 %v1759_v53  ;;  %1766 = vmax.xlane.f32.xlu0 %v1765_v19  ;;  %6547 = vpow2.f32 %v1836_v46 }
 0x32d   : > { %v6542_v35 = vpop.eup %6541  ;;  %6549 = vpow2.f32 %v1838_v63 }
 0x32e   : > { %v2013_v25 = vmul.f32 %v6542_v35, %v8114_v24  ;;  %v8278_v29 = vpop.eup %6543  ;;  %v1774_v24 = vsel %vm838_vm1, %v8282_v15, -inf  ;;  %v1740_v35 = vpop.xlane.xlu0 %1739 }
 0x32f   : > { %v1408_v42 = vpop.f32.mrf.mxu3  ;;  %v1906_v23 = vsel %vm838_vm1, %v8278_v29, 0.0 }
 0x330   : > { %v2045_v60 = vpack.c.bf16 %v2013_v25, %v2013_v25  ;;  %v1802_v42 = vsub.f32 %v8129_v3, %v1740_v35 }
 0x331   : > { %v6546_v9 = vpop.eup %6545 }
 0x332   : > { %6006 = vmatmul.msk.bf16.vlgmr.msrb.gmra.mxu3 %vm838_vm1, %v2045_v60  ;;  %v2016_v2 = vmul.f32 %v6546_v9, %v8118_v37  ;;  %v8299_v51 = vpop.eup %6547  ;;  %v1799_v37 = vsub.f32 %v8060_v38, %v8215_v57  ;;  %v1632_v38 = vmul.f32 0.35355338, %v8183_v43 }
 0x333   : > { %2321 = vmatpush.bf16.msrb.mxu3 %v2312_v55  ;;  %v1909_v49 = vsel %vm838_vm1, %v8299_v51, 0.0  ;;  %v8314_v19 = vpop.eup %6549  ;;  %v1850_v55 = vmul.f32 1.442695, %v1802_v42 }
 0x334   : > { %1775 = vmax.xlane.f32.xlu1 %v1774_v24  ;;  %1907 = vadd.xlane.f32.xlu0 %v1906_v23  ;;  %v2048_v50 = vpack.c.bf16 %v2016_v2, %v2016_v2  ;;  %v1844_v17 = vmul.f32 1.442695, %v1799_v37  ;;  %v1912_v39 = vsel %vm838_vm1, %v8314_v19, 0.0  ;;  %v8323_v36 = vsel %vm7918_vm14, %v1632_v38, -1e+30  ;;  %vm9900_vm14 = vmmov %vm9895_vm0 }
 0x335   : > { %v1780_v9 = vsel %vm838_vm1, %v8323_v36, -inf  ;;  %v1800_v37 = vsub.f32 %v8106_v52, %v8251_v47 }
 0x336   : > { %6551 = vpow2.f32 %v1844_v17 }
 0x337   : > { %v1502_v7 = vpop.f32.mrf.mxu3  ;;  %6553 = vpow2.f32 %v1850_v55 }
 0x338   : > { %v1629_v32 = vmul.f32 0.35355338, %v1502_v7 }
 0x33a   : > { %6009 = vmatmul.msk.bf16.vlgmr.msra.gmra.mxu2 %vm838_vm1, %v2048_v50  ;;  %v8312_v30 = vsel %vm7833_vm6, %v1629_v32, -1e+30  ;;  %vm9897_vm6 = vmmov %vm9895_vm0 }
 0x33b   : > { %2384 = vmatpush.bf16.msra.mxu2 %v2375_v5  ;;  %v1771_v57 = vsel %vm838_vm1, %v8312_v30, -inf  ;;  %v2270_v32 = vsel %vm9897_vm6, %v7972_v28, 0  ;;  %vm9912_vm6 = vmmov %vm9895_vm0 }
 0x33c   : > { %1769 = vmax.xlane.f32.xlu1 %v1768_v31  ;;  %1910 = vadd.xlane.f32.xlu0 %v1909_v49  ;;  %v8325_v25 = vpop.eup %6551  ;;  %v1846_v49 = vmul.f32 1.442695, %v1800_v37 }
 0x33d   : > { %v1921_v43 = vsel %vm838_vm1, %v8325_v25, 0.0  ;;  %v8338_v3 = vpop.eup %6553 }
 0x33e   : > { %v1930_v33 = vsel %vm838_vm1, %v8338_v3, 0.0 }
 0x33f   : > { %v1504_v53 = vpop.f32.mrf.mxu3 }
 0x344   : > { %1772 = vmax.xlane.f32.xlu1 %v1771_v57  ;;  %1913 = vadd.xlane.f32.xlu0 %v1912_v39 }
 0x347   : > { %v1598_v46 = vpop.f32.mrf.mxu3 }
 0x348   : > { %v1633_v60 = vmul.f32 0.35355338, %v1598_v46 }
 0x34a   : > { %v8334_v10 = vsel %vm7903_vm13, %v1633_v60, -1e+30  ;;  %vm9899_vm13 = vmmov %vm9895_vm0 }
 0x34b   : > { %v1783_v24 = vsel %vm838_vm1, %v8334_v10, -inf }
 0x34c   : > { %1781 = vmax.xlane.f32.xlu1 %v1780_v9  ;;  %1922 = vadd.xlane.f32.xlu0 %v1921_v43 }
 0x34f   : > { %v1600_v54 = vpop.f32.mrf.mxu3 }
 0x354   : > { %1784 = vmax.xlane.f32.xlu1 %v1783_v24 }
 0x35c   : > { %1931 = vadd.xlane.f32.xlu1 %v1930_v33 }
 0x35e   : > { %v1887_v2 = vpop.xlane.xlu1 %1886 }
 0x35f   : > { %6555 = vrcp.f32 %v1887_v2 }
 0x365   : > { %v6556_v23 = vpop.eup %6555 }
 0x366   : > { %v2011_v63 = vmul.f32 %v6556_v23, %v8159_v44  ;;  %v1728_v7 = vpop.xlane.xlu1 %1727  ;;  %v1899_v16 = vpop.xlane.xlu0 %1898 }
 0x367   : > { %v1798_v50 = vsub.f32 %v8166_v20, %v1728_v7  ;;  %6557 = vrcp.f32 %v1899_v16  ;;  %v8378_v7 = vpop.xlane.xlu2 %1778 }
 0x368   : > { %v2043_v5 = vpack.c.bf16 %v2011_v63, %v2011_v63 }
 0x369   : > { %v1842_v31 = vmul.f32 1.442695, %v1798_v50 }
 0x36a   : > { %6004 = vmatmul.msk.bf16.vlgmr.msrb.gmra.mxu1 %vm838_vm1, %v2043_v5 }
 0x36b   : > { %6559 = vpow2.f32 %v1842_v31  ;;  %2279 = vmatpush.bf16.msrb.mxu1 %v2270_v32 }
 0x36c   : > { %6561 = vpow2.f32 %v1846_v49 }
 0x36d   : > { %v6558_v44 = vpop.eup %6557 }
 0x36e   : > { %v1743_v17 = vpop.xlane.xlu1 %1742  ;;  %v2015_v47 = vmul.f32 %v6558_v44, %v8168_v13 }
 0x36f   : > { %v1803_v20 = vsub.f32 %v8177_v1, %v1743_v17  ;;  %v2354_v1 = vsel %vm9898_vm12, %v7964_v62, 0  ;;  %vm9914_vm12 = vmmov %vm9895_vm0 }
 0x370   : > { %v2047_v39 = vpack.c.bf16 %v2015_v47, %v2015_v47 }
 0x371   : > { %v8349_v53 = vpop.eup %6559  ;;  %v1852_v28 = vmul.f32 1.442695, %v1803_v20 }
 0x372   : > { %v1918_v52 = vsel %vm838_vm1, %v8349_v53, 0.0  ;;  %v8357_v38 = vpop.eup %6561 }
 0x373   : > { %1919 = vadd.xlane.f32.xlu2 %v1918_v52  ;;  %6563 = vpow2.f32 %v1852_v28  ;;  %v1924_v46 = vsel %vm838_vm1, %v8357_v38, 0.0 }
 0x375   : > { %2642 = vrot.lane.b32.xlu1 %v7663_v14, %s7173_s27 }
 0x376   : > { %v1746_v57 = vpop.xlane.xlu1 %1745 }
 0x377   : > { %v1804_v35 = vsub.f32 %v8187_v4, %v1746_v57 }
 0x379   : > { %v1854_v13 = vmul.f32 1.442695, %v1804_v35  ;;  %v8365_v14 = vpop.eup %6563 }
 0x37a   : > { %6008 = vmatmul.msk.bf16.vlgmr.msra.gmra.mxu1 %vm838_vm1, %v2047_v39  ;;  %v1933_v62 = vsel %vm838_vm1, %v8365_v14, 0.0 }
 0x37b   : > { %2363 = vmatpush.bf16.msra.mxu1 %v2354_v1  ;;  %1925 = vadd.xlane.f32.xlu2 %v1924_v46 }
 0x37e   : > { %v1905_v42 = vpop.xlane.xlu1 %1904 }
 0x37f   : > { %6565 = vrcp.f32 %v1905_v42  ;;  %v1737_v9 = vpop.xlane.xlu0 %1736 }
 0x380   : > { %v1801_v60 = vsub.f32 %v8201_v41, %v1737_v9  ;;  %6567 = vpow2.f32 %v1854_v13  ;;  %v2396_v41 = vsel %vm9899_vm13, %v8034_v22, 0  ;;  %vm9916_vm13 = vmmov %vm9895_vm0 }
 0x382   : > { %v1848_v4 = vmul.f32 1.442695, %v1801_v60 }
 0x383   : > { %1934 = vadd.xlane.f32.xlu2 %v1933_v62 }
 0x384   : > { %6569 = vpow2.f32 %v1848_v4 }
 0x385   : > { %v6566_v43 = vpop.eup %6565 }
 0x386   : > { %v2017_v55 = vmul.f32 %v6566_v43, %v8193_v61  ;;  %v8371_v54 = vpop.eup %6567  ;;  %v1764_v2 = vpop.xlane.xlu1 %1763 }
 0x387   : > { %v1752_v24 = vpop.xlane.xlu0 %1751  ;;  %v1936_v61 = vsel %vm838_vm1, %v8371_v54, 0.0  ;;  %v1810_v50 = vsub.f32 %v8209_v8, %v1764_v2 }
 0x388   : > { %v2049_v33 = vpack.c.bf16 %v2017_v55, %v2017_v55  ;;  %v1806_v23 = vsub.f32 %v8213_v6, %v1752_v24 }
 0x389   : > { %v1866_v5 = vmul.f32 1.442695, %v1810_v50 }
 0x38a   : > { %v8374_v63 = vpop.eup %6569  ;;  %v1858_v16 = vmul.f32 1.442695, %v1806_v23  ;;  %6010 = vmatmul.msk.bf16.vlgmr.msra.gmra.mxu3 %vm838_vm1, %v2049_v33 }
 0x38b   : > { %2405 = vmatpush.bf16.msra.mxu3 %v2396_v41  ;;  %1937 = vadd.xlane.f32.xlu2 %v1936_v61  ;;  %v1927_v6 = vsel %vm838_vm1, %v8374_v63, 0.0 }
 0x38c   : > { %6571 = vpow2.f32 %v1858_v16  ;;  %1928 = vadd.xlane.f32.xlu0 %v1927_v6 }
 0x38d   : > { %6573 = vpow2.f32 %v1866_v5 }
 0x38e   : > { %v1758_v44 = vpop.xlane.xlu1 %1757 }
 0x38f   : > { %v1755_v37 = vpop.xlane.xlu0 %1754  ;;  %v1808_v28 = vsub.f32 %v8230_v27, %v1758_v44  ;;  %v2480_v27 = vsel %vm9900_vm14, %v8015_v45, 0  ;;  %v1815_v44 = vsub.f32 %v8149_v21, %v8378_v7  ;;  %vm9918_vm14 = vmmov %vm9895_vm0 }
 0x390   : > { %v1807_v22 = vsub.f32 %v8234_v11, %v1755_v37 }
 0x391   : > { %v1862_v13 = vmul.f32 1.442695, %v1808_v28 }
 0x392   : > { %v8387_v31 = vpop.eup %6571  ;;  %v1860_v32 = vmul.f32 1.442695, %v1807_v22  ;;  %v1917_v49 = vpop.xlane.xlu2 %1916 }
 0x393   : > { %v1942_v17 = vsel %vm838_vm1, %v8387_v31, 0.0  ;;  %v8391_v8 = vpop.f32.mrf.mxu0  ;;  %v8394_v47 = vpop.eup %6573 }
 0x394   : > { %6575 = vpow2.f32 %v1860_v32  ;;  %1943 = vadd.xlane.f32.xlu0 %v1942_v17 }
 0x395   : > { %6577 = vrcp.f32 %v1917_v49 }
 0x397   : > { %v1749_v20 = vpop.xlane.xlu0 %1748 }
 0x398   : > { %v1805_v52 = vsub.f32 %v8246_v58, %v1749_v20  ;;  %v1954_v58 = vsel %vm838_vm1, %v8394_v47, 0.0 }
 0x39a   : > { %v8396_v11 = vpop.eup %6575  ;;  %v1856_v57 = vmul.f32 1.442695, %v1805_v52 }
 0x39b   : > { %v6578_v39 = vpop.eup %6577  ;;  %v1945_v35 = vsel %vm838_vm1, %v8396_v11, 0.0  ;;  %v2094_v46 = vpop.f32.mrf.mxu0 }
 0x39c   : > { %v2021_v1 = vmul.f32 %v6578_v39, %v8240_v34  ;;  %6579 = vpow2.f32 %v1856_v57  ;;  %1946 = vadd.xlane.f32.xlu2 %v1945_v35  ;;  %v1876_v39 = vmul.f32 1.442695, %v1815_v44 }
 0x39d   : > { %6581 = vpow2.f32 %v1862_v13 }
 0x39e   : > { %v2053_v42 = vpack.c.bf16 %v2021_v1, %v2021_v1 }
 0x39f   : > { %v1767_v9 = vpop.xlane.xlu0 %1766  ;;  %1955 = vadd.xlane.f32.xlu1 %v1954_v58  ;;  %v1761_v60 = vpop.xlane.xlu1 %1760 }
 0x3a0   : > { %6014 = vmatmul.msk.bf16.vlgmr.msrb.gmra.mxu3 %vm838_vm1, %v2053_v42  ;;  %v1811_v4 = vsub.f32 %v8262_v26, %v1767_v9  ;;  %v1809_v43 = vsub.f32 %v8269_v18, %v1761_v60  ;;  %v2438_v60 = vsel %vm9902_vm4, %v8108_v0, 0  ;;  %vm9920_vm4 = vmmov %vm9895_vm0 }
 0x3a1   : > { %2489 = vmatpush.bf16.msrb.mxu3 %v2480_v27 }
 0x3a2   : > { %v8408_v34 = vpop.eup %6579  ;;  %v1868_v62 = vmul.f32 1.442695, %v1811_v4  ;;  %v1864_v33 = vmul.f32 1.442695, %v1809_v43 }
 0x3a3   : > { %v1939_v55 = vsel %vm838_vm1, %v8408_v34, 0.0  ;;  %v8413_v24 = vpop.f32.mrf.mxu0  ;;  %v8415_v2 = vpop.eup %6581 }
 0x3a4   : > { %6583 = vpow2.f32 %v1868_v62  ;;  %1940 = vadd.xlane.f32.xlu0 %v1939_v55  ;;  %v1948_v61 = vsel %vm838_vm1, %v8415_v2, 0.0 }
 0x3a7   : > { %v1776_v45 = vpop.xlane.xlu1 %1775  ;;  %v1908_v23 = vpop.xlane.xlu0 %1907 }
 0x3a8   : > { %v1814_v26 = vsub.f32 %v8282_v15, %v1776_v45  ;;  %6585 = vrcp.f32 %v1908_v23  ;;  %v2459_v23 = vsel %vm9903_vm7, %v8131_v48, 0  ;;  %v9905_v48 = vld [vmem:[#allocation26_spill] sm:$0xff]  ;;  %vm9921_vm7 = vmmov %vm9895_vm0 }
 0x3a9   : > { %6587 = vpow2.f32 %v1864_v33 }
 0x3aa   : > { %v8418_v41 = vpop.eup %6583  ;;  %v1874_v16 = vmul.f32 1.442695, %v1814_v26 }
 0x3ab   : > { %v1957_v18 = vsel %vm838_vm1, %v8418_v41, 0.0  ;;  %v2178_v50 = vpop.f32.mrf.mxu0 }
 0x3ac   : > { %6589 = vpow2.f32 %v1874_v16  ;;  %1958 = vadd.xlane.f32.xlu2 %v1957_v18  ;;  %1949 = vadd.xlane.f32.xlu0 %v1948_v61  ;;  %v2522_v61 = vsel %vm9904_vm9, %v8013_v40, 0  ;;  %v9906_v50 = vld [vmem:[#allocation25_spill] sm:$0xff]  ;;  %vm9922_vm9 = vmmov %vm9895_vm0 }
 0x3ad   : > { %v8424_v6 = vpop.f32.mrf.mxu2 }
 0x3ae   : > { %v6586_v5 = vpop.eup %6585 }
 0x3af   : > { %v1770_v37 = vpop.xlane.xlu1 %1769  ;;  %v8426_v15 = vpop.eup %6587  ;;  %v2018_v22 = vmul.f32 %v6586_v5, %v8278_v29  ;;  %v2417_v29 = vsel %vm9901_vm11, %v7983_v12, 0  ;;  %vm9919_vm11 = vmmov %vm9895_vm0 }
 0x3b0   : > { %v1911_v32 = vpop.xlane.xlu0 %1910  ;;  %v1812_v49 = vsub.f32 %v8297_v56, %v1770_v37  ;;  %v1951_v28 = vsel %vm838_vm1, %v8426_v15, 0.0  ;;  %v9907_v37 = vld [vmem:[#allocation24_spill] sm:$0xff] }
 0x3b1   : > { %6591 = vrcp.f32 %v1911_v32  ;;  %v2050_v20 = vpack.c.bf16 %v2018_v22, %v2018_v22 }
 0x3b2   : > { %v8430_v17 = vpop.eup %6589  ;;  %v1870_v52 = vmul.f32 1.442695, %v1812_v49 }
 0x3b3   : > { %v1966_v57 = vsel %vm838_vm1, %v8430_v17, 0.0  ;;  %6011 = vmatmul.msk.bf16.vlgmr.msra.gmra.mxu0 %vm838_vm1, %v2050_v20 }
 0x3b4   : > { %6593 = vpow2.f32 %v1870_v52  ;;  %1952 = vadd.xlane.f32.xlu2 %v1951_v28  ;;  %2426 = vmatpush.bf16.msra.mxu0 %v2417_v29 }
 0x3b5   : > { %1967 = vadd.xlane.f32.xlu1 %v1966_v57  ;;  %v2136_v56 = vpop.f32.mrf.mxu2  ;;  %v8441_v21 = vpop.f32.mrf.mxu3  ;;  %v9908_v57 = vld [vmem:[#allocation38_spill] sm:$0xff] }
 0x3b6   : > { %v2501_v29 = vsel %vm9895_vm0, %v9908_v57, 0 }
 0x3b7   : > { %v6592_v7 = vpop.eup %6591  ;;  %v1773_v35 = vpop.xlane.xlu1 %1772 }
 0x3b8   : > { %v2019_v1 = vmul.f32 %v6592_v7, %v8299_v51  ;;  %v1914_v46 = vpop.xlane.xlu0 %1913  ;;  %v1813_v13 = vsub.f32 %v8312_v30, %v1773_v35 }
 0x3b9   : > { %6595 = vrcp.f32 %v1914_v46 }
 0x3ba   : > { %v8445_v42 = vpop.eup %6593  ;;  %6597 = vpow2.f32 %v1876_v39  ;;  %v2051_v12 = vpack.c.bf16 %v2019_v1, %v2019_v1  ;;  %v1872_v58 = vmul.f32 1.442695, %v1813_v13 }
 0x3bb   : > { %v1960_v9 = vsel %vm838_vm1, %v8445_v42, 0.0 }
 0x3bc   : > { %6599 = vpow2.f32 %v1872_v58  ;;  %6012 = vmatmul.msk.bf16.vlgmr.msrb.gmra.mxu1 %vm838_vm1, %v2051_v12  ;;  %1961 = vadd.xlane.f32.xlu0 %v1960_v9  ;;  %v9909_v12 = vld [vmem:[#allocation39_spill] sm:$0xff] }
 0x3bd   : > { %2447 = vmatpush.bf16.msrb.mxu1 %v2438_v60  ;;  %v8452_v51 = vpop.f32.mrf.mxu2  ;;  %v2157_v30 = vpop.f32.mrf.mxu3  ;;  %v2543_v58 = vsel %vm9910_vm10, %v9909_v12, 0  ;;  %vm9813_vm10 = vcmask 130048  }
 0x3bf   : > { %v6596_v27 = vpop.eup %6595  ;;  %v1782_v5 = vpop.xlane.xlu1 %1781 }
 0x3c0   : > { %v8454_v4 = vpop.eup %6597  ;;  %v2020_v62 = vmul.f32 %v6596_v27, %v8314_v19  ;;  %v1923_v43 = vpop.xlane.xlu0 %1922  ;;  %v1816_v56 = vsub.f32 %v8323_v36, %v1782_v5 }
 0x3c1   : > { %6601 = vrcp.f32 %v1923_v43  ;;  %v1969_v0 = vsel %vm838_vm1, %v8454_v4, 0.0 }
 0x3c2   : > { %v8457_v55 = vpop.eup %6599  ;;  %v2052_v33 = vpack.c.bf16 %v2020_v62, %v2020_v62 }
 0x3c3   : > { %v1963_v45 = vsel %vm838_vm1, %v8457_v55, 0.0 }
 0x3c4   : > { %6013 = vmatmul.msk.bf16.vlgmr.msrb.gmra.mxu2 %vm838_vm1, %v2052_v33  ;;  %1970 = vadd.xlane.f32.xlu0 %v1969_v0 }
 0x3c5   : > { %2468 = vmatpush.bf16.msrb.mxu2 %v2459_v23  ;;  %1964 = vadd.xlane.f32.xlu2 %v1963_v45  ;;  %v2220_v19 = vpop.f32.mrf.mxu2  ;;  %v9911_v23 = vld [vmem:[#allocation35_spill] sm:$0xff] }
 0x3c6   : > { %v2606_v19 = vsel %vm9912_vm6, %v9911_v23, 0  ;;  %vm9812_vm6 = vcmask 195584  }
 0x3c7   : > { %v6602_v26 = vpop.eup %6601  ;;  %v1785_v22 = vpop.xlane.xlu1 %1784 }
 0x3c8   : > { %v2023_v16 = vmul.f32 %v6602_v26, %v8325_v25  ;;  %v1817_v20 = vsub.f32 %v8334_v10, %v1785_v22  ;;  %v1878_v10 = vmul.f32 1.442695, %v1816_v56 }
 0x3ca   : > { %v2055_v18 = vpack.c.bf16 %v2023_v16, %v2023_v16  ;;  %v1880_v39 = vmul.f32 1.442695, %v1817_v20 }
 0x3cc   : > { %6016 = vmatmul.msk.bf16.vlgmr.msra.gmra.mxu1 %vm838_vm1, %v2055_v18 }
 0x3cd   : > { %2531 = vmatpush.bf16.msra.mxu1 %v2522_v61 }
 0x3ce   : > { %2705 = vrot.lane.b32.xlu1 %v7765_v59, %s7173_s27 }
 0x3cf   : > { %v1932_v28 = vpop.xlane.xlu1 %1931 }
 0x3d6   : > { %2726 = vrot.lane.b32.xlu1 %v9905_v48, %s7173_s27 }
 0x3d8   : > { %2684 = vrot.lane.b32.xlu0 %v9906_v50, %s7173_s27 }
 0x3dd   : > { %2663 = vrot.lane.b32.xlu2 %v9907_v37, %s7173_s27 }
 0x3e6   : > { %v1920_v25 = vpop.xlane.xlu2 %1919 }
 0x3e7   : > { %6603 = vrcp.f32 %v1920_v25  ;;  %v8478_v40 = vpop.f32.mrf.mxu1  ;;  %v9915_v25 = vld [vmem:[#allocation37_spill] sm:$0xff] }
 0x3e8   : > { %v2627_v22 = vsel %vm9916_vm13, %v9915_v25, 0 }
 0x3ed   : > { %v6604_v32 = vpop.eup %6603 }
 0x3ee   : > { %v2022_v49 = vmul.f32 %v6604_v32, %v8349_v53  ;;  %v1926_v44 = vpop.xlane.xlu2 %1925  ;;  %v2643_v32 = vpop.permute.xlu1 %2642 }
 0x3ef   : > { %6605 = vrcp.f32 %v1926_v44  ;;  %v2115_v59 = vpop.f32.mrf.mxu1 }
 0x3f0   : > { %v2054_v52 = vpack.c.bf16 %v2022_v49, %v2022_v49  ;;  %6607 = vrcp.f32 %v1932_v28  ;;  %v9917_v49 = vld [vmem:[#allocation36_spill] sm:$0xff] }
 0x3f1   : > { %v2564_v44 = vsel %vm9918_vm14, %v9917_v49, 0 }
 0x3f2   : > { %6015 = vmatmul.msk.bf16.vlgmr.msrb.gmra.mxu0 %vm838_vm1, %v2054_v52 }
 0x3f3   : > { %2510 = vmatpush.bf16.msrb.mxu0 %v2501_v29 }
 0x3f5   : > { %v6606_v7 = vpop.eup %6605 }
 0x3f6   : > { %v2024_v53 = vmul.f32 %v6606_v7, %v8357_v38  ;;  %v1935_v35 = vpop.xlane.xlu2 %1934  ;;  %v6608_v13 = vpop.eup %6607 }
 0x3f7   : > { %6609 = vrcp.f32 %v1935_v35  ;;  %v8487_v1 = vpop.f32.mrf.mxu1  ;;  %v2026_v9 = vmul.f32 %v6608_v13, %v8338_v3  ;;  %v9913_v3 = vld [vmem:[#allocation40_spill] sm:$0xff] }
 0x3f8   : > { %6611 = vpow2.f32 %v1880_v39  ;;  %v2056_v46 = vpack.c.bf16 %v2024_v53, %v2024_v53 }
 0x3f9   : > { %6613 = vpow2.f32 %v1878_v10  ;;  %v2058_v33 = vpack.c.bf16 %v2026_v9, %v2026_v9 }
 0x3fa   : > { %6017 = vmatmul.msk.bf16.vlgmr.msra.gmra.mxu2 %vm838_vm1, %v2056_v46 }
 0x3fb   : > { %2552 = vmatpush.bf16.msra.mxu2 %v2543_v58 }
 0x3fd   : > { %v6610_v36 = vpop.eup %6609 }
 0x3fe   : > { %v8493_v60 = vpop.eup %6611  ;;  %v2027_v38 = vmul.f32 %v6610_v36, %v8365_v14  ;;  %v1938_v30 = vpop.xlane.xlu2 %1937  ;;  %v2585_v14 = vsel %vm9914_vm12, %v9913_v3, 0  ;;  %v2648_v36 = vsel %vm9919_vm11, %v2643_v32, 0  ;;  %vm9923_vm12 = vcmask 261120  }
 0x3ff   : > { %6615 = vrcp.f32 %v1938_v30  ;;  %v1929_v27 = vpop.xlane.xlu0 %1928  ;;  %v2199_v62 = vpop.f32.mrf.mxu1  ;;  %v1975_v0 = vsel %vm838_vm1, %v8493_v60, 0.0  ;;  %vm9924_vm13 = vmmov %vm9923_vm12 }
 0x400   : > { %v2059_v43 = vpack.c.bf16 %v2027_v38, %v2027_v38  ;;  %6617 = vrcp.f32 %v1929_v27  ;;  %v8498_v45 = vpop.eup %6613  ;;  %vm9925_vm14 = vmmov %vm9923_vm12 }
 0x401   : > { %v1972_v16 = vsel %vm838_vm1, %v8498_v45, 0.0  ;;  %vm9926_vm11 = vmmov %vm9923_vm12 }
 0x402   : > { %6020 = vmatmul.msk.bf16.vlgmr.msrb.gmra.mxu1 %vm838_vm1, %v2059_v43  ;;  %1976 = vadd.xlane.f32.xlu0 %v1975_v0 }
 0x403   : > { %2615 = vmatpush.bf16.msrb.mxu1 %v2606_v19  ;;  %6019 = vmatmul.msk.bf16.vlgmr.msra.gmra.mxu0 %vm838_vm1, %v2058_v33 }
 0x404   : > { %2594 = vmatpush.bf16.msra.mxu0 %v2585_v14 }
 0x405   : > { %v6616_v26 = vpop.eup %6615 }
 0x406   : > { %v6618_v18 = vpop.eup %6617  ;;  %v2028_v61 = vmul.f32 %v6616_v26, %v8371_v54  ;;  %1973 = vadd.xlane.f32.xlu2 %v1972_v16 }
 0x407   : > { %v2025_v48 = vmul.f32 %v6618_v18, %v8374_v63  ;;  %v1944_v50 = vpop.xlane.xlu0 %1943 }
 0x408   : > { %v2060_v5 = vpack.c.bf16 %v2028_v61, %v2028_v61  ;;  %6619 = vrcp.f32 %v1944_v50 }
 0x409   : > { %v2057_v37 = vpack.c.bf16 %v2025_v48, %v2025_v48 }
 0x40a   : > { %6021 = vmatmul.msk.bf16.vlgmr.msrb.gmra.mxu2 %vm838_vm1, %v2060_v5 }
 0x40b   : > { %2636 = vmatpush.bf16.msrb.mxu2 %v2627_v22  ;;  %6018 = vmatmul.msk.bf16.vlgmr.msra.gmra.mxu3 %vm838_vm1, %v2057_v37 }
 0x40c   : > { %2573 = vmatpush.bf16.msra.mxu3 %v2564_v44 }
 0x40d   : > { %v8516_v54 = vpop.f32.mrf.mxu3 }
 0x40e   : > { %v6620_v63 = vpop.eup %6619 }
 0x40f   : > { %v2030_v59 = vmul.f32 %v6620_v63, %v8387_v31  ;;  %v1947_v20 = vpop.xlane.xlu2 %1946 }
 0x410   : > { %6621 = vrcp.f32 %v1947_v20 }
 0x411   : > { %v2062_v52 = vpack.c.bf16 %v2030_v59, %v2030_v59 }
 0x412   : > { %v1956_v28 = vpop.xlane.xlu1 %1955 }
 0x413   : > { %6023 = vmatmul.msk.bf16.vlgmr.msrb.gmra.mxu0 %vm838_vm1, %v2062_v52  ;;  %6623 = vrcp.f32 %v1956_v28 }
 0x415   : > { %v2241_v57 = vpop.f32.mrf.mxu3 }
 0x416   : > { %v6622_v29 = vpop.eup %6621 }
 0x417   : > { %v2031_v56 = vmul.f32 %v6622_v29, %v8396_v11  ;;  %v1941_v39 = vpop.xlane.xlu0 %1940 }
 0x418   : > { %6625 = vrcp.f32 %v1941_v39 }
 0x419   : > { %v2063_v7 = vpack.c.bf16 %v2031_v56, %v2031_v56  ;;  %v6624_v53 = vpop.eup %6623 }
 0x41a   : > { %v2034_v35 = vmul.f32 %v6624_v53, %v8394_v47 }
 0x41b   : > { %6024 = vmatmul.msk.bf16.vlgmr.msra.gmra.mxu1 %vm838_vm1, %v2063_v7 }
 0x41c   : > { %v2066_v12 = vpack.c.bf16 %v2034_v35, %v2034_v35 }
 0x41e   : > { %v6626_v31 = vpop.eup %6625 }
 0x41f   : > { %v2029_v10 = vmul.f32 %v6626_v31, %v8408_v34  ;;  %v1959_v46 = vpop.xlane.xlu2 %1958  ;;  %v1950_v13 = vpop.xlane.xlu0 %1949 }
 0x420   : > { %6627 = vrcp.f32 %v1959_v46 }
 0x421   : > { %v2061_v58 = vpack.c.bf16 %v2029_v10, %v2029_v10  ;;  %6629 = vrcp.f32 %v1950_v13 }
 0x423   : > { %v2323_v11 = vpop.f32.mrf.mxu3  ;;  %6022 = vmatmul.msk.bf16.vlgmr.msrb.gmra.mxu3 %vm838_vm1, %v2061_v58  ;;  %6027 = vmatmul.msk.bf16.vlgmr.msra.gmra.mxu0 %vm838_vm1, %v2066_v12 }
 0x424   : > { %2657 = vmatpush.bf16.msrb.mxu3 %v2648_v36 }
 0x426   : > { %v6628_v9 = vpop.eup %6627 }
 0x427   : > { %v6630_v38 = vpop.eup %6629  ;;  %v2035_v47 = vmul.f32 %v6628_v9, %v8418_v41  ;;  %v1953_v30 = vpop.xlane.xlu2 %1952 }
 0x428   : > { %v2032_v34 = vmul.f32 %v6630_v38, %v8415_v2  ;;  %6631 = vrcp.f32 %v1953_v30  ;;  %v1968_v14 = vpop.xlane.xlu1 %1967 }
 0x429   : > { %v2067_v27 = vpack.c.bf16 %v2035_v47, %v2035_v47 }
 0x42a   : > { %v2064_v62 = vpack.c.bf16 %v2032_v34, %v2032_v34 }
 0x42b   : > { %v2325_v43 = vpop.f32.mrf.mxu3  ;;  %6028 = vmatmul.msk.bf16.vlgmr.msrb.gmra.mxu1 %vm838_vm1, %v2067_v27 }
 0x42c   : > { %6025 = vmatmul.msk.bf16.vlgmr.msra.gmra.mxu2 %vm838_vm1, %v2064_v62 }
 0x42e   : > { %v6632_v33 = vpop.eup %6631 }
 0x42f   : > { %v2033_v0 = vmul.f32 %v6632_v33, %v8426_v15  ;;  %v1962_v23 = vpop.xlane.xlu0 %1961 }
 0x430   : > { %6633 = vrcp.f32 %v1962_v23  ;;  %v2260_v3 = vpop.f32.mrf.mxu0 }
 0x431   : > { %v2065_v19 = vpack.c.bf16 %v2033_v0, %v2033_v0  ;;  %6635 = vrcp.f32 %v1968_v14 }
 0x433   : > { %6026 = vmatmul.msk.bf16.vlgmr.msra.gmra.mxu3 %vm838_vm1, %v2065_v19 }
 0x436   : > { %v6634_v41 = vpop.eup %6633 }
 0x437   : > { %v2036_v2 = vmul.f32 %v6634_v41, %v8445_v42  ;;  %v6636_v50 = vpop.eup %6635  ;;  %v1971_v15 = vpop.xlane.xlu0 %1970 }
 0x438   : > { %v1965_v26 = vpop.xlane.xlu2 %1964  ;;  %v2262_v18 = vpop.f32.mrf.mxu0  ;;  %v2038_v37 = vmul.f32 %v6636_v50, %v8430_v17 }
 0x439   : > { %v2068_v16 = vpack.c.bf16 %v2036_v2, %v2036_v2  ;;  %6637 = vrcp.f32 %v1965_v26  ;;  %v2281_v61 = vpop.f32.mrf.mxu1 }
 0x43a   : > { %v6397_v48 = vpack.i.bf16 %v2281_v61, %v2260_v3  ;;  %6639 = vrcp.f32 %v1971_v15  ;;  %v2070_v59 = vpack.c.bf16 %v2038_v37, %v2038_v37 }
 0x43c   : > { %6398 = vrot.lane.b32.xlu1 %v6397_v48, %s7175_s16  ;;  %6029 = vmatmul.msk.bf16.vlgmr.msrb.gmra.mxu2 %vm838_vm1, %v2068_v16 }
 0x43f   : > { %v6638_v5 = vpop.eup %6637 }
 0x440   : > { %v2037_v25 = vmul.f32 %v6638_v5, %v8457_v55  ;;  %v2664_v42 = vpop.permute.xlu2 %2663  ;;  %v2706_v22 = vpop.permute.xlu1 %2705 }
 0x441   : > { %v2669_v32 = vsel %vm9920_vm4, %v2664_v42, 0  ;;  %v2711_v49 = vsel %vm9921_vm7, %v2706_v22, 0  ;;  %v2283_v44 = vpop.f32.mrf.mxu1  ;;  %v6640_v20 = vpop.eup %6639  ;;  %vm9927_vm4 = vmmov %vm9926_vm11 }
 0x442   : > { %v2069_v63 = vpack.c.bf16 %v2037_v25, %v2037_v25  ;;  %2678 = vmatpush.bf16.msrb.mxu0 %v2669_v32  ;;  %2720 = vmatpush.bf16.msra.mxu2 %v2711_v49  ;;  %v2039_v55 = vmul.f32 %v6640_v20, %v8454_v4  ;;  %vm9928_vm7 = vmmov %vm9927_vm4 }
 0x444   : > { %6030 = vmatmul.msk.bf16.vlgmr.msrb.gmra.mxu3 %vm838_vm1, %v2069_v63  ;;  %v2071_v7 = vpack.c.bf16 %v2039_v55, %v2039_v55 }
 0x445   : > { %6031 = vmatmul.msk.bf16.vlgmr.msrb.gmra.mxu0 %vm838_vm1, %v2070_v59 }
 0x447   : > { %v2302_v17 = vpop.f32.mrf.mxu2 }
 0x448   : > { %v6412_v52 = vpack.i.bf16 %v2323_v11, %v2302_v17  ;;  %v2727_v28 = vpop.permute.xlu1 %2726 }
 0x449   : > { %v2732_v57 = vsel %vm9922_vm9, %v2727_v28, 0  ;;  %v2365_v29 = vpop.f32.mrf.mxu1  ;;  %vm9929_vm9 = vmmov %vm9927_vm4 }
 0x44a   : > { %6413 = vrot.lane.b32.xlu1 %v6412_v52, %s7175_s16  ;;  %2741 = vmatpush.bf16.msra.mxu3 %v2732_v57  ;;  %v2685_v56 = vpop.permute.xlu0 %2684 }
 0x44b   : > { %v2690_v39 = vsel %vm9895_vm0, %v2685_v56, 0  ;;  %v6183_v56 = vld [vmem:[#allocation8 + $0x8] sm:$0xff]  ;;  %vm9930_vm0 = vmmov %vm9927_vm4 }
 0x44c   : > { %2699 = vmatpush.bf16.msra.mxu1 %v2690_v39  ;;  %2904 = vmatpush.bf16.msra.mxu0 %v6183_v56  ;;  %v6182_v39 = vld [vmem:[#allocation8] sm:$0xff] }
 0x44f   : > { %v2304_v53 = vpop.f32.mrf.mxu2  ;;  %6032 = vmatmul.msk.bf16.vlgmr.msra.gmra.mxu1 %vm838_vm1, %v2071_v7 }
 0x450   : > { %2905 = vmatpush.bf16.msra.mxu0 %v6182_v39 }
 0x451   : > { %v2367_v35 = vpop.f32.mrf.mxu1 }
 0x46f   : > { %v2344_v31 = vpop.f32.mrf.mxu0 }
 0x470   : > { %v6427_v15 = vpack.i.bf16 %v2365_v29, %v2344_v31 }
 0x475   : > { %v1977_v10 = vpop.xlane.xlu0 %1976 }
 0x476   : > { %6641 = vrcp.f32 %v1977_v10 }
 0x477   : > { %v2346_v46 = vpop.f32.mrf.mxu0 }
 0x479   : > { %v1974_v4 = vpop.xlane.xlu2 %1973 }
 0x47a   : > { %6643 = vrcp.f32 %v1974_v4 }
 0x47c   : > { %v6642_v13 = vpop.eup %6641 }
 0x47d   : > { %v2041_v12 = vmul.f32 %v6642_v13, %v8493_v60  ;;  %v2386_v58 = vpop.f32.mrf.mxu2 }
 0x47f   : > { %v2073_v36 = vpack.c.bf16 %v2041_v12, %v2041_v12  ;;  %v2449_v11 = vpop.f32.mrf.mxu1 }
 0x480   : > { %v6644_v9 = vpop.eup %6643  ;;  %v2428_v38 = vpop.f32.mrf.mxu0 }
 0x481   : > { %v2040_v47 = vmul.f32 %v6644_v9, %v8498_v45  ;;  %v6402_v30 = vpack.i.bf16 %v2449_v11, %v2428_v38  ;;  %6034 = vmatmul.msk.bf16.vlgmr.msra.gmra.mxu3 %vm838_vm1, %v2073_v36 }
 0x483   : > { %v2072_v34 = vpack.c.bf16 %v2040_v47, %v2040_v47  ;;  %6403 = vrot.lane.b32.xlu2 %v6402_v30, %s7176_s3 }
 0x485   : > { %6033 = vmatmul.msk.bf16.vlgmr.msra.gmra.mxu2 %vm838_vm1, %v2072_v34  ;;  %v2388_v27 = vpop.f32.mrf.mxu2 }
 0x487   : > { %v2451_v62 = vpop.f32.mrf.mxu1 }
 0x488   : > { %v2430_v43 = vpop.f32.mrf.mxu0 }
 0x48d   : > { %v2470_v60 = vpop.f32.mrf.mxu2 }
 0x48e   : > { %v2407_v33 = vpop.f32.mrf.mxu3 }
 0x48f   : > { %v6442_v42 = vpack.i.bf16 %v2407_v33, %v2386_v58 }
 0x490   : > { %v2512_v0 = vpop.f32.mrf.mxu0 }
 0x495   : > { %v2472_v23 = vpop.f32.mrf.mxu2 }
 0x496   : > { %v2409_v19 = vpop.f32.mrf.mxu3 }
 0x498   : > { %v2514_v3 = vpop.f32.mrf.mxu0  ;;  %v2533_v14 = vpop.f32.mrf.mxu1 }
 0x499   : > { %v6432_v45 = vpack.i.bf16 %v2533_v14, %v2512_v0 }
 0x49b   : > { %6433 = vrot.lane.b32.xlu2 %v6432_v45, %s7176_s3 }
 0x4a0   : > { %v2535_v41 = vpop.f32.mrf.mxu1  ;;  %v2596_v2 = vpop.f32.mrf.mxu0 }
 0x4a6   : > { %v2491_v26 = vpop.f32.mrf.mxu3 }
 0x4a7   : > { %v6417_v16 = vpack.i.bf16 %v2491_v26, %v2470_v60 }
 0x4a8   : > { %v2598_v18 = vpop.f32.mrf.mxu0  ;;  %v2617_v61 = vpop.f32.mrf.mxu1 }
 0x4a9   : > { %v6407_v48 = vpack.i.bf16 %v2617_v61, %v2596_v2  ;;  %6418 = vrot.lane.b32.xlu1 %v6417_v16, %s7176_s3 }
 0x4ab   : > { %6408 = vrot.lane.b32.xlu0 %v6407_v48, %s7177_s7 }
 0x4ae   : > { %v2493_v50 = vpop.f32.mrf.mxu3  ;;  %v6399_v46 = vpop.permute.xlu1 %6398 }
 0x4af   : > { %v2554_v5 = vpop.f32.mrf.mxu2  ;;  %v6401_v13 = vunpack.i.h.bf16 %v6399_v46  ;;  %v6400_v12 = vunpack.i.l.bf16 %v6399_v46 }
 0x4b0   : > { %v2619_v37 = vpop.f32.mrf.mxu1 }
 0x4b1   : > { %6428 = vrot.lane.b32.xlu1 %v6427_v15, %s7175_s16  ;;  %v2844_v9 = vsel %vm838_vm1, %v8478_v40, %v6401_v13  ;;  %v2843_v38 = vsel %vm838_vm1, %v8391_v8, %v6400_v12 }
 0x4b6   : > { %v2575_v25 = vpop.f32.mrf.mxu3 }
 0x4b7   : > { %v2556_v22 = vpop.f32.mrf.mxu2  ;;  %v6447_v32 = vpack.i.bf16 %v2575_v25, %v2554_v5 }
 0x4b9   : > { %6443 = vrot.lane.b32.xlu1 %v6442_v42, %s7175_s16  ;;  %6448 = vrot.lane.b32.xlu2 %v6447_v32, %s7176_s3 }
 0x4bc   : > { %v6414_v33 = vpop.permute.xlu1 %6413 }
 0x4bd   : > { %v6416_v23 = vunpack.i.h.bf16 %v6414_v33  ;;  %v6415_v40 = vunpack.i.l.bf16 %v6414_v33 }
 0x4be   : > { %v2577_v49 = vpop.f32.mrf.mxu3 }
 0x4bf   : > { %v2638_v44 = vpop.f32.mrf.mxu2  ;;  %v2846_v14 = vsel %vm838_vm1, %v8441_v21, %v6416_v23  ;;  %v2845_v45 = vsel %vm838_vm1, %v8424_v6, %v6415_v40  ;;  %v6797_v40 = vld [vmem:[%s7413_s5 + $0x18] sm:$0xff] }
 0x4c2   : > { %v2680_v63 = vpop.f32.mrf.mxu0 }
 0x4c7   : > { %v2640_v59 = vpop.f32.mrf.mxu2  ;;  %v2659_v20 = vpop.f32.mrf.mxu3 }
 0x4c8   : > { %v6422_v17 = vpack.i.bf16 %v2659_v20, %v2638_v44 }
 0x4ca   : > { %6423 = vrot.lane.b32.xlu0 %v6422_v17, %s7177_s7  ;;  %v2682_v52 = vpop.f32.mrf.mxu0 }
 0x4cc   : > { %v2701_v28 = vpop.f32.mrf.mxu1 }
 0x4cd   : > { %v6437_v57 = vpack.i.bf16 %v2701_v28, %v2680_v63 }
 0x4cf   : > { %v2661_v55 = vpop.f32.mrf.mxu3 }
 0x4d2   : > { %6438 = vrot.lane.b32.xlu0 %v6437_v57, %s7177_s7 }
 0x4d4   : > { %v2703_v29 = vpop.f32.mrf.mxu1 }
 0x4dd   : > { %v6404_v4 = vpop.permute.xlu2 %6403 }
 0x4de   : > { %v6406_v58 = vunpack.i.h.bf16 %v6404_v4  ;;  %v6405_v36 = vunpack.i.l.bf16 %v6404_v4 }
 0x4e0   : > { %v2852_v34 = vsel %vm9813_vm10, %v2843_v38, %v6405_v36  ;;  %v2853_v27 = vsel %vm9813_vm10, %v2844_v9, %v6406_v58  ;;  %v6794_v58 = vld [vmem:[%s7413_s5] sm:$0xff] }
 0x4f5   : > { %v6434_v37 = vpop.permute.xlu2 %6433 }
 0x4f6   : > { %v6436_v32 = vunpack.i.h.bf16 %v6434_v37  ;;  %v6435_v49 = vunpack.i.l.bf16 %v6434_v37 }
 0x504   : > { %v2743_v7 = vpop.f32.mrf.mxu3 }
 0x508   : > { %v2722_v53 = vpop.f32.mrf.mxu2 }
 0x509   : > { %v6452_v35 = vpack.i.bf16 %v2743_v7, %v2722_v53 }
 0x50b   : > { %6453 = vrot.lane.b32.xlu0 %v6452_v35, %s7177_s7 }
 0x50c   : > { %v2745_v31 = vpop.f32.mrf.mxu3 }
 0x510   : > { %v2724_v10 = vpop.f32.mrf.mxu2 }
 0x513   : > { %v6449_v55 = vpop.permute.xlu2 %6448 }
 0x514   : > { %v6451_v29 = vunpack.i.h.bf16 %v6449_v55  ;;  %v6450_v56 = vunpack.i.l.bf16 %v6449_v55 }
 0x51b   : > { %v6419_v0 = vpop.permute.xlu1 %6418 }
 0x51c   : > { %v6421_v19 = vunpack.i.h.bf16 %v6419_v0  ;;  %v6420_v3 = vunpack.i.l.bf16 %v6419_v0 }
 0x51d   : > { %v6409_v11 = vpop.permute.xlu0 %6408 }
 0x51e   : > { %v6411_v47 = vunpack.i.h.bf16 %v6409_v11  ;;  %v6410_v30 = vunpack.i.l.bf16 %v6409_v11  ;;  %v2854_v26 = vsel %vm9813_vm10, %v2845_v45, %v6420_v3  ;;  %v2855_v16 = vsel %vm9813_vm10, %v2846_v14, %v6421_v19  ;;  %v6798_v45 = vld [vmem:[%s7413_s5 + $0x20] sm:$0xff] }
 0x520   : > { %v2861_v62 = vsel %vm9812_vm6, %v2852_v34, %v6410_v30  ;;  %v2862_v43 = vsel %vm9812_vm6, %v2853_v27, %v6411_v47  ;;  %v6795_v47 = vld [vmem:[%s7413_s5 + $0x8] sm:$0xff] }
 0x521   : > { %v2869_v60 = vpack.c.bf16 %v2862_v43, %v2861_v62  ;;  %v6796_v43 = vld [vmem:[%s7413_s5 + $0x10] sm:$0xff] }
 0x523   : > { %6043 = vmatmul.msk.bf16.vlgmr.msra.gmra.mxu0 %vm9923_vm12, %v2869_v60  ;;  %v6429_v50 = vpop.permute.xlu1 %6428  ;;  %vm9931_vm12 = vmmov %vm9930_vm0 }
 0x524   : > { %v6431_v15 = vunpack.i.h.bf16 %v6429_v50  ;;  %v6430_v5 = vunpack.i.l.bf16 %v6429_v50  ;;  %v7178_v50 = vmov 32.0  }
 0x525   : > { %6645 = vrcp.f32 %v7178_v50 }
 0x526   : > { %v2848_v6 = vsel %vm838_vm1, %v8487_v1, %v6431_v15  ;;  %v2847_v25 = vsel %vm838_vm1, %v8413_v24, %v6430_v5 }
 0x527   : > { %v2856_v44 = vsel %vm9813_vm10, %v2847_v25, %v6435_v49  ;;  %v2857_v63 = vsel %vm9813_vm10, %v2848_v6, %v6436_v32 }
 0x52b   : > { %v6444_v52 = vpop.permute.xlu1 %6443  ;;  %v6646_v6 = vpop.eup %6645 }
 0x52c   : > { %v6446_v1 = vunpack.i.h.bf16 %v6444_v52  ;;  %v6445_v28 = vunpack.i.l.bf16 %v6444_v52 }
 0x52e   : > { %v2850_v24 = vsel %vm838_vm1, %v8516_v54, %v6446_v1  ;;  %v2849_v57 = vsel %vm838_vm1, %v8452_v51, %v6445_v28  ;;  %v8597_v54 = vld [vmem:[#allocation5] sm:$0xff] }
 0x52f   : > { %v2858_v35 = vsel %vm9813_vm10, %v2849_v57, %v6450_v56  ;;  %v2859_v31 = vsel %vm9813_vm10, %v2850_v24, %v6451_v29  ;;  %v2873_v51 = vperm.slane %v8597_v54, 1  ;;  %v6801_v29 = vld [vmem:[%s7413_s5 + $0x38] sm:$0xff] }
 0x53c   : > { %v6424_v8 = vpop.permute.xlu0 %6423 }
 0x53d   : > { %v6426_v41 = vunpack.i.h.bf16 %v6424_v8  ;;  %v6425_v2 = vunpack.i.l.bf16 %v6424_v8 }
 0x53f   : > { %v2863_v18 = vsel %vm9812_vm6, %v2854_v26, %v6425_v2  ;;  %v2864_v61 = vsel %vm9812_vm6, %v2855_v16, %v6426_v41 }
 0x540   : > { %v2870_v48 = vpack.c.bf16 %v2864_v61, %v2863_v18  ;;  %v6799_v18 = vld [vmem:[%s7413_s5 + $0x28] sm:$0xff] }
 0x542   : > { %6044 = vmatmul.msk.bf16.gmra.mxu0 %vm9924_vm13, %v2870_v48  ;;  %vm9932_vm13 = vmmov %vm9930_vm0 }
 0x544   : > { %v6439_v21 = vpop.permute.xlu0 %6438 }
 0x545   : > { %v6441_v42 = vunpack.i.h.bf16 %v6439_v21  ;;  %v6440_v22 = vunpack.i.l.bf16 %v6439_v21  ;;  %v6800_v21 = vld [vmem:[%s7413_s5 + $0x30] sm:$0xff]  ;;  %s596_s5 = scalar_select %p595_p3, %s8745_s8, 15 }
 0x547   : > { %v2865_v59 = vsel %vm9812_vm6, %v2856_v44, %v6440_v22  ;;  %v2866_v20 = vsel %vm9812_vm6, %v2857_v63, %v6441_v42  ;;  %v2960_v42 = vmul.f32 32.0, %v6646_v6  ;;  %s597_s13 = scalar_lea.vmem %s9771_s1, %s596_s5 }
 0x548   : > { %v2871_v17 = vpack.c.bf16 %v2866_v20, %v2865_v59 }
 0x549   : > { %v2961_v22 = vsub.f32 1.0, %v2960_v42 }
 0x54b   : > { %v2962_v32 = vmul.f32 %v6646_v6, %v2961_v22 }
 0x54d   : > { %v2963_v49 = vadd.f32 %v6646_v6, %v2962_v32 }
 0x552   : > { %6045 = vmatmul.msk.bf16.gmra.mxu0 %vm9925_vm14, %v2871_v17  ;;  %vm9933_vm14 = vmmov %vm9930_vm0 }
 0x57d   : > { %v6454_v39 = vpop.permute.xlu0 %6453 }
 0x57e   : > { %v6456_v7 = vunpack.i.h.bf16 %v6454_v39  ;;  %v6455_v53 = vunpack.i.l.bf16 %v6454_v39 }
 0x580   : > { %v2867_v10 = vsel %vm9812_vm6, %v2858_v35, %v6455_v53  ;;  %v2868_v46 = vsel %vm9812_vm6, %v2859_v31, %v6456_v7 }
 0x581   : > { %v2872_v4 = vpack.c.bf16 %v2868_v46, %v2867_v10 }
 0x583   : > { %6046 = vmatmul.msk.bf16.gmra.mxu0 %vm9926_vm11, %v2872_v4  ;;  %vm2964_vm11 = vweird.f32 %v6646_v6 }
 0x584   : > { %v8614_v44 = vsel %vm2964_vm11, %v6646_v6, %v2963_v49  ;;  %vm9941_vm11 = vmmov %vm9930_vm0 }
 0x585   : > { %9934 = vst [vmem:[#allocation26_spill] sm:$0xff] %v8614_v44 }
 0x5a0   : > { %v2907_v13 = vpop.f32.mrf.mxu0 }
 0x5a1   : > { %v2908_v12 = vadd.f32 %v2907_v13, %v2873_v51 }
 0x5a3   : > { %v2927_v36 = vadd.f32 %v6794_v58, %v2908_v12 }
 0x5a5   : > { %v2935_v11 = vsel %vm9927_vm4, %v2927_v36, 0.0  ;;  %vm9935_vm4 = vmmov %vm9930_vm0 }
 0x5a6   : > { %2936 = vadd.xlane.f32.xlu1 %v2935_v11 }
 0x5a8   : > { %v2909_v9 = vpop.f32.mrf.mxu0 }
 0x5a9   : > { %v2910_v38 = vadd.f32 %v2909_v9, %v2873_v51 }
 0x5ab   : > { %v2928_v30 = vadd.f32 %v6795_v47, %v2910_v38 }
 0x5ad   : > { %v2938_v34 = vsel %vm9928_vm7, %v2928_v30, 0.0  ;;  %vm9936_vm7 = vmmov %vm9930_vm0 }
 0x5ae   : > { %2939 = vadd.xlane.f32.xlu2 %v2938_v34 }
 0x5bf   : > { %v2912_v27 = vpop.f32.mrf.mxu0 }
 0x5c0   : > { %v2913_v62 = vadd.f32 %v2912_v27, %v2873_v51 }
 0x5c2   : > { %v2929_v60 = vadd.f32 %v6796_v43, %v2913_v62 }
 0x5c4   : > { %v2941_v33 = vsel %vm9929_vm9, %v2929_v60, 0.0  ;;  %vm9937_vm9 = vmmov %vm9930_vm0 }
 0x5c5   : > { %2942 = vadd.xlane.f32.xlu0 %v2941_v33 }
 0x5c7   : > { %v2914_v0 = vpop.f32.mrf.mxu0 }
 0x5c8   : > { %v2915_v23 = vadd.f32 %v2914_v0, %v2873_v51 }
 0x5ca   : > { %v2930_v19 = vadd.f32 %v6797_v40, %v2915_v23 }
 0x5cc   : > { %v2944_v3 = vsel %vm9930_vm0, %v2930_v19, 0.0 }
 0x5cd   : > { %2945 = vadd.xlane.f32.xlu1 %v2944_v3 }
 0x5cf   : > { %v2917_v8 = vpop.f32.mrf.mxu0 }
 0x5d0   : > { %v2918_v14 = vadd.f32 %v2917_v8, %v2873_v51 }
 0x5d2   : > { %v2931_v41 = vadd.f32 %v6798_v45, %v2918_v14  ;;  %v6185_v14 = vld [vmem:[#allocation10 + $0x8] sm:$0xff] }
 0x5d3   : > { %3171 = vmatpush.bf16.msrb.mxu1 %v6185_v14 }
 0x5d4   : > { %v2947_v2 = vsel %vm9931_vm12, %v2931_v41, 0.0  ;;  %vm9938_vm12 = vmmov %vm9930_vm0 }
 0x5d5   : > { %2948 = vadd.xlane.f32.xlu2 %v2947_v2 }
 0x5d7   : > { %v2919_v26 = vpop.f32.mrf.mxu0 }
 0x5d8   : > { %v2920_v16 = vadd.f32 %v2919_v26, %v2873_v51 }
 0x5da   : > { %v2932_v61 = vadd.f32 %v6799_v18, %v2920_v16 }
 0x5dc   : > { %v2950_v48 = vsel %vm9932_vm13, %v2932_v61, 0.0  ;;  %vm9939_vm13 = vmmov %vm9930_vm0 }
 0x5dd   : > { %2951 = vadd.xlane.f32.xlu0 %v2950_v48 }
 0x600   : > { %v2922_v15 = vpop.f32.mrf.mxu0 }
 0x601   : > { %v2923_v5 = vadd.f32 %v2922_v15, %v2873_v51 }
 0x603   : > { %v2933_v37 = vadd.f32 %v6800_v21, %v2923_v5 }
 0x605   : > { %v2953_v25 = vsel %vm9933_vm14, %v2933_v37, 0.0  ;;  %vm9940_vm14 = vmmov %vm9930_vm0 }
 0x606   : > { %2954 = vadd.xlane.f32.xlu0 %v2953_v25 }
 0x608   : > { %v2924_v17 = vpop.f32.mrf.mxu0 }
 0x609   : > { %v2925_v1 = vadd.f32 %v2924_v17, %v2873_v51 }
 0x60b   : > { %v2934_v56 = vadd.f32 %v6801_v29, %v2925_v1 }
 0x60d   : > { %v2956_v53 = vsel %vm9937_vm9, %v2934_v56, 0.0 }
 0x619   : > { %v2937_v63 = vpop.xlane.xlu1 %2936 }
 0x61a   : > { %v2966_v59 = vmul.f32 %v8614_v44, %v2937_v63 }
 0x61c   : > { %v8617_v20 = vsub.f32 %v2927_v36, %v2966_v59 }
 0x61e   : > { %v2982_v52 = vmul.f32 %v8617_v20, %v8617_v20 }
 0x620   : > { %v2990_v28 = vsel %vm9935_vm4, %v2982_v52, 0.0  ;;  %vm9942_vm4 = vmmov %vm9930_vm0  ;;  %v8669_v52 = vperm.slane %v8597_v54, 2 }
 0x621   : > { %v2940_v55 = vpop.xlane.xlu2 %2939  ;;  %2991 = vadd.xlane.f32.xlu1 %v2990_v28 }
 0x622   : > { %v2967_v24 = vmul.f32 %v8614_v44, %v2940_v55 }
 0x624   : > { %v8623_v57 = vsub.f32 %v2928_v30, %v2967_v24  ;;  %v8673_v24 = vperm.slane %v8597_v54, 3 }
 0x626   : > { %v2983_v39 = vmul.f32 %v8623_v57, %v8623_v57 }
 0x628   : > { %v2993_v7 = vsel %vm9936_vm7, %v2983_v39, 0.0 }
 0x629   : > { %2994 = vadd.xlane.f32.xlu2 %v2993_v7  ;;  %2957 = vadd.xlane.f32.xlu1 %v2956_v53 }
 0x638   : > { %v2943_v35 = vpop.xlane.xlu0 %2942 }
 0x639   : > { %v2968_v31 = vmul.f32 %v8614_v44, %v2943_v35 }
 0x63b   : > { %v8631_v10 = vsub.f32 %v2929_v60, %v2968_v31 }
 0x63d   : > { %v2984_v46 = vmul.f32 %v8631_v10, %v8631_v10 }
 0x63f   : > { %v2996_v4 = vsel %vm9930_vm0, %v2984_v46, 0.0 }
 0x640   : > { %2997 = vadd.xlane.f32.xlu2 %v2996_v4  ;;  %v2946_v51 = vpop.xlane.xlu1 %2945 }
 0x641   : > { %v2969_v13 = vmul.f32 %v8614_v44, %v2946_v51 }
 0x643   : > { %v8637_v12 = vsub.f32 %v2930_v19, %v2969_v13 }
 0x645   : > { %v2985_v58 = vmul.f32 %v8637_v12, %v8637_v12 }
 0x647   : > { %v2999_v36 = vsel %vm9938_vm12, %v2985_v58, 0.0 }
 0x648   : > { %v2949_v11 = vpop.xlane.xlu2 %2948  ;;  %3000 = vadd.xlane.f32.xlu0 %v2999_v36 }
 0x649   : > { %v2970_v9 = vmul.f32 %v8614_v44, %v2949_v11 }
 0x64b   : > { %v8643_v38 = vsub.f32 %v2931_v41, %v2970_v9  ;;  %v6184_v41 = vld [vmem:[#allocation10] sm:$0xff] }
 0x64c   : > { %3172 = vmatpush.bf16.msrb.mxu1 %v6184_v41 }
 0x64d   : > { %v2986_v47 = vmul.f32 %v8643_v38, %v8643_v38 }
 0x64f   : > { %v3002_v30 = vsel %vm9939_vm13, %v2986_v47, 0.0 }
 0x650   : > { %v2952_v34 = vpop.xlane.xlu0 %2951  ;;  %3003 = vadd.xlane.f32.xlu1 %v3002_v30 }
 0x651   : > { %v2971_v27 = vmul.f32 %v8614_v44, %v2952_v34 }
 0x653   : > { %v8649_v62 = vsub.f32 %v2932_v61, %v2971_v27 }
 0x655   : > { %v2987_v43 = vmul.f32 %v8649_v62, %v8649_v62 }
 0x657   : > { %v3005_v60 = vsel %vm9940_vm14, %v2987_v43, 0.0 }
 0x658   : > { %3006 = vadd.xlane.f32.xlu2 %v3005_v60 }
 0x679   : > { %v2955_v33 = vpop.xlane.xlu0 %2954 }
 0x67a   : > { %v2972_v0 = vmul.f32 %v8614_v44, %v2955_v33 }
 0x67c   : > { %v8655_v23 = vsub.f32 %v2933_v37, %v2972_v0 }
 0x67e   : > { %v2988_v40 = vmul.f32 %v8655_v23, %v8655_v23 }
 0x680   : > { %v3008_v19 = vsel %vm9941_vm11, %v2988_v40, 0.0  ;;  %vm9943_vm11 = vmmov %vm9942_vm4 }
 0x681   : > { %3009 = vadd.xlane.f32.xlu0 %v3008_v19 }
 0x694   : > { %v2992_v3 = vpop.xlane.xlu1 %2991 }
 0x695   : > { %v3014_v8 = vmul.f32 %v2992_v3, %v8614_v44 }
 0x697   : > { %v3022_v45 = vadd.f32 1e-06, %v3014_v8 }
 0x699   : > { %6647 = vrsqrt.f32 %v3022_v45  ;;  %vm3036_vm9 = vweird.f32 %v3022_v45 }
 0x69c   : > { %v2995_v2 = vpop.xlane.xlu2 %2994  ;;  %v2958_v26 = vpop.xlane.xlu1 %2957 }
 0x69d   : > { %v3015_v16 = vmul.f32 %v2995_v2, %v8614_v44  ;;  %v2973_v18 = vmul.f32 %v8614_v44, %v2958_v26 }
 0x69f   : > { %v6648_v61 = vpop.eup %6647  ;;  %v3023_v48 = vadd.f32 1e-06, %v3015_v16  ;;  %v8663_v50 = vsub.f32 %v2934_v56, %v2973_v18 }
 0x6a0   : > { %v3031_v15 = vmul.f32 %v6648_v61, %v3022_v45  ;;  %vm3037_vm7 = vweird.f32 %v6648_v61 }
 0x6a1   : > { %6649 = vrsqrt.f32 %v3023_v48  ;;  %v2989_v5 = vmul.f32 %v8663_v50, %v8663_v50  ;;  %vm3038_vm0 = vmor %vm3036_vm9, %vm3037_vm7  ;;  %vm3046_vm13 = vweird.f32 %v3023_v48 }
 0x6a2   : > { %v3032_v21 = vmul.f32 %v6648_v61, %v3031_v15 }
 0x6a3   : > { %v3011_v37 = vsel %vm9942_vm4, %v2989_v5, 0.0 }
 0x6a4   : > { %v3033_v6 = vmul.f32 0.5, %v3032_v21  ;;  %3012 = vadd.xlane.f32.xlu1 %v3011_v37 }
 0x6a6   : > { %v3034_v25 = vsub.f32 1.5, %v3033_v6 }
 0x6a7   : > { %v6650_v42 = vpop.eup %6649 }
 0x6a8   : > { %v3035_v22 = vmul.f32 %v6648_v61, %v3034_v25  ;;  %v3041_v32 = vmul.f32 %v6650_v42, %v3023_v48  ;;  %vm3047_vm12 = vweird.f32 %v6650_v42 }
 0x6a9   : > { %vm3048_vm14 = vmor %vm3046_vm13, %vm3047_vm12 }
 0x6aa   : > { %v3042_v49 = vmul.f32 %v6650_v42, %v3041_v32  ;;  %v3039_v63 = vsel %vm3038_vm0, %v6648_v61, %v3035_v22 }
 0x6ab   : > { %v3110_v1 = vmul.f32 %v3039_v63, %v8617_v20 }
 0x6ac   : > { %v3043_v59 = vmul.f32 0.5, %v3042_v49 }
 0x6ad   : > { %v3119_v29 = vmul.f32 %v8669_v52, %v3110_v1 }
 0x6ae   : > { %v3044_v17 = vsub.f32 1.5, %v3043_v59 }
 0x6af   : > { %v8680_v31 = vadd.f32 %v8673_v24, %v3119_v29 }
 0x6b0   : > { %v3045_v28 = vmul.f32 %v6650_v42, %v3044_v17 }
 0x6b2   : > { %v3049_v55 = vsel %vm3048_vm14, %v6650_v42, %v3045_v28 }
 0x6b3   : > { %v3111_v56 = vmul.f32 %v3049_v55, %v8623_v57  ;;  %v2998_v39 = vpop.xlane.xlu2 %2997 }
 0x6b4   : > { %v3016_v7 = vmul.f32 %v2998_v39, %v8614_v44 }
 0x6b5   : > { %v3120_v53 = vmul.f32 %v8669_v52, %v3111_v56 }
 0x6b6   : > { %v3024_v35 = vadd.f32 1e-06, %v3016_v7 }
 0x6b7   : > { %v8683_v20 = vadd.f32 %v8673_v24, %v3120_v53 }
 0x6b8   : > { %6651 = vrsqrt.f32 %v3024_v35  ;;  %vm3056_vm7 = vweird.f32 %v3024_v35 }
 0x6b9   : > { %v3136_v46 = vpack.c.bf16 %v8683_v20, %v8680_v31 }
 0x6bb   : > { %v3001_v4 = vpop.xlane.xlu0 %3000  ;;  %6055 = vmatmul.msk.bf16.vlgmr.msrb.gmra.mxu1 %vm9943_vm11, %v3136_v46 }
 0x6bc   : > { %v3017_v57 = vmul.f32 %v3001_v4, %v8614_v44 }
 0x6be   : > { %v6652_v51 = vpop.eup %6651  ;;  %v3025_v13 = vadd.f32 1e-06, %v3017_v57 }
 0x6bf   : > { %v3051_v58 = vmul.f32 %v6652_v51, %v3024_v35  ;;  %vm3057_vm4 = vweird.f32 %v6652_v51 }
 0x6c0   : > { %6653 = vrsqrt.f32 %v3025_v13  ;;  %vm3058_vm9 = vmor %vm3056_vm7, %vm3057_vm4  ;;  %vm3066_vm12 = vweird.f32 %v3025_v13  ;;  %vm9944_vm7 = vcmask 261120  }
 0x6c1   : > { %v3052_v36 = vmul.f32 %v6652_v51, %v3051_v58 }
 0x6c3   : > { %v3053_v11 = vmul.f32 0.5, %v3052_v36  ;;  %v3004_v9 = vpop.xlane.xlu1 %3003 }
 0x6c4   : > { %v3018_v47 = vmul.f32 %v3004_v9, %v8614_v44 }
 0x6c5   : > { %v3054_v30 = vsub.f32 1.5, %v3053_v11  ;;  %v6187_v11 = vld [vmem:[#allocation11 + $0x8] sm:$0xff] }
 0x6c6   : > { %v6654_v34 = vpop.eup %6653  ;;  %v3026_v27 = vadd.f32 1e-06, %v3018_v47  ;;  %3237 = vmatpush.bf16.msrb.mxu2 %v6187_v11 }
 0x6c7   : > { %v3055_v43 = vmul.f32 %v6652_v51, %v3054_v30  ;;  %v3061_v60 = vmul.f32 %v6654_v34, %v3025_v13  ;;  %vm3067_vm0 = vweird.f32 %v6654_v34 }
 0x6c8   : > { %6655 = vrsqrt.f32 %v3026_v27  ;;  %vm3068_vm13 = vmor %vm3066_vm12, %vm3067_vm0  ;;  %vm3076_vm11 = vweird.f32 %v3026_v27 }
 0x6c9   : > { %v3062_v33 = vmul.f32 %v6654_v34, %v3061_v60  ;;  %v3059_v0 = vsel %vm3058_vm9, %v6652_v51, %v3055_v43 }
 0x6ca   : > { %v3112_v45 = vmul.f32 %v3059_v0, %v8631_v10 }
 0x6cb   : > { %v3063_v40 = vmul.f32 0.5, %v3062_v33  ;;  %v3007_v19 = vpop.xlane.xlu2 %3006 }
 0x6cc   : > { %v3019_v3 = vmul.f32 %v3007_v19, %v8614_v44  ;;  %v3121_v48 = vmul.f32 %v8669_v52, %v3112_v45 }
 0x6cd   : > { %v3064_v8 = vsub.f32 1.5, %v3063_v40 }
 0x6ce   : > { %v6656_v14 = vpop.eup %6655  ;;  %v3027_v41 = vadd.f32 1e-06, %v3019_v3  ;;  %v8696_v6 = vadd.f32 %v8673_v24, %v3121_v48 }
 0x6cf   : > { %v3065_v2 = vmul.f32 %v6654_v34, %v3064_v8  ;;  %v3071_v26 = vmul.f32 %v6656_v14, %v3026_v27  ;;  %vm3077_vm14 = vweird.f32 %v6656_v14  ;;  %v6186_v27 = vld [vmem:[#allocation11] sm:$0xff] }
 0x6d0   : > { %6657 = vrsqrt.f32 %v3027_v41  ;;  %vm3078_vm4 = vmor %vm3076_vm11, %vm3077_vm14  ;;  %vm3086_vm0 = vweird.f32 %v3027_v41  ;;  %3238 = vmatpush.bf16.msrb.mxu2 %v6186_v27 }
 0x6d1   : > { %v3069_v16 = vsel %vm3068_vm13, %v6654_v34, %v3065_v2  ;;  %v3072_v18 = vmul.f32 %v6656_v14, %v3071_v26  ;;  %vm9945_vm13 = vmmov %vm9944_vm7  ;;  %v8733_v26 = vperm.slane %v8597_v54, 4 }
 0x6d2   : > { %v3113_v61 = vmul.f32 %v3069_v16, %v8637_v12 }
 0x6d3   : > { %v3073_v15 = vmul.f32 0.5, %v3072_v18 }
 0x6d4   : > { %v3122_v5 = vmul.f32 %v8669_v52, %v3113_v61 }
 0x6d5   : > { %v3074_v21 = vsub.f32 1.5, %v3073_v15 }
 0x6d6   : > { %v6658_v37 = vpop.eup %6657  ;;  %v8699_v10 = vadd.f32 %v8673_v24, %v3122_v5 }
 0x6d7   : > { %v3075_v25 = vmul.f32 %v6656_v14, %v3074_v21  ;;  %v3081_v42 = vmul.f32 %v6658_v37, %v3027_v41  ;;  %vm3087_vm9 = vweird.f32 %v6658_v37 }
 0x6d8   : > { %v3137_v22 = vpack.c.bf16 %v8699_v10, %v8696_v6  ;;  %vm3088_vm12 = vmor %vm3086_vm0, %vm3087_vm9 }
 0x6d9   : > { %v3082_v12 = vmul.f32 %v6658_v37, %v3081_v42  ;;  %v3079_v32 = vsel %vm3078_vm4, %v6656_v14, %v3075_v25 }
 0x6da   : > { %6056 = vmatmul.msk.bf16.gmra.mxu1 %vm9944_vm7, %v3137_v22  ;;  %v3114_v59 = vmul.f32 %v3079_v32, %v8643_v38 }
 0x6db   : > { %v3083_v49 = vmul.f32 0.5, %v3082_v12 }
 0x6dc   : > { %v3123_v55 = vmul.f32 %v8669_v52, %v3114_v59 }
 0x6dd   : > { %v3084_v63 = vsub.f32 1.5, %v3083_v49 }
 0x6de   : > { %v8709_v56 = vadd.f32 %v8673_v24, %v3123_v55 }
 0x6df   : > { %v3085_v17 = vmul.f32 %v6658_v37, %v3084_v63 }
 0x6e1   : > { %v3089_v1 = vsel %vm3088_vm12, %v6658_v37, %v3085_v17  ;;  %vm9946_vm12 = vmmov %vm9945_vm13 }
 0x6e2   : > { %v3115_v28 = vmul.f32 %v3089_v1, %v8649_v62  ;;  %v613_v1 = vld [vmem:[%s597_s13 + $0x1] sm:$0x1] }
 0x6e3   : > { %v3285_v55 = vpack.c.bf16 %v613_v1, %v613_v1  ;;  %5644 = vst [vmem:[#allocation1 + $0x1] ss:$9 sm:$0xff] %v613_v1 }
 0x6e4   : > { %v3124_v29 = vmul.f32 %v8669_v52, %v3115_v28  ;;  %v614_v28 = vld [vmem:[%s597_s13 + $0x2] sm:$0x1] }
 0x6e5   : > { %5646 = vst [vmem:[#allocation1 + $0x2] ss:$9 sm:$0xff] %v614_v28 }
 0x6e6   : > { %v8712_v39 = vadd.f32 %v8673_v24, %v3124_v29  ;;  %v612_v29 = vld [vmem:[%s597_s13] sm:$0x1] }
 0x6e7   : > { %5642 = vst [vmem:[#allocation1] ss:$9 sm:$0xff] %v612_v29 }
 0x6e8   : > { %v3138_v7 = vpack.c.bf16 %v8712_v39, %v8709_v56 }
 0x6ea   : > { %6057 = vmatmul.msk.bf16.gmra.mxu1 %vm9945_vm13, %v3138_v7  ;;  %vm9947_vm13 = vmmov %vm9946_vm12  ;;  %v615_v7 = vld [vmem:[%s597_s13 + $0x3] sm:$0x1] }
 0x6eb   : > { %5648 = vst [vmem:[#allocation1 + $0x3] ss:$9 sm:$0xff] %v615_v7 }
 0x6f4   : > { %v3010_v38 = vpop.xlane.xlu0 %3009 }
 0x6f5   : > { %v3020_v53 = vmul.f32 %v3010_v38, %v8614_v44  ;;  %v3286_v38 = vpack.c.bf16 %v614_v28, %v614_v28 }
 0x6f7   : > { %v3028_v35 = vadd.f32 1e-06, %v3020_v53  ;;  %v616_v53 = vld [vmem:[%s597_s13 + $0x4] sm:$0x1] }
 0x6f8   : > { %5650 = vst [vmem:[#allocation1 + $0x4] ss:$9 sm:$0xff] %v616_v53 }
 0x6f9   : > { %6659 = vrsqrt.f32 %v3028_v35  ;;  %vm3096_vm11 = vweird.f32 %v3028_v35 }
 0x6ff   : > { %v6660_v62 = vpop.eup %6659 }
 0x700   : > { %v3091_v46 = vmul.f32 %v6660_v62, %v3028_v35  ;;  %vm3097_vm14 = vweird.f32 %v6660_v62  ;;  %v3284_v35 = vpack.c.bf16 %v612_v29, %v612_v29 }
 0x701   : > { %vm3098_vm4 = vmor %vm3096_vm11, %vm3097_vm14 }
 0x702   : > { %v3092_v4 = vmul.f32 %v6660_v62, %v3091_v46  ;;  %vm9948_vm14 = vmmov %vm9946_vm12  ;;  %v3302_v46 = vunpack.c.l.b16 %v3285_v55 }
 0x703   : > { %vm9949_vm11 = vmmov %vm9946_vm12 }
 0x704   : > { %v3093_v58 = vmul.f32 0.5, %v3092_v4  ;;  %v617_v4 = vld [vmem:[%s597_s13 + $0x5] sm:$0x1]  ;;  %vm9950_vm6 = vmmov %vm9949_vm11 }
 0x705   : > { %5652 = vst [vmem:[#allocation1 + $0x5] ss:$9 sm:$0xff] %v617_v4 }
 0x706   : > { %v3094_v36 = vsub.f32 1.5, %v3093_v58  ;;  %v3289_v58 = vpack.c.bf16 %v617_v4, %v617_v4 }
 0x708   : > { %v3095_v47 = vmul.f32 %v6660_v62, %v3094_v36  ;;  %v3301_v36 = vunpack.c.l.b16 %v3284_v35 }
 0x70a   : > { %v3099_v43 = vsel %vm3098_vm4, %v6660_v62, %v3095_v47  ;;  %v3287_v62 = vpack.c.bf16 %v615_v7, %v615_v7  ;;  %v6189_v47 = vld [vmem:[#allocation13 + $0x8] sm:$0xff]  ;;  %vm3310_vm4 = vcmask 1041409  }
 0x70b   : > { %v3116_v0 = vmul.f32 %v3099_v43, %v8655_v23  ;;  %3352 = vmatpush.bf16.msrb.mxu3 %v6189_v47 }
 0x70c   : > { %v3304_v11 = vunpack.c.l.b16 %v3287_v62 }
 0x70d   : > { %v3125_v8 = vmul.f32 %v8669_v52, %v3116_v0 }
 0x70f   : > { %v8724_v45 = vadd.f32 %v8673_v24, %v3125_v8  ;;  %v3315_v8 = vrot.slane %v3304_v11, 5 }
 0x717   : > { %v3013_v57 = vpop.xlane.xlu1 %3012 }
 0x718   : > { %v3021_v51 = vmul.f32 %v3013_v57, %v8614_v44  ;;  %v3288_v57 = vpack.c.bf16 %v616_v53, %v616_v53 }
 0x71a   : > { %v3029_v13 = vadd.f32 1e-06, %v3021_v51  ;;  %v3303_v51 = vunpack.c.l.b16 %v3286_v38  ;;  %v3305_v27 = vunpack.c.l.b16 %v3288_v57 }
 0x71c   : > { %6661 = vrsqrt.f32 %v3029_v13  ;;  %vm3106_vm9 = vweird.f32 %v3029_v13  ;;  %v3312_v43 = vrot.slane %v3303_v51, 6 }
 0x722   : > { %v6662_v9 = vpop.eup %6661 }
 0x723   : > { %v3101_v30 = vmul.f32 %v6662_v9, %v3029_v13  ;;  %vm3107_vm7 = vweird.f32 %v6662_v9  ;;  %v618_v13 = vld [vmem:[%s597_s13 + $0x6] sm:$0x1] }
 0x724   : > { %vm3108_vm0 = vmor %vm3106_vm9, %vm3107_vm7  ;;  %vm3313_vm7 = vcmask 1042434   ;;  %5654 = vst [vmem:[#allocation1 + $0x6] ss:$9 sm:$0xff] %v618_v13  ;;  %vm3316_vm9 = vcmask 1043459  }
 0x725   : > { %v3102_v34 = vmul.f32 %v6662_v9, %v3101_v30  ;;  %v619_v30 = vld [vmem:[%s597_s13 + $0x7] sm:$0x1] }
 0x726   : > { %5656 = vst [vmem:[#allocation1 + $0x7] ss:$9 sm:$0xff] %v619_v30 }
 0x727   : > { %v3103_v60 = vmul.f32 0.5, %v3102_v34  ;;  %v3290_v34 = vpack.c.bf16 %v618_v13, %v618_v13 }
 0x729   : > { %v3104_v33 = vsub.f32 1.5, %v3103_v60  ;;  %v3291_v60 = vpack.c.bf16 %v619_v30, %v619_v30 }
 0x72b   : > { %v3105_v40 = vmul.f32 %v6662_v9, %v3104_v33  ;;  %v3306_v33 = vunpack.c.l.b16 %v3289_v58  ;;  %v8774_v58 = vperm.slane %v8597_v54, 6 }
 0x72d   : > { %v3109_v19 = vsel %vm3108_vm0, %v6662_v9, %v3105_v40  ;;  %v3309_v9 = vrot.slane %v3302_v46, 7  ;;  %v6188_v40 = vld [vmem:[#allocation13] sm:$0xff]  ;;  %vm3319_vm0 = vcmask 1044484  }
 0x72e   : > { %v3117_v3 = vmul.f32 %v3109_v19, %v8663_v50  ;;  %v3307_v19 = vunpack.c.l.b16 %v3290_v34  ;;  %3353 = vmatpush.bf16.msrb.mxu3 %v6188_v40 }
 0x72f   : > { %v3311_v0 = vsel %vm3310_vm4, %v3309_v9, %v3301_v36 }
 0x730   : > { %v3126_v14 = vmul.f32 %v8669_v52, %v3117_v3  ;;  %v3314_v3 = vsel %vm3313_vm7, %v3312_v43, %v3311_v0 }
 0x732   : > { %v8727_v41 = vadd.f32 %v8673_v24, %v3126_v14  ;;  %v3308_v14 = vunpack.c.l.b16 %v3291_v60  ;;  %3381 = vmatpush.bf16.msra.mxu3 %v6189_v47 }
 0x734   : > { %v3139_v2 = vpack.c.bf16 %v8727_v41, %v8724_v45 }
 0x736   : > { %6058 = vmatmul.msk.bf16.gmra.mxu1 %vm9946_vm12, %v3139_v2  ;;  %v3318_v2 = vrot.slane %v3305_v27, 4  ;;  %vm9816_vm12 = vcmask 1045509   ;;  %3382 = vmatpush.bf16.msra.mxu3 %v6188_v40 }
 0x738   : > { %v3174_v23 = vpop.f32.mrf.mxu1 }
 0x739   : > { %v3175_v50 = vadd.f32 %v3174_v23, %v8733_v26  ;;  %v3321_v23 = vrot.slane %v3306_v33, 3 }
 0x73b   : > { %v3194_v18 = vmax.f32 %v3175_v50, 0.0  ;;  %v3317_v50 = vsel %vm3316_vm9, %v3315_v8, %v3314_v3 }
 0x740   : > { %v3176_v16 = vpop.f32.mrf.mxu1 }
 0x741   : > { %v3177_v52 = vadd.f32 %v3176_v16, %v8733_v26  ;;  %v3324_v16 = vrot.slane %v3307_v19, 2 }
 0x743   : > { %v3195_v61 = vmax.f32 %v3177_v52, 0.0  ;;  %v3320_v52 = vsel %vm3319_vm0, %v3318_v2, %v3317_v50 }
 0x745   : > { %v3202_v48 = vpack.c.bf16 %v3195_v61, %v3194_v18  ;;  %v3327_v18 = vrot.slane %v3308_v14, 1  ;;  %v3323_v61 = vsel %vm9816_vm12, %v3321_v23, %v3320_v52 }
 0x747   : > { %6067 = vmatmul.msk.bf16.vlgmr.msrb.gmra.mxu2 %vm9947_vm13, %v3202_v48  ;;  %vm9815_vm13 = vcmask 1046534  }
 0x748   : > { %v3326_v48 = vsel %vm9815_vm13, %v3324_v16, %v3323_v61 }
 0x757   : > { %v3179_v24 = vpop.f32.mrf.mxu1 }
 0x758   : > { %v3180_v15 = vadd.f32 %v3179_v24, %v8733_v26 }
 0x75a   : > { %v3196_v37 = vmax.f32 %v3180_v15, 0.0 }
 0x75f   : > { %v3181_v5 = vpop.f32.mrf.mxu1 }
 0x760   : > { %v3182_v21 = vadd.f32 %v3181_v5, %v8733_v26 }
 0x762   : > { %v3197_v25 = vmax.f32 %v3182_v21, 0.0 }
 0x764   : > { %v3203_v42 = vpack.c.bf16 %v3197_v25, %v3196_v37 }
 0x766   : > { %6068 = vmatmul.msk.bf16.gmra.mxu2 %vm9948_vm14, %v3203_v42  ;;  %vm9814_vm14 = vcmask 1047559  }
 0x767   : > { %v3184_v22 = vpop.f32.mrf.mxu1  ;;  %v3329_v24 = vsel %vm9814_vm14, %v3327_v18, %v3326_v48 }
 0x768   : > { %v3185_v12 = vadd.f32 %v3184_v22, %v8733_v26  ;;  %v3330_v15 = vpack.c.b16 %v3329_v24, %v3329_v24 }
 0x76a   : > { %v3198_v63 = vmax.f32 %v3185_v12, 0.0  ;;  %6079 = vmatmul.msk.bf16.vlgmr.msrb.gmra.mxu3 %vm9949_vm11, %v3330_v15 }
 0x76f   : > { %v3186_v32 = vpop.f32.mrf.mxu1 }
 0x770   : > { %v3187_v49 = vadd.f32 %v3186_v32, %v8733_v26 }
 0x772   : > { %v3199_v59 = vmax.f32 %v3187_v49, 0.0  ;;  %v3206_v49 = vperm.slane %v8597_v54, 5 }
 0x774   : > { %v3204_v17 = vpack.c.bf16 %v3199_v59, %v3198_v63 }
 0x776   : > { %6069 = vmatmul.msk.bf16.gmra.mxu2 %vm9949_vm11, %v3204_v17  ;;  %vm9951_vm11 = vmmov %vm9950_vm6 }
 0x7b3   : > { %v3189_v5 = vpop.f32.mrf.mxu1 }
 0x7b4   : > { %v3190_v21 = vadd.f32 %v3189_v5, %v8733_v26 }
 0x7b6   : > { %v3200_v42 = vmax.f32 %v3190_v21, 0.0 }
 0x7bb   : > { %v3191_v37 = vpop.f32.mrf.mxu1 }
 0x7bc   : > { %v3192_v25 = vadd.f32 %v3191_v37, %v8733_v26 }
 0x7be   : > { %v3201_v22 = vmax.f32 %v3192_v25, 0.0 }
 0x7c0   : > { %v3205_v12 = vpack.c.bf16 %v3201_v22, %v3200_v42 }
 0x7c2   : > { %6070 = vmatmul.msk.bf16.gmra.mxu2 %vm9950_vm6, %v3205_v12 }
 0x7ca   : > { %v3240_v32 = vpop.f32.mrf.mxu2 }
 0x7cb   : > { %v3241_v63 = vadd.f32 %v3240_v32, %v3206_v49 }
 0x7cd   : > { %v3260_v1 = vadd.f32 %v3241_v63, %v8680_v31 }
 0x7d2   : > { %v3242_v59 = vpop.f32.mrf.mxu2 }
 0x7d3   : > { %v3243_v17 = vadd.f32 %v3242_v59, %v3206_v49 }
 0x7d5   : > { %v3261_v28 = vadd.f32 %v3243_v17, %v8683_v20 }
 0x7d7   : > { %v3359_v55 = vpack.c.bf16 %v3261_v28, %v3260_v1 }
 0x7d9   : > { %6080 = vmatmul.msk.bf16.vlgmr.msra.gmra.mxu3 %vm9951_vm11, %v3359_v55  ;;  %vm9952_vm11 = vmmov %vm9950_vm6 }
 0x7e9   : > { %v3245_v29 = vpop.f32.mrf.mxu2 }
 0x7ea   : > { %v3246_v26 = vadd.f32 %v3245_v29, %v3206_v49 }
 0x7ec   : > { %v3262_v53 = vadd.f32 %v3246_v26, %v8696_v6 }
 0x7ed   : > { %v3355_v6 = vpop.f32.mrf.mxu3 }
 0x7f1   : > { %v3247_v7 = vpop.f32.mrf.mxu2 }
 0x7f2   : > { %v3248_v38 = vadd.f32 %v3247_v7, %v3206_v49 }
 0x7f4   : > { %v3263_v35 = vadd.f32 %v3248_v38, %v8699_v10  ;;  %v8777_v10 = vadd.f32 %v3355_v6, %v8774_v58 }
 0x7f6   : > { %v3360_v62 = vpack.c.bf16 %v3263_v35, %v3262_v53  ;;  %3408 = vrot.lane.b32.xlu1 %v8777_v10, %s7171_s29  ;;  %3405 = vrot.lane.b32.xlu2 %v8777_v10, %s7172_s15  ;;  %v3414_v1 = vrot.slane %v8777_v10, 1 }
 0x7f7   : > { %3411 = vrot.lane.b32.xlu0 %v8777_v10, %s7170_s6 }
 0x7f8   : > { %6081 = vmatmul.msk.bf16.gmra.mxu3 %vm9950_vm6, %v3360_v62  ;;  %v3551_v55 = vpack.c.bf16 %v3414_v1, %v3414_v1 }
 0x7f9   : > { %v3250_v46 = vpop.f32.mrf.mxu2 }
 0x7fa   : > { %v3251_v4 = vadd.f32 %v3250_v46, %v3206_v49 }
 0x7fc   : > { %v3264_v20 = vadd.f32 %v3251_v4, %v8709_v56  ;;  %v3357_v56 = vpop.f32.mrf.mxu3 }
 0x801   : > { %v3252_v57 = vpop.f32.mrf.mxu2 }
 0x802   : > { %v3253_v31 = vadd.f32 %v3252_v57, %v3206_v49  ;;  %v3550_v57 = vpack.c.bf16 %v8777_v10, %v8777_v10 }
 0x804   : > { %v3265_v51 = vadd.f32 %v3253_v31, %v8712_v39 }
 0x806   : > { %v3361_v13 = vpack.c.bf16 %v3265_v51, %v3264_v20 }
 0x808   : > { %6082 = vmatmul.msk.bf16.gmra.mxu3 %vm9952_vm11, %v3361_v13  ;;  %vm4446_vm11 = vcmask 57344  }
 0x845   : > { %v3255_v39 = vpop.f32.mrf.mxu2 }
 0x846   : > { %v3256_v36 = vadd.f32 %v3255_v39, %v3206_v49 }
 0x848   : > { %v3266_v54 = vadd.f32 %v3256_v36, %v8724_v45  ;;  %v3415_v36 = vrot.slane %v8777_v10, 2 }
 0x84d   : > { %v3257_v11 = vpop.f32.mrf.mxu2 }
 0x84e   : > { %v3258_v9 = vadd.f32 %v3257_v11, %v3206_v49 }
 0x850   : > { %v3267_v47 = vadd.f32 %v3258_v9, %v8727_v41  ;;  %v8824_v63 = vpop.permute.xlu2 %3405  ;;  %v3552_v9 = vpack.c.bf16 %v3415_v36, %v3415_v36 }
 0x852   : > { %v3362_v30 = vpack.c.bf16 %v3267_v47, %v3266_v54 }
 0x854   : > { %6083 = vmatmul.msk.bf16.gmra.mxu3 %vm9950_vm6, %v3362_v30 }
 0x85c   : > { %v3384_v34 = vpop.f32.mrf.mxu3 }
 0x85d   : > { %v3385_v27 = vadd.f32 %v3384_v34, %v8774_v58 }
 0x85f   : > { %v3582_v43 = vpack.c.bf16 %v3385_v27, %v3385_v27 }
 0x861   : > { %v3615_v60 = vunpack.c.l.b16 %v3582_v43 }
 0x863   : > { %v8789_v33 = vpack.c.b16 %v3615_v60, %v3615_v60 }
 0x864   : > { %v3386_v0 = vpop.f32.mrf.mxu3 }
 0x865   : > { %v3387_v40 = vadd.f32 %v3386_v0, %v8774_v58  ;;  %3617 = vrot.lane.b32.xlu1 %v8789_v33, %s7169_s4 }
 0x867   : > { %v3583_v19 = vpack.c.bf16 %v3387_v40, %v3387_v40 }
 0x868   : > { %v8828_v28 = vpop.permute.xlu1 %3408 }
 0x869   : > { %v3639_v45 = vunpack.c.l.b16 %v3583_v19  ;;  %v8850_v6 = vpop.permute.xlu0 %3411 }
 0x86b   : > { %v8794_v3 = vpack.c.b16 %v3639_v45, %v3639_v45 }
 0x86d   : > { %3641 = vrot.lane.b32.xlu2 %v8794_v3, %s7169_s4 }
 0x87b   : > { %v3389_v41 = vpop.f32.mrf.mxu3 }
 0x87c   : > { %v3390_v8 = vadd.f32 %v3389_v41, %v8774_v58 }
 0x87e   : > { %v6462_v14 = vpack.i.bf16 %v3390_v8, %v3387_v40  ;;  %v3584_v16 = vpack.c.bf16 %v3390_v8, %v3390_v8 }
 0x880   : > { %6463 = vrot.lane.b32.xlu0 %v6462_v14, %s7171_s29  ;;  %6458 = vrot.lane.b32.xlu2 %v6462_v14, %s7172_s15  ;;  %v3663_v52 = vunpack.c.l.b16 %v3584_v16 }
 0x882   : > { %v8806_v48 = vpack.c.b16 %v3663_v52, %v3663_v52 }
 0x883   : > { %v3391_v2 = vpop.f32.mrf.mxu3 }
 0x884   : > { %v3392_v23 = vadd.f32 %v3391_v2, %v8774_v58  ;;  %v3418_v2 = vrot.slane %v8777_v10, 5 }
 0x886   : > { %v6472_v50 = vpack.i.bf16 %v3392_v23, %v3385_v27  ;;  %v3585_v24 = vpack.c.bf16 %v3392_v23, %v3392_v23  ;;  %v3417_v27 = vrot.slane %v8777_v10, 4 }
 0x888   : > { %6468 = vrot.lane.b32.xlu2 %v6462_v14, %s7170_s6  ;;  %6473 = vrot.lane.b32.xlu0 %v6472_v50, %s7172_s15  ;;  %v3687_v5 = vunpack.c.l.b16 %v3585_v24  ;;  %v3554_v43 = vpack.c.bf16 %v3417_v27, %v3417_v27  ;;  %v3555_v24 = vpack.c.bf16 %v3418_v2, %v3418_v2 }
 0x889   : > { %6478 = vrot.lane.b32.xlu1 %v6472_v50, %s7171_s29 }
 0x88a   : > { %v8812_v42 = vpack.c.b16 %v3687_v5, %v3687_v5 }
 0x88b   : > { %v3394_v18 = vpop.f32.mrf.mxu3 }
 0x88c   : > { %v3395_v61 = vadd.f32 %v3394_v18, %v8774_v58 }
 0x88e   : > { %v3586_v15 = vpack.c.bf16 %v3395_v61, %v3395_v61 }
 0x890   : > { %3665 = vrot.lane.b32.xlu2 %v8806_v48, %s7169_s4  ;;  %6483 = vrot.lane.b32.xlu0 %v6472_v50, %s7170_s6  ;;  %v3711_v21 = vunpack.c.l.b16 %v3586_v15 }
 0x892   : > { %v8814_v22 = vpack.c.b16 %v3711_v21, %v3711_v21 }
 0x893   : > { %v3396_v37 = vpop.f32.mrf.mxu3 }
 0x894   : > { %v3397_v25 = vadd.f32 %v3396_v37, %v8774_v58 }
 0x896   : > { %v3587_v12 = vpack.c.bf16 %v3397_v25, %v3397_v25 }
 0x898   : > { %3689 = vrot.lane.b32.xlu0 %v8812_v42, %s7169_s4  ;;  %3713 = vrot.lane.b32.xlu2 %v8814_v22, %s7169_s4  ;;  %v3735_v32 = vunpack.c.l.b16 %v3587_v12 }
 0x89a   : > { %v8820_v49 = vpack.c.b16 %v3735_v32, %v3735_v32 }
 0x8a0   : > { %3737 = vrot.lane.b32.xlu2 %v8820_v49, %s7169_s4 }
 0x8c7   : > { %v3642_v59 = vpop.permute.xlu2 %3641 }
 0x8c8   : > { %v3647_v17 = vsel %vm838_vm1, %v3642_v59, 0 }
 0x8c9   : > { %3656 = vmatpush.bf16.xpose.msra.mxu1 %v3647_v17 }
 0x8d0   : > { %6085 = vmatmul.msk.bf16.vlgmr.msra.gmra.mxu1 %vm838_vm1, %v3551_v55 }
 0x8d7   : > { %v3399_v29 = vpop.f32.mrf.mxu3  ;;  %v3618_v26 = vpop.permute.xlu1 %3617 }
 0x8d8   : > { %v3400_v7 = vadd.f32 %v3399_v29, %v8774_v58  ;;  %v3623_v38 = vsel %vm838_vm1, %v3618_v26, 0 }
 0x8d9   : > { %3632 = vmatpush.bf16.xpose.msrb.mxu0 %v3623_v38 }
 0x8da   : > { %v8833_v53 = vpop.permute.xlu2 %6458  ;;  %v6497_v35 = vpack.i.bf16 %v3400_v7, %v3397_v25  ;;  %v3588_v62 = vpack.c.bf16 %v3400_v7, %v3400_v7 }
 0x8db   : > { %v6461_v25 = vunpack.i.h.bf16 %v8833_v53  ;;  %v6460_v12 = vunpack.i.l.bf16 %v8833_v53 }
 0x8dc   : > { %6498 = vrot.lane.b32.xlu2 %v6497_v35, %s7170_s6  ;;  %6488 = vrot.lane.b32.xlu0 %v6497_v35, %s7172_s15  ;;  %v3759_v46 = vunpack.c.l.b16 %v3588_v62 }
 0x8dd   : > { %v3592_v55 = vpack.c.bf16 %v6461_v25, %v6461_v25  ;;  %v3591_v29 = vpack.c.bf16 %v6460_v12, %v6460_v12 }
 0x8de   : > { %v8837_v4 = vpack.c.b16 %v3759_v46, %v3759_v46 }
 0x8df   : > { %v3401_v31 = vpop.f32.mrf.mxu3  ;;  %v3855_v53 = vunpack.c.l.b16 %v3592_v55  ;;  %v3831_v46 = vunpack.c.l.b16 %v3591_v29 }
 0x8e0   : > { %v3402_v20 = vadd.f32 %v3401_v31, %v8774_v58  ;;  %3761 = vrot.lane.b32.xlu1 %v8837_v4, %s7169_s4  ;;  %6084 = vmatmul.msk.bf16.vlgmr.msrb.gmra.mxu0 %vm838_vm1, %v3550_v57 }
 0x8e2   : > { %v8845_v51 = vpop.permute.xlu2 %6468  ;;  %v6512_v13 = vpack.i.bf16 %v3402_v20, %v3395_v61  ;;  %v3589_v39 = vpack.c.bf16 %v3402_v20, %v3402_v20  ;;  %v3416_v20 = vrot.slane %v8777_v10, 3 }
 0x8e3   : > { %v6471_v57 = vunpack.i.h.bf16 %v8845_v51  ;;  %v6470_v31 = vunpack.i.l.bf16 %v8845_v51 }
 0x8e4   : > { %6513 = vrot.lane.b32.xlu2 %v6512_v13, %s7170_s6  ;;  %6493 = vrot.lane.b32.xlu0 %v6497_v35, %s7171_s29  ;;  %v3783_v11 = vunpack.c.l.b16 %v3589_v39  ;;  %v3553_v36 = vpack.c.bf16 %v3416_v20, %v3416_v20 }
 0x8e5   : > { %v3608_v39 = vpack.c.bf16 %v6471_v57, %v6471_v57 }
 0x8e6   : > { %v8855_v30 = vpack.c.b16 %v3783_v11, %v3783_v11 }
 0x8e7   : > { %v4239_v11 = vunpack.c.l.b16 %v3608_v39 }
 0x8e8   : > { %6503 = vrot.lane.b32.xlu1 %v6512_v13, %s7172_s15  ;;  %s5956_s15 = sshll.u32 %s7409_s20, 3 }
 0x8ea   : > { %v3666_v56 = vpop.permute.xlu2 %3665 }
 0x8eb   : > { %v3671_v58 = vsel %vm838_vm1, %v3666_v56, 0  ;;  %v3832_v56 = vpack.c.b16 %v3831_v46, %v3831_v46 }
 0x8ec   : > { %3680 = vmatpush.bf16.xpose.msra.mxu2 %v3671_v58  ;;  %6508 = vrot.lane.b32.xlu0 %v6512_v13, %s7171_s29  ;;  %v8895_v13 = vpack.c.b16 %v3855_v53, %v3855_v53  ;;  %v3607_v58 = vpack.c.bf16 %v6470_v31, %v6470_v31 }
 0x8ee   : > { %v4215_v51 = vunpack.c.l.b16 %v3607_v58 }
 0x8f2   : > { %v6464_v54 = vpop.permute.xlu0 %6463  ;;  %v3714_v47 = vpop.permute.xlu2 %3713 }
 0x8f3   : > { %v3719_v34 = vsel %vm838_vm1, %v3714_v47, 0  ;;  %6086 = vmatmul.msk.bf16.vlgmr.msra.gmra.mxu2 %vm838_vm1, %v3552_v9  ;;  %v6465_v8 = vunpack.i.l.bf16 %v6464_v54  ;;  %v6466_v23 = vunpack.i.h.bf16 %v6464_v54  ;;  %v8904_v47 = vpack.c.b16 %v4239_v11, %v4239_v11 }
 0x8f4   : > { %3728 = vmatpush.bf16.xpose.msrb.mxu1 %v3719_v34  ;;  %3785 = vrot.lane.b32.xlu0 %v8855_v30, %s7169_s4  ;;  %v8906_v34 = vpack.c.b16 %v4215_v51, %v4215_v51  ;;  %v3420_v51 = vrot.slane %v8777_v10, 7 }
 0x8f5   : > { %v3599_v18 = vpack.c.bf16 %v6465_v8, %v6465_v8  ;;  %v3600_v15 = vpack.c.bf16 %v6466_v23, %v6466_v23  ;;  %v3419_v23 = vrot.slane %v8777_v10, 6 }
 0x8f7   : > { %v4023_v32 = vunpack.c.l.b16 %v3599_v18  ;;  %v4047_v17 = vunpack.c.l.b16 %v3600_v15 }
 0x8f9   : > { %v8879_v26 = vpack.c.b16 %v4023_v32, %v4023_v32  ;;  %v8883_v38 = vpack.c.b16 %v4047_v17, %v4047_v17 }
 0x8fa   : > { %v8862_v60 = vpop.permute.xlu0 %6473  ;;  %v3738_v0 = vpop.permute.xlu2 %3737 }
 0x8fb   : > { %v6475_v40 = vunpack.i.l.bf16 %v8862_v60  ;;  %v3743_v19 = vsel %vm838_vm1, %v3738_v0, 0  ;;  %v6479_v45 = vpop.permute.xlu1 %6478  ;;  %6088 = vmatmul.msk.bf16.vlgmr.msrb.gmra.mxu1 %vm838_vm1, %v3554_v43  ;;  %v6476_v9 = vunpack.i.h.bf16 %v8862_v60 }
 0x8fc   : > { %v6480_v41 = vunpack.i.l.bf16 %v6479_v45  ;;  %3752 = vmatpush.bf16.xpose.msrb.mxu2 %v3743_v19  ;;  %v6481_v54 = vunpack.i.h.bf16 %v6479_v45 }
 0x8fd   : > { %v3590_v14 = vpack.c.bf16 %v6475_v40, %v6475_v40  ;;  %v3593_v27 = vpack.c.bf16 %v6476_v9, %v6476_v9 }
 0x8fe   : > { %v3598_v50 = vpack.c.bf16 %v6480_v41, %v6480_v41  ;;  %v3601_v43 = vpack.c.bf16 %v6481_v54, %v6481_v54 }
 0x8ff   : > { %v3807_v16 = vunpack.c.l.b16 %v3590_v14 }
 0x900   : > { %v3999_v52 = vunpack.c.l.b16 %v3598_v50  ;;  %v4071_v0 = vunpack.c.l.b16 %v3601_v43 }
 0x901   : > { %v8868_v61 = vpack.c.b16 %v3807_v16, %v3807_v16 }
 0x902   : > { %v8870_v5 = vpack.c.b16 %v3999_v52, %v3999_v52  ;;  %v6484_v21 = vpop.permute.xlu0 %6483  ;;  %v8914_v19 = vpack.c.b16 %v4071_v0, %v4071_v0  ;;  %v3556_v52 = vpack.c.bf16 %v3419_v23, %v3419_v23  ;;  %v3557_v0 = vpack.c.bf16 %v3420_v51, %v3420_v51 }
 0x903   : > { %v6485_v37 = vunpack.i.l.bf16 %v6484_v21  ;;  %6089 = vmatmul.msk.bf16.vlgmr.msrb.gmra.mxu2 %vm838_vm1, %v3555_v24  ;;  %3809 = vrot.lane.b32.xlu1 %v8868_v61, %s7169_s4  ;;  %v6486_v40 = vunpack.i.h.bf16 %v6484_v21 }
 0x904   : > { %4001 = vrot.lane.b32.xlu0 %v8870_v5, %s7169_s4 }
 0x905   : > { %v3606_v59 = vpack.c.bf16 %v6485_v37, %v6485_v37  ;;  %v3609_v45 = vpack.c.bf16 %v6486_v40, %v6486_v40 }
 0x907   : > { %v4191_v1 = vunpack.c.l.b16 %v3606_v59  ;;  %v4263_v41 = vunpack.c.l.b16 %v3609_v45 }
 0x909   : > { %v8881_v7 = vpack.c.b16 %v4191_v1, %v4191_v1  ;;  %v8921_v8 = vpack.c.b16 %v4263_v41, %v4263_v41 }
 0x90a   : > { %v3690_v35 = vpop.permute.xlu0 %3689 }
 0x90b   : > { %v3695_v62 = vsel %vm838_vm1, %v3690_v35, 0  ;;  %4193 = vrot.lane.b32.xlu2 %v8881_v7, %s7169_s4  ;;  %4025 = vrot.lane.b32.xlu1 %v8879_v26, %s7169_s4 }
 0x90c   : > { %4049 = vrot.lane.b32.xlu0 %v8883_v38, %s7169_s4  ;;  %3704 = vmatpush.bf16.xpose.msra.mxu0 %v3695_v62 }
 0x913   : > { %3833 = vrot.lane.b32.xlu2 %v3832_v56, %s7169_s4  ;;  %3857 = vrot.lane.b32.xlu1 %v8895_v13, %s7169_s4 }
 0x914   : > { %6087 = vmatmul.msk.bf16.vlgmr.msra.gmra.mxu0 %vm838_vm1, %v3553_v36  ;;  %4852 = vrot.lane.b32.xlu0 %v8794_v3, %s7173_s27  ;;  %v3879_v3 = vunpack.c.l.b16 %v3593_v27 }
 0x916   : > { %v3880_v60 = vpack.c.b16 %v3879_v3, %v3879_v3 }
 0x91b   : > { %4217 = vrot.lane.b32.xlu2 %v8906_v34, %s7169_s4  ;;  %4241 = vrot.lane.b32.xlu1 %v8904_v47, %s7169_s4 }
 0x91c   : > { %4831 = vrot.lane.b32.xlu0 %v8789_v33, %s7173_s27 }
 0x923   : > { %3881 = vrot.lane.b32.xlu2 %v3880_v60, %s7169_s4  ;;  %4073 = vrot.lane.b32.xlu1 %v8914_v19, %s7169_s4 }
 0x924   : > { %4957 = vrot.lane.b32.xlu0 %v8837_v4, %s7173_s27 }
 0x92b   : > { %4873 = vrot.lane.b32.xlu2 %v8806_v48, %s7173_s27  ;;  %4265 = vrot.lane.b32.xlu1 %v8921_v8, %s7169_s4 }
 0x92c   : > { %5020 = vrot.lane.b32.xlu0 %v3832_v56, %s7173_s27 }
 0x933   : > { %4894 = vrot.lane.b32.xlu2 %v8812_v42, %s7173_s27 }
 0x936   : > { %v6499_v14 = vpop.permute.xlu2 %6498 }
 0x937   : > { %v6500_v16 = vunpack.i.l.bf16 %v6499_v14  ;;  %v6501_v53 = vunpack.i.h.bf16 %v6499_v14  ;;  %v3421_v14 = vrot.slane %v8824_v63, 1 }
 0x939   : > { %v3611_v15 = vpack.c.bf16 %v6500_v16, %v6500_v16  ;;  %v3612_v9 = vpack.c.bf16 %v6501_v53, %v6501_v53 }
 0x93b   : > { %4915 = vrot.lane.b32.xlu2 %v8814_v22, %s7173_s27  ;;  %v4311_v55 = vunpack.c.l.b16 %v3611_v15  ;;  %v4335_v40 = vunpack.c.l.b16 %v3612_v9 }
 0x93d   : > { %v8954_v46 = vpack.c.b16 %v4311_v55, %v4311_v55 }
 0x93e   : > { %v8944_v21 = vpop.permute.xlu2 %6513 }
 0x943   : > { %4978 = vrot.lane.b32.xlu2 %v8855_v30, %s7173_s27 }
 0x94b   : > { %4999 = vrot.lane.b32.xlu2 %v8868_v61, %s7173_s27 }
 0x94d   : > { %v8936_v33 = vpop.f32.mrf.mxu1 }
 0x94e   : > { %v6489_v48 = vpop.permute.xlu0 %6488 }
 0x94f   : > { %v6491_v62 = vunpack.i.h.bf16 %v6489_v48  ;;  %v6490_v57 = vunpack.i.l.bf16 %v6489_v48 }
 0x951   : > { %v3596_v58 = vpack.c.bf16 %v6491_v62, %v6491_v62  ;;  %v3595_v54 = vpack.c.bf16 %v6490_v57, %v6490_v57 }
 0x952   : > { %v3762_v4 = vpop.permute.xlu1 %3761 }
 0x953   : > { %5062 = vrot.lane.b32.xlu2 %v3880_v60, %s7173_s27  ;;  %v3767_v2 = vsel %vm838_vm1, %v3762_v4, 0  ;;  %v3951_v3 = vunpack.c.l.b16 %v3596_v58  ;;  %v6515_v60 = vunpack.i.l.bf16 %v8944_v21  ;;  %v3927_v45 = vunpack.c.l.b16 %v3595_v54 }
 0x954   : > { %3776 = vmatpush.bf16.xpose.msrb.mxu3 %v3767_v2  ;;  %v8972_v2 = vpack.c.b16 %v4335_v40, %v4335_v40  ;;  %v6516_v54 = vunpack.i.h.bf16 %v8944_v21 }
 0x955   : > { %v3660_v42 = vpop.f32.mrf.mxu1  ;;  %v3952_v4 = vpack.c.b16 %v3951_v3, %v3951_v3  ;;  %v3928_v23 = vpack.c.b16 %v3927_v45, %v3927_v45 }
 0x956   : > { %v6494_v22 = vpop.permute.xlu0 %6493  ;;  %v3610_v42 = vpack.c.bf16 %v6515_v60, %v6515_v60 }
 0x957   : > { %v6495_v50 = vunpack.i.l.bf16 %v6494_v22  ;;  %v6496_v37 = vunpack.i.h.bf16 %v6494_v22 }
 0x958   : > { %v4287_v16 = vunpack.c.l.b16 %v3610_v42 }
 0x959   : > { %v3603_v30 = vpack.c.bf16 %v6495_v50, %v6495_v50  ;;  %v3604_v29 = vpack.c.bf16 %v6496_v37, %v6496_v37  ;;  %v3559_v50 = vpack.c.bf16 %v3421_v14, %v3421_v14 }
 0x95a   : > { %v6504_v18 = vpop.permute.xlu1 %6503  ;;  %v8986_v37 = vpack.c.b16 %v4287_v16, %v4287_v16 }
 0x95b   : > { %v4119_v61 = vunpack.c.l.b16 %v3603_v30  ;;  %5209 = vrot.lane.b32.xlu2 %v8883_v38, %s7173_s27  ;;  %v6505_v24 = vunpack.i.l.bf16 %v6504_v18  ;;  %6090 = vmatmul.msk.bf16.vlgmr.msrb.gmra.mxu3 %vm838_vm1, %v3556_v52  ;;  %v4143_v31 = vunpack.c.l.b16 %v3604_v29  ;;  %v6506_v41 = vunpack.i.h.bf16 %v6504_v18 }
 0x95d   : > { %v4120_v25 = vpack.c.b16 %v4119_v61, %v4119_v61  ;;  %v3594_v12 = vpack.c.bf16 %v6505_v24, %v6505_v24  ;;  %v8946_v32 = vpop.f32.mrf.mxu0  ;;  %v8962_v27 = vpack.c.b16 %v4143_v31, %v4143_v31  ;;  %v3597_v22 = vpack.c.bf16 %v6506_v41, %v6506_v41 }
 0x95e   : > { %v8948_v59 = vpop.permute.xlu0 %6508 }
 0x95f   : > { %v3903_v17 = vunpack.c.l.b16 %v3594_v12  ;;  %v6510_v1 = vunpack.i.l.bf16 %v8948_v59  ;;  %4121 = vrot.lane.b32.xlu0 %v4120_v25, %s7169_s4  ;;  %v3975_v30 = vunpack.c.l.b16 %v3597_v22  ;;  %v3558_v12 = vpack.c.bf16 %v8824_v63, %v8824_v63 }
 0x961   : > { %v3904_v38 = vpack.c.b16 %v3903_v17, %v3903_v17  ;;  %v3602_v35 = vpack.c.bf16 %v6510_v1, %v6510_v1 }
 0x963   : > { %5272 = vrot.lane.b32.xlu2 %v4120_v25, %s7173_s27  ;;  %3905 = vrot.lane.b32.xlu1 %v3904_v38, %s7169_s4  ;;  %v4095_v20 = vunpack.c.l.b16 %v3602_v35  ;;  %v3976_v25 = vpack.c.b16 %v3975_v30, %v3975_v30  ;;  %v3423_v35 = vrot.slane %v8824_v63, 3 }
 0x965   : > { %v8956_v56 = vpop.permute.xlu2 %4193  ;;  %v3636_v39 = vpop.f32.mrf.mxu0  ;;  %v4096_v43 = vpack.c.b16 %v4095_v20, %v4095_v20  ;;  %v3561_v62 = vpack.c.bf16 %v3423_v35, %v3423_v35 }
 0x966   : > { %v3786_v36 = vpop.permute.xlu0 %3785 }
 0x967   : > { %v3791_v11 = vsel %vm838_vm1, %v3786_v36, 0  ;;  %4313 = vrot.lane.b32.xlu0 %v8954_v46, %s7169_s4  ;;  %v6511_v36 = vunpack.i.h.bf16 %v8948_v59 }
 0x968   : > { %3800 = vmatpush.bf16.xpose.msrb.mxu0 %v3791_v11 }
 0x969   : > { %v3605_v51 = vpack.c.bf16 %v6511_v36, %v6511_v36 }
 0x96b   : > { %4145 = vrot.lane.b32.xlu2 %v8962_v27, %s7169_s4  ;;  %4097 = vrot.lane.b32.xlu1 %v4096_v43, %s7169_s4 }
 0x96d   : > { %v3834_v48 = vpop.permute.xlu2 %3833 }
 0x96e   : > { %v3839_v10 = vsel %vm838_vm1, %v3834_v48, 0 }
 0x96f   : > { %3848 = vmatpush.bf16.xpose.msra.mxu2 %v3839_v10  ;;  %6091 = vmatmul.msk.bf16.vlgmr.msrb.gmra.mxu0 %vm838_vm1, %v3557_v0  ;;  %v3613_v0 = vpack.c.bf16 %v6516_v54, %v6516_v54 }
 0x970   : > { %3953 = vrot.lane.b32.xlu0 %v3952_v4, %s7169_s4 }
 0x971   : > { %v4359_v60 = vunpack.c.l.b16 %v3613_v0 }
 0x973   : > { %4337 = vrot.lane.b32.xlu2 %v8972_v2, %s7169_s4  ;;  %3929 = vrot.lane.b32.xlu1 %v3928_v23, %s7169_s4  ;;  %v9037_v21 = vpack.c.b16 %v4359_v60, %v4359_v60  ;;  %v9959_v60 = vld [vmem:[#allocation27_spill] sm:$0xff] }
 0x974   : > { %vm9960_vm6 = vcmp.gt.f32.partialorder %v9959_v60, 0.0  ;;  %vm9966_vm14 = vcmp.gt.f32.partialorder %v9959_v60, 0.0 }
 0x975   : > { %v8977_v52 = vpop.permute.xlu2 %4217  ;;  %v3810_v18 = vpop.permute.xlu1 %3809  ;;  %9953 = vst [vmem:[#allocation25_spill] sm:$0xff] %v9037_v21 }
 0x976   : > { %v3815_v61 = vsel %vm838_vm1, %v3810_v18, 0  ;;  %v8980_v24 = vpop.f32.mrf.mxu2  ;;  %6093 = vmatmul.msk.bf16.vlgmr.msra.gmra.mxu2 %vm838_vm1, %v3559_v50  ;;  %v4002_v9 = vpop.permute.xlu0 %4001 }
 0x977   : > { %3824 = vmatpush.bf16.xpose.msra.mxu1 %v3815_v61 }
 0x978   : > { %v8983_v15 = vpop.f32.mrf.mxu1  ;;  %5083 = vrot.lane.b32.xlu0 %v3904_v38, %s7173_s27 }
 0x97b   : > { %3977 = vrot.lane.b32.xlu2 %v3976_v25, %s7169_s4  ;;  %4289 = vrot.lane.b32.xlu1 %v8986_v37, %s7169_s4 }
 0x97d   : > { %v3882_v17 = vpop.permute.xlu2 %3881  ;;  %v8993_v1 = vpop.permute.xlu1 %4025 }
 0x97e   : > { %v3887_v55 = vsel %vm838_vm1, %v3882_v17, 0  ;;  %v3684_v29 = vpop.f32.mrf.mxu2  ;;  %6092 = vmatmul.msk.bf16.vlgmr.msra.gmra.mxu1 %vm838_vm1, %v3558_v12  ;;  %v9030_v40 = vpop.permute.xlu0 %4049 }
 0x97f   : > { %3896 = vmatpush.bf16.xpose.msra.mxu0 %v3887_v55 }
 0x980   : > { %v3732_v38 = vpop.f32.mrf.mxu1  ;;  %5167 = vrot.lane.b32.xlu0 %v8870_v5, %s7173_s27  ;;  %v3422_v5 = vrot.slane %v8824_v63, 2 }
 0x981   : > { %v4384_v38 = vmul.f32 0.35355338, %v8980_v24 }
 0x983   : > { %5377 = vrot.lane.b32.xlu2 %v8904_v47, %s7173_s27  ;;  %4936 = vrot.lane.b32.xlu1 %v8820_v49, %s7173_s27  ;;  %v3560_v47 = vpack.c.bf16 %v3422_v5, %v3422_v5  ;;  %v4007_v5 = vsel %vm838_vm1, %v4002_v9, 0  ;;  %v9095_v24 = vsel %vm7845_vm8, %v4384_v38, -1e+30  ;;  %v4055_v38 = vsel %vm838_vm1, %v9030_v40, 0 }
 0x984   : > { %v4453_v9 = vsel %vm4446_vm11, %v9095_v24, -inf  ;;  %v3430_v40 = vrot.slane %v8828_v28, 3 }
 0x985   : > { %v9004_v53 = vpop.permute.xlu2 %4873  ;;  %v3858_v57 = vpop.permute.xlu1 %3857 }
 0x986   : > { %v3863_v31 = vsel %vm838_vm1, %v3858_v57, 0  ;;  %v9007_v20 = vpop.f32.mrf.mxu2  ;;  %6095 = vmatmul.msk.bf16.vlgmr.msra.gmra.mxu0 %vm838_vm1, %v3561_v62  ;;  %v9045_v48 = vpop.permute.xlu0 %4852 }
 0x987   : > { %3872 = vmatpush.bf16.xpose.msra.mxu3 %v3863_v31  ;;  %v4387_v0 = vmul.f32 0.35355338, %v9007_v20 }
 0x988   : > { %5251 = vrot.lane.b32.xlu0 %v4096_v43, %s7173_s27  ;;  %v4167_v43 = vunpack.c.l.b16 %v3605_v51 }
 0x98a   : > { %v4168_v59 = vpack.c.b16 %v4167_v43, %v4167_v43 }
 0x98b   : > { %5041 = vrot.lane.b32.xlu1 %v8895_v13, %s7173_s27 }
 0x98d   : > { %v9014_v49 = vpop.permute.xlu2 %4894  ;;  %v9072_v30 = vpop.permute.xlu1 %4241 }
 0x98e   : > { %v3756_v39 = vpop.f32.mrf.mxu2  ;;  %6094 = vmatmul.msk.bf16.vlgmr.msra.gmra.mxu3 %vm838_vm1, %v3560_v47 }
 0x98f   : > { %v3427_v39 = vrot.slane %v8824_v63, 7 }
 0x990   : > { %5125 = vrot.lane.b32.xlu0 %v3952_v4, %s7173_s27 }
 0x991   : > { %v3706_v58 = vpop.f32.mrf.mxu0  ;;  %v3565_v54 = vpack.c.bf16 %v3427_v39, %v3427_v39 }
 0x993   : > { %5104 = vrot.lane.b32.xlu1 %v3928_v23, %s7173_s27  ;;  %v4386_v23 = vmul.f32 0.35355338, %v8983_v15 }
 0x995   : > { %v9020_v11 = vpop.permute.xlu2 %4915  ;;  %v9069_v16 = vsel %vm7825_vm5, %v4386_v23, -1e+30  ;;  %v4074_v15 = vpop.permute.xlu1 %4073 }
 0x996   : > { %v4459_v18 = vsel %vm4446_vm11, %v9069_v16, -inf  ;;  %v4079_v47 = vsel %vm838_vm1, %v4074_v15, 0 }
 0x998   : > { %5335 = vrot.lane.b32.xlu0 %v8881_v7, %s7173_s27  ;;  %v4383_v7 = vmul.f32 0.35355338, %v8936_v33 }
 0x999   : > { %v3708_v13 = vpop.f32.mrf.mxu0 }
 0x99a   : > { %v4382_v13 = vmul.f32 0.35355338, %v8946_v32 }
 0x99b   : > { %5188 = vrot.lane.b32.xlu1 %v8879_v26, %s7173_s27  ;;  %v9041_v26 = vsel %vm7968_vm15, %v4383_v7, -1e+30 }
 0x99c   : > { %v4450_v4 = vsel %vm4446_vm11, %v9041_v26, -inf  ;;  %v9105_v7 = vsel %vm9960_vm6, %v4382_v13, -1e+30  ;;  %v3425_v13 = vrot.slane %v8824_v63, 5 }
 0x99d   : > { %v9027_v3 = vpop.permute.xlu2 %4978  ;;  %v9082_v17 = vpop.permute.xlu1 %4265  ;;  %v4447_v20 = vsel %vm4446_vm11, %v9105_v7, -inf }
 0x9a0   : > { %4169 = vrot.lane.b32.xlu0 %v4168_v59, %s7169_s4 }
 0x9a3   : > { %5230 = vrot.lane.b32.xlu1 %v8914_v19, %s7173_s27  ;;  %v4385_v19 = vmul.f32 0.35355338, %v3706_v58  ;;  %v3424_v58 = vrot.slane %v8824_v63, 4 }
 0x9a5   : > { %v9035_v45 = vpop.permute.xlu2 %4999  ;;  %v9055_v14 = vsel %vm7797_vm3, %v4385_v19, -1e+30  ;;  %v3562_v43 = vpack.c.bf16 %v3424_v58, %v3424_v58  ;;  %v4031_v58 = vsel %vm838_vm1, %v8993_v1, 0  ;;  %v3569_v1 = vpack.c.bf16 %v3430_v40, %v3430_v40 }
 0x9a6   : > { %v4456_v42 = vsel %vm4446_vm11, %v9055_v14, -inf  ;;  %v4247_v40 = vsel %vm838_vm1, %v9072_v30, 0 }
 0x9a8   : > { %4361 = vrot.lane.b32.xlu0 %v9037_v21, %s7169_s4  ;;  %s7093_s4 = scalar_lea.hbm %s10027_s14, 16 }
 0x9ab   : > { %5356 = vrot.lane.b32.xlu1 %v8906_v34, %s7173_s27  ;;  %v9063_v34 = vpop.permute.xlu0 %4831 }
 0x9ac   : > { %4451 = vmax.xlane.f32.xlu2 %v4450_v4 }
 0x9ad   : > { %v9051_v33 = vpop.permute.xlu2 %5062 }
 0x9b0   : > { %5146 = vrot.lane.b32.xlu0 %v3976_v25, %s7173_s27 }
 0x9b3   : > { %5293 = vrot.lane.b32.xlu1 %v8962_v27, %s7173_s27  ;;  %v9078_v61 = vpop.permute.xlu0 %4957 }
 0x9b4   : > { %4457 = vmax.xlane.f32.xlu2 %v4456_v42  ;;  %v9112_v42 = vsel %vm7978_vm2, %v4387_v0, -1e+30 }
 0x9b5   : > { %v9065_v22 = vpop.permute.xlu2 %5209 }
 0x9b8   : > { %5314 = vrot.lane.b32.xlu0 %v4168_v59, %s7173_s27 }
 0x9bb   : > { %v9080_v12 = vpop.permute.xlu0 %5020 }
 0x9bc   : > { %4460 = vmax.xlane.f32.xlu2 %v4459_v18 }
 0x9bd   : > { %v9076_v27 = vpop.permute.xlu2 %5272 }
 0x9be   : > { %9957 = vst [vmem:[#allocation24_spill] sm:$0xff] %v9076_v27 }
 0x9c5   : > { %v4146_v25 = vpop.permute.xlu2 %4145 }
 0x9c6   : > { %v4151_v0 = vsel %vm838_vm1, %v4146_v25, 0  ;;  %v9964_v25 = vld [vmem:[#allocation31_spill] sm:$0xff] }
 0x9c7   : > { %vm9965_vm10 = vnez %v9964_v25 }
 0x9cd   : > { %v9084_v55 = vpop.permute.xlu2 %4337 }
 0x9d1   : > { %v4122_v29 = vpop.permute.xlu0 %4121 }
 0x9d5   : > { %v3978_v35 = vpop.permute.xlu2 %3977  ;;  %v3906_v62 = vpop.permute.xlu1 %3905 }
 0x9d6   : > { %v3983_v57 = vsel %vm838_vm1, %v3978_v35, 0  ;;  %v3911_v31 = vsel %vm838_vm1, %v3906_v62, 0  ;;  %v4462_v35 = vsel %vm4446_vm11, %v9112_v42, -inf }
 0x9d7   : > { %3992 = vmatpush.bf16.xpose.msrb.mxu0 %v3983_v57  ;;  %3920 = vmatpush.bf16.xpose.msrb.mxu1 %v3911_v31  ;;  %v3426_v57 = vrot.slane %v8824_v63, 6  ;;  %v9962_v31 = vld [vmem:[#allocation32_spill] sm:$0xff]  ;;  %v4127_v63 = vsel %vm838_vm1, %v4122_v29, 0 }
 0x9d8   : > { %vm9963_vm6 = vnez %v9962_v31 }
 0x9d9   : > { %v9097_v51 = vpop.permute.xlu0 %4313 }
 0x9dd   : > { %4454 = vmax.xlane.f32.xlu1 %v4453_v9  ;;  %v4098_v59 = vpop.permute.xlu1 %4097  ;;  %v3564_v9 = vpack.c.bf16 %v3426_v57, %v3426_v57 }
 0x9de   : > { %6099 = vmatmul.msk.bf16.vlgmr.msrb.gmra.mxu0 %vm838_vm1, %v3565_v54  ;;  %v4103_v4 = vsel %vm838_vm1, %v4098_v59, 0  ;;  %v3778_v19 = vpop.f32.mrf.mxu3  ;;  %6096 = vmatmul.msk.bf16.vlgmr.msrb.gmra.mxu1 %vm838_vm1, %v3562_v43 }
 0x9df   : > { %4088 = vmatpush.bf16.xpose.msra.mxu0 %v4079_v47  ;;  %4016 = vmatpush.bf16.xpose.msra.mxu1 %v4007_v5  ;;  %v4388_v23 = vmul.f32 0.35355338, %v3778_v19 }
 0x9e1   : > { %v9124_v5 = vsel %vm9963_vm6, %v4388_v23, -1e+30  ;;  %v4199_v23 = vsel %vm838_vm1, %v8956_v56, 0 }
 0x9e2   : > { %4448 = vmax.xlane.f32.xlu0 %v4447_v20  ;;  %v3954_v18 = vpop.permute.xlu0 %3953  ;;  %v4465_v54 = vsel %vm4446_vm11, %v9124_v5, -inf  ;;  %v3566_v20 = vpack.c.bf16 %v8828_v28, %v8828_v28 }
 0x9e3   : > { %v3959_v15 = vsel %vm838_vm1, %v3954_v18, 0 }
 0x9e4   : > { %3968 = vmatpush.bf16.xpose.msrb.mxu3 %v3959_v15 }
 0x9e5   : > { %4463 = vmax.xlane.f32.xlu1 %v4462_v35  ;;  %v3930_v62 = vpop.permute.xlu1 %3929  ;;  %v3429_v35 = vrot.slane %v8828_v28, 2 }
 0x9e6   : > { %v3935_v47 = vsel %vm838_vm1, %v3930_v62, 0  ;;  %v3780_v39 = vpop.f32.mrf.mxu3  ;;  %v3428_v62 = vrot.slane %v8828_v28, 1 }
 0x9e7   : > { %4112 = vmatpush.bf16.xpose.msrb.mxu1 %v4103_v4  ;;  %3944 = vmatpush.bf16.xpose.msrb.mxu2 %v3935_v47  ;;  %v3563_v4 = vpack.c.bf16 %v3425_v13, %v3425_v13  ;;  %v3568_v57 = vpack.c.bf16 %v3429_v35, %v3429_v35  ;;  %v3431_v47 = vrot.slane %v8828_v28, 4  ;;  %v3433_v35 = vrot.slane %v8828_v28, 6 }
 0x9ea   : > { %4466 = vmax.xlane.f32.xlu0 %v4465_v54  ;;  %v9133_v43 = vpop.permute.xlu0 %5083 }
 0x9eb   : > { %6098 = vmatmul.msk.bf16.vlgmr.msrb.gmra.mxu3 %vm838_vm1, %v3564_v9 }
 0x9ec   : > { %4064 = vmatpush.bf16.xpose.msra.mxu3 %v4055_v38  ;;  %v3802_v59 = vpop.f32.mrf.mxu0 }
 0x9ed   : > { %v4389_v19 = vmul.f32 0.35355338, %v3802_v59  ;;  %v4290_v54 = vpop.permute.xlu1 %4289  ;;  %v3567_v59 = vpack.c.bf16 %v3428_v62, %v3428_v62  ;;  %v3432_v62 = vrot.slane %v8828_v28, 5 }
 0x9ee   : > { %6103 = vmatmul.msk.bf16.vlgmr.msra.gmra.mxu0 %vm838_vm1, %v3569_v1  ;;  %6097 = vmatmul.msk.bf16.vlgmr.msrb.gmra.mxu2 %vm838_vm1, %v3563_v4  ;;  %v3570_v4 = vpack.c.bf16 %v3431_v47, %v3431_v47  ;;  %v4343_v47 = vsel %vm838_vm1, %v9084_v55, 0 }
 0x9ef   : > { %4040 = vmatpush.bf16.xpose.msra.mxu2 %v4031_v58  ;;  %v9146_v18 = vsel %vm9965_vm10, %v4389_v19, -1e+30  ;;  %6100 = vmatmul.msk.bf16.vlgmr.msra.gmra.mxu1 %vm838_vm1, %v3566_v20  ;;  %v4223_v19 = vsel %vm838_vm1, %v8977_v52, 0  ;;  %v4295_v20 = vsel %vm838_vm1, %v4290_v54, 0  ;;  %v3574_v54 = vpack.c.bf16 %v8850_v6, %v8850_v6 }
 0x9f0   : > { %4208 = vmatpush.bf16.xpose.msra.mxu1 %v4199_v23  ;;  %v4468_v15 = vsel %vm4446_vm11, %v9146_v18, -inf }
 0x9f1   : > { %4469 = vmax.xlane.f32.xlu1 %v4468_v15 }
 0x9f2   : > { %v9151_v29 = vpop.permute.xlu0 %5167 }
 0x9f4   : > { %4160 = vmatpush.bf16.xpose.msrb.mxu3 %v4151_v0  ;;  %v3804_v38 = vpop.f32.mrf.mxu0 }
 0x9f7   : > { %4136 = vmatpush.bf16.xpose.msrb.mxu2 %v4127_v63 }
 0x9f9   : > { %v3850_v56 = vpop.f32.mrf.mxu2 }
 0x9fa   : > { %v4391_v39 = vmul.f32 0.35355338, %v3850_v56  ;;  %v9156_v58 = vpop.permute.xlu0 %5251  ;;  %v3572_v56 = vpack.c.bf16 %v3433_v35, %v3433_v35 }
 0x9fb   : > { %v3826_v13 = vpop.f32.mrf.mxu1  ;;  %6102 = vmatmul.msk.bf16.vlgmr.msra.gmra.mxu3 %vm838_vm1, %v3568_v57 }
 0x9fc   : > { %v9163_v9 = vsel %vm7968_vm15, %v4391_v39, -1e+30  ;;  %v4390_v0 = vmul.f32 0.35355338, %v3826_v13  ;;  %4256 = vmatpush.bf16.xpose.msra.mxu3 %v4247_v40  ;;  %v4937_v40 = vpop.permute.xlu1 %4936  ;;  %v3571_v13 = vpack.c.bf16 %v3432_v62, %v3432_v62 }
 0x9fd   : > { %v4474_v1 = vsel %vm4446_vm11, %v9163_v9, -inf }
 0x9fe   : > { %v9171_v30 = vsel %vm9966_vm14, %v4390_v0, -1e+30  ;;  %4475 = vmax.xlane.f32.xlu0 %v4474_v1  ;;  %6101 = vmatmul.msk.bf16.vlgmr.msra.gmra.mxu2 %vm838_vm1, %v3567_v59  ;;  %v4319_v0 = vsel %vm838_vm1, %v9097_v51, 0  ;;  %vm9968_vm14 = vcmask 1043456   ;;  %v3434_v51 = vrot.slane %v8828_v28, 7 }
 0x9ff   : > { %6104 = vmatmul.msk.bf16.vlgmr.msrb.gmra.mxu1 %vm838_vm1, %v3570_v4  ;;  %4232 = vmatpush.bf16.xpose.msra.mxu2 %v4223_v19  ;;  %v4471_v63 = vsel %vm4446_vm11, %v9171_v30, -inf  ;;  %v4837_v59 = vsel %vm9968_vm14, %v9063_v34, 0  ;;  %v4271_v19 = vsel %vm838_vm1, %v9082_v17, 0  ;;  %v9206_v34 = vpop.permute.xlu2 %5377  ;;  %v4879_v17 = vsel %vm9968_vm14, %v9004_v53, 0  ;;  %vm9970_vm13 = vmmov %vm9968_vm14 }
 0xa00   : > { %4304 = vmatpush.bf16.xpose.msrb.mxu1 %v4295_v20  ;;  %4472 = vmax.xlane.f32.xlu1 %v4471_v63  ;;  %v3436_v20 = vrot.slane %v8850_v6, 2  ;;  %9969 = vst [vmem:[#allocation39_spill] sm:$0xff] %v9206_v34  ;;  %v3573_v35 = vpack.c.bf16 %v3434_v51, %v3434_v51  ;;  %vm9971_vm12 = vmmov %vm9970_vm13  ;;  %v3439_v51 = vrot.slane %v8850_v6, 5 }
 0xa01   : > { %v3852_v23 = vpop.f32.mrf.mxu2  ;;  %vm9973_vm14 = vmmov %vm9971_vm12 }
 0xa02   : > { %v9178_v15 = vpop.permute.xlu0 %5125  ;;  %v3435_v23 = vrot.slane %v8850_v6, 1  ;;  %v3576_v62 = vpack.c.bf16 %v3436_v20, %v3436_v20 }
 0xa03   : > { %v3828_v52 = vpop.f32.mrf.mxu1  ;;  %v9180_v38 = vpop.f32.mrf.mxu0 }
 0xa04   : > { %v9204_v63 = vpop.permute.xlu1 %5041  ;;  %v3575_v28 = vpack.c.bf16 %v3435_v23, %v3435_v23 }
 0xa0a   : > { %v9184_v57 = vpop.permute.xlu0 %5335 }
 0xa0b   : > { %9967 = vst [vmem:[#allocation38_spill] sm:$0xff] %v9184_v57  ;;  %v3900_v39 = vpop.f32.mrf.mxu0  ;;  %6106 = vmatmul.msk.bf16.vlgmr.msrb.gmra.mxu3 %vm838_vm1, %v3572_v56  ;;  %v3438_v56 = vrot.slane %v8850_v6, 4 }
 0xa0c   : > { %4352 = vmatpush.bf16.xpose.msrb.mxu3 %v4343_v47  ;;  %v9221_v53 = vpop.permute.xlu1 %5104 }
 0xa0e   : > { %6105 = vmatmul.msk.bf16.vlgmr.msrb.gmra.mxu2 %vm838_vm1, %v3571_v13  ;;  %v3578_v13 = vpack.c.bf16 %v3438_v56, %v3438_v56  ;;  %v3579_v56 = vpack.c.bf16 %v3439_v51, %v3439_v51 }
 0xa0f   : > { %6108 = vmatmul.msk.bf16.vlgmr.msra.gmra.mxu1 %vm838_vm1, %v3574_v54  ;;  %4328 = vmatpush.bf16.xpose.msrb.mxu2 %v4319_v0  ;;  %v4858_v54 = vsel %vm9970_vm13, %v9045_v48, 0  ;;  %v4921_v0 = vsel %vm9971_vm12, %v9020_v11, 0  ;;  %v3440_v48 = vrot.slane %v8850_v6, 6  ;;  %vm9972_vm13 = vmmov %vm9971_vm12 }
 0xa10   : > { %4846 = vmatpush.bf16.msra.mxu1 %v4837_v59 }
 0xa11   : > { %v9197_v55 = vpop.f32.mrf.mxu3  ;;  %v3580_v23 = vpack.c.bf16 %v3440_v48, %v3440_v48 }
 0xa12   : > { %v4170_v1 = vpop.permute.xlu0 %4169 }
 0xa13   : > { %v4175_v4 = vsel %vm838_vm1, %v4170_v1, 0 }
 0xa14   : > { %4184 = vmatpush.bf16.xpose.msrb.mxu0 %v4175_v4 }
 0xa19   : > { %v3876_v52 = vpop.f32.mrf.mxu3 }
 0xa1a   : > { %v4362_v47 = vpop.permute.xlu0 %4361  ;;  %v9229_v52 = vpop.permute.xlu1 %5188 }
 0xa1b   : > { %v4367_v39 = vsel %vm838_vm1, %v4362_v47, 0  ;;  %6107 = vmatmul.msk.bf16.vlgmr.msrb.gmra.mxu0 %vm838_vm1, %v3573_v35  ;;  %6110 = vmatmul.msk.bf16.vlgmr.msra.gmra.mxu3 %vm838_vm1, %v3576_v62  ;;  %v4900_v35 = vsel %vm9971_vm12, %v9014_v49, 0  ;;  %v4393_v47 = vmul.f32 0.35355338, %v9180_v38  ;;  %v4984_v38 = vsel %vm9971_vm12, %v9027_v3, 0 }
 0xa1c   : > { %4280 = vmatpush.bf16.xpose.msra.mxu0 %v4271_v19  ;;  %4888 = vmatpush.bf16.msra.mxu3 %v4879_v17  ;;  %v3437_v19 = vrot.slane %v8850_v6, 3  ;;  %v4942_v17 = vsel %vm9973_vm14, %v4937_v40, 0 }
 0xa1d   : > { %v9244_v49 = vsel %vm7797_vm3, %v4393_v47, -1e+30 }
 0xa1e   : > { %6109 = vmatmul.msk.bf16.vlgmr.msra.gmra.mxu2 %vm838_vm1, %v3575_v28  ;;  %v3577_v20 = vpack.c.bf16 %v3437_v19, %v3437_v19  ;;  %v3441_v28 = vrot.slane %v8850_v6, 7 }
 0xa1f   : > { %v4452_v59 = vpop.xlane.xlu2 %4451  ;;  %6112 = vmatmul.msk.bf16.vlgmr.msrb.gmra.mxu1 %vm838_vm1, %v3578_v13  ;;  %4867 = vmatpush.bf16.msra.mxu2 %v4858_v54 }
 0xa20   : > { %v4544_v1 = vsub.f32 %v9041_v26, %v4452_v59  ;;  %4930 = vmatpush.bf16.msrb.mxu1 %v4921_v0  ;;  %v4963_v26 = vsel %vm9972_vm13, %v9078_v61, 0  ;;  %v3581_v13 = vpack.c.bf16 %v3441_v28, %v3441_v28  ;;  %v4392_v28 = vmul.f32 0.35355338, %v9197_v55 }
 0xa21   : > { %vm9977_vm13 = vcmp.gt.f32.partialorder %v9959_v60, 0.0 }
 0xa22   : > { %v4577_v4 = vmul.f32 1.442695, %v4544_v1  ;;  %v9246_v61 = vpop.permute.xlu1 %5230  ;;  %v9256_v54 = vpop.permute.xlu0 %5146  ;;  %vm9978_vm14 = vmmov %vm9977_vm13 }
 0xa24   : > { %4376 = vmatpush.bf16.xpose.msrb.mxu0 %v4367_v39  ;;  %6663 = vpow2.f32 %v4577_v4  ;;  %v4480_v39 = vsel %vm4446_vm11, %v9244_v49, -inf }
 0xa27   : > { %v4458_v1 = vpop.xlane.xlu2 %4457 }
 0xa28   : > { %v4546_v6 = vsub.f32 %v9055_v14, %v4458_v1  ;;  %v9281_v1 = vsel %vm7845_vm8, %v4392_v28, -1e+30 }
 0xa2a   : > { %v9227_v11 = vpop.eup %6663  ;;  %v9254_v40 = vpop.permute.xlu1 %5356 }
 0xa2b   : > { %6111 = vmatmul.msk.bf16.vlgmr.msra.gmra.mxu0 %vm838_vm1, %v3577_v20  ;;  %6114 = vmatmul.msk.bf16.vlgmr.msrb.gmra.mxu3 %vm838_vm1, %v3580_v23  ;;  %v4642_v62 = vsel %vm4446_vm11, %v9227_v11, 0.0  ;;  %9974 = vst [vmem:[#allocation35_spill] sm:$0xff] %v9254_v40  ;;  %v9260_v59 = vpop.permute.xlu0 %5314  ;;  %v4581_v20 = vmul.f32 1.442695, %v4546_v6  ;;  %v4477_v6 = vsel %vm4446_vm11, %v9281_v1, -inf }
 0xa2c   : > { %4909 = vmatpush.bf16.msra.mxu0 %v4900_v35  ;;  %4972 = vmatpush.bf16.msrb.mxu3 %v4963_v26  ;;  %9976 = vst [vmem:[#allocation37_spill] sm:$0xff] %v9260_v59 }
 0xa2d   : > { %4643 = vadd.xlane.f32.xlu0 %v4642_v62 }
 0xa2e   : > { %6113 = vmatmul.msk.bf16.vlgmr.msrb.gmra.mxu2 %vm838_vm1, %v3579_v56 }
 0xa2f   : > { %4951 = vmatpush.bf16.msrb.mxu2 %v4942_v17  ;;  %v4461_v23 = vpop.xlane.xlu2 %4460 }
 0xa30   : > { %v4547_v62 = vsub.f32 %v9069_v16, %v4461_v23 }
 0xa32   : > { %v9258_v0 = vpop.permute.xlu1 %5293  ;;  %v4583_v14 = vmul.f32 1.442695, %v4547_v62 }
 0xa33   : > { %9975 = vst [vmem:[#allocation40_spill] sm:$0xff] %v9258_v0 }
 0xa35   : > { %4481 = vmax.xlane.f32.xlu0 %v4480_v39 }
 0xa3b   : > { %6115 = vmatmul.msk.bf16.vlgmr.msrb.gmra.mxu0 %vm838_vm1, %v3581_v13 }
 0xa3c   : > { %4993 = vmatpush.bf16.msrb.mxu0 %v4984_v38 }
 0xa50   : > { %v4455_v4 = vpop.xlane.xlu1 %4454 }
 0xa51   : > { %v4545_v19 = vsub.f32 %v9095_v24, %v4455_v4 }
 0xa53   : > { %v4579_v48 = vmul.f32 1.442695, %v4545_v19 }
 0xa55   : > { %6665 = vpow2.f32 %v4579_v48  ;;  %v4449_v3 = vpop.xlane.xlu0 %4448 }
 0xa56   : > { %v4543_v51 = vsub.f32 %v9105_v7, %v4449_v3 }
 0xa58   : > { %v4575_v35 = vmul.f32 1.442695, %v4543_v51  ;;  %v4464_v4 = vpop.xlane.xlu1 %4463 }
 0xa59   : > { %v4548_v55 = vsub.f32 %v9112_v42, %v4464_v4 }
 0xa5a   : > { %6667 = vpow2.f32 %v4575_v35 }
 0xa5b   : > { %v9265_v26 = vpop.eup %6665  ;;  %6669 = vpow2.f32 %v4581_v20  ;;  %v3994_v56 = vpop.f32.mrf.mxu0 }
 0xa5c   : > { %v3922_v47 = vpop.f32.mrf.mxu1  ;;  %v4645_v24 = vsel %vm4446_vm11, %v9265_v26, 0.0  ;;  %6671 = vpow2.f32 %v4583_v14 }
 0xa5d   : > { %4646 = vadd.xlane.f32.xlu1 %v4645_v24  ;;  %v4394_v48 = vmul.f32 0.35355338, %v3922_v47  ;;  %v4585_v24 = vmul.f32 1.442695, %v4548_v55 }
 0xa5f   : > { %v9292_v35 = vsel %vm7825_vm5, %v4394_v48, -1e+30  ;;  %6673 = vpow2.f32 %v4585_v24 }
 0xa60   : > { %v9270_v17 = vpop.eup %6667 }
 0xa61   : > { %v9272_v39 = vpop.eup %6669  ;;  %v4639_v7 = vsel %vm4446_vm11, %v9270_v17, 0.0 }
 0xa62   : > { %4640 = vadd.xlane.f32.xlu2 %v4639_v7  ;;  %v4648_v38 = vsel %vm4446_vm11, %v9272_v39, 0.0  ;;  %v9283_v19 = vpop.eup %6671  ;;  %v4397_v7 = vmul.f32 0.35355338, %v3994_v56 }
 0xa63   : > { %v3996_v13 = vpop.f32.mrf.mxu0  ;;  %v4651_v20 = vsel %vm4446_vm11, %v9283_v19, 0.0 }
 0xa64   : > { %v3924_v16 = vpop.f32.mrf.mxu1  ;;  %v9310_v56 = vsel %vm9965_vm10, %v4397_v7, -1e+30 }
 0xa65   : > { %4649 = vadd.xlane.f32.xlu1 %v4648_v38  ;;  %v4483_v16 = vsel %vm4446_vm11, %v9292_v35, -inf }
 0xa6a   : > { %4478 = vmax.xlane.f32.xlu2 %v4477_v6 }
 0xa6b   : > { %v4090_v3 = vpop.f32.mrf.mxu0 }
 0xa6c   : > { %v4018_v51 = vpop.f32.mrf.mxu1 }
 0xa6d   : > { %v4398_v23 = vmul.f32 0.35355338, %v4018_v51  ;;  %4652 = vadd.xlane.f32.xlu1 %v4651_v20  ;;  %v4492_v20 = vsel %vm4446_vm11, %v9310_v56, -inf }
 0xa6e   : > { %v3970_v62 = vpop.f32.mrf.mxu3 }
 0xa6f   : > { %v9296_v14 = vsel %vm9977_vm13, %v4398_v23, -1e+30  ;;  %v4396_v47 = vmul.f32 0.35355338, %v3970_v62  ;;  %v9318_v23 = vpop.eup %6673  ;;  %v4467_v62 = vpop.xlane.xlu0 %4466 }
 0xa70   : > { %v4495_v42 = vsel %vm4446_vm11, %v9296_v14, -inf }
 0xa71   : > { %v9302_v28 = vsel %vm9963_vm6, %v4396_v47, -1e+30  ;;  %4496 = vmax.xlane.f32.xlu0 %v4495_v42  ;;  %v3946_v13 = vpop.f32.mrf.mxu2  ;;  %v4549_v42 = vsub.f32 %v9124_v5, %v4467_v62 }
 0xa72   : > { %v4395_v38 = vmul.f32 0.35355338, %v3946_v13  ;;  %4484 = vmax.xlane.f32.xlu2 %v4483_v16  ;;  %v4489_v48 = vsel %vm4446_vm11, %v9302_v28, -inf  ;;  %v4654_v13 = vsel %vm4446_vm11, %v9318_v23, 0.0 }
 0xa73   : > { %v4092_v4 = vpop.f32.mrf.mxu0 }
 0xa74   : > { %v4020_v6 = vpop.f32.mrf.mxu1  ;;  %v9314_v55 = vsel %vm7978_vm2, %v4395_v38, -1e+30 }
 0xa75   : > { %4490 = vmax.xlane.f32.xlu1 %v4489_v48  ;;  %v4486_v47 = vsel %vm4446_vm11, %v9314_v55, -inf  ;;  %v4587_v6 = vmul.f32 1.442695, %v4549_v42 }
 0xa76   : > { %v3972_v51 = vpop.f32.mrf.mxu3 }
 0xa77   : > { %v4470_v51 = vpop.xlane.xlu1 %4469  ;;  %6675 = vpow2.f32 %v4587_v6 }
 0xa78   : > { %v4550_v5 = vsub.f32 %v9146_v18, %v4470_v51 }
 0xa79   : > { %4493 = vmax.xlane.f32.xlu0 %v4492_v20  ;;  %v3948_v24 = vpop.f32.mrf.mxu2 }
 0xa7a   : > { %4487 = vmax.xlane.f32.xlu2 %v4486_v47  ;;  %v4401_v24 = vmul.f32 0.35355338, %v4090_v3  ;;  %v4589_v3 = vmul.f32 1.442695, %v4550_v5 }
 0xa7c   : > { %v4114_v7 = vpop.f32.mrf.mxu1  ;;  %v9340_v42 = vsel %vm7797_vm3, %v4401_v24, -1e+30  ;;  %6677 = vpow2.f32 %v4589_v3 }
 0xa7d   : > { %v4402_v16 = vmul.f32 0.35355338, %v4114_v7  ;;  %4655 = vadd.xlane.f32.xlu1 %v4654_v13  ;;  %v4504_v6 = vsel %vm4446_vm11, %v9340_v42, -inf  ;;  %v9344_v18 = vpop.eup %6675 }
 0xa7e   : > { %v4066_v38 = vpop.f32.mrf.mxu3  ;;  %v4657_v51 = vsel %vm4446_vm11, %v9344_v18, 0.0 }
 0xa7f   : > { %v9327_v4 = vsel %vm7825_vm5, %v4402_v16, -1e+30 }
 0xa80   : > { %v4507_v48 = vsel %vm4446_vm11, %v9327_v4, -inf }
 0xa81   : > { %v4042_v20 = vpop.f32.mrf.mxu2 }
 0xa82   : > { %v4399_v47 = vmul.f32 0.35355338, %v4042_v20  ;;  %4508 = vmax.xlane.f32.xlu2 %v4507_v48  ;;  %v9348_v24 = vpop.eup %6677 }
 0xa83   : > { %v4660_v3 = vsel %vm4446_vm11, %v9348_v24, 0.0 }
 0xa84   : > { %v9334_v62 = vsel %vm7968_vm15, %v4399_v47, -1e+30  ;;  %v4116_v7 = vpop.f32.mrf.mxu1 }
 0xa85   : > { %v4498_v13 = vsel %vm4446_vm11, %v9334_v62, -inf }
 0xa86   : > { %v4068_v16 = vpop.f32.mrf.mxu3  ;;  %4499 = vmax.xlane.f32.xlu1 %v4498_v13 }
 0xa89   : > { %v4044_v20 = vpop.f32.mrf.mxu2 }
 0xa8a   : > { %4505 = vmax.xlane.f32.xlu2 %v4504_v6  ;;  %v4400_v6 = vmul.f32 0.35355338, %v4066_v38 }
 0xa8c   : > { %v4210_v48 = vpop.f32.mrf.mxu1 }
 0xa8d   : > { %v4406_v44 = vmul.f32 0.35355338, %v4210_v48 }
 0xa8e   : > { %v4162_v47 = vpop.f32.mrf.mxu3  ;;  %4658 = vadd.xlane.f32.xlu1 %v4657_v51  ;;  %v4476_v51 = vpop.xlane.xlu0 %4475 }
 0xa8f   : > { %v4404_v38 = vmul.f32 0.35355338, %v4162_v47 }
 0xa91   : > { %v4138_v7 = vpop.f32.mrf.mxu2  ;;  %v9376_v59 = vsel %vm9963_vm6, %v4404_v38, -1e+30 }
 0xa92   : > { %v4403_v16 = vmul.f32 0.35355338, %v4138_v7  ;;  %v9360_v7 = vsel %vm7845_vm8, %v4400_v6, -1e+30 }
 0xa94   : > { %v9352_v5 = vsel %vm7978_vm2, %v4403_v16, -1e+30  ;;  %v4212_v13 = vpop.f32.mrf.mxu1  ;;  %v9364_v16 = vsel %vm9978_vm14, %v4406_v44, -1e+30 }
 0xa95   : > { %v4510_v20 = vsel %vm4446_vm11, %v9352_v5, -inf  ;;  %v4519_v21 = vsel %vm4446_vm11, %v9364_v16, -inf }
 0xa96   : > { %v4164_v34 = vpop.f32.mrf.mxu3  ;;  %4511 = vmax.xlane.f32.xlu2 %v4510_v20  ;;  %4661 = vadd.xlane.f32.xlu1 %v4660_v3 }
 0xa97   : > { %v4501_v34 = vsel %vm4446_vm11, %v9360_v7, -inf }
 0xa98   : > { %v4186_v40 = vpop.f32.mrf.mxu0 }
 0xa99   : > { %v4140_v57 = vpop.f32.mrf.mxu2  ;;  %v4405_v38 = vmul.f32 0.35355338, %v4186_v40 }
 0xa9a   : > { %v4473_v57 = vpop.xlane.xlu1 %4472 }
 0xa9c   : > { %v4306_v13 = vpop.f32.mrf.mxu1 }
 0xa9e   : > { %v4258_v48 = vpop.f32.mrf.mxu3  ;;  %4520 = vmax.xlane.f32.xlu2 %v4519_v21  ;;  %4502 = vmax.xlane.f32.xlu1 %v4501_v34  ;;  %v4551_v21 = vsub.f32 %v9171_v30, %v4473_v57 }
 0xa9f   : > { %v4408_v20 = vmul.f32 0.35355338, %v4258_v48 }
 0xaa0   : > { %v4644_v3 = vpop.xlane.xlu0 %4643  ;;  %v4188_v6 = vpop.f32.mrf.mxu0  ;;  %v4591_v0 = vmul.f32 1.442695, %v4551_v21 }
 0xaa1   : > { %v9372_v60 = vsel %vm7845_vm8, %v4408_v20, -1e+30  ;;  %6679 = vrcp.f32 %v4644_v3  ;;  %v4234_v44 = vpop.f32.mrf.mxu2  ;;  %v4513_v20 = vsel %vm4446_vm11, %v9376_v59, -inf  ;;  %v4410_v3 = vmul.f32 0.35355338, %v4306_v13  ;;  %vm9979_vm8 = vmmov %vm9971_vm12 }
 0xaa2   : > { %v4407_v27 = vmul.f32 0.35355338, %v4234_v44  ;;  %v4525_v47 = vsel %vm4446_vm11, %v9372_v60, -inf  ;;  %v4552_v13 = vsub.f32 %v9163_v9, %v4476_v51  ;;  %6681 = vpow2.f32 %v4591_v0 }
 0xaa3   : > { %4526 = vmax.xlane.f32.xlu0 %v4525_v47  ;;  %v9392_v47 = vsel %vm9965_vm10, %v4405_v38, -1e+30 }
 0xaa4   : > { %v9383_v34 = vsel %vm7968_vm15, %v4407_v27, -1e+30  ;;  %v4308_v36 = vpop.f32.mrf.mxu1  ;;  %v4516_v9 = vsel %vm4446_vm11, %v9392_v47, -inf  ;;  %v4593_v10 = vmul.f32 1.442695, %v4552_v13 }
 0xaa5   : > { %v4522_v48 = vsel %vm4446_vm11, %v9383_v34, -inf  ;;  %v9396_v36 = vsel %vm7825_vm5, %v4410_v3, -1e+30 }
 0xaa6   : > { %v4260_v6 = vpop.f32.mrf.mxu3  ;;  %4523 = vmax.xlane.f32.xlu2 %v4522_v48  ;;  %4514 = vmax.xlane.f32.xlu1 %v4513_v20  ;;  %v4531_v50 = vsel %vm4446_vm11, %v9396_v36, -inf  ;;  %6683 = vpow2.f32 %v4593_v10 }
 0xaa7   : > { %v6680_v44 = vpop.eup %6679 }
 0xaa8   : > { %v4768_v30 = vmul.f32 %v6680_v44, %v9227_v11  ;;  %v4282_v57 = vpop.f32.mrf.mxu0  ;;  %v5026_v11 = vsel %vm9979_vm8, %v9080_v12, 0  ;;  %v9412_v12 = vpop.eup %6681 }
 0xaa9   : > { %v4409_v41 = vmul.f32 0.35355338, %v4282_v57  ;;  %v4236_v27 = vpop.f32.mrf.mxu2 }
 0xaaa   : > { %v4800_v40 = vpack.c.bf16 %v4768_v30, %v4768_v30  ;;  %v4663_v30 = vsel %vm4446_vm11, %v9412_v12, 0.0 }
 0xaab   : > { %v9401_v21 = vsel %vm7797_vm3, %v4409_v41, -1e+30 }
 0xaac   : > { %6117 = vmatmul.msk.bf16.vlgmr.msra.gmra.mxu2 %vm838_vm1, %v4800_v40  ;;  %v4528_v48 = vsel %vm4446_vm11, %v9401_v21, -inf  ;;  %v9428_v40 = vpop.eup %6683 }
 0xaad   : > { %5035 = vmatpush.bf16.msra.mxu2 %v5026_v11  ;;  %4529 = vmax.xlane.f32.xlu0 %v4528_v48  ;;  %v4666_v48 = vsel %vm4446_vm11, %v9428_v40, 0.0 }
 0xaae   : > { %v4354_v0 = vpop.f32.mrf.mxu3  ;;  %4532 = vmax.xlane.f32.xlu2 %v4531_v50  ;;  %4517 = vmax.xlane.f32.xlu1 %v4516_v9 }
 0xaaf   : > { %v4412_v51 = vmul.f32 0.35355338, %v4354_v0 }
 0xab0   : > { %v4284_v20 = vpop.f32.mrf.mxu0 }
 0xab1   : > { %v4330_v38 = vpop.f32.mrf.mxu2  ;;  %v9416_v3 = vsel %vm9963_vm6, %v4412_v51, -1e+30 }
 0xab2   : > { %v4411_v6 = vmul.f32 0.35355338, %v4330_v38  ;;  %v4537_v41 = vsel %vm4446_vm11, %v9416_v3, -inf }
 0xab4   : > { %v9420_v44 = vsel %vm7978_vm2, %v4411_v6, -1e+30  ;;  %vm9980_vm2 = vmmov %vm9979_vm8 }
 0xab5   : > { %4664 = vadd.xlane.f32.xlu0 %v4663_v30  ;;  %v4534_v57 = vsel %vm4446_vm11, %v9420_v44, -inf  ;;  %v5047_v30 = vsel %vm9980_vm2, %v9204_v63, 0  ;;  %vm9981_vm3 = vmmov %vm9980_vm2 }
 0xab6   : > { %v4356_v27 = vpop.f32.mrf.mxu3  ;;  %4535 = vmax.xlane.f32.xlu2 %v4534_v57  ;;  %4538 = vmax.xlane.f32.xlu1 %v4537_v41  ;;  %v4482_v57 = vpop.xlane.xlu0 %4481  ;;  %v5005_v63 = vsel %vm9981_vm3, %v9035_v45, 0  ;;  %vm9982_vm5 = vmmov %vm9980_vm2 }
 0xab7   : > { %vm9983_vm15 = vmmov %vm9980_vm2 }
 0xab8   : > { %v4378_v31 = vpop.f32.mrf.mxu0  ;;  %vm9985_vm6 = vmmov %vm9980_vm2 }
 0xab9   : > { %v4413_v13 = vmul.f32 0.35355338, %v4378_v31  ;;  %v4332_v32 = vpop.f32.mrf.mxu2  ;;  %vm9986_vm12 = vmmov %vm9980_vm2 }
 0xaba   : > { %vm9987_vm13 = vmmov %vm9980_vm2 }
 0xabb   : > { %v9432_v11 = vsel %vm9965_vm10, %v4413_v13, -1e+30  ;;  %vm9984_vm10 = vmmov %vm9980_vm2 }
 0xabc   : > { %v4540_v50 = vsel %vm4446_vm11, %v9432_v11, -inf  ;;  %vm9988_vm14 = vmmov %vm9980_vm2 }
 0xabd   : > { %4667 = vadd.xlane.f32.xlu0 %v4666_v48  ;;  %vm9989_vm8 = vmmov %vm9980_vm2 }
 0xabe   : > { %4541 = vmax.xlane.f32.xlu2 %v4540_v50  ;;  %vm9992_vm3 = vmmov %vm9980_vm2 }
 0xac0   : > { %v4380_v9 = vpop.f32.mrf.mxu0 }
 0xad0   : > { %v4647_v0 = vpop.xlane.xlu1 %4646 }
 0xad1   : > { %6685 = vrcp.f32 %v4647_v0 }
 0xad5   : > { %v4641_v10 = vpop.xlane.xlu2 %4640 }
 0xad6   : > { %6687 = vrcp.f32 %v4641_v10 }
 0xad7   : > { %v6686_v51 = vpop.eup %6685 }
 0xad8   : > { %v4769_v20 = vmul.f32 %v6686_v51, %v9265_v26  ;;  %v4650_v38 = vpop.xlane.xlu1 %4649  ;;  %v4554_v26 = vsub.f32 %v9244_v49, %v4482_v57 }
 0xad9   : > { %6689 = vrcp.f32 %v4650_v38 }
 0xada   : > { %v4801_v25 = vpack.c.bf16 %v4769_v20, %v4769_v20 }
 0xadc   : > { %v6688_v6 = vpop.eup %6687  ;;  %6118 = vmatmul.msk.bf16.vlgmr.msra.gmra.mxu3 %vm838_vm1, %v4801_v25 }
 0xadd   : > { %v4767_v41 = vmul.f32 %v6688_v6, %v9270_v17  ;;  %5056 = vmatpush.bf16.msra.mxu3 %v5047_v30  ;;  %v4479_v27 = vpop.xlane.xlu2 %4478  ;;  %v5068_v17 = vsel %vm9982_vm5, %v9051_v33, 0  ;;  %vm9994_vm5 = vmmov %vm9980_vm2 }
 0xade   : > { %v4553_v31 = vsub.f32 %v9281_v1, %v4479_v27  ;;  %v4597_v1 = vmul.f32 1.442695, %v4554_v26 }
 0xadf   : > { %v6690_v13 = vpop.eup %6689  ;;  %v4799_v32 = vpack.c.bf16 %v4767_v41, %v4767_v41 }
 0xae0   : > { %v4770_v48 = vmul.f32 %v6690_v13, %v9272_v39  ;;  %v4595_v50 = vmul.f32 1.442695, %v4553_v31  ;;  %v4653_v9 = vpop.xlane.xlu1 %4652 }
 0xae1   : > { %6691 = vrcp.f32 %v4653_v9  ;;  %6116 = vmatmul.msk.bf16.vlgmr.msra.gmra.mxu1 %vm838_vm1, %v4799_v32 }
 0xae2   : > { %v4802_v0 = vpack.c.bf16 %v4770_v48, %v4770_v48  ;;  %6693 = vpow2.f32 %v4595_v50  ;;  %5014 = vmatpush.bf16.msra.mxu1 %v5005_v63  ;;  %v5089_v50 = vsel %vm9983_vm15, %v9133_v43, 0  ;;  %vm9996_vm15 = vmmov %vm9980_vm2 }
 0xae3   : > { %6695 = vpow2.f32 %v4597_v1 }
 0xae4   : > { %v4497_v10 = vpop.xlane.xlu0 %4496  ;;  %6119 = vmatmul.msk.bf16.vlgmr.msra.gmra.mxu0 %vm838_vm1, %v4802_v0 }
 0xae5   : > { %v4559_v49 = vsub.f32 %v9296_v14, %v4497_v10  ;;  %5077 = vmatpush.bf16.msra.mxu0 %v5068_v17  ;;  %v4485_v39 = vpop.xlane.xlu2 %4484 }
 0xae6   : > { %v4555_v38 = vsub.f32 %v9292_v35, %v4485_v39 }
 0xae7   : > { %v6692_v51 = vpop.eup %6691  ;;  %v4607_v20 = vmul.f32 1.442695, %v4559_v49 }
 0xae8   : > { %v9453_v45 = vpop.eup %6693  ;;  %v4491_v25 = vpop.xlane.xlu1 %4490  ;;  %v4771_v30 = vmul.f32 %v6692_v51, %v9283_v19  ;;  %v4599_v57 = vmul.f32 1.442695, %v4555_v38 }
 0xae9   : > { %6697 = vpow2.f32 %v4607_v20  ;;  %v4557_v6 = vsub.f32 %v9302_v28, %v4491_v25  ;;  %v4669_v33 = vsel %vm4446_vm11, %v9453_v45, 0.0  ;;  %v9461_v13 = vpop.eup %6695 }
 0xaea   : > { %4670 = vadd.xlane.f32.xlu1 %v4669_v33  ;;  %v4803_v32 = vpack.c.bf16 %v4771_v30, %v4771_v30  ;;  %v5110_v30 = vsel %vm9984_vm10, %v9221_v53, 0  ;;  %vm9997_vm10 = vcmask 1045509  }
 0xaeb   : > { %v4603_v14 = vmul.f32 1.442695, %v4557_v6 }
 0xaec   : > { %v4494_v41 = vpop.xlane.xlu0 %4493 }
 0xaed   : > { %6699 = vpow2.f32 %v4603_v14  ;;  %v4558_v27 = vsub.f32 %v9310_v56, %v4494_v41  ;;  %v4488_v31 = vpop.xlane.xlu2 %4487  ;;  %v4672_v56 = vsel %vm4446_vm11, %v9461_v13, 0.0 }
 0xaee   : > { %6701 = vpow2.f32 %v4599_v57  ;;  %v4556_v28 = vsub.f32 %v9314_v55, %v4488_v31 }
 0xaef   : > { %v9463_v35 = vpop.eup %6697  ;;  %v4605_v26 = vmul.f32 1.442695, %v4558_v27 }
 0xaf0   : > { %v4656_v48 = vpop.xlane.xlu1 %4655  ;;  %v4687_v19 = vsel %vm4446_vm11, %v9463_v35, 0.0  ;;  %v4601_v55 = vmul.f32 1.442695, %v4556_v28 }
 0xaf1   : > { %6120 = vmatmul.msk.bf16.vlgmr.msrb.gmra.mxu1 %vm838_vm1, %v4803_v32  ;;  %4688 = vadd.xlane.f32.xlu2 %v4687_v19  ;;  %6703 = vpow2.f32 %v4605_v26  ;;  %v5131_v19 = vsel %vm9985_vm6, %v9178_v15, 0  ;;  %vm10000_vm6 = vmmov %vm9980_vm2 }
 0xaf2   : > { %5098 = vmatpush.bf16.msrb.mxu1 %v5089_v50  ;;  %4673 = vadd.xlane.f32.xlu1 %v4672_v56  ;;  %6705 = vrcp.f32 %v4656_v48 }
 0xaf3   : > { %v9473_v9 = vpop.eup %6699  ;;  %6707 = vpow2.f32 %v4601_v55 }
 0xaf4   : > { %v4681_v63 = vsel %vm4446_vm11, %v9473_v9, 0.0  ;;  %v9477_v17 = vpop.eup %6701 }
 0xaf5   : > { %v4509_v0 = vpop.xlane.xlu2 %4508  ;;  %4682 = vadd.xlane.f32.xlu0 %v4681_v63  ;;  %v4675_v51 = vsel %vm4446_vm11, %v9477_v17, 0.0 }
 0xaf6   : > { %v4563_v43 = vsub.f32 %v9327_v4, %v4509_v0 }
 0xaf7   : > { %v9480_v1 = vpop.eup %6703 }
 0xaf8   : > { %v4615_v10 = vmul.f32 1.442695, %v4563_v43  ;;  %v6706_v49 = vpop.eup %6705  ;;  %v4684_v4 = vsel %vm4446_vm11, %v9480_v1, 0.0 }
 0xaf9   : > { %v4500_v39 = vpop.xlane.xlu1 %4499  ;;  %v4772_v20 = vmul.f32 %v6706_v49, %v9318_v23  ;;  %v9488_v33 = vpop.eup %6707 }
 0xafa   : > { %v4560_v38 = vsub.f32 %v9334_v62, %v4500_v39  ;;  %4676 = vadd.xlane.f32.xlu1 %v4675_v51  ;;  %6709 = vpow2.f32 %v4615_v10  ;;  %v4678_v57 = vsel %vm4446_vm11, %v9488_v33, 0.0 }
 0xafb   : > { %v4804_v25 = vpack.c.bf16 %v4772_v20, %v4772_v20 }
 0xafc   : > { %v4609_v6 = vmul.f32 1.442695, %v4560_v38 }
 0xafd   : > { %4685 = vadd.xlane.f32.xlu0 %v4684_v4  ;;  %6121 = vmatmul.msk.bf16.vlgmr.msrb.gmra.mxu2 %vm838_vm1, %v4804_v25  ;;  %v9495_v62 = vpop.xlane.xlu2 %4505 }
 0xafe   : > { %6711 = vpow2.f32 %v4609_v6  ;;  %5119 = vmatpush.bf16.msrb.mxu2 %v5110_v30 }
 0xb00   : > { %v9493_v23 = vpop.eup %6709 }
 0xb01   : > { %v4659_v14 = vpop.xlane.xlu1 %4658  ;;  %v4699_v27 = vsel %vm4446_vm11, %v9493_v23, 0.0 }
 0xb02   : > { %4679 = vadd.xlane.f32.xlu1 %v4678_v57  ;;  %6713 = vrcp.f32 %v4659_v14 }
 0xb04   : > { %v9499_v41 = vpop.eup %6711 }
 0xb05   : > { %4700 = vadd.xlane.f32.xlu0 %v4699_v27  ;;  %v4690_v53 = vsel %vm4446_vm11, %v9499_v41, 0.0 }
 0xb06   : > { %4691 = vadd.xlane.f32.xlu2 %v4690_v53 }
 0xb08   : > { %v6714_v31 = vpop.eup %6713 }
 0xb09   : > { %v9505_v32 = vpop.xlane.xlu2 %4511  ;;  %v4662_v26 = vpop.xlane.xlu1 %4661  ;;  %v4773_v28 = vmul.f32 %v6714_v31, %v9344_v18  ;;  %v5152_v18 = vsel %vm9986_vm12, %v9256_v54, 0  ;;  %vm10002_vm12 = vmmov %vm9980_vm2 }
 0xb0a   : > { %6715 = vrcp.f32 %v4662_v26 }
 0xb0b   : > { %v4805_v48 = vpack.c.bf16 %v4773_v28, %v4773_v28 }
 0xb0d   : > { %6122 = vmatmul.msk.bf16.vlgmr.msrb.gmra.mxu3 %vm838_vm1, %v4805_v48 }
 0xb0e   : > { %5140 = vmatpush.bf16.msrb.mxu3 %v5131_v19 }
 0xb10   : > { %v6716_v50 = vpop.eup %6715 }
 0xb11   : > { %v4774_v56 = vmul.f32 %v6716_v50, %v9348_v24  ;;  %v9512_v55 = vpop.xlane.xlu2 %4520  ;;  %v4503_v63 = vpop.xlane.xlu1 %4502 }
 0xb12   : > { %v4561_v0 = vsub.f32 %v9360_v7, %v4503_v63 }
 0xb13   : > { %v4806_v43 = vpack.c.bf16 %v4774_v56, %v4774_v56  ;;  %v5173_v56 = vsel %vm9987_vm13, %v9151_v29, 0  ;;  %v5194_v29 = vsel %vm9988_vm14, %v9229_v52, 0  ;;  %vm10003_vm13 = vcmask 1046534  }
 0xb14   : > { %v4611_v10 = vmul.f32 1.442695, %v4561_v0  ;;  %vm10004_vm14 = vcmask 1047559  }
 0xb15   : > { %6123 = vmatmul.msk.bf16.vlgmr.msrb.gmra.mxu0 %vm838_vm1, %v4806_v43 }
 0xb16   : > { %5161 = vmatpush.bf16.msrb.mxu0 %v5152_v18  ;;  %6717 = vpow2.f32 %v4611_v10  ;;  %v4527_v15 = vpop.xlane.xlu0 %4526 }
 0xb17   : > { %v4569_v7 = vsub.f32 %v9372_v60, %v4527_v15 }
 0xb19   : > { %v9518_v49 = vpop.xlane.xlu2 %4523  ;;  %v4515_v39 = vpop.xlane.xlu1 %4514  ;;  %v4627_v25 = vmul.f32 1.442695, %v4569_v7 }
 0xb1a   : > { %v4565_v24 = vsub.f32 %v9376_v59, %v4515_v39 }
 0xb1c   : > { %v4619_v51 = vmul.f32 1.442695, %v4565_v24  ;;  %v9521_v20 = vpop.eup %6717 }
 0xb1d   : > { %v4693_v54 = vsel %vm4446_vm11, %v9521_v20, 0.0 }
 0xb1e   : > { %5440 = vrot.lane.b32.xlu2 %v8954_v46, %s7173_s27  ;;  %6719 = vpow2.f32 %v4619_v51  ;;  %4694 = vadd.xlane.f32.xlu0 %v4693_v54 }
 0xb1f   : > { %6721 = vpow2.f32 %v4627_v25 }
 0xb20   : > { %v9528_v38 = vpop.xlane.xlu0 %4529 }
 0xb21   : > { %v9530_v6 = vpop.xlane.xlu2 %4532 }
 0xb24   : > { %v9532_v4 = vpop.eup %6719 }
 0xb25   : > { %v4705_v59 = vsel %vm4446_vm11, %v9532_v4, 0.0  ;;  %v9537_v14 = vpop.eup %6721 }
 0xb26   : > { %4706 = vadd.xlane.f32.xlu1 %v4705_v59  ;;  %v4717_v27 = vsel %vm4446_vm11, %v9537_v14, 0.0 }
 0xb28   : > { %v4665_v60 = vpop.xlane.xlu0 %4664 }
 0xb29   : > { %6723 = vrcp.f32 %v4665_v60  ;;  %v4536_v46 = vpop.xlane.xlu2 %4535 }
 0xb2a   : > { %v4572_v30 = vsub.f32 %v9420_v44, %v4536_v46  ;;  %v4571_v46 = vsub.f32 %v9396_v36, %v9530_v6 }
 0xb2c   : > { %v4633_v57 = vmul.f32 1.442695, %v4572_v30 }
 0xb2e   : > { %6725 = vpow2.f32 %v4633_v57  ;;  %4718 = vadd.xlane.f32.xlu1 %v4717_v27 }
 0xb2f   : > { %v6724_v53 = vpop.eup %6723  ;;  %v9541_v31 = vpop.f32.mrf.mxu2 }
 0xb30   : > { %v4775_v26 = vmul.f32 %v6724_v53, %v9412_v12  ;;  %v4668_v28 = vpop.xlane.xlu0 %4667  ;;  %v4562_v12 = vsub.f32 %v9340_v42, %v9495_v62  ;;  %v4564_v42 = vsub.f32 %v9352_v5, %v9505_v32  ;;  %v4567_v5 = vsub.f32 %v9364_v16, %v9512_v55 }
 0xb31   : > { %6727 = vrcp.f32 %v4668_v28  ;;  %v4542_v48 = vpop.xlane.xlu2 %4541  ;;  %v4568_v32 = vsub.f32 %v9383_v34, %v9518_v49  ;;  %v4570_v16 = vsub.f32 %v9401_v21, %v9528_v38  ;;  %v4631_v49 = vmul.f32 1.442695, %v4571_v46 }
 0xb32   : > { %v4807_v19 = vpack.c.bf16 %v4775_v26, %v4775_v26  ;;  %v4574_v50 = vsub.f32 %v9432_v11, %v4542_v48  ;;  %5398 = vrot.lane.b32.xlu0 %v8921_v8, %s7173_s27  ;;  %v4613_v10 = vmul.f32 1.442695, %v4562_v12  ;;  %v4617_v39 = vmul.f32 1.442695, %v4564_v42 }
 0xb33   : > { %v4623_v59 = vmul.f32 1.442695, %v4567_v5  ;;  %v4629_v57 = vmul.f32 1.442695, %v4570_v16  ;;  %v5511_v38 = vrot.slane %v9541_v31, 7  ;;  %v5236_v46 = vsel %vm9980_vm2, %v9246_v61, 0 }
 0xb34   : > { %v9547_v44 = vpop.eup %6725  ;;  %v4637_v63 = vmul.f32 1.442695, %v4574_v50  ;;  %6124 = vmatmul.msk.bf16.vlgmr.msra.gmra.mxu1 %vm838_vm1, %v4807_v19 }
 0xb35   : > { %5182 = vmatpush.bf16.msra.mxu1 %v5173_v56  ;;  %v4726_v0 = vsel %vm4446_vm11, %v9547_v44, 0.0 }
 0xb36   : > { %6729 = vpow2.f32 %v4637_v63  ;;  %4727 = vadd.xlane.f32.xlu1 %v4726_v0 }
 0xb37   : > { %v6728_v11 = vpop.eup %6727  ;;  %v4871_v43 = vpop.f32.mrf.mxu2  ;;  %6731 = vpow2.f32 %v4613_v10 }
 0xb38   : > { %v4776_v8 = vmul.f32 %v6728_v11, %v9428_v40  ;;  %v4518_v40 = vpop.xlane.xlu1 %4517  ;;  %6733 = vpow2.f32 %v4617_v39  ;;  %v5215_v39 = vsel %vm9989_vm8, %v9065_v22, 0  ;;  %vm10006_vm8 = vmmov %vm9980_vm2 }
 0xb39   : > { %v4566_v51 = vsub.f32 %v9392_v47, %v4518_v40  ;;  %v4625_v47 = vmul.f32 1.442695, %v4568_v32 }
 0xb3a   : > { %v4808_v18 = vpack.c.bf16 %v4776_v8, %v4776_v8 }
 0xb3b   : > { %v4621_v7 = vmul.f32 1.442695, %v4566_v51 }
 0xb3c   : > { %v9557_v15 = vpop.eup %6729  ;;  %6125 = vmatmul.msk.bf16.vlgmr.msra.gmra.mxu2 %vm838_vm1, %v4808_v18 }
 0xb3d   : > { %5203 = vmatpush.bf16.msra.mxu2 %v5194_v29  ;;  %v4732_v62 = vsel %vm4446_vm11, %v9557_v15, 0.0  ;;  %v9566_v24 = vpop.eup %6731  ;;  %6735 = vpow2.f32 %v4621_v7 }
 0xb3e   : > { %4733 = vadd.xlane.f32.xlu1 %v4732_v62  ;;  %v4696_v52 = vsel %vm4446_vm11, %v9566_v24, 0.0  ;;  %v9571_v54 = vpop.eup %6733  ;;  %6737 = vpow2.f32 %v4623_v59 }
 0xb3f   : > { %v4702_v25 = vsel %vm4446_vm11, %v9571_v54, 0.0  ;;  %6739 = vpow2.f32 %v4625_v47 }
 0xb40   : > { %v4539_v55 = vpop.xlane.xlu1 %4538  ;;  %6741 = vpow2.f32 %v4631_v49 }
 0xb41   : > { %6743 = vpow2.f32 %v4629_v57  ;;  %v4573_v21 = vsub.f32 %v9416_v3, %v4539_v55 }
 0xb43   : > { %v9579_v60 = vpop.eup %6735  ;;  %v4635_v50 = vmul.f32 1.442695, %v4573_v21 }
 0xb44   : > { %v4708_v34 = vsel %vm4446_vm11, %v9579_v60, 0.0  ;;  %v9589_v30 = vpop.eup %6737 }
 0xb45   : > { %v9591_v27 = vpop.eup %6739  ;;  %v4711_v36 = vsel %vm4446_vm11, %v9589_v30, 0.0 }
 0xb46   : > { %v9600_v19 = vpop.eup %6741 }
 0xb47   : > { %4697 = vadd.xlane.f32.xlu2 %v4696_v52  ;;  %v9603_v31 = vpop.eup %6743  ;;  %v4723_v11 = vsel %vm4446_vm11, %v9600_v19, 0.0 }
 0xb48   : > { %v4720_v18 = vsel %vm4446_vm11, %v9603_v31, 0.0 }
 0xb4f   : > { %4703 = vadd.xlane.f32.xlu2 %v4702_v25 }
 0xb57   : > { %4709 = vadd.xlane.f32.xlu2 %v4708_v34  ;;  %5461 = vrot.lane.b32.xlu1 %v8972_v2, %s7173_s27  ;;  %v4714_v2 = vsel %vm4446_vm11, %v9591_v27, 0.0 }
 0xb5c   : > { %4712 = vadd.xlane.f32.xlu0 %v4711_v36 }
 0xb5d   : > { %v4671_v6 = vpop.xlane.xlu1 %4670 }
 0xb5e   : > { %6745 = vrcp.f32 %v4671_v6  ;;  %v4848_v53 = vpop.f32.mrf.mxu1 }
 0xb5f   : > { %v5512_v26 = vsel %vm3310_vm4, %v5511_v38, %v4848_v53  ;;  %v4890_v28 = vpop.f32.mrf.mxu3  ;;  %4715 = vadd.xlane.f32.xlu2 %v4714_v2  ;;  %6747 = vpow2.f32 %v4635_v50  ;;  %v9991_v53 = vld [vmem:[#allocation40_spill] sm:$0xff] }
 0xb60   : > { %v5513_v48 = vrot.slane %v4890_v28, 6 }
 0xb61   : > { %v4911_v56 = vpop.f32.mrf.mxu0 }
 0xb62   : > { %v5514_v3 = vsel %vm3313_vm7, %v5513_v48, %v5512_v26  ;;  %v5515_v63 = vrot.slane %v4911_v56, 5 }
 0xb64   : > { %v6746_v12 = vpop.eup %6745  ;;  %v5516_v0 = vsel %vm3316_vm9, %v5515_v63, %v5514_v3  ;;  %4724 = vadd.xlane.f32.xlu0 %v4723_v11  ;;  %v4689_v36 = vpop.xlane.xlu2 %4688  ;;  %v9995_v3 = vld [vmem:[#allocation37_spill] sm:$0xff] }
 0xb65   : > { %v4777_v43 = vmul.f32 %v6746_v12, %v9453_v45  ;;  %v4674_v8 = vpop.xlane.xlu1 %4673  ;;  %v9614_v51 = vpop.eup %6747  ;;  %v5320_v63 = vsel %vm9996_vm15, %v9995_v3, 0  ;;  %vm10010_vm15 = vmmov %vm9980_vm2 }
 0xb66   : > { %6749 = vrcp.f32 %v4674_v8  ;;  %v4850_v10 = vpop.f32.mrf.mxu1  ;;  %v4729_v32 = vsel %vm4446_vm11, %v9614_v51, 0.0  ;;  %vm9990_vm11 = vmmov %vm9980_vm2  ;;  %v9998_v8 = vld [vmem:[#allocation25_spill] sm:$0xff] }
 0xb67   : > { %v4809_v29 = vpack.c.bf16 %v4777_v43, %v4777_v43  ;;  %v4892_v42 = vpop.f32.mrf.mxu3  ;;  %4721 = vadd.xlane.f32.xlu2 %v4720_v18  ;;  %v5257_v61 = vsel %vm9990_vm11, %v9156_v58, 0  ;;  %v9999_v18 = vld [vmem:[#allocation38_spill] sm:$0xff]  ;;  %vm10007_vm11 = vmmov %vm9980_vm2 }
 0xb68   : > { %v4683_v62 = vpop.xlane.xlu0 %4682 }
 0xb69   : > { %6126 = vmatmul.msk.bf16.vlgmr.msra.gmra.mxu3 %vm838_vm1, %v4809_v29  ;;  %v4913_v40 = vpop.f32.mrf.mxu0  ;;  %6751 = vrcp.f32 %v4683_v62  ;;  %v5341_v29 = vsel %vm10000_vm6, %v9999_v18, 0  ;;  %vm10011_vm6 = vmmov %vm10003_vm13 }
 0xb6a   : > { %5224 = vmatpush.bf16.msra.mxu3 %v5215_v39  ;;  %v10001_v40 = vld [vmem:[#allocation35_spill] sm:$0xff] }
 0xb6c   : > { %v6750_v45 = vpop.eup %6749 }
 0xb6d   : > { %v4778_v52 = vmul.f32 %v6750_v45, %v9461_v13  ;;  %v4677_v7 = vpop.xlane.xlu1 %4676  ;;  %v5362_v45 = vsel %vm10002_vm12, %v10001_v40, 0  ;;  %vm10012_vm12 = vmmov %vm10004_vm14 }
 0xb6e   : > { %6753 = vrcp.f32 %v4677_v7  ;;  %v4932_v5 = vpop.f32.mrf.mxu1 }
 0xb6f   : > { %v4810_v25 = vpack.c.bf16 %v4778_v52, %v4778_v52  ;;  %v5517_v59 = vrot.slane %v4932_v5, 4  ;;  %4730 = vadd.xlane.f32.xlu2 %v4729_v32  ;;  %v6752_v47 = vpop.eup %6751 }
 0xb70   : > { %v4686_v22 = vpop.xlane.xlu0 %4685  ;;  %v4781_v55 = vmul.f32 %v6752_v47, %v9473_v9  ;;  %v5299_v9 = vsel %vm9992_vm3, %v9991_v53, 0  ;;  %vm10008_vm3 = vmmov %vm9980_vm2 }
 0xb71   : > { %v5518_v16 = vsel %vm3319_vm0, %v5517_v59, %v5516_v0  ;;  %6127 = vmatmul.msk.bf16.vlgmr.msra.gmra.mxu0 %vm838_vm1, %v4810_v25  ;;  %6755 = vrcp.f32 %v4686_v22 }
 0xb72   : > { %5245 = vmatpush.bf16.msra.mxu0 %v5236_v46  ;;  %v4813_v6 = vpack.c.bf16 %v4781_v55, %v4781_v55 }
 0xb74   : > { %v6754_v13 = vpop.eup %6753 }
 0xb75   : > { %v4779_v34 = vmul.f32 %v6754_v13, %v9477_v17  ;;  %v4680_v49 = vpop.xlane.xlu1 %4679 }
 0xb76   : > { %6757 = vrcp.f32 %v4680_v49  ;;  %v4934_v57 = vpop.f32.mrf.mxu1 }
 0xb77   : > { %v4811_v21 = vpack.c.bf16 %v4779_v34, %v4779_v34  ;;  %v6756_v38 = vpop.eup %6755  ;;  %6759 = vrcp.f32 %v4689_v36  ;;  %v10005_v57 = vld [vmem:[#allocation39_spill] sm:$0xff] }
 0xb78   : > { %5419 = vrot.lane.b32.xlu0 %v8986_v37, %s7173_s27  ;;  %v4782_v17 = vmul.f32 %v6756_v38, %v9480_v1  ;;  %v9993_v37 = vld [vmem:[#allocation24_spill] sm:$0xff]  ;;  %v4701_v43 = vpop.xlane.xlu0 %4700 }
 0xb79   : > { %6128 = vmatmul.msk.bf16.vlgmr.msrb.gmra.mxu1 %vm838_vm1, %v4811_v21  ;;  %6130 = vmatmul.msk.bf16.vlgmr.msrb.gmra.mxu3 %vm838_vm1, %v4813_v6  ;;  %v4692_v48 = vpop.xlane.xlu2 %4691  ;;  %v5278_v56 = vsel %vm9994_vm5, %v9993_v37, 0  ;;  %vm10009_vm5 = vmmov %vm9980_vm2 }
 0xb7a   : > { %5266 = vmatpush.bf16.msrb.mxu1 %v5257_v61  ;;  %5308 = vmatpush.bf16.msrb.mxu3 %v5299_v9  ;;  %v4814_v28 = vpack.c.bf16 %v4782_v17, %v4782_v17  ;;  %6761 = vrcp.f32 %v4692_v48 }
 0xb7b   : > { %6763 = vrcp.f32 %v4701_v43 }
 0xb7c   : > { %v6758_v2 = vpop.eup %6757 }
 0xb7d   : > { %v4780_v26 = vmul.f32 %v6758_v2, %v9488_v33  ;;  %v6760_v50 = vpop.eup %6759 }
 0xb7e   : > { %v4783_v33 = vmul.f32 %v6760_v50, %v9463_v35 }
 0xb7f   : > { %v4812_v58 = vpack.c.bf16 %v4780_v26, %v4780_v26 }
 0xb80   : > { %v4953_v12 = vpop.f32.mrf.mxu2  ;;  %v4815_v11 = vpack.c.bf16 %v4783_v33, %v4783_v33  ;;  %v6762_v10 = vpop.eup %6761 }
 0xb81   : > { %6129 = vmatmul.msk.bf16.vlgmr.msrb.gmra.mxu2 %vm838_vm1, %v4812_v58  ;;  %6131 = vmatmul.msk.bf16.vlgmr.msrb.gmra.mxu0 %vm838_vm1, %v4814_v28  ;;  %v5519_v1 = vrot.slane %v4953_v12, 3  ;;  %v4784_v62 = vmul.f32 %v6762_v10, %v9499_v41  ;;  %v6764_v35 = vpop.eup %6763 }
 0xb82   : > { %5287 = vmatpush.bf16.msrb.mxu2 %v5278_v56  ;;  %5329 = vmatpush.bf16.msrb.mxu0 %v5320_v63  ;;  %v4787_v25 = vmul.f32 %v6764_v35, %v9493_v23  ;;  %v5383_v23 = vsel %vm10006_vm8, %v10005_v57, 0  ;;  %vm10015_vm8 = vmmov %vm10012_vm12 }
 0xb83   : > { %v5520_v0 = vsel %vm9997_vm10, %v5519_v1, %v5518_v16  ;;  %v4816_v39 = vpack.c.bf16 %v4784_v62, %v4784_v62 }
 0xb84   : > { %v4819_v47 = vpack.c.bf16 %v4787_v25, %v4787_v25 }
 0xb87   : > { %5482 = vrot.lane.b32.xlu2 %v9998_v8, %s7173_s27 }
 0xb88   : > { %v4955_v42 = vpop.f32.mrf.mxu2 }
 0xb89   : > { %6132 = vmatmul.msk.bf16.vlgmr.msra.gmra.mxu1 %vm838_vm1, %v4815_v11 }
 0xb8a   : > { %5350 = vmatpush.bf16.msra.mxu1 %v5341_v29 }
 0xb90   : > { %v4974_v52 = vpop.f32.mrf.mxu3 }
 0xb91   : > { %6133 = vmatmul.msk.bf16.vlgmr.msra.gmra.mxu2 %vm838_vm1, %v4816_v39  ;;  %v5521_v7 = vrot.slane %v4974_v52, 2  ;;  %v4695_v5 = vpop.xlane.xlu0 %4694 }
 0xb92   : > { %5371 = vmatpush.bf16.msra.mxu2 %v5362_v45  ;;  %v4995_v32 = vpop.f32.mrf.mxu0  ;;  %6765 = vrcp.f32 %v4695_v5 }
 0xb93   : > { %v5523_v59 = vrot.slane %v4995_v32, 1  ;;  %v5522_v22 = vsel %vm10003_vm13, %v5521_v7, %v5520_v0  ;;  %vm10013_vm13 = vmmov %vm9997_vm10 }
 0xb95   : > { %v9655_v41 = vsel %vm10004_vm14, %v5523_v59, %v5522_v22  ;;  %vm10014_vm14 = vmmov %vm10011_vm6 }
 0xb98   : > { %v6766_v46 = vpop.eup %6765  ;;  %v4976_v16 = vpop.f32.mrf.mxu3 }
 0xb99   : > { %6136 = vmatmul.msk.bf16.vlgmr.msrb.gmra.mxu1 %vm838_vm1, %v4819_v47  ;;  %v4785_v13 = vmul.f32 %v6766_v46, %v9521_v20  ;;  %v4707_v49 = vpop.xlane.xlu1 %4706  ;;  %v5441_v20 = vpop.permute.xlu2 %5440 }
 0xb9a   : > { %v4997_v55 = vpop.f32.mrf.mxu0  ;;  %6767 = vrcp.f32 %v4707_v49  ;;  %v5446_v10 = vsel %vm10008_vm3, %v5441_v20, 0 }
 0xb9b   : > { %v4817_v34 = vpack.c.bf16 %v4785_v13, %v4785_v13 }
 0xb9d   : > { %6134 = vmatmul.msk.bf16.vlgmr.msra.gmra.mxu3 %vm838_vm1, %v4817_v34 }
 0xb9e   : > { %5392 = vmatpush.bf16.msra.mxu3 %v5383_v23 }
 0xba0   : > { %v6768_v36 = vpop.eup %6767 }
 0xba1   : > { %v4789_v21 = vmul.f32 %v6768_v36, %v9532_v4  ;;  %v4719_v6 = vpop.xlane.xlu1 %4718 }
 0xba2   : > { %6769 = vrcp.f32 %v4719_v6 }
 0xba3   : > { %v4821_v38 = vpack.c.bf16 %v4789_v21, %v4789_v21 }
 0xba4   : > { %v5399_v63 = vpop.permute.xlu0 %5398 }
 0xba5   : > { %v5404_v12 = vsel %vm9980_vm2, %v5399_v63, 0  ;;  %vm10016_vm2 = vmmov %vm9997_vm10 }
 0xba8   : > { %v6770_v53 = vpop.eup %6769 }
 0xba9   : > { %v4793_v9 = vmul.f32 %v6770_v53, %v9537_v14  ;;  %v4728_v17 = vpop.xlane.xlu1 %4727 }
 0xbab   : > { %v4825_v28 = vpack.c.bf16 %v4793_v9, %v4793_v9 }
 0xbad   : > { %6138 = vmatmul.msk.bf16.vlgmr.msrb.gmra.mxu3 %vm838_vm1, %v4821_v38 }
 0xbb1   : > { %v5016_v61 = vpop.f32.mrf.mxu1  ;;  %v4734_v50 = vpop.xlane.xlu1 %4733 }
 0xbb9   : > { %v5018_v2 = vpop.f32.mrf.mxu1 }
 0xbba   : > { %v4698_v26 = vpop.xlane.xlu2 %4697 }
 0xbbb   : > { %6771 = vrcp.f32 %v4698_v26 }
 0xbbd   : > { %6142 = vmatmul.msk.bf16.vlgmr.msra.gmra.mxu3 %vm838_vm1, %v4825_v28 }
 0xbbf   : > { %v5037_v58 = vpop.f32.mrf.mxu2 }
 0xbc0   : > { %v5534_v48 = vrot.slane %v5037_v58, 7 }
 0xbc1   : > { %v6772_v4 = vpop.eup %6771 }
 0xbc2   : > { %v4786_v37 = vmul.f32 %v6772_v4, %v9566_v24  ;;  %v9668_v56 = vsel %vm3310_vm4, %v5534_v48, %v5016_v61  ;;  %v4704_v3 = vpop.xlane.xlu2 %4703 }
 0xbc3   : > { %6773 = vrcp.f32 %v4704_v3 }
 0xbc4   : > { %v4818_v14 = vpack.c.bf16 %v4786_v37, %v4786_v37 }
 0xbc6   : > { %6135 = vmatmul.msk.bf16.vlgmr.msra.gmra.mxu0 %vm838_vm1, %v4818_v14 }
 0xbc7   : > { %v5039_v1 = vpop.f32.mrf.mxu2  ;;  %5413 = vmatpush.bf16.msra.mxu0 %v5404_v12 }
 0xbc9   : > { %v6774_v33 = vpop.eup %6773  ;;  %v5462_v11 = vpop.permute.xlu1 %5461 }
 0xbca   : > { %v4788_v0 = vmul.f32 %v6774_v33, %v9571_v54  ;;  %v4710_v43 = vpop.xlane.xlu2 %4709  ;;  %v5467_v24 = vsel %vm10007_vm11, %v5462_v11, 0  ;;  %vm10017_vm11 = vmmov %vm10011_vm6 }
 0xbcb   : > { %6775 = vrcp.f32 %v4710_v43  ;;  %5476 = vmatpush.bf16.msrb.mxu3 %v5467_v24 }
 0xbcc   : > { %v4820_v8 = vpack.c.bf16 %v4788_v0, %v4788_v0 }
 0xbce   : > { %6137 = vmatmul.msk.bf16.vlgmr.msrb.gmra.mxu2 %vm838_vm1, %v4820_v8 }
 0xbcf   : > { %5455 = vmatpush.bf16.msrb.mxu2 %v5446_v10  ;;  %v4713_v18 = vpop.xlane.xlu0 %4712 }
 0xbd0   : > { %6777 = vrcp.f32 %v4713_v18 }
 0xbd1   : > { %v6776_v29 = vpop.eup %6775 }
 0xbd2   : > { %v4790_v42 = vmul.f32 %v6776_v29, %v9579_v60  ;;  %v4716_v62 = vpop.xlane.xlu2 %4715 }
 0xbd3   : > { %6779 = vrcp.f32 %v4716_v62 }
 0xbd4   : > { %v4822_v54 = vpack.c.bf16 %v4790_v42, %v4790_v42 }
 0xbd6   : > { %6139 = vmatmul.msk.bf16.vlgmr.msrb.gmra.mxu0 %vm838_vm1, %v4822_v54  ;;  %v6778_v39 = vpop.eup %6777 }
 0xbd7   : > { %v4791_v35 = vmul.f32 %v6778_v39, %v9589_v30  ;;  %v4725_v32 = vpop.xlane.xlu0 %4724 }
 0xbd9   : > { %v6780_v40 = vpop.eup %6779  ;;  %v4823_v45 = vpack.c.bf16 %v4791_v35, %v4791_v35 }
 0xbda   : > { %v4792_v52 = vmul.f32 %v6780_v40, %v9591_v27  ;;  %v4722_v7 = vpop.xlane.xlu2 %4721 }
 0xbdb   : > { %6781 = vrcp.f32 %v4722_v7  ;;  %6140 = vmatmul.msk.bf16.vlgmr.msra.gmra.mxu1 %vm838_vm1, %v4823_v45 }
 0xbdc   : > { %v4824_v5 = vpack.c.bf16 %v4792_v52, %v4792_v52  ;;  %6783 = vrcp.f32 %v4728_v17 }
 0xbdd   : > { %6785 = vrcp.f32 %v4725_v32 }
 0xbde   : > { %6141 = vmatmul.msk.bf16.vlgmr.msra.gmra.mxu2 %vm838_vm1, %v4824_v5 }
 0xbe1   : > { %v6782_v60 = vpop.eup %6781 }
 0xbe2   : > { %v4794_v25 = vmul.f32 %v6782_v60, %v9603_v31  ;;  %v4731_v59 = vpop.xlane.xlu2 %4730  ;;  %v6784_v22 = vpop.eup %6783 }
 0xbe3   : > { %6787 = vrcp.f32 %v4731_v59  ;;  %v6786_v27 = vpop.eup %6785  ;;  %v4796_v47 = vmul.f32 %v6784_v22, %v9547_v44 }
 0xbe4   : > { %v4826_v30 = vpack.c.bf16 %v4794_v25, %v4794_v25  ;;  %6789 = vrcp.f32 %v4734_v50  ;;  %v4795_v16 = vmul.f32 %v6786_v27, %v9600_v19 }
 0xbe5   : > { %v4828_v31 = vpack.c.bf16 %v4796_v47, %v4796_v47 }
 0xbe6   : > { %6143 = vmatmul.msk.bf16.vlgmr.msra.gmra.mxu0 %vm838_vm1, %v4826_v30  ;;  %v4827_v38 = vpack.c.bf16 %v4795_v16, %v4795_v16 }
 0xbe9   : > { %v6788_v46 = vpop.eup %6787 }
 0xbea   : > { %v4797_v13 = vmul.f32 %v6788_v46, %v9614_v51  ;;  %v5483_v55 = vpop.permute.xlu2 %5482  ;;  %v5420_v49 = vpop.permute.xlu0 %5419 }
 0xbeb   : > { %v5488_v34 = vsel %vm10009_vm5, %v5483_v55, 0  ;;  %v5425_v23 = vsel %vm10010_vm15, %v5420_v49, 0  ;;  %v6790_v21 = vpop.eup %6789 }
 0xbec   : > { %v4829_v57 = vpack.c.bf16 %v4797_v13, %v4797_v13  ;;  %v5058_v36 = vpop.f32.mrf.mxu3  ;;  %5497 = vmatpush.bf16.msrb.mxu0 %v5488_v34  ;;  %5434 = vmatpush.bf16.msrb.mxu1 %v5425_v23  ;;  %v4798_v44 = vmul.f32 %v6790_v21, %v9557_v15 }
 0xbed   : > { %v5536_v9 = vrot.slane %v5058_v36, 6 }
 0xbee   : > { %v5079_v6 = vpop.f32.mrf.mxu0  ;;  %6145 = vmatmul.msk.bf16.vlgmr.msrb.gmra.mxu2 %vm838_vm1, %v4828_v31  ;;  %6146 = vmatmul.msk.bf16.vlgmr.msrb.gmra.mxu3 %vm838_vm1, %v4829_v57  ;;  %v4830_v19 = vpack.c.bf16 %v4798_v44, %v4798_v44 }
 0xbef   : > { %6144 = vmatmul.msk.bf16.vlgmr.msrb.gmra.mxu1 %vm838_vm1, %v4827_v38  ;;  %v5538_v26 = vrot.slane %v5079_v6, 5  ;;  %v5537_v28 = vsel %vm3313_vm7, %v5536_v9, %v9668_v56 }
 0xbf1   : > { %v5539_v15 = vsel %vm3316_vm9, %v5538_v26, %v5537_v28 }
 0xbf4   : > { %v5060_v51 = vpop.f32.mrf.mxu3 }
 0xbf6   : > { %v5081_v61 = vpop.f32.mrf.mxu0  ;;  %v5100_v20 = vpop.f32.mrf.mxu1  ;;  %6147 = vmatmul.msk.bf16.vlgmr.msrb.gmra.mxu0 %vm838_vm1, %v4830_v19 }
 0xbf7   : > { %v5540_v58 = vrot.slane %v5100_v20, 4 }
 0xbf9   : > { %v5541_v37 = vsel %vm3319_vm0, %v5540_v58, %v5539_v15 }
 0xbfc   : > { %v5142_v53 = vpop.f32.mrf.mxu3 }
 0xbfd   : > { %v5544_v3 = vrot.slane %v5142_v53, 2 }
 0xbfe   : > { %v5102_v17 = vpop.f32.mrf.mxu1  ;;  %v5163_v2 = vpop.f32.mrf.mxu0 }
 0xbff   : > { %v5546_v12 = vrot.slane %v5163_v2, 1 }
 0xc04   : > { %v5121_v48 = vpop.f32.mrf.mxu2  ;;  %v5144_v50 = vpop.f32.mrf.mxu3 }
 0xc05   : > { %v5542_v4 = vrot.slane %v5121_v48, 3 }
 0xc06   : > { %v5165_v63 = vpop.f32.mrf.mxu0  ;;  %v5184_v14 = vpop.f32.mrf.mxu1 }
 0xc07   : > { %v5543_v1 = vsel %vm9997_vm10, %v5542_v4, %v5541_v37 }
 0xc08   : > { %v5545_v33 = vsel %vm10011_vm6, %v5544_v3, %v5543_v1  ;;  %v6191_v1 = vld [vmem:[%s9779_s9 + $0x8] sm:$0xff] }
 0xc09   : > { %v5547_v0 = vsel %vm10012_vm12, %v5546_v12, %v5545_v33  ;;  %5627 = vmatpush.bf16.msra.mxu1 %v6191_v1  ;;  %v6190_v33 = vld [vmem:[%s9779_s9] sm:$0xff] }
 0xc0a   : > { %5548 = vrot.lane.b32.xlu0 %v5547_v0, %s7175_s16  ;;  %s5760_s16 = scalar_lea.hbm %s10027_s14, %s8745_s8 }
 0xc0b   : > { %s5764_s5 = sshll.u32 %s5760_s16, 4  ;;  %s5765_s5 = int_to_ptr.hbm [resolvable:$true] %s5764_s5 }
 0xc0c   : > { %v5123_v56 = vpop.f32.mrf.mxu2  ;;  %s7087_s12 = sshra.s32 %s5765_s5, 4  ;;  %s7088_s12 = int_to_ptr.hbm [resolvable:$true] %s7087_s12 }
 0xc0d   : > { %5628 = vmatpush.bf16.msra.mxu1 %v6190_v33  ;;  %s7089_s13 = scalar_lea.hbm %s7088_s12, 8  ;;  %p7094_p8 = scmp.lt.s32.totalorder %s7088_s12, %s10027_s14 }
 0xc0e   : > { %v5186_v11 = vpop.f32.mrf.mxu1  ;;  %p7090_p5 = scmp.ne.s32.totalorder %s7088_s12, %s7089_s13  ;;  %p7095_p9 = scmp.lt.s32.totalorder %s7093_s4, %s7089_s13 }
 0xc10   : > { %p7091_p12 = pnand %p7090_p5, %p7375_p4  ;;  %p7096_p10 = por %p7095_p9, %p7094_p8 }
 0xc12   : > { %p7092_p7 = pneg %p7091_p12 }
 0xc14   : > { %v5205_v43 = vpop.f32.mrf.mxu2  ;;  %p7097_p13 = pnand %p7096_p10, %p7092_p7 }
 0xc15   : > { %v5559_v40 = vrot.slane %v5205_v43, 7 }
 0xc16   : > { %v5268_v24 = vpop.f32.mrf.mxu1 }
 0xc17   : > { %v5560_v5 = vsel %vm3310_vm4, %v5559_v40, %v5184_v14  ;;  %v5565_v25 = vrot.slane %v5268_v24, 4 }
 0xc1c   : > { %v5207_v8 = vpop.f32.mrf.mxu2 }
 0xc1e   : > { %v5270_v10 = vpop.f32.mrf.mxu1 }
 0xc20   : > { %v5226_v18 = vpop.f32.mrf.mxu3 }
 0xc21   : > { %v5561_v45 = vrot.slane %v5226_v18, 6  ;;  %v6802_v18 = vld [vmem:[#allocation5] sm:$0xff] }
 0xc23   : > { %v5562_v32 = vsel %vm3313_vm7, %v5561_v45, %v5560_v5 }
 0xc28   : > { %v5228_v29 = vpop.f32.mrf.mxu3 }
 0xc29   : > { %v5605_v29 = vperm.slane %v6802_v18, 7 }
 0xc30   : > { %v5310_v42 = vpop.f32.mrf.mxu3 }
 0xc31   : > { %v5569_v22 = vrot.slane %v5310_v42, 2 }
 0xc38   : > { %v5312_v62 = vpop.f32.mrf.mxu3 }
 0xc39   : > { %v5657_v62 = vld [vmem:[#allocation1] sm:$0xff] }
 0xc40   : > { %v5394_v54 = vpop.f32.mrf.mxu3 }
 0xc41   : > { %v5586_v19 = vrot.slane %v5394_v54, 6 }
 0xc43   : > { %v5247_v39 = vpop.f32.mrf.mxu0 }
 0xc44   : > { %v5563_v7 = vrot.slane %v5247_v39, 5 }
 0xc46   : > { %v5564_v60 = vsel %vm3316_vm9, %v5563_v7, %v5562_v32 }
 0xc47   : > { %v5566_v27 = vsel %vm3319_vm0, %v5565_v25, %v5564_v60  ;;  %v6193_v60 = vld [vmem:[#allocation14 + $0x8] sm:$0xff]  ;;  %v6192_v25 = vld [vmem:[#allocation14] sm:$0xff] }
 0xc48   : > { %v5396_v35 = vpop.f32.mrf.mxu3  ;;  %5709 = vmatpush.bf16.msra.mxu2 %v6193_v60 }
 0xc4b   : > { %v5249_v52 = vpop.f32.mrf.mxu0 }
 0xc4c   : > { %5710 = vmatpush.bf16.msra.mxu2 %v6192_v25 }
 0xc51   : > { %v5289_v59 = vpop.f32.mrf.mxu2 }
 0xc52   : > { %v5567_v30 = vrot.slane %v5289_v59, 3 }
 0xc53   : > { %v5331_v47 = vpop.f32.mrf.mxu0 }
 0xc54   : > { %v5568_v46 = vsel %vm10013_vm13, %v5567_v30, %v5566_v27  ;;  %v5571_v16 = vrot.slane %v5331_v47, 1 }
 0xc55   : > { %v5570_v13 = vsel %vm10014_vm14, %v5569_v22, %v5568_v46 }
 0xc56   : > { %v5572_v55 = vsel %vm10015_vm8, %v5571_v16, %v5570_v13  ;;  %v621_v13 = vld [vmem:[#allocation5 + $0x8] sm:$0xf] }
 0xc57   : > { %5573 = vrot.lane.b32.xlu1 %v5572_v55, %s7176_s3  ;;  %s592_s3 = scalar_lea.vmem [#allocation17], %s5956_s15 }
 0xc58   : > { %v5352_v34 = vpop.f32.mrf.mxu1 }
 0xc59   : > { %v5291_v49 = vpop.f32.mrf.mxu2 }
 0xc5a   : > { %v5682_v49 = vperm.slane %v621_v13, 0 }
 0xc5b   : > { %v5333_v31 = vpop.f32.mrf.mxu0 }
 0xc60   : > { %v5354_v57 = vpop.f32.mrf.mxu1 }
 0xc61   : > { %v5373_v23 = vpop.f32.mrf.mxu2  ;;  %v5684_v57 = vperm.slane %v621_v13, 1 }
 0xc62   : > { %v5584_v21 = vrot.slane %v5373_v23, 7 }
 0xc63   : > { %v5415_v36 = vpop.f32.mrf.mxu0 }
 0xc64   : > { %v5585_v44 = vsel %vm3310_vm4, %v5584_v21, %v5352_v34  ;;  %v5588_v61 = vrot.slane %v5415_v36, 5  ;;  %vm10018_vm4 = vmmov %vm10015_vm8 }
 0xc65   : > { %v5587_v20 = vsel %vm3313_vm7, %v5586_v19, %v5585_v44  ;;  %vm10019_vm7 = vcmask 130048   ;;  %v6194_v44 = vld [vmem:[#allocation16] sm:$0xff]  ;;  %v5687_v19 = vperm.slane %v621_v13, 2 }
 0xc66   : > { %v5589_v2 = vsel %vm3316_vm9, %v5588_v61, %v5587_v20  ;;  %vm10020_vm9 = vcmask 195584  }
 0xc69   : > { %v5375_v38 = vpop.f32.mrf.mxu2 }
 0xc6b   : > { %v5417_v6 = vpop.f32.mrf.mxu0 }
 0xc6c   : > { %v5436_v51 = vpop.f32.mrf.mxu1  ;;  %v6195_v6 = vld [vmem:[#allocation16 + $0x8] sm:$0xff] }
 0xc6d   : > { %v5590_v53 = vrot.slane %v5436_v51, 4  ;;  %5740 = vmatpush.bf16.msra.mxu3 %v6195_v6 }
 0xc6f   : > { %v5591_v58 = vsel %vm3319_vm0, %v5590_v53, %v5589_v2  ;;  %vm10021_vm0 = vcmask 261120  }
 0xc70   : > { %vm10022_vm3 = vmmov %vm10021_vm0 }
 0xc71   : > { %v5457_v9 = vpop.f32.mrf.mxu2  ;;  %v5478_v17 = vpop.f32.mrf.mxu3  ;;  %vm10025_vm6 = vmmov %vm10021_vm0  ;;  %5741 = vmatpush.bf16.msra.mxu3 %v6194_v44 }
 0xc72   : > { %v5592_v26 = vrot.slane %v5457_v9, 3  ;;  %v5594_v28 = vrot.slane %v5478_v17, 2  ;;  %vm10026_vm12 = vmmov %vm10021_vm0  ;;  %v5718_v17 = vperm.slane %v621_v13, 3 }
 0xc73   : > { %v5499_v48 = vpop.f32.mrf.mxu0  ;;  %vm10028_vm13 = vmmov %vm10021_vm0 }
 0xc74   : > { %v5593_v15 = vsel %vm10016_vm2, %v5592_v26, %v5591_v58  ;;  %v5596_v4 = vrot.slane %v5499_v48, 1  ;;  %v5438_v37 = vpop.f32.mrf.mxu1 }
 0xc75   : > { %v5595_v50 = vsel %vm10017_vm11, %v5594_v28, %v5593_v15 }
 0xc76   : > { %v5597_v3 = vsel %vm10018_vm4, %v5596_v4, %v5595_v50 }
 0xc77   : > { %5598 = vrot.lane.b32.xlu2 %v5597_v3, %s7177_s7  ;;  %s5762_s7 = sshll.u32 %s592_s3, 4  ;;  %s5763_s7 = int_to_ptr.vmem [resolvable:$true] %s5762_s7 }
 0xc79   : > { %v5459_v63 = vpop.f32.mrf.mxu2  ;;  %v5480_v14 = vpop.f32.mrf.mxu3 }
 0xc7b   : > { %v5501_v12 = vpop.f32.mrf.mxu0 }
 0xc7c   : > { %v5549_v0 = vpop.permute.xlu0 %5548 }
 0xc7d   : > { %v5601_v11 = vsel %vm838_vm1, %v9655_v41, %v5549_v0  ;;  %v10023_v41 = vld [vmem:[#allocation26_spill] sm:$0xff]  ;;  %vm10024_vm1 = vmmov %vm10021_vm0 }
 0xcc9   : > { %v5574_v56 = vpop.permute.xlu1 %5573 }
 0xcca   : > { %v5602_v43 = vsel %vm10019_vm7, %v5601_v11, %v5574_v56 }
 0xcd1   : > { %v5599_v24 = vpop.permute.xlu2 %5598 }
 0xcd2   : > { %v5603_v8 = vsel %vm10020_vm9, %v5602_v43, %v5599_v24 }
 0xcd3   : > { %v5604_v10 = vpack.c.bf16 %v5603_v8, %v5603_v8 }
 0xcd5   : > { %6156 = vmatmul.msk.bf16.vlgmr.msra.gmra.mxu1 %vm10021_vm0, %v5604_v10 }
 0xd52   : > { %v5630_v42 = vpop.f32.mrf.mxu1 }
 0xd53   : > { %v5631_v54 = vadd.f32 %v5630_v42, %v5605_v29 }
 0xd55   : > { %v5659_v39 = vadd.f32 %v5657_v62, %v5631_v54 }
 0xd57   : > { %v5660_v35 = vsel %vm10022_vm3, %v5659_v39, 0.0 }
 0xd58   : > { %5661 = vadd.xlane.f32.xlu0 %v5660_v35 }
 0xd5a   : > { %v5632_v40 = vpop.f32.mrf.mxu1 }
 0xdcb   : > { %v5662_v45 = vpop.xlane.xlu0 %5661 }
 0xdcc   : > { %v5663_v52 = vmul.f32 %v5662_v45, %v10023_v41 }
 0xdce   : > { %v5664_v7 = vsub.f32 %v5659_v39, %v5663_v52 }
 0xdd0   : > { %v5665_v5 = vmul.f32 %v5664_v7, %v5664_v7 }
 0xdd2   : > { %v5666_v32 = vsel %vm10024_vm1, %v5665_v5, 0.0 }
 0xdd3   : > { %5667 = vadd.xlane.f32.xlu1 %v5666_v32 }
 0xe46   : > { %v5668_v59 = vpop.xlane.xlu1 %5667 }
 0xe47   : > { %v5669_v30 = vmul.f32 %v5668_v59, %v10023_v41 }
 0xe49   : > { %v5670_v22 = vadd.f32 1e-06, %v5669_v30 }
 0xe4b   : > { %6791 = vrsqrt.f32 %v5670_v22  ;;  %vm5677_vm15 = vweird.f32 %v5670_v22 }
 0xe51   : > { %v6792_v27 = vpop.eup %6791 }
 0xe52   : > { %v5672_v47 = vmul.f32 %v6792_v27, %v5670_v22  ;;  %vm5678_vm5 = vweird.f32 %v6792_v27 }
 0xe53   : > { %vm5679_vm10 = vmor %vm5677_vm15, %vm5678_vm5 }
 0xe54   : > { %v5673_v46 = vmul.f32 %v6792_v27, %v5672_v47 }
 0xe56   : > { %v5674_v16 = vmul.f32 0.5, %v5673_v46 }
 0xe58   : > { %v5675_v55 = vsub.f32 1.5, %v5674_v16 }
 0xe5a   : > { %v5676_v34 = vmul.f32 %v6792_v27, %v5675_v55 }
 0xe5c   : > { %v5680_v31 = vsel %vm5679_vm10, %v6792_v27, %v5676_v34 }
 0xe5d   : > { %v5681_v23 = vmul.f32 %v5680_v31, %v5664_v7 }
 0xe5f   : > { %v5683_v36 = vmul.f32 %v5682_v49, %v5681_v23 }
 0xe61   : > { %v5685_v21 = vadd.f32 %v5684_v57, %v5683_v36 }
 0xe63   : > { %v5686_v38 = vpack.c.bf16 %v5685_v21, %v5685_v21 }
 0xe65   : > { %6165 = vmatmul.msk.bf16.vlgmr.msra.gmra.mxu2 %vm10025_vm6, %v5686_v38 }
 0xee8   : > { %v5712_v51 = vpop.f32.mrf.mxu2 }
 0xee9   : > { %v5713_v61 = vadd.f32 %v5712_v51, %v5687_v19 }
 0xeeb   : > { %v5716_v20 = vmax.f32 %v5713_v61, 0.0 }
 0xeed   : > { %v5717_v53 = vpack.c.bf16 %v5716_v20, %v5716_v20 }
 0xeef   : > { %6174 = vmatmul.msk.bf16.vlgmr.msra.gmra.mxu3 %vm10026_vm12, %v5717_v53 }
 0xef0   : > { %v5714_v9 = vpop.f32.mrf.mxu2 }
 0xf72   : > { %v5743_v2 = vpop.f32.mrf.mxu3 }
 0xf73   : > { %v5744_v26 = vadd.f32 %v5743_v2, %v5718_v17 }
 0xf75   : > { %v5747_v28 = vadd.f32 %v5744_v26, %v5685_v21 }
 0xf77   : > { %5748 = vst.msk [vmem:[%s592_s3] sm:$0xff] %vm10028_vm13, %v5747_v28 }
 0xf78   : > { %7100 = shalt.err (!%p7097_p13)
}
 0xf79   : > { %6230 = dma.vmem_to_hbm [thread:$0]  (%p7375_p4), %s5763_s7, 128, %s5765_s5, %s5750_s18  }
 0xf7a   : > { %v5745_v58 = vpop.f32.mrf.mxu3 }
 0xf7b PF: > { %s5776_s20 = sand.u32 1, %s7143_s21   ;;  %p10029_p11 = scmp.ge.s32.totalorder %s7155_s24, 2 }
 0xf7c   : > { %s5777_s15 = scalar_lea.sflag [#allocation4], %s5776_s20 }
 0xf7d   : > { %p6262_p0 = pnand %p10029_p11, %p7379_p6 }
 0xf7f   : > { %p6263_p2 = pneg %p6262_p0 }
 0xf81   : > { %7138 = dma.done.wait (%p6263_p2), %s5777_s15, 128  }
 0xf82   : > { %7140 = vsyncadd (%p6263_p2), %s5777_s15, 4294967168  ;;  %p29_p1 = scmp.ge.s32.totalorder %s7349_s19, 4   ;;  %s10030_s21 = smov %s7147_s22 }
 0xf83   : > { %s10031_s22 = smov %s7151_s23  ;;  %s10032_s23 = smov %s7360_s26 }
 0xf84   : > { %s10033_s24 = smov %s7349_s19  ;;  %31 = sbr.rel (!%p29_p1) target bundleno = 17 (0x11), region = 158 }
 0xf89   :  { %5783 = vsyncpa [#allocation3], 1 }
 0xf8a   :  { %5785 = vsyncpa [#allocation3 + $0x1], 1 }
 0xf8b   :  { %5786 = vsyncpa [#allocation6], 1 }
 0xf8c   :  { %5787 = vsyncpa [#allocation9], 1 }
 0xf8d   :  { %5788 = vsyncpa [#allocation12], 1 }
 0xf8e   :  { %5789 = vsyncpa [#allocation15], 1 }
 0xf8f   :  { %5790 = vsyncpa [#allocation4], 1 }
 0xf90   :  { %5792 = vsyncpa [#allocation4 + $0x1], 1 }

</bundles_post_ra>
